<compile_context>
chip_gen: v7x
topology: tpu7x:2x2x1
jax: 0.10.0
libtpu: 0.0.40
codegen_flags: <defaults>
</compile_context>

<pallas_src>
import functools

import jax
import jax.numpy as jnp
from jax.experimental import pallas as pl
from jax.experimental.pallas import tpu as pltpu

# ----------------------------- model hyper-parameters -----------------------------
VOCAB_SIZE = 100
VOCAB_PAD = 128      # embedding table padded to a lane-friendly row count
HIDDEN = 32          # d_model (must be divisible by NHEAD)
NUM_LABELS = 3
MAX_LEN = 8
NHEAD = 8            # nn.TransformerEncoderLayer(nhead=8)
HEAD_DIM = HIDDEN // NHEAD
FFN_DIM = 2048       # PyTorch default dim_feedforward
NUM_LAYERS = 6
LN_EPS = 1e-5


def _layer_norm(x, w, b):
    mu = jnp.mean(x, axis=-1, keepdims=True)
    xc = x - mu
    var = jnp.mean(xc * xc, axis=-1, keepdims=True)
    return xc * jax.lax.rsqrt(var + LN_EPS) * w + b


# ----------------------------- fused Pallas kernel -----------------------------
def fused_forward_kernel(ids_ref, emb_ref, hm_ref, hmt_ref, pool_ref,
                         wqkv_ref, bqkv_ref, wo_ref, bo_ref,
                         ln1w_ref, ln1b_ref, w1_ref, b1_ref, w2_ref, b2_ref,
                         ln2w_ref, ln2b_ref, fcw_ref, fcb_ref,
                         out_ref, *, B, L, E, NH):
    S, N = B, L                      # attention seq axis = batch, attention batch = seq
    BN = B * L

    # ---- embedding lookup as one-hot @ table (bf16 MXU operands, f32 accumulate) ----
    ids = ids_ref[...]                                                    # (BN, 1) i32
    vocab = jax.lax.broadcasted_iota(jnp.int32, (BN, VOCAB_PAD), 1)
    onehot = (vocab == ids).astype(jnp.bfloat16)                          # (BN, VP)
    x = jnp.dot(onehot, emb_ref[...], preferred_element_type=jnp.float32) # (BN, E) f32

    hm = hm_ref[...]                                                      # (E, NH) bf16
    hm_t = hmt_ref[...]                                                   # (NH, E) bf16

    # ---- 6 encoder layers, fully unrolled; all weights already resident in VMEM ----
    for li in range(NUM_LAYERS):
        wqkv = wqkv_ref[li]                      # (E, 3E) bf16, Q scale folded in
        bqkv = bqkv_ref[pl.ds(li, 1), :]         # (1, 3E) f32
        wo = wo_ref[li]                          # (E, E) bf16
        bo = bo_ref[pl.ds(li, 1), :]             # (1, E)
        ln1w = ln1w_ref[pl.ds(li, 1), :]
        ln1b = ln1b_ref[pl.ds(li, 1), :]
        w1 = w1_ref[li]                          # (E, FFN) bf16
        b1 = b1_ref[pl.ds(li, 1), :]             # (1, FFN)
        w2 = w2_ref[li]                          # (E, FFN) bf16 = linear2.weight (lane-dense)
        b2 = b2_ref[pl.ds(li, 1), :]             # (1, E)
        ln2w = ln2w_ref[pl.ds(li, 1), :]
        ln2b = ln2b_ref[pl.ds(li, 1), :]

        # ---------------- self-attention ----------------
        qkv = jnp.dot(x.astype(jnp.bfloat16), wqkv,
                      preferred_element_type=jnp.float32) + bqkv          # (BN, 3E)
        q = qkv[:, :E]
        k = qkv[:, E:2 * E]
        v = qkv[:, 2 * E:3 * E]

        q_blk = [q[s * N:(s + 1) * N, :] for s in range(S)]
        k_blk = [k[t * N:(t + 1) * N, :] for t in range(S)]
        v_blk = [v[t * N:(t + 1) * N, :] for t in range(S)]

        # stack all (s, t) pairs -> ONE score matmul + ONE expand matmul per layer
        q_rep = jnp.concatenate([q_blk[s] for s in range(S) for _ in range(S)], axis=0)
        k_rep = jnp.concatenate(k_blk * S, axis=0)                        # (S*S*N, E)
        v_rep = jnp.concatenate(v_blk * S, axis=0)

        prod = (q_rep * k_rep).astype(jnp.bfloat16)                       # (S*S*N, E)
        scores = jnp.dot(prod, hm, preferred_element_type=jnp.float32)    # (S*S*N, NH)

        w_blocks = []
        for s in range(S):
            sc = [scores[(s * S + t) * N:(s * S + t + 1) * N, :] for t in range(S)]
            m = sc[0]
            for t in range(1, S):
                m = jnp.maximum(m, sc[t])
            exps = [jnp.exp(b_ - m) for b_ in sc]
            denom = exps[0]
            for t in range(1, S):
                denom = denom + exps[t]
            inv = pl.reciprocal(denom, approx=True)                       # EUP slot
            w_blocks.extend([e * inv for e in exps])
        w_all = jnp.concatenate(w_blocks, axis=0).astype(jnp.bfloat16)    # (S*S*N, NH)

        expand = jnp.dot(w_all, hm_t, preferred_element_type=jnp.float32) # (S*S*N, E)
        weighted = expand * v_rep
        ctx_blocks = []
        for s in range(S):
            acc = weighted[(s * S) * N:(s * S + 1) * N, :]
            for t in range(1, S):
                acc = acc + weighted[(s * S + t) * N:(s * S + t + 1) * N, :]
            ctx_blocks.append(acc)
        attn = jnp.concatenate(ctx_blocks, axis=0)                        # (BN, E)

        attn = jnp.dot(attn.astype(jnp.bfloat16), wo,
                       preferred_element_type=jnp.float32) + bo
        x1 = _layer_norm(x + attn, ln1w, ln1b)

        # ---------------- feed-forward (relu) + residual + LayerNorm2 ----------------
        h1 = jnp.dot(x1.astype(jnp.bfloat16), w1,
                     preferred_element_type=jnp.float32) + b1             # (BN, FFN)
        h1 = jnp.maximum(h1, 0.0)
        # contract against un-transposed linear2.weight (E, FFN): h1 @ w2.T
        h2 = jax.lax.dot_general(h1.astype(jnp.bfloat16), w2,
                                 dimension_numbers=(((1,), (1,)), ((), ())),
                                 preferred_element_type=jnp.float32) + b2 # (BN, E)
        x = _layer_norm(x1 + h2, ln2w, ln2b)

    # ---- epilogue: mean over seq (dim=1) then fc ----
    pooled = jnp.dot(pool_ref[...], x.astype(jnp.bfloat16),
                     preferred_element_type=jnp.float32)                  # (B, E)
    out_ref[...] = jnp.dot(pooled.astype(jnp.bfloat16), fcw_ref[...],
                           preferred_element_type=jnp.float32) + fcb_ref[...]


# ----------------------------- wrapper -----------------------------
def transformer_classifier_forward(input_ids, attention_mask, params):
    # attention_mask is accepted but unused, exactly as in the PyTorch forward.
    del attention_mask
    B, L = input_ids.shape
    E = HIDDEN
    BN = B * L
    ids = input_ids.reshape(BN, 1).astype(jnp.int32)

    # head-sum / head-expand masks and mean-pool matrix (exact in bf16)
    e_idx = jnp.arange(E)[:, None] // HEAD_DIM
    h_idx = jnp.arange(NHEAD)[None, :]
    hm = (e_idx == h_idx).astype(jnp.bfloat16)                  # (E, NH)
    hm_t = jnp.transpose(hm)                                    # (NH, E)
    pool = jnp.where(jnp.arange(BN)[None, :] // L == jnp.arange(B)[:, None],
                     jnp.float32(1.0 / L), jnp.float32(0.0)).astype(jnp.bfloat16)  # (B, BN)

    def full_spec(shape):                        # whole array resident in VMEM
        return pl.BlockSpec(shape, lambda i: (0,) * len(shape))

    grid_spec = pltpu.PrefetchScalarGridSpec(
        num_scalar_prefetch=0,
        grid=(1,),                               # single step: everything fused/resident
        in_specs=[
            full_spec((BN, 1)),                  # input ids
            full_spec((VOCAB_PAD, E)),           # embedding table (bf16)
            full_spec((E, NHEAD)),               # head-sum mask (bf16)
            full_spec((NHEAD, E)),               # head-expand mask (bf16)
            full_spec((B, BN)),                  # mean-pool matrix (bf16)
            full_spec((NUM_LAYERS, E, 3 * E)),   # w_qkv (bf16, Q scale folded in)
            full_spec((NUM_LAYERS, 3 * E)),      # b_qkv
            full_spec((NUM_LAYERS, E, E)),       # w_o (bf16)
            full_spec((NUM_LAYERS, E)),          # b_o
            full_spec((NUM_LAYERS, E)),          # ln1_w
            full_spec((NUM_LAYERS, E)),          # ln1_b
            full_spec((NUM_LAYERS, E, FFN_DIM)), # w1 (bf16, lane-dense)
            full_spec((NUM_LAYERS, FFN_DIM)),    # b1
            full_spec((NUM_LAYERS, E, FFN_DIM)), # w2 = linear2.weight (bf16, lane-dense)
            full_spec((NUM_LAYERS, E)),          # b2
            full_spec((NUM_LAYERS, E)),          # ln2_w
            full_spec((NUM_LAYERS, E)),          # ln2_b
            full_spec((E, NUM_LABELS)),          # fc_w (bf16)
            full_spec((1, NUM_LABELS)),          # fc_b
        ],
        out_specs=pl.BlockSpec((B, NUM_LABELS), lambda i: (0, 0)),
    )

    kernel = functools.partial(fused_forward_kernel, B=B, L=L, E=E, NH=NHEAD)
    return pl.pallas_call(
        kernel,
        out_shape=jax.ShapeDtypeStruct((B, NUM_LABELS), jnp.float32),
        grid_spec=grid_spec,
        compiler_params=pltpu.CompilerParams(dimension_semantics=("arbitrary",)),
    )(ids, params["embedding"], hm, hm_t, pool,
      params["w_qkv"], params["b_qkv"], params["w_o"], params["b_o"],
      params["ln1_w"], params["ln1_b"], params["w1"], params["b1"],
      params["w2"], params["b2"], params["ln2_w"], params["ln2_b"],
      params["fc_w"], params["fc_b"])


# ----------------------------- deterministic parameter init -----------------------------
def init_params(key):
    def nrm(k, shape, scale=0.02):
        return scale * jax.random.normal(k, shape, jnp.float32)

    keys = jax.random.split(key, 2 + NUM_LAYERS)
    emb = nrm(keys[0], (VOCAB_SIZE, HIDDEN), 0.1)
    emb = jnp.concatenate(
        [emb, jnp.zeros((VOCAB_PAD - VOCAB_SIZE, HIDDEN), jnp.float32)], axis=0)

    params = {
        "embedding": emb.astype(jnp.bfloat16),             # (VOCAB_PAD, H) bf16
        "fc_w": nrm(keys[1], (HIDDEN, NUM_LABELS)).astype(jnp.bfloat16),
        "fc_b": jnp.zeros((1, NUM_LABELS), jnp.float32),
    }

    scale = 1.0 / (HEAD_DIM ** 0.5)
    acc = {k: [] for k in ("w_qkv", "b_qkv", "w_o", "b_o", "ln1_w", "ln1_b",
                           "w1", "b1", "w2", "b2", "ln2_w", "ln2_b")}
    for li in range(NUM_LAYERS):
        ks = jax.random.split(keys[2 + li], 6)
        wq = nrm(ks[0], (HIDDEN, 3 * HIDDEN))              # in_proj_weight.T
        bq = nrm(ks[1], (3 * HIDDEN,))
        # fold the 1/sqrt(head_dim) attention scale into the Q slab (weights + bias)
        wq = wq.at[:, :HIDDEN].multiply(scale)
        bq = bq.at[:HIDDEN].multiply(scale)
        acc["w_qkv"].append(wq)
        acc["b_qkv"].append(bq)
        acc["w_o"].append(nrm(ks[2], (HIDDEN, HIDDEN)))    # out_proj.weight.T
        acc["b_o"].append(jnp.zeros((HIDDEN,), jnp.float32))
        acc["ln1_w"].append(jnp.ones((HIDDEN,), jnp.float32))
        acc["ln1_b"].append(jnp.zeros((HIDDEN,), jnp.float32))
        acc["w1"].append(nrm(ks[3], (HIDDEN, FFN_DIM)))    # linear1.weight.T
        acc["b1"].append(nrm(ks[4], (FFN_DIM,)))
        acc["w2"].append(nrm(ks[5], (HIDDEN, FFN_DIM)))    # linear2.weight (UN-transposed)
        acc["b2"].append(jnp.zeros((HIDDEN,), jnp.float32))
        acc["ln2_w"].append(jnp.ones((HIDDEN,), jnp.float32))
        acc["ln2_b"].append(jnp.zeros((HIDDEN,), jnp.float32))

    bf16_keys = {"w_qkv", "w_o", "w1", "w2"}               # matmul operands in bf16
    for name, vals in acc.items():
        dt = jnp.bfloat16 if name in bf16_keys else jnp.float32
        params[name] = jnp.stack(vals).astype(dt)
    return params


# ----------------------------- main -----------------------------
if __name__ == "__main__":
    B, L = 2, MAX_LEN
    key = jax.random.PRNGKey(0)
    k_ids, k_params = jax.random.split(key)

    input_ids = jax.random.randint(k_ids, (B, L), 0, VOCAB_SIZE, dtype=jnp.int32)
    attention_mask = jnp.ones((B, L), jnp.int32)
    params = init_params(k_params)

    logits = transformer_classifier_forward(input_ids, attention_mask, params)
    logits = jax.block_until_ready(logits)

    assert logits.shape == (B, NUM_LABELS), logits.shape
    assert jnp.all(jnp.isfinite(logits))
    print("KERNEL_OK")
</pallas_src>

<mosaic_0001>
module attributes {stable_mosaic.version = 11 : i64} {
  func.func @fused_forward_kernel(%arg0: i32, %arg1: memref<16x1xi32, #tpu.memory_space<vmem>>, %arg2: memref<128x32xbf16, #tpu.memory_space<vmem>>, %arg3: memref<32x8xbf16, #tpu.memory_space<vmem>>, %arg4: memref<8x32xbf16, #tpu.memory_space<vmem>>, %arg5: memref<2x16xbf16, #tpu.memory_space<vmem>>, %arg6: memref<6x32x96xbf16, #tpu.memory_space<vmem>>, %arg7: memref<6x96xf32, #tpu.memory_space<vmem>>, %arg8: memref<6x32x32xbf16, #tpu.memory_space<vmem>>, %arg9: memref<6x32xf32, #tpu.memory_space<vmem>>, %arg10: memref<6x32xf32, #tpu.memory_space<vmem>>, %arg11: memref<6x32xf32, #tpu.memory_space<vmem>>, %arg12: memref<6x32x2048xbf16, #tpu.memory_space<vmem>>, %arg13: memref<6x2048xf32, #tpu.memory_space<vmem>>, %arg14: memref<6x32x2048xbf16, #tpu.memory_space<vmem>>, %arg15: memref<6x32xf32, #tpu.memory_space<vmem>>, %arg16: memref<6x32xf32, #tpu.memory_space<vmem>>, %arg17: memref<6x32xf32, #tpu.memory_space<vmem>>, %arg18: memref<32x3xbf16, #tpu.memory_space<vmem>>, %arg19: memref<1x3xf32, #tpu.memory_space<vmem>>, %arg20: memref<2x3xf32, #tpu.memory_space<vmem>>) attributes {dimension_semantics = [#tpu.dimension_semantics<arbitrary>], iteration_bounds = array<i64: 1>, scalar_prefetch = 0 : i64, scratch_operands = 0 : i64, tpu.core_type = #tpu.core_type<tc>, window_params = [{pipeline_mode = #tpu.pipeline_mode<synchronous>, transform_indices = @transform_0, window_bounds = array<i64: 16, 1>}, {pipeline_mode = #tpu.pipeline_mode<synchronous>, transform_indices = @transform_1, window_bounds = array<i64: 128, 32>}, {pipeline_mode = #tpu.pipeline_mode<synchronous>, transform_indices = @transform_2, window_bounds = array<i64: 32, 8>}, {pipeline_mode = #tpu.pipeline_mode<synchronous>, transform_indices = @transform_3, window_bounds = array<i64: 8, 32>}, {pipeline_mode = #tpu.pipeline_mode<synchronous>, transform_indices = @transform_4, window_bounds = array<i64: 2, 16>}, {pipeline_mode = #tpu.pipeline_mode<synchronous>, transform_indices = @transform_5, window_bounds = array<i64: 6, 32, 96>}, {pipeline_mode = #tpu.pipeline_mode<synchronous>, transform_indices = @transform_6, window_bounds = array<i64: 6, 96>}, {pipeline_mode = #tpu.pipeline_mode<synchronous>, transform_indices = @transform_7, window_bounds = array<i64: 6, 32, 32>}, {pipeline_mode = #tpu.pipeline_mode<synchronous>, transform_indices = @transform_8, window_bounds = array<i64: 6, 32>}, {pipeline_mode = #tpu.pipeline_mode<synchronous>, transform_indices = @transform_9, window_bounds = array<i64: 6, 32>}, {pipeline_mode = #tpu.pipeline_mode<synchronous>, transform_indices = @transform_10, window_bounds = array<i64: 6, 32>}, {pipeline_mode = #tpu.pipeline_mode<synchronous>, transform_indices = @transform_11, window_bounds = array<i64: 6, 32, 2048>}, {pipeline_mode = #tpu.pipeline_mode<synchronous>, transform_indices = @transform_12, window_bounds = array<i64: 6, 2048>}, {pipeline_mode = #tpu.pipeline_mode<synchronous>, transform_indices = @transform_13, window_bounds = array<i64: 6, 32, 2048>}, {pipeline_mode = #tpu.pipeline_mode<synchronous>, transform_indices = @transform_14, window_bounds = array<i64: 6, 32>}, {pipeline_mode = #tpu.pipeline_mode<synchronous>, transform_indices = @transform_15, window_bounds = array<i64: 6, 32>}, {pipeline_mode = #tpu.pipeline_mode<synchronous>, transform_indices = @transform_16, window_bounds = array<i64: 6, 32>}, {pipeline_mode = #tpu.pipeline_mode<synchronous>, transform_indices = @transform_17, window_bounds = array<i64: 32, 3>}, {pipeline_mode = #tpu.pipeline_mode<synchronous>, transform_indices = @transform_18, window_bounds = array<i64: 1, 3>}, {pipeline_mode = #tpu.pipeline_mode<synchronous>, transform_indices = @transform_19, window_bounds = array<i64: 2, 3>}]} {
    %c0 = arith.constant 0 : index
    %c0_0 = arith.constant 0 : index
    %0 = vector.load %arg1[%c0, %c0_0] : memref<16x1xi32, #tpu.memory_space<vmem>>, vector<16x1xi32>
    %1 = tpu.iota {dimensions = array<i32: 1>} : vector<16x128xi32>
    %2 = vector.broadcast %0 : vector<16x1xi32> to vector<16x128xi32>
    %3 = arith.cmpi eq, %1, %2 : vector<16x128xi32>
    %4 = arith.extui %3 : vector<16x128xi1> to vector<16x128xi32>
    %5 = arith.sitofp %4 : vector<16x128xi32> to vector<16x128xf32>
    %6 = arith.truncf %5 : vector<16x128xf32> to vector<16x128xbf16>
    %c0_1 = arith.constant 0 : index
    %c0_2 = arith.constant 0 : index
    %7 = vector.load %arg2[%c0_1, %c0_2] : memref<128x32xbf16, #tpu.memory_space<vmem>>, vector<128x32xbf16>
    %cst = arith.constant dense<0.000000e+00> : vector<16x32xf32>
    %8 = tpu.matmul %6, %7, %cst {dimension_numbers = #tpu.dot_dimension_numbers<[1], [0], [0], [1], [0, 0, 1, 1], [], []>} : vector<16x128xbf16>, vector<128x32xbf16>, vector<16x32xf32> -> vector<16x32xf32>
    %c0_3 = arith.constant 0 : index
    %c0_4 = arith.constant 0 : index
    %9 = vector.load %arg3[%c0_3, %c0_4] : memref<32x8xbf16, #tpu.memory_space<vmem>>, vector<32x8xbf16>
    %c0_5 = arith.constant 0 : index
    %c0_6 = arith.constant 0 : index
    %10 = vector.load %arg4[%c0_5, %c0_6] : memref<8x32xbf16, #tpu.memory_space<vmem>>, vector<8x32xbf16>
    %c0_7 = arith.constant 0 : index
    %c0_8 = arith.constant 0 : index
    %c0_9 = arith.constant 0 : index
    %11 = vector.load %arg6[%c0_7, %c0_8, %c0_9] : memref<6x32x96xbf16, #tpu.memory_space<vmem>>, vector<1x32x96xbf16>
    %12 = vector.shape_cast %11 : vector<1x32x96xbf16> to vector<32x96xbf16>
    %c0_10 = arith.constant 0 : index
    %c0_11 = arith.constant 0 : index
    %13 = vector.load %arg7[%c0_10, %c0_11] : memref<6x96xf32, #tpu.memory_space<vmem>>, vector<1x96xf32>
    %c0_12 = arith.constant 0 : index
    %c0_13 = arith.constant 0 : index
    %c0_14 = arith.constant 0 : index
    %14 = vector.load %arg8[%c0_12, %c0_13, %c0_14] : memref<6x32x32xbf16, #tpu.memory_space<vmem>>, vector<1x32x32xbf16>
    %15 = vector.shape_cast %14 : vector<1x32x32xbf16> to vector<32x32xbf16>
    %c0_15 = arith.constant 0 : index
    %c0_16 = arith.constant 0 : index
    %16 = vector.load %arg9[%c0_15, %c0_16] : memref<6x32xf32, #tpu.memory_space<vmem>>, vector<1x32xf32>
    %c0_17 = arith.constant 0 : index
    %c0_18 = arith.constant 0 : index
    %17 = vector.load %arg10[%c0_17, %c0_18] : memref<6x32xf32, #tpu.memory_space<vmem>>, vector<1x32xf32>
    %c0_19 = arith.constant 0 : index
    %c0_20 = arith.constant 0 : index
    %18 = vector.load %arg11[%c0_19, %c0_20] : memref<6x32xf32, #tpu.memory_space<vmem>>, vector<1x32xf32>
    %c0_21 = arith.constant 0 : index
    %c0_22 = arith.constant 0 : index
    %c0_23 = arith.constant 0 : index
    %19 = vector.load %arg12[%c0_21, %c0_22, %c0_23] : memref<6x32x2048xbf16, #tpu.memory_space<vmem>>, vector<1x32x2048xbf16>
    %20 = vector.shape_cast %19 : vector<1x32x2048xbf16> to vector<32x2048xbf16>
    %c0_24 = arith.constant 0 : index
    %c0_25 = arith.constant 0 : index
    %21 = vector.load %arg13[%c0_24, %c0_25] : memref<6x2048xf32, #tpu.memory_space<vmem>>, vector<1x2048xf32>
    %c0_26 = arith.constant 0 : index
    %c0_27 = arith.constant 0 : index
    %c0_28 = arith.constant 0 : index
    %22 = vector.load %arg14[%c0_26, %c0_27, %c0_28] : memref<6x32x2048xbf16, #tpu.memory_space<vmem>>, vector<1x32x2048xbf16>
    %23 = vector.shape_cast %22 : vector<1x32x2048xbf16> to vector<32x2048xbf16>
    %c0_29 = arith.constant 0 : index
    %c0_30 = arith.constant 0 : index
    %24 = vector.load %arg15[%c0_29, %c0_30] : memref<6x32xf32, #tpu.memory_space<vmem>>, vector<1x32xf32>
    %c0_31 = arith.constant 0 : index
    %c0_32 = arith.constant 0 : index
    %25 = vector.load %arg16[%c0_31, %c0_32] : memref<6x32xf32, #tpu.memory_space<vmem>>, vector<1x32xf32>
    %c0_33 = arith.constant 0 : index
    %c0_34 = arith.constant 0 : index
    %26 = vector.load %arg17[%c0_33, %c0_34] : memref<6x32xf32, #tpu.memory_space<vmem>>, vector<1x32xf32>
    %27 = arith.truncf %8 : vector<16x32xf32> to vector<16x32xbf16>
    %cst_35 = arith.constant dense<0.000000e+00> : vector<16x96xf32>
    %28 = tpu.matmul %27, %12, %cst_35 {dimension_numbers = #tpu.dot_dimension_numbers<[1], [0], [0], [1], [0, 0, 1, 1], [], []>} : vector<16x32xbf16>, vector<32x96xbf16>, vector<16x96xf32> -> vector<16x96xf32>
    %29 = vector.broadcast %13 : vector<1x96xf32> to vector<16x96xf32>
    %30 = arith.addf %28, %29 : vector<16x96xf32>
    %31 = vector.extract_strided_slice %30 {offsets = [0, 0], sizes = [16, 32], strides = [1, 1]} : vector<16x96xf32> to vector<16x32xf32>
    %32 = vector.extract_strided_slice %30 {offsets = [0, 32], sizes = [16, 32], strides = [1, 1]} : vector<16x96xf32> to vector<16x32xf32>
    %33 = vector.extract_strided_slice %30 {offsets = [0, 64], sizes = [16, 32], strides = [1, 1]} : vector<16x96xf32> to vector<16x32xf32>
    %34 = vector.extract_strided_slice %31 {offsets = [0, 0], sizes = [8, 32], strides = [1, 1]} : vector<16x32xf32> to vector<8x32xf32>
    %35 = vector.extract_strided_slice %31 {offsets = [8, 0], sizes = [8, 32], strides = [1, 1]} : vector<16x32xf32> to vector<8x32xf32>
    %36 = vector.extract_strided_slice %32 {offsets = [0, 0], sizes = [8, 32], strides = [1, 1]} : vector<16x32xf32> to vector<8x32xf32>
    %37 = vector.extract_strided_slice %32 {offsets = [8, 0], sizes = [8, 32], strides = [1, 1]} : vector<16x32xf32> to vector<8x32xf32>
    %38 = vector.extract_strided_slice %33 {offsets = [0, 0], sizes = [8, 32], strides = [1, 1]} : vector<16x32xf32> to vector<8x32xf32>
    %39 = vector.extract_strided_slice %33 {offsets = [8, 0], sizes = [8, 32], strides = [1, 1]} : vector<16x32xf32> to vector<8x32xf32>
    %40 = tpu.concatenate %34, %34, %35, %35 in 0 : vector<8x32xf32>, vector<8x32xf32>, vector<8x32xf32>, vector<8x32xf32> -> vector<32x32xf32>
    %41 = tpu.concatenate %36, %37, %36, %37 in 0 : vector<8x32xf32>, vector<8x32xf32>, vector<8x32xf32>, vector<8x32xf32> -> vector<32x32xf32>
    %42 = tpu.concatenate %38, %39, %38, %39 in 0 : vector<8x32xf32>, vector<8x32xf32>, vector<8x32xf32>, vector<8x32xf32> -> vector<32x32xf32>
    %43 = arith.mulf %40, %41 : vector<32x32xf32>
    %44 = arith.truncf %43 : vector<32x32xf32> to vector<32x32xbf16>
    %cst_36 = arith.constant dense<0.000000e+00> : vector<32x8xf32>
    %45 = tpu.matmul %44, %9, %cst_36 {dimension_numbers = #tpu.dot_dimension_numbers<[1], [0], [0], [1], [0, 0, 1, 1], [], []>} : vector<32x32xbf16>, vector<32x8xbf16>, vector<32x8xf32> -> vector<32x8xf32>
    %46 = vector.extract_strided_slice %45 {offsets = [0, 0], sizes = [8, 8], strides = [1, 1]} : vector<32x8xf32> to vector<8x8xf32>
    %47 = vector.extract_strided_slice %45 {offsets = [8, 0], sizes = [8, 8], strides = [1, 1]} : vector<32x8xf32> to vector<8x8xf32>
    %48 = arith.maximumf %46, %47 : vector<8x8xf32>
    %49 = arith.subf %46, %48 : vector<8x8xf32>
    %50 = math.exp %49 : vector<8x8xf32>
    %51 = arith.subf %47, %48 : vector<8x8xf32>
    %52 = math.exp %51 : vector<8x8xf32>
    %53 = arith.addf %50, %52 : vector<8x8xf32>
    %54 = tpu.reciprocal %53 {approx = true} : vector<8x8xf32> -> vector<8x8xf32>
    %55 = arith.mulf %50, %54 : vector<8x8xf32>
    %56 = arith.mulf %52, %54 : vector<8x8xf32>
    %57 = vector.extract_strided_slice %45 {offsets = [16, 0], sizes = [8, 8], strides = [1, 1]} : vector<32x8xf32> to vector<8x8xf32>
    %58 = vector.extract_strided_slice %45 {offsets = [24, 0], sizes = [8, 8], strides = [1, 1]} : vector<32x8xf32> to vector<8x8xf32>
    %59 = arith.maximumf %57, %58 : vector<8x8xf32>
    %60 = arith.subf %57, %59 : vector<8x8xf32>
    %61 = math.exp %60 : vector<8x8xf32>
    %62 = arith.subf %58, %59 : vector<8x8xf32>
    %63 = math.exp %62 : vector<8x8xf32>
    %64 = arith.addf %61, %63 : vector<8x8xf32>
    %65 = tpu.reciprocal %64 {approx = true} : vector<8x8xf32> -> vector<8x8xf32>
    %66 = arith.mulf %61, %65 : vector<8x8xf32>
    %67 = arith.mulf %63, %65 : vector<8x8xf32>
    %68 = tpu.concatenate %55, %56, %66, %67 in 0 : vector<8x8xf32>, vector<8x8xf32>, vector<8x8xf32>, vector<8x8xf32> -> vector<32x8xf32>
    %69 = arith.truncf %68 : vector<32x8xf32> to vector<32x8xbf16>
    %cst_37 = arith.constant dense<0.000000e+00> : vector<32x32xf32>
    %70 = tpu.matmul %69, %10, %cst_37 {dimension_numbers = #tpu.dot_dimension_numbers<[1], [0], [0], [1], [0, 0, 1, 1], [], []>} : vector<32x8xbf16>, vector<8x32xbf16>, vector<32x32xf32> -> vector<32x32xf32>
    %71 = arith.mulf %70, %42 : vector<32x32xf32>
    %72 = vector.extract_strided_slice %71 {offsets = [0, 0], sizes = [8, 32], strides = [1, 1]} : vector<32x32xf32> to vector<8x32xf32>
    %73 = vector.extract_strided_slice %71 {offsets = [8, 0], sizes = [8, 32], strides = [1, 1]} : vector<32x32xf32> to vector<8x32xf32>
    %74 = arith.addf %72, %73 : vector<8x32xf32>
    %75 = vector.extract_strided_slice %71 {offsets = [16, 0], sizes = [8, 32], strides = [1, 1]} : vector<32x32xf32> to vector<8x32xf32>
    %76 = vector.extract_strided_slice %71 {offsets = [24, 0], sizes = [8, 32], strides = [1, 1]} : vector<32x32xf32> to vector<8x32xf32>
    %77 = arith.addf %75, %76 : vector<8x32xf32>
    %78 = tpu.concatenate %74, %77 in 0 : vector<8x32xf32>, vector<8x32xf32> -> vector<16x32xf32>
    %79 = arith.truncf %78 : vector<16x32xf32> to vector<16x32xbf16>
    %cst_38 = arith.constant dense<0.000000e+00> : vector<16x32xf32>
    %80 = tpu.matmul %79, %15, %cst_38 {dimension_numbers = #tpu.dot_dimension_numbers<[1], [0], [0], [1], [0, 0, 1, 1], [], []>} : vector<16x32xbf16>, vector<32x32xbf16>, vector<16x32xf32> -> vector<16x32xf32>
    %81 = vector.broadcast %16 : vector<1x32xf32> to vector<16x32xf32>
    %82 = arith.addf %80, %81 : vector<16x32xf32>
    %83 = arith.addf %8, %82 : vector<16x32xf32>
    %cst_39 = arith.constant dense<0.000000e+00> : vector<16xf32>
    %84 = vector.multi_reduction <add>, %83, %cst_39 [1] : vector<16x32xf32> to vector<16xf32>
    %85 = vector.shape_cast %84 : vector<16xf32> to vector<16x1xf32>
    %cst_40 = arith.constant 3.200000e+01 : f32
    %86 = vector.broadcast %cst_40 : f32 to vector<16x1xf32>
    %87 = arith.divf %85, %86 : vector<16x1xf32>
    %88 = vector.broadcast %87 : vector<16x1xf32> to vector<16x32xf32>
    %89 = arith.subf %83, %88 : vector<16x32xf32>
    %90 = arith.mulf %89, %89 : vector<16x32xf32>
    %cst_41 = arith.constant dense<0.000000e+00> : vector<16xf32>
    %91 = vector.multi_reduction <add>, %90, %cst_41 [1] : vector<16x32xf32> to vector<16xf32>
    %92 = vector.shape_cast %91 : vector<16xf32> to vector<16x1xf32>
    %cst_42 = arith.constant 3.200000e+01 : f32
    %93 = vector.broadcast %cst_42 : f32 to vector<16x1xf32>
    %94 = arith.divf %92, %93 : vector<16x1xf32>
    %cst_43 = arith.constant 9.99999974E-6 : f32
    %95 = vector.broadcast %cst_43 : f32 to vector<16x1xf32>
    %96 = arith.addf %94, %95 : vector<16x1xf32>
    %97 = math.rsqrt %96 : vector<16x1xf32>
    %98 = vector.broadcast %97 : vector<16x1xf32> to vector<16x32xf32>
    %99 = arith.mulf %89, %98 : vector<16x32xf32>
    %100 = vector.broadcast %17 : vector<1x32xf32> to vector<16x32xf32>
    %101 = arith.mulf %99, %100 : vector<16x32xf32>
    %102 = vector.broadcast %18 : vector<1x32xf32> to vector<16x32xf32>
    %103 = arith.addf %101, %102 : vector<16x32xf32>
    %104 = arith.truncf %103 : vector<16x32xf32> to vector<16x32xbf16>
    %cst_44 = arith.constant dense<0.000000e+00> : vector<16x2048xf32>
    %105 = tpu.matmul %104, %20, %cst_44 {dimension_numbers = #tpu.dot_dimension_numbers<[1], [0], [0], [1], [0, 0, 1, 1], [], []>} : vector<16x32xbf16>, vector<32x2048xbf16>, vector<16x2048xf32> -> vector<16x2048xf32>
    %106 = vector.broadcast %21 : vector<1x2048xf32> to vector<16x2048xf32>
    %107 = arith.addf %105, %106 : vector<16x2048xf32>
    %cst_45 = arith.constant 0.000000e+00 : f32
    %108 = vector.broadcast %cst_45 : f32 to vector<16x2048xf32>
    %109 = arith.maximumf %107, %108 : vector<16x2048xf32>
    %110 = arith.truncf %109 : vector<16x2048xf32> to vector<16x2048xbf16>
    %cst_46 = arith.constant dense<0.000000e+00> : vector<16x32xf32>
    %111 = tpu.matmul %110, %23, %cst_46 {dimension_numbers = #tpu.dot_dimension_numbers<[1], [1], [0], [0], [0, 0, 1, 0], [], []>} : vector<16x2048xbf16>, vector<32x2048xbf16>, vector<16x32xf32> -> vector<16x32xf32>
    %112 = vector.broadcast %24 : vector<1x32xf32> to vector<16x32xf32>
    %113 = arith.addf %111, %112 : vector<16x32xf32>
    %114 = arith.addf %103, %113 : vector<16x32xf32>
    %cst_47 = arith.constant dense<0.000000e+00> : vector<16xf32>
    %115 = vector.multi_reduction <add>, %114, %cst_47 [1] : vector<16x32xf32> to vector<16xf32>
    %116 = vector.shape_cast %115 : vector<16xf32> to vector<16x1xf32>
    %cst_48 = arith.constant 3.200000e+01 : f32
    %117 = vector.broadcast %cst_48 : f32 to vector<16x1xf32>
    %118 = arith.divf %116, %117 : vector<16x1xf32>
    %119 = vector.broadcast %118 : vector<16x1xf32> to vector<16x32xf32>
    %120 = arith.subf %114, %119 : vector<16x32xf32>
    %121 = arith.mulf %120, %120 : vector<16x32xf32>
    %cst_49 = arith.constant dense<0.000000e+00> : vector<16xf32>
    %122 = vector.multi_reduction <add>, %121, %cst_49 [1] : vector<16x32xf32> to vector<16xf32>
    %123 = vector.shape_cast %122 : vector<16xf32> to vector<16x1xf32>
    %cst_50 = arith.constant 3.200000e+01 : f32
    %124 = vector.broadcast %cst_50 : f32 to vector<16x1xf32>
    %125 = arith.divf %123, %124 : vector<16x1xf32>
    %cst_51 = arith.constant 9.99999974E-6 : f32
    %126 = vector.broadcast %cst_51 : f32 to vector<16x1xf32>
    %127 = arith.addf %125, %126 : vector<16x1xf32>
    %128 = math.rsqrt %127 : vector<16x1xf32>
    %129 = vector.broadcast %128 : vector<16x1xf32> to vector<16x32xf32>
    %130 = arith.mulf %120, %129 : vector<16x32xf32>
    %131 = vector.broadcast %25 : vector<1x32xf32> to vector<16x32xf32>
    %132 = arith.mulf %130, %131 : vector<16x32xf32>
    %133 = vector.broadcast %26 : vector<1x32xf32> to vector<16x32xf32>
    %134 = arith.addf %132, %133 : vector<16x32xf32>
    %c1 = arith.constant 1 : index
    %c0_52 = arith.constant 0 : index
    %c0_53 = arith.constant 0 : index
    %135 = vector.load %arg6[%c1, %c0_52, %c0_53] : memref<6x32x96xbf16, #tpu.memory_space<vmem>>, vector<1x32x96xbf16>
    %136 = vector.shape_cast %135 : vector<1x32x96xbf16> to vector<32x96xbf16>
    %c1_54 = arith.constant 1 : index
    %c0_55 = arith.constant 0 : index
    %137 = vector.load %arg7[%c1_54, %c0_55] : memref<6x96xf32, #tpu.memory_space<vmem>>, vector<1x96xf32>
    %c1_56 = arith.constant 1 : index
    %c0_57 = arith.constant 0 : index
    %c0_58 = arith.constant 0 : index
    %138 = vector.load %arg8[%c1_56, %c0_57, %c0_58] : memref<6x32x32xbf16, #tpu.memory_space<vmem>>, vector<1x32x32xbf16>
    %139 = vector.shape_cast %138 : vector<1x32x32xbf16> to vector<32x32xbf16>
    %c1_59 = arith.constant 1 : index
    %c0_60 = arith.constant 0 : index
    %140 = vector.load %arg9[%c1_59, %c0_60] : memref<6x32xf32, #tpu.memory_space<vmem>>, vector<1x32xf32>
    %c1_61 = arith.constant 1 : index
    %c0_62 = arith.constant 0 : index
    %141 = vector.load %arg10[%c1_61, %c0_62] : memref<6x32xf32, #tpu.memory_space<vmem>>, vector<1x32xf32>
    %c1_63 = arith.constant 1 : index
    %c0_64 = arith.constant 0 : index
    %142 = vector.load %arg11[%c1_63, %c0_64] : memref<6x32xf32, #tpu.memory_space<vmem>>, vector<1x32xf32>
    %c1_65 = arith.constant 1 : index
    %c0_66 = arith.constant 0 : index
    %c0_67 = arith.constant 0 : index
    %143 = vector.load %arg12[%c1_65, %c0_66, %c0_67] : memref<6x32x2048xbf16, #tpu.memory_space<vmem>>, vector<1x32x2048xbf16>
    %144 = vector.shape_cast %143 : vector<1x32x2048xbf16> to vector<32x2048xbf16>
    %c1_68 = arith.constant 1 : index
    %c0_69 = arith.constant 0 : index
    %145 = vector.load %arg13[%c1_68, %c0_69] : memref<6x2048xf32, #tpu.memory_space<vmem>>, vector<1x2048xf32>
    %c1_70 = arith.constant 1 : index
    %c0_71 = arith.constant 0 : index
    %c0_72 = arith.constant 0 : index
    %146 = vector.load %arg14[%c1_70, %c0_71, %c0_72] : memref<6x32x2048xbf16, #tpu.memory_space<vmem>>, vector<1x32x2048xbf16>
    %147 = vector.shape_cast %146 : vector<1x32x2048xbf16> to vector<32x2048xbf16>
    %c1_73 = arith.constant 1 : index
    %c0_74 = arith.constant 0 : index
    %148 = vector.load %arg15[%c1_73, %c0_74] : memref<6x32xf32, #tpu.memory_space<vmem>>, vector<1x32xf32>
    %c1_75 = arith.constant 1 : index
    %c0_76 = arith.constant 0 : index
    %149 = vector.load %arg16[%c1_75, %c0_76] : memref<6x32xf32, #tpu.memory_space<vmem>>, vector<1x32xf32>
    %c1_77 = arith.constant 1 : index
    %c0_78 = arith.constant 0 : index
    %150 = vector.load %arg17[%c1_77, %c0_78] : memref<6x32xf32, #tpu.memory_space<vmem>>, vector<1x32xf32>
    %151 = arith.truncf %134 : vector<16x32xf32> to vector<16x32xbf16>
    %cst_79 = arith.constant dense<0.000000e+00> : vector<16x96xf32>
    %152 = tpu.matmul %151, %136, %cst_79 {dimension_numbers = #tpu.dot_dimension_numbers<[1], [0], [0], [1], [0, 0, 1, 1], [], []>} : vector<16x32xbf16>, vector<32x96xbf16>, vector<16x96xf32> -> vector<16x96xf32>
    %153 = vector.broadcast %137 : vector<1x96xf32> to vector<16x96xf32>
    %154 = arith.addf %152, %153 : vector<16x96xf32>
    %155 = vector.extract_strided_slice %154 {offsets = [0, 0], sizes = [16, 32], strides = [1, 1]} : vector<16x96xf32> to vector<16x32xf32>
    %156 = vector.extract_strided_slice %154 {offsets = [0, 32], sizes = [16, 32], strides = [1, 1]} : vector<16x96xf32> to vector<16x32xf32>
    %157 = vector.extract_strided_slice %154 {offsets = [0, 64], sizes = [16, 32], strides = [1, 1]} : vector<16x96xf32> to vector<16x32xf32>
    %158 = vector.extract_strided_slice %155 {offsets = [0, 0], sizes = [8, 32], strides = [1, 1]} : vector<16x32xf32> to vector<8x32xf32>
    %159 = vector.extract_strided_slice %155 {offsets = [8, 0], sizes = [8, 32], strides = [1, 1]} : vector<16x32xf32> to vector<8x32xf32>
    %160 = vector.extract_strided_slice %156 {offsets = [0, 0], sizes = [8, 32], strides = [1, 1]} : vector<16x32xf32> to vector<8x32xf32>
    %161 = vector.extract_strided_slice %156 {offsets = [8, 0], sizes = [8, 32], strides = [1, 1]} : vector<16x32xf32> to vector<8x32xf32>
    %162 = vector.extract_strided_slice %157 {offsets = [0, 0], sizes = [8, 32], strides = [1, 1]} : vector<16x32xf32> to vector<8x32xf32>
    %163 = vector.extract_strided_slice %157 {offsets = [8, 0], sizes = [8, 32], strides = [1, 1]} : vector<16x32xf32> to vector<8x32xf32>
    %164 = tpu.concatenate %158, %158, %159, %159 in 0 : vector<8x32xf32>, vector<8x32xf32>, vector<8x32xf32>, vector<8x32xf32> -> vector<32x32xf32>
    %165 = tpu.concatenate %160, %161, %160, %161 in 0 : vector<8x32xf32>, vector<8x32xf32>, vector<8x32xf32>, vector<8x32xf32> -> vector<32x32xf32>
    %166 = tpu.concatenate %162, %163, %162, %163 in 0 : vector<8x32xf32>, vector<8x32xf32>, vector<8x32xf32>, vector<8x32xf32> -> vector<32x32xf32>
    %167 = arith.mulf %164, %165 : vector<32x32xf32>
    %168 = arith.truncf %167 : vector<32x32xf32> to vector<32x32xbf16>
    %cst_80 = arith.constant dense<0.000000e+00> : vector<32x8xf32>
    %169 = tpu.matmul %168, %9, %cst_80 {dimension_numbers = #tpu.dot_dimension_numbers<[1], [0], [0], [1], [0, 0, 1, 1], [], []>} : vector<32x32xbf16>, vector<32x8xbf16>, vector<32x8xf32> -> vector<32x8xf32>
    %170 = vector.extract_strided_slice %169 {offsets = [0, 0], sizes = [8, 8], strides = [1, 1]} : vector<32x8xf32> to vector<8x8xf32>
    %171 = vector.extract_strided_slice %169 {offsets = [8, 0], sizes = [8, 8], strides = [1, 1]} : vector<32x8xf32> to vector<8x8xf32>
    %172 = arith.maximumf %170, %171 : vector<8x8xf32>
    %173 = arith.subf %170, %172 : vector<8x8xf32>
    %174 = math.exp %173 : vector<8x8xf32>
    %175 = arith.subf %171, %172 : vector<8x8xf32>
    %176 = math.exp %175 : vector<8x8xf32>
    %177 = arith.addf %174, %176 : vector<8x8xf32>
    %178 = tpu.reciprocal %177 {approx = true} : vector<8x8xf32> -> vector<8x8xf32>
    %179 = arith.mulf %174, %178 : vector<8x8xf32>
    %180 = arith.mulf %176, %178 : vector<8x8xf32>
    %181 = vector.extract_strided_slice %169 {offsets = [16, 0], sizes = [8, 8], strides = [1, 1]} : vector<32x8xf32> to vector<8x8xf32>
    %182 = vector.extract_strided_slice %169 {offsets = [24, 0], sizes = [8, 8], strides = [1, 1]} : vector<32x8xf32> to vector<8x8xf32>
    %183 = arith.maximumf %181, %182 : vector<8x8xf32>
    %184 = arith.subf %181, %183 : vector<8x8xf32>
    %185 = math.exp %184 : vector<8x8xf32>
    %186 = arith.subf %182, %183 : vector<8x8xf32>
    %187 = math.exp %186 : vector<8x8xf32>
    %188 = arith.addf %185, %187 : vector<8x8xf32>
    %189 = tpu.reciprocal %188 {approx = true} : vector<8x8xf32> -> vector<8x8xf32>
    %190 = arith.mulf %185, %189 : vector<8x8xf32>
    %191 = arith.mulf %187, %189 : vector<8x8xf32>
    %192 = tpu.concatenate %179, %180, %190, %191 in 0 : vector<8x8xf32>, vector<8x8xf32>, vector<8x8xf32>, vector<8x8xf32> -> vector<32x8xf32>
    %193 = arith.truncf %192 : vector<32x8xf32> to vector<32x8xbf16>
    %cst_81 = arith.constant dense<0.000000e+00> : vector<32x32xf32>
    %194 = tpu.matmul %193, %10, %cst_81 {dimension_numbers = #tpu.dot_dimension_numbers<[1], [0], [0], [1], [0, 0, 1, 1], [], []>} : vector<32x8xbf16>, vector<8x32xbf16>, vector<32x32xf32> -> vector<32x32xf32>
    %195 = arith.mulf %194, %166 : vector<32x32xf32>
    %196 = vector.extract_strided_slice %195 {offsets = [0, 0], sizes = [8, 32], strides = [1, 1]} : vector<32x32xf32> to vector<8x32xf32>
    %197 = vector.extract_strided_slice %195 {offsets = [8, 0], sizes = [8, 32], strides = [1, 1]} : vector<32x32xf32> to vector<8x32xf32>
    %198 = arith.addf %196, %197 : vector<8x32xf32>
    %199 = vector.extract_strided_slice %195 {offsets = [16, 0], sizes = [8, 32], strides = [1, 1]} : vector<32x32xf32> to vector<8x32xf32>
    %200 = vector.extract_strided_slice %195 {offsets = [24, 0], sizes = [8, 32], strides = [1, 1]} : vector<32x32xf32> to vector<8x32xf32>
    %201 = arith.addf %199, %200 : vector<8x32xf32>
    %202 = tpu.concatenate %198, %201 in 0 : vector<8x32xf32>, vector<8x32xf32> -> vector<16x32xf32>
    %203 = arith.truncf %202 : vector<16x32xf32> to vector<16x32xbf16>
    %cst_82 = arith.constant dense<0.000000e+00> : vector<16x32xf32>
    %204 = tpu.matmul %203, %139, %cst_82 {dimension_numbers = #tpu.dot_dimension_numbers<[1], [0], [0], [1], [0, 0, 1, 1], [], []>} : vector<16x32xbf16>, vector<32x32xbf16>, vector<16x32xf32> -> vector<16x32xf32>
    %205 = vector.broadcast %140 : vector<1x32xf32> to vector<16x32xf32>
    %206 = arith.addf %204, %205 : vector<16x32xf32>
    %207 = arith.addf %134, %206 : vector<16x32xf32>
    %cst_83 = arith.constant dense<0.000000e+00> : vector<16xf32>
    %208 = vector.multi_reduction <add>, %207, %cst_83 [1] : vector<16x32xf32> to vector<16xf32>
    %209 = vector.shape_cast %208 : vector<16xf32> to vector<16x1xf32>
    %cst_84 = arith.constant 3.200000e+01 : f32
    %210 = vector.broadcast %cst_84 : f32 to vector<16x1xf32>
    %211 = arith.divf %209, %210 : vector<16x1xf32>
    %212 = vector.broadcast %211 : vector<16x1xf32> to vector<16x32xf32>
    %213 = arith.subf %207, %212 : vector<16x32xf32>
    %214 = arith.mulf %213, %213 : vector<16x32xf32>
    %cst_85 = arith.constant dense<0.000000e+00> : vector<16xf32>
    %215 = vector.multi_reduction <add>, %214, %cst_85 [1] : vector<16x32xf32> to vector<16xf32>
    %216 = vector.shape_cast %215 : vector<16xf32> to vector<16x1xf32>
    %cst_86 = arith.constant 3.200000e+01 : f32
    %217 = vector.broadcast %cst_86 : f32 to vector<16x1xf32>
    %218 = arith.divf %216, %217 : vector<16x1xf32>
    %cst_87 = arith.constant 9.99999974E-6 : f32
    %219 = vector.broadcast %cst_87 : f32 to vector<16x1xf32>
    %220 = arith.addf %218, %219 : vector<16x1xf32>
    %221 = math.rsqrt %220 : vector<16x1xf32>
    %222 = vector.broadcast %221 : vector<16x1xf32> to vector<16x32xf32>
    %223 = arith.mulf %213, %222 : vector<16x32xf32>
    %224 = vector.broadcast %141 : vector<1x32xf32> to vector<16x32xf32>
    %225 = arith.mulf %223, %224 : vector<16x32xf32>
    %226 = vector.broadcast %142 : vector<1x32xf32> to vector<16x32xf32>
    %227 = arith.addf %225, %226 : vector<16x32xf32>
    %228 = arith.truncf %227 : vector<16x32xf32> to vector<16x32xbf16>
    %cst_88 = arith.constant dense<0.000000e+00> : vector<16x2048xf32>
    %229 = tpu.matmul %228, %144, %cst_88 {dimension_numbers = #tpu.dot_dimension_numbers<[1], [0], [0], [1], [0, 0, 1, 1], [], []>} : vector<16x32xbf16>, vector<32x2048xbf16>, vector<16x2048xf32> -> vector<16x2048xf32>
    %230 = vector.broadcast %145 : vector<1x2048xf32> to vector<16x2048xf32>
    %231 = arith.addf %229, %230 : vector<16x2048xf32>
    %cst_89 = arith.constant 0.000000e+00 : f32
    %232 = vector.broadcast %cst_89 : f32 to vector<16x2048xf32>
    %233 = arith.maximumf %231, %232 : vector<16x2048xf32>
    %234 = arith.truncf %233 : vector<16x2048xf32> to vector<16x2048xbf16>
    %cst_90 = arith.constant dense<0.000000e+00> : vector<16x32xf32>
    %235 = tpu.matmul %234, %147, %cst_90 {dimension_numbers = #tpu.dot_dimension_numbers<[1], [1], [0], [0], [0, 0, 1, 0], [], []>} : vector<16x2048xbf16>, vector<32x2048xbf16>, vector<16x32xf32> -> vector<16x32xf32>
    %236 = vector.broadcast %148 : vector<1x32xf32> to vector<16x32xf32>
    %237 = arith.addf %235, %236 : vector<16x32xf32>
    %238 = arith.addf %227, %237 : vector<16x32xf32>
    %cst_91 = arith.constant dense<0.000000e+00> : vector<16xf32>
    %239 = vector.multi_reduction <add>, %238, %cst_91 [1] : vector<16x32xf32> to vector<16xf32>
    %240 = vector.shape_cast %239 : vector<16xf32> to vector<16x1xf32>
    %cst_92 = arith.constant 3.200000e+01 : f32
    %241 = vector.broadcast %cst_92 : f32 to vector<16x1xf32>
    %242 = arith.divf %240, %241 : vector<16x1xf32>
    %243 = vector.broadcast %242 : vector<16x1xf32> to vector<16x32xf32>
    %244 = arith.subf %238, %243 : vector<16x32xf32>
    %245 = arith.mulf %244, %244 : vector<16x32xf32>
    %cst_93 = arith.constant dense<0.000000e+00> : vector<16xf32>
    %246 = vector.multi_reduction <add>, %245, %cst_93 [1] : vector<16x32xf32> to vector<16xf32>
    %247 = vector.shape_cast %246 : vector<16xf32> to vector<16x1xf32>
    %cst_94 = arith.constant 3.200000e+01 : f32
    %248 = vector.broadcast %cst_94 : f32 to vector<16x1xf32>
    %249 = arith.divf %247, %248 : vector<16x1xf32>
    %cst_95 = arith.constant 9.99999974E-6 : f32
    %250 = vector.broadcast %cst_95 : f32 to vector<16x1xf32>
    %251 = arith.addf %249, %250 : vector<16x1xf32>
    %252 = math.rsqrt %251 : vector<16x1xf32>
    %253 = vector.broadcast %252 : vector<16x1xf32> to vector<16x32xf32>
    %254 = arith.mulf %244, %253 : vector<16x32xf32>
    %255 = vector.broadcast %149 : vector<1x32xf32> to vector<16x32xf32>
    %256 = arith.mulf %254, %255 : vector<16x32xf32>
    %257 = vector.broadcast %150 : vector<1x32xf32> to vector<16x32xf32>
    %258 = arith.addf %256, %257 : vector<16x32xf32>
    %c2 = arith.constant 2 : index
    %c0_96 = arith.constant 0 : index
    %c0_97 = arith.constant 0 : index
    %259 = vector.load %arg6[%c2, %c0_96, %c0_97] : memref<6x32x96xbf16, #tpu.memory_space<vmem>>, vector<1x32x96xbf16>
    %260 = vector.shape_cast %259 : vector<1x32x96xbf16> to vector<32x96xbf16>
    %c2_98 = arith.constant 2 : index
    %c0_99 = arith.constant 0 : index
    %261 = vector.load %arg7[%c2_98, %c0_99] : memref<6x96xf32, #tpu.memory_space<vmem>>, vector<1x96xf32>
    %c2_100 = arith.constant 2 : index
    %c0_101 = arith.constant 0 : index
    %c0_102 = arith.constant 0 : index
    %262 = vector.load %arg8[%c2_100, %c0_101, %c0_102] : memref<6x32x32xbf16, #tpu.memory_space<vmem>>, vector<1x32x32xbf16>
    %263 = vector.shape_cast %262 : vector<1x32x32xbf16> to vector<32x32xbf16>
    %c2_103 = arith.constant 2 : index
    %c0_104 = arith.constant 0 : index
    %264 = vector.load %arg9[%c2_103, %c0_104] : memref<6x32xf32, #tpu.memory_space<vmem>>, vector<1x32xf32>
    %c2_105 = arith.constant 2 : index
    %c0_106 = arith.constant 0 : index
    %265 = vector.load %arg10[%c2_105, %c0_106] : memref<6x32xf32, #tpu.memory_space<vmem>>, vector<1x32xf32>
    %c2_107 = arith.constant 2 : index
    %c0_108 = arith.constant 0 : index
    %266 = vector.load %arg11[%c2_107, %c0_108] : memref<6x32xf32, #tpu.memory_space<vmem>>, vector<1x32xf32>
    %c2_109 = arith.constant 2 : index
    %c0_110 = arith.constant 0 : index
    %c0_111 = arith.constant 0 : index
    %267 = vector.load %arg12[%c2_109, %c0_110, %c0_111] : memref<6x32x2048xbf16, #tpu.memory_space<vmem>>, vector<1x32x2048xbf16>
    %268 = vector.shape_cast %267 : vector<1x32x2048xbf16> to vector<32x2048xbf16>
    %c2_112 = arith.constant 2 : index
    %c0_113 = arith.constant 0 : index
    %269 = vector.load %arg13[%c2_112, %c0_113] : memref<6x2048xf32, #tpu.memory_space<vmem>>, vector<1x2048xf32>
    %c2_114 = arith.constant 2 : index
    %c0_115 = arith.constant 0 : index
    %c0_116 = arith.constant 0 : index
    %270 = vector.load %arg14[%c2_114, %c0_115, %c0_116] : memref<6x32x2048xbf16, #tpu.memory_space<vmem>>, vector<1x32x2048xbf16>
    %271 = vector.shape_cast %270 : vector<1x32x2048xbf16> to vector<32x2048xbf16>
    %c2_117 = arith.constant 2 : index
    %c0_118 = arith.constant 0 : index
    %272 = vector.load %arg15[%c2_117, %c0_118] : memref<6x32xf32, #tpu.memory_space<vmem>>, vector<1x32xf32>
    %c2_119 = arith.constant 2 : index
    %c0_120 = arith.constant 0 : index
    %273 = vector.load %arg16[%c2_119, %c0_120] : memref<6x32xf32, #tpu.memory_space<vmem>>, vector<1x32xf32>
    %c2_121 = arith.constant 2 : index
    %c0_122 = arith.constant 0 : index
    %274 = vector.load %arg17[%c2_121, %c0_122] : memref<6x32xf32, #tpu.memory_space<vmem>>, vector<1x32xf32>
    %275 = arith.truncf %258 : vector<16x32xf32> to vector<16x32xbf16>
    %cst_123 = arith.constant dense<0.000000e+00> : vector<16x96xf32>
    %276 = tpu.matmul %275, %260, %cst_123 {dimension_numbers = #tpu.dot_dimension_numbers<[1], [0], [0], [1], [0, 0, 1, 1], [], []>} : vector<16x32xbf16>, vector<32x96xbf16>, vector<16x96xf32> -> vector<16x96xf32>
    %277 = vector.broadcast %261 : vector<1x96xf32> to vector<16x96xf32>
    %278 = arith.addf %276, %277 : vector<16x96xf32>
    %279 = vector.extract_strided_slice %278 {offsets = [0, 0], sizes = [16, 32], strides = [1, 1]} : vector<16x96xf32> to vector<16x32xf32>
    %280 = vector.extract_strided_slice %278 {offsets = [0, 32], sizes = [16, 32], strides = [1, 1]} : vector<16x96xf32> to vector<16x32xf32>
    %281 = vector.extract_strided_slice %278 {offsets = [0, 64], sizes = [16, 32], strides = [1, 1]} : vector<16x96xf32> to vector<16x32xf32>
    %282 = vector.extract_strided_slice %279 {offsets = [0, 0], sizes = [8, 32], strides = [1, 1]} : vector<16x32xf32> to vector<8x32xf32>
    %283 = vector.extract_strided_slice %279 {offsets = [8, 0], sizes = [8, 32], strides = [1, 1]} : vector<16x32xf32> to vector<8x32xf32>
    %284 = vector.extract_strided_slice %280 {offsets = [0, 0], sizes = [8, 32], strides = [1, 1]} : vector<16x32xf32> to vector<8x32xf32>
    %285 = vector.extract_strided_slice %280 {offsets = [8, 0], sizes = [8, 32], strides = [1, 1]} : vector<16x32xf32> to vector<8x32xf32>
    %286 = vector.extract_strided_slice %281 {offsets = [0, 0], sizes = [8, 32], strides = [1, 1]} : vector<16x32xf32> to vector<8x32xf32>
    %287 = vector.extract_strided_slice %281 {offsets = [8, 0], sizes = [8, 32], strides = [1, 1]} : vector<16x32xf32> to vector<8x32xf32>
    %288 = tpu.concatenate %282, %282, %283, %283 in 0 : vector<8x32xf32>, vector<8x32xf32>, vector<8x32xf32>, vector<8x32xf32> -> vector<32x32xf32>
    %289 = tpu.concatenate %284, %285, %284, %285 in 0 : vector<8x32xf32>, vector<8x32xf32>, vector<8x32xf32>, vector<8x32xf32> -> vector<32x32xf32>
    %290 = tpu.concatenate %286, %287, %286, %287 in 0 : vector<8x32xf32>, vector<8x32xf32>, vector<8x32xf32>, vector<8x32xf32> -> vector<32x32xf32>
    %291 = arith.mulf %288, %289 : vector<32x32xf32>
    %292 = arith.truncf %291 : vector<32x32xf32> to vector<32x32xbf16>
    %cst_124 = arith.constant dense<0.000000e+00> : vector<32x8xf32>
    %293 = tpu.matmul %292, %9, %cst_124 {dimension_numbers = #tpu.dot_dimension_numbers<[1], [0], [0], [1], [0, 0, 1, 1], [], []>} : vector<32x32xbf16>, vector<32x8xbf16>, vector<32x8xf32> -> vector<32x8xf32>
    %294 = vector.extract_strided_slice %293 {offsets = [0, 0], sizes = [8, 8], strides = [1, 1]} : vector<32x8xf32> to vector<8x8xf32>
    %295 = vector.extract_strided_slice %293 {offsets = [8, 0], sizes = [8, 8], strides = [1, 1]} : vector<32x8xf32> to vector<8x8xf32>
    %296 = arith.maximumf %294, %295 : vector<8x8xf32>
    %297 = arith.subf %294, %296 : vector<8x8xf32>
    %298 = math.exp %297 : vector<8x8xf32>
    %299 = arith.subf %295, %296 : vector<8x8xf32>
    %300 = math.exp %299 : vector<8x8xf32>
    %301 = arith.addf %298, %300 : vector<8x8xf32>
    %302 = tpu.reciprocal %301 {approx = true} : vector<8x8xf32> -> vector<8x8xf32>
    %303 = arith.mulf %298, %302 : vector<8x8xf32>
    %304 = arith.mulf %300, %302 : vector<8x8xf32>
    %305 = vector.extract_strided_slice %293 {offsets = [16, 0], sizes = [8, 8], strides = [1, 1]} : vector<32x8xf32> to vector<8x8xf32>
    %306 = vector.extract_strided_slice %293 {offsets = [24, 0], sizes = [8, 8], strides = [1, 1]} : vector<32x8xf32> to vector<8x8xf32>
    %307 = arith.maximumf %305, %306 : vector<8x8xf32>
    %308 = arith.subf %305, %307 : vector<8x8xf32>
    %309 = math.exp %308 : vector<8x8xf32>
    %310 = arith.subf %306, %307 : vector<8x8xf32>
    %311 = math.exp %310 : vector<8x8xf32>
    %312 = arith.addf %309, %311 : vector<8x8xf32>
    %313 = tpu.reciprocal %312 {approx = true} : vector<8x8xf32> -> vector<8x8xf32>
    %314 = arith.mulf %309, %313 : vector<8x8xf32>
    %315 = arith.mulf %311, %313 : vector<8x8xf32>
    %316 = tpu.concatenate %303, %304, %314, %315 in 0 : vector<8x8xf32>, vector<8x8xf32>, vector<8x8xf32>, vector<8x8xf32> -> vector<32x8xf32>
    %317 = arith.truncf %316 : vector<32x8xf32> to vector<32x8xbf16>
    %cst_125 = arith.constant dense<0.000000e+00> : vector<32x32xf32>
    %318 = tpu.matmul %317, %10, %cst_125 {dimension_numbers = #tpu.dot_dimension_numbers<[1], [0], [0], [1], [0, 0, 1, 1], [], []>} : vector<32x8xbf16>, vector<8x32xbf16>, vector<32x32xf32> -> vector<32x32xf32>
    %319 = arith.mulf %318, %290 : vector<32x32xf32>
    %320 = vector.extract_strided_slice %319 {offsets = [0, 0], sizes = [8, 32], strides = [1, 1]} : vector<32x32xf32> to vector<8x32xf32>
    %321 = vector.extract_strided_slice %319 {offsets = [8, 0], sizes = [8, 32], strides = [1, 1]} : vector<32x32xf32> to vector<8x32xf32>
    %322 = arith.addf %320, %321 : vector<8x32xf32>
    %323 = vector.extract_strided_slice %319 {offsets = [16, 0], sizes = [8, 32], strides = [1, 1]} : vector<32x32xf32> to vector<8x32xf32>
    %324 = vector.extract_strided_slice %319 {offsets = [24, 0], sizes = [8, 32], strides = [1, 1]} : vector<32x32xf32> to vector<8x32xf32>
    %325 = arith.addf %323, %324 : vector<8x32xf32>
    %326 = tpu.concatenate %322, %325 in 0 : vector<8x32xf32>, vector<8x32xf32> -> vector<16x32xf32>
    %327 = arith.truncf %326 : vector<16x32xf32> to vector<16x32xbf16>
    %cst_126 = arith.constant dense<0.000000e+00> : vector<16x32xf32>
    %328 = tpu.matmul %327, %263, %cst_126 {dimension_numbers = #tpu.dot_dimension_numbers<[1], [0], [0], [1], [0, 0, 1, 1], [], []>} : vector<16x32xbf16>, vector<32x32xbf16>, vector<16x32xf32> -> vector<16x32xf32>
    %329 = vector.broadcast %264 : vector<1x32xf32> to vector<16x32xf32>
    %330 = arith.addf %328, %329 : vector<16x32xf32>
    %331 = arith.addf %258, %330 : vector<16x32xf32>
    %cst_127 = arith.constant dense<0.000000e+00> : vector<16xf32>
    %332 = vector.multi_reduction <add>, %331, %cst_127 [1] : vector<16x32xf32> to vector<16xf32>
    %333 = vector.shape_cast %332 : vector<16xf32> to vector<16x1xf32>
    %cst_128 = arith.constant 3.200000e+01 : f32
    %334 = vector.broadcast %cst_128 : f32 to vector<16x1xf32>
    %335 = arith.divf %333, %334 : vector<16x1xf32>
    %336 = vector.broadcast %335 : vector<16x1xf32> to vector<16x32xf32>
    %337 = arith.subf %331, %336 : vector<16x32xf32>
    %338 = arith.mulf %337, %337 : vector<16x32xf32>
    %cst_129 = arith.constant dense<0.000000e+00> : vector<16xf32>
    %339 = vector.multi_reduction <add>, %338, %cst_129 [1] : vector<16x32xf32> to vector<16xf32>
    %340 = vector.shape_cast %339 : vector<16xf32> to vector<16x1xf32>
    %cst_130 = arith.constant 3.200000e+01 : f32
    %341 = vector.broadcast %cst_130 : f32 to vector<16x1xf32>
    %342 = arith.divf %340, %341 : vector<16x1xf32>
    %cst_131 = arith.constant 9.99999974E-6 : f32
    %343 = vector.broadcast %cst_131 : f32 to vector<16x1xf32>
    %344 = arith.addf %342, %343 : vector<16x1xf32>
    %345 = math.rsqrt %344 : vector<16x1xf32>
    %346 = vector.broadcast %345 : vector<16x1xf32> to vector<16x32xf32>
    %347 = arith.mulf %337, %346 : vector<16x32xf32>
    %348 = vector.broadcast %265 : vector<1x32xf32> to vector<16x32xf32>
    %349 = arith.mulf %347, %348 : vector<16x32xf32>
    %350 = vector.broadcast %266 : vector<1x32xf32> to vector<16x32xf32>
    %351 = arith.addf %349, %350 : vector<16x32xf32>
    %352 = arith.truncf %351 : vector<16x32xf32> to vector<16x32xbf16>
    %cst_132 = arith.constant dense<0.000000e+00> : vector<16x2048xf32>
    %353 = tpu.matmul %352, %268, %cst_132 {dimension_numbers = #tpu.dot_dimension_numbers<[1], [0], [0], [1], [0, 0, 1, 1], [], []>} : vector<16x32xbf16>, vector<32x2048xbf16>, vector<16x2048xf32> -> vector<16x2048xf32>
    %354 = vector.broadcast %269 : vector<1x2048xf32> to vector<16x2048xf32>
    %355 = arith.addf %353, %354 : vector<16x2048xf32>
    %cst_133 = arith.constant 0.000000e+00 : f32
    %356 = vector.broadcast %cst_133 : f32 to vector<16x2048xf32>
    %357 = arith.maximumf %355, %356 : vector<16x2048xf32>
    %358 = arith.truncf %357 : vector<16x2048xf32> to vector<16x2048xbf16>
    %cst_134 = arith.constant dense<0.000000e+00> : vector<16x32xf32>
    %359 = tpu.matmul %358, %271, %cst_134 {dimension_numbers = #tpu.dot_dimension_numbers<[1], [1], [0], [0], [0, 0, 1, 0], [], []>} : vector<16x2048xbf16>, vector<32x2048xbf16>, vector<16x32xf32> -> vector<16x32xf32>
    %360 = vector.broadcast %272 : vector<1x32xf32> to vector<16x32xf32>
    %361 = arith.addf %359, %360 : vector<16x32xf32>
    %362 = arith.addf %351, %361 : vector<16x32xf32>
    %cst_135 = arith.constant dense<0.000000e+00> : vector<16xf32>
    %363 = vector.multi_reduction <add>, %362, %cst_135 [1] : vector<16x32xf32> to vector<16xf32>
    %364 = vector.shape_cast %363 : vector<16xf32> to vector<16x1xf32>
    %cst_136 = arith.constant 3.200000e+01 : f32
    %365 = vector.broadcast %cst_136 : f32 to vector<16x1xf32>
    %366 = arith.divf %364, %365 : vector<16x1xf32>
    %367 = vector.broadcast %366 : vector<16x1xf32> to vector<16x32xf32>
    %368 = arith.subf %362, %367 : vector<16x32xf32>
    %369 = arith.mulf %368, %368 : vector<16x32xf32>
    %cst_137 = arith.constant dense<0.000000e+00> : vector<16xf32>
    %370 = vector.multi_reduction <add>, %369, %cst_137 [1] : vector<16x32xf32> to vector<16xf32>
    %371 = vector.shape_cast %370 : vector<16xf32> to vector<16x1xf32>
    %cst_138 = arith.constant 3.200000e+01 : f32
    %372 = vector.broadcast %cst_138 : f32 to vector<16x1xf32>
    %373 = arith.divf %371, %372 : vector<16x1xf32>
    %cst_139 = arith.constant 9.99999974E-6 : f32
    %374 = vector.broadcast %cst_139 : f32 to vector<16x1xf32>
    %375 = arith.addf %373, %374 : vector<16x1xf32>
    %376 = math.rsqrt %375 : vector<16x1xf32>
    %377 = vector.broadcast %376 : vector<16x1xf32> to vector<16x32xf32>
    %378 = arith.mulf %368, %377 : vector<16x32xf32>
    %379 = vector.broadcast %273 : vector<1x32xf32> to vector<16x32xf32>
    %380 = arith.mulf %378, %379 : vector<16x32xf32>
    %381 = vector.broadcast %274 : vector<1x32xf32> to vector<16x32xf32>
    %382 = arith.addf %380, %381 : vector<16x32xf32>
    %c3 = arith.constant 3 : index
    %c0_140 = arith.constant 0 : index
    %c0_141 = arith.constant 0 : index
    %383 = vector.load %arg6[%c3, %c0_140, %c0_141] : memref<6x32x96xbf16, #tpu.memory_space<vmem>>, vector<1x32x96xbf16>
    %384 = vector.shape_cast %383 : vector<1x32x96xbf16> to vector<32x96xbf16>
    %c3_142 = arith.constant 3 : index
    %c0_143 = arith.constant 0 : index
    %385 = vector.load %arg7[%c3_142, %c0_143] : memref<6x96xf32, #tpu.memory_space<vmem>>, vector<1x96xf32>
    %c3_144 = arith.constant 3 : index
    %c0_145 = arith.constant 0 : index
    %c0_146 = arith.constant 0 : index
    %386 = vector.load %arg8[%c3_144, %c0_145, %c0_146] : memref<6x32x32xbf16, #tpu.memory_space<vmem>>, vector<1x32x32xbf16>
    %387 = vector.shape_cast %386 : vector<1x32x32xbf16> to vector<32x32xbf16>
    %c3_147 = arith.constant 3 : index
    %c0_148 = arith.constant 0 : index
    %388 = vector.load %arg9[%c3_147, %c0_148] : memref<6x32xf32, #tpu.memory_space<vmem>>, vector<1x32xf32>
    %c3_149 = arith.constant 3 : index
    %c0_150 = arith.constant 0 : index
    %389 = vector.load %arg10[%c3_149, %c0_150] : memref<6x32xf32, #tpu.memory_space<vmem>>, vector<1x32xf32>
    %c3_151 = arith.constant 3 : index
    %c0_152 = arith.constant 0 : index
    %390 = vector.load %arg11[%c3_151, %c0_152] : memref<6x32xf32, #tpu.memory_space<vmem>>, vector<1x32xf32>
    %c3_153 = arith.constant 3 : index
    %c0_154 = arith.constant 0 : index
    %c0_155 = arith.constant 0 : index
    %391 = vector.load %arg12[%c3_153, %c0_154, %c0_155] : memref<6x32x2048xbf16, #tpu.memory_space<vmem>>, vector<1x32x2048xbf16>
    %392 = vector.shape_cast %391 : vector<1x32x2048xbf16> to vector<32x2048xbf16>
    %c3_156 = arith.constant 3 : index
    %c0_157 = arith.constant 0 : index
    %393 = vector.load %arg13[%c3_156, %c0_157] : memref<6x2048xf32, #tpu.memory_space<vmem>>, vector<1x2048xf32>
    %c3_158 = arith.constant 3 : index
    %c0_159 = arith.constant 0 : index
    %c0_160 = arith.constant 0 : index
    %394 = vector.load %arg14[%c3_158, %c0_159, %c0_160] : memref<6x32x2048xbf16, #tpu.memory_space<vmem>>, vector<1x32x2048xbf16>
    %395 = vector.shape_cast %394 : vector<1x32x2048xbf16> to vector<32x2048xbf16>
    %c3_161 = arith.constant 3 : index
    %c0_162 = arith.constant 0 : index
    %396 = vector.load %arg15[%c3_161, %c0_162] : memref<6x32xf32, #tpu.memory_space<vmem>>, vector<1x32xf32>
    %c3_163 = arith.constant 3 : index
    %c0_164 = arith.constant 0 : index
    %397 = vector.load %arg16[%c3_163, %c0_164] : memref<6x32xf32, #tpu.memory_space<vmem>>, vector<1x32xf32>
    %c3_165 = arith.constant 3 : index
    %c0_166 = arith.constant 0 : index
    %398 = vector.load %arg17[%c3_165, %c0_166] : memref<6x32xf32, #tpu.memory_space<vmem>>, vector<1x32xf32>
    %399 = arith.truncf %382 : vector<16x32xf32> to vector<16x32xbf16>
    %cst_167 = arith.constant dense<0.000000e+00> : vector<16x96xf32>
    %400 = tpu.matmul %399, %384, %cst_167 {dimension_numbers = #tpu.dot_dimension_numbers<[1], [0], [0], [1], [0, 0, 1, 1], [], []>} : vector<16x32xbf16>, vector<32x96xbf16>, vector<16x96xf32> -> vector<16x96xf32>
    %401 = vector.broadcast %385 : vector<1x96xf32> to vector<16x96xf32>
    %402 = arith.addf %400, %401 : vector<16x96xf32>
    %403 = vector.extract_strided_slice %402 {offsets = [0, 0], sizes = [16, 32], strides = [1, 1]} : vector<16x96xf32> to vector<16x32xf32>
    %404 = vector.extract_strided_slice %402 {offsets = [0, 32], sizes = [16, 32], strides = [1, 1]} : vector<16x96xf32> to vector<16x32xf32>
    %405 = vector.extract_strided_slice %402 {offsets = [0, 64], sizes = [16, 32], strides = [1, 1]} : vector<16x96xf32> to vector<16x32xf32>
    %406 = vector.extract_strided_slice %403 {offsets = [0, 0], sizes = [8, 32], strides = [1, 1]} : vector<16x32xf32> to vector<8x32xf32>
    %407 = vector.extract_strided_slice %403 {offsets = [8, 0], sizes = [8, 32], strides = [1, 1]} : vector<16x32xf32> to vector<8x32xf32>
    %408 = vector.extract_strided_slice %404 {offsets = [0, 0], sizes = [8, 32], strides = [1, 1]} : vector<16x32xf32> to vector<8x32xf32>
    %409 = vector.extract_strided_slice %404 {offsets = [8, 0], sizes = [8, 32], strides = [1, 1]} : vector<16x32xf32> to vector<8x32xf32>
    %410 = vector.extract_strided_slice %405 {offsets = [0, 0], sizes = [8, 32], strides = [1, 1]} : vector<16x32xf32> to vector<8x32xf32>
    %411 = vector.extract_strided_slice %405 {offsets = [8, 0], sizes = [8, 32], strides = [1, 1]} : vector<16x32xf32> to vector<8x32xf32>
    %412 = tpu.concatenate %406, %406, %407, %407 in 0 : vector<8x32xf32>, vector<8x32xf32>, vector<8x32xf32>, vector<8x32xf32> -> vector<32x32xf32>
    %413 = tpu.concatenate %408, %409, %408, %409 in 0 : vector<8x32xf32>, vector<8x32xf32>, vector<8x32xf32>, vector<8x32xf32> -> vector<32x32xf32>
    %414 = tpu.concatenate %410, %411, %410, %411 in 0 : vector<8x32xf32>, vector<8x32xf32>, vector<8x32xf32>, vector<8x32xf32> -> vector<32x32xf32>
    %415 = arith.mulf %412, %413 : vector<32x32xf32>
    %416 = arith.truncf %415 : vector<32x32xf32> to vector<32x32xbf16>
    %cst_168 = arith.constant dense<0.000000e+00> : vector<32x8xf32>
    %417 = tpu.matmul %416, %9, %cst_168 {dimension_numbers = #tpu.dot_dimension_numbers<[1], [0], [0], [1], [0, 0, 1, 1], [], []>} : vector<32x32xbf16>, vector<32x8xbf16>, vector<32x8xf32> -> vector<32x8xf32>
    %418 = vector.extract_strided_slice %417 {offsets = [0, 0], sizes = [8, 8], strides = [1, 1]} : vector<32x8xf32> to vector<8x8xf32>
    %419 = vector.extract_strided_slice %417 {offsets = [8, 0], sizes = [8, 8], strides = [1, 1]} : vector<32x8xf32> to vector<8x8xf32>
    %420 = arith.maximumf %418, %419 : vector<8x8xf32>
    %421 = arith.subf %418, %420 : vector<8x8xf32>
    %422 = math.exp %421 : vector<8x8xf32>
    %423 = arith.subf %419, %420 : vector<8x8xf32>
    %424 = math.exp %423 : vector<8x8xf32>
    %425 = arith.addf %422, %424 : vector<8x8xf32>
    %426 = tpu.reciprocal %425 {approx = true} : vector<8x8xf32> -> vector<8x8xf32>
    %427 = arith.mulf %422, %426 : vector<8x8xf32>
    %428 = arith.mulf %424, %426 : vector<8x8xf32>
    %429 = vector.extract_strided_slice %417 {offsets = [16, 0], sizes = [8, 8], strides = [1, 1]} : vector<32x8xf32> to vector<8x8xf32>
    %430 = vector.extract_strided_slice %417 {offsets = [24, 0], sizes = [8, 8], strides = [1, 1]} : vector<32x8xf32> to vector<8x8xf32>
    %431 = arith.maximumf %429, %430 : vector<8x8xf32>
    %432 = arith.subf %429, %431 : vector<8x8xf32>
    %433 = math.exp %432 : vector<8x8xf32>
    %434 = arith.subf %430, %431 : vector<8x8xf32>
    %435 = math.exp %434 : vector<8x8xf32>
    %436 = arith.addf %433, %435 : vector<8x8xf32>
    %437 = tpu.reciprocal %436 {approx = true} : vector<8x8xf32> -> vector<8x8xf32>
    %438 = arith.mulf %433, %437 : vector<8x8xf32>
    %439 = arith.mulf %435, %437 : vector<8x8xf32>
    %440 = tpu.concatenate %427, %428, %438, %439 in 0 : vector<8x8xf32>, vector<8x8xf32>, vector<8x8xf32>, vector<8x8xf32> -> vector<32x8xf32>
    %441 = arith.truncf %440 : vector<32x8xf32> to vector<32x8xbf16>
    %cst_169 = arith.constant dense<0.000000e+00> : vector<32x32xf32>
    %442 = tpu.matmul %441, %10, %cst_169 {dimension_numbers = #tpu.dot_dimension_numbers<[1], [0], [0], [1], [0, 0, 1, 1], [], []>} : vector<32x8xbf16>, vector<8x32xbf16>, vector<32x32xf32> -> vector<32x32xf32>
    %443 = arith.mulf %442, %414 : vector<32x32xf32>
    %444 = vector.extract_strided_slice %443 {offsets = [0, 0], sizes = [8, 32], strides = [1, 1]} : vector<32x32xf32> to vector<8x32xf32>
    %445 = vector.extract_strided_slice %443 {offsets = [8, 0], sizes = [8, 32], strides = [1, 1]} : vector<32x32xf32> to vector<8x32xf32>
    %446 = arith.addf %444, %445 : vector<8x32xf32>
    %447 = vector.extract_strided_slice %443 {offsets = [16, 0], sizes = [8, 32], strides = [1, 1]} : vector<32x32xf32> to vector<8x32xf32>
    %448 = vector.extract_strided_slice %443 {offsets = [24, 0], sizes = [8, 32], strides = [1, 1]} : vector<32x32xf32> to vector<8x32xf32>
    %449 = arith.addf %447, %448 : vector<8x32xf32>
    %450 = tpu.concatenate %446, %449 in 0 : vector<8x32xf32>, vector<8x32xf32> -> vector<16x32xf32>
    %451 = arith.truncf %450 : vector<16x32xf32> to vector<16x32xbf16>
    %cst_170 = arith.constant dense<0.000000e+00> : vector<16x32xf32>
    %452 = tpu.matmul %451, %387, %cst_170 {dimension_numbers = #tpu.dot_dimension_numbers<[1], [0], [0], [1], [0, 0, 1, 1], [], []>} : vector<16x32xbf16>, vector<32x32xbf16>, vector<16x32xf32> -> vector<16x32xf32>
    %453 = vector.broadcast %388 : vector<1x32xf32> to vector<16x32xf32>
    %454 = arith.addf %452, %453 : vector<16x32xf32>
    %455 = arith.addf %382, %454 : vector<16x32xf32>
    %cst_171 = arith.constant dense<0.000000e+00> : vector<16xf32>
    %456 = vector.multi_reduction <add>, %455, %cst_171 [1] : vector<16x32xf32> to vector<16xf32>
    %457 = vector.shape_cast %456 : vector<16xf32> to vector<16x1xf32>
    %cst_172 = arith.constant 3.200000e+01 : f32
    %458 = vector.broadcast %cst_172 : f32 to vector<16x1xf32>
    %459 = arith.divf %457, %458 : vector<16x1xf32>
    %460 = vector.broadcast %459 : vector<16x1xf32> to vector<16x32xf32>
    %461 = arith.subf %455, %460 : vector<16x32xf32>
    %462 = arith.mulf %461, %461 : vector<16x32xf32>
    %cst_173 = arith.constant dense<0.000000e+00> : vector<16xf32>
    %463 = vector.multi_reduction <add>, %462, %cst_173 [1] : vector<16x32xf32> to vector<16xf32>
    %464 = vector.shape_cast %463 : vector<16xf32> to vector<16x1xf32>
    %cst_174 = arith.constant 3.200000e+01 : f32
    %465 = vector.broadcast %cst_174 : f32 to vector<16x1xf32>
    %466 = arith.divf %464, %465 : vector<16x1xf32>
    %cst_175 = arith.constant 9.99999974E-6 : f32
    %467 = vector.broadcast %cst_175 : f32 to vector<16x1xf32>
    %468 = arith.addf %466, %467 : vector<16x1xf32>
    %469 = math.rsqrt %468 : vector<16x1xf32>
    %470 = vector.broadcast %469 : vector<16x1xf32> to vector<16x32xf32>
    %471 = arith.mulf %461, %470 : vector<16x32xf32>
    %472 = vector.broadcast %389 : vector<1x32xf32> to vector<16x32xf32>
    %473 = arith.mulf %471, %472 : vector<16x32xf32>
    %474 = vector.broadcast %390 : vector<1x32xf32> to vector<16x32xf32>
    %475 = arith.addf %473, %474 : vector<16x32xf32>
    %476 = arith.truncf %475 : vector<16x32xf32> to vector<16x32xbf16>
    %cst_176 = arith.constant dense<0.000000e+00> : vector<16x2048xf32>
    %477 = tpu.matmul %476, %392, %cst_176 {dimension_numbers = #tpu.dot_dimension_numbers<[1], [0], [0], [1], [0, 0, 1, 1], [], []>} : vector<16x32xbf16>, vector<32x2048xbf16>, vector<16x2048xf32> -> vector<16x2048xf32>
    %478 = vector.broadcast %393 : vector<1x2048xf32> to vector<16x2048xf32>
    %479 = arith.addf %477, %478 : vector<16x2048xf32>
    %cst_177 = arith.constant 0.000000e+00 : f32
    %480 = vector.broadcast %cst_177 : f32 to vector<16x2048xf32>
    %481 = arith.maximumf %479, %480 : vector<16x2048xf32>
    %482 = arith.truncf %481 : vector<16x2048xf32> to vector<16x2048xbf16>
    %cst_178 = arith.constant dense<0.000000e+00> : vector<16x32xf32>
    %483 = tpu.matmul %482, %395, %cst_178 {dimension_numbers = #tpu.dot_dimension_numbers<[1], [1], [0], [0], [0, 0, 1, 0], [], []>} : vector<16x2048xbf16>, vector<32x2048xbf16>, vector<16x32xf32> -> vector<16x32xf32>
    %484 = vector.broadcast %396 : vector<1x32xf32> to vector<16x32xf32>
    %485 = arith.addf %483, %484 : vector<16x32xf32>
    %486 = arith.addf %475, %485 : vector<16x32xf32>
    %cst_179 = arith.constant dense<0.000000e+00> : vector<16xf32>
    %487 = vector.multi_reduction <add>, %486, %cst_179 [1] : vector<16x32xf32> to vector<16xf32>
    %488 = vector.shape_cast %487 : vector<16xf32> to vector<16x1xf32>
    %cst_180 = arith.constant 3.200000e+01 : f32
    %489 = vector.broadcast %cst_180 : f32 to vector<16x1xf32>
    %490 = arith.divf %488, %489 : vector<16x1xf32>
    %491 = vector.broadcast %490 : vector<16x1xf32> to vector<16x32xf32>
    %492 = arith.subf %486, %491 : vector<16x32xf32>
    %493 = arith.mulf %492, %492 : vector<16x32xf32>
    %cst_181 = arith.constant dense<0.000000e+00> : vector<16xf32>
    %494 = vector.multi_reduction <add>, %493, %cst_181 [1] : vector<16x32xf32> to vector<16xf32>
    %495 = vector.shape_cast %494 : vector<16xf32> to vector<16x1xf32>
    %cst_182 = arith.constant 3.200000e+01 : f32
    %496 = vector.broadcast %cst_182 : f32 to vector<16x1xf32>
    %497 = arith.divf %495, %496 : vector<16x1xf32>
    %cst_183 = arith.constant 9.99999974E-6 : f32
    %498 = vector.broadcast %cst_183 : f32 to vector<16x1xf32>
    %499 = arith.addf %497, %498 : vector<16x1xf32>
    %500 = math.rsqrt %499 : vector<16x1xf32>
    %501 = vector.broadcast %500 : vector<16x1xf32> to vector<16x32xf32>
    %502 = arith.mulf %492, %501 : vector<16x32xf32>
    %503 = vector.broadcast %397 : vector<1x32xf32> to vector<16x32xf32>
    %504 = arith.mulf %502, %503 : vector<16x32xf32>
    %505 = vector.broadcast %398 : vector<1x32xf32> to vector<16x32xf32>
    %506 = arith.addf %504, %505 : vector<16x32xf32>
    %c4 = arith.constant 4 : index
    %c0_184 = arith.constant 0 : index
    %c0_185 = arith.constant 0 : index
    %507 = vector.load %arg6[%c4, %c0_184, %c0_185] : memref<6x32x96xbf16, #tpu.memory_space<vmem>>, vector<1x32x96xbf16>
    %508 = vector.shape_cast %507 : vector<1x32x96xbf16> to vector<32x96xbf16>
    %c4_186 = arith.constant 4 : index
    %c0_187 = arith.constant 0 : index
    %509 = vector.load %arg7[%c4_186, %c0_187] : memref<6x96xf32, #tpu.memory_space<vmem>>, vector<1x96xf32>
    %c4_188 = arith.constant 4 : index
    %c0_189 = arith.constant 0 : index
    %c0_190 = arith.constant 0 : index
    %510 = vector.load %arg8[%c4_188, %c0_189, %c0_190] : memref<6x32x32xbf16, #tpu.memory_space<vmem>>, vector<1x32x32xbf16>
    %511 = vector.shape_cast %510 : vector<1x32x32xbf16> to vector<32x32xbf16>
    %c4_191 = arith.constant 4 : index
    %c0_192 = arith.constant 0 : index
    %512 = vector.load %arg9[%c4_191, %c0_192] : memref<6x32xf32, #tpu.memory_space<vmem>>, vector<1x32xf32>
    %c4_193 = arith.constant 4 : index
    %c0_194 = arith.constant 0 : index
    %513 = vector.load %arg10[%c4_193, %c0_194] : memref<6x32xf32, #tpu.memory_space<vmem>>, vector<1x32xf32>
    %c4_195 = arith.constant 4 : index
    %c0_196 = arith.constant 0 : index
    %514 = vector.load %arg11[%c4_195, %c0_196] : memref<6x32xf32, #tpu.memory_space<vmem>>, vector<1x32xf32>
    %c4_197 = arith.constant 4 : index
    %c0_198 = arith.constant 0 : index
    %c0_199 = arith.constant 0 : index
    %515 = vector.load %arg12[%c4_197, %c0_198, %c0_199] : memref<6x32x2048xbf16, #tpu.memory_space<vmem>>, vector<1x32x2048xbf16>
    %516 = vector.shape_cast %515 : vector<1x32x2048xbf16> to vector<32x2048xbf16>
    %c4_200 = arith.constant 4 : index
    %c0_201 = arith.constant 0 : index
    %517 = vector.load %arg13[%c4_200, %c0_201] : memref<6x2048xf32, #tpu.memory_space<vmem>>, vector<1x2048xf32>
    %c4_202 = arith.constant 4 : index
    %c0_203 = arith.constant 0 : index
    %c0_204 = arith.constant 0 : index
    %518 = vector.load %arg14[%c4_202, %c0_203, %c0_204] : memref<6x32x2048xbf16, #tpu.memory_space<vmem>>, vector<1x32x2048xbf16>
    %519 = vector.shape_cast %518 : vector<1x32x2048xbf16> to vector<32x2048xbf16>
    %c4_205 = arith.constant 4 : index
    %c0_206 = arith.constant 0 : index
    %520 = vector.load %arg15[%c4_205, %c0_206] : memref<6x32xf32, #tpu.memory_space<vmem>>, vector<1x32xf32>
    %c4_207 = arith.constant 4 : index
    %c0_208 = arith.constant 0 : index
    %521 = vector.load %arg16[%c4_207, %c0_208] : memref<6x32xf32, #tpu.memory_space<vmem>>, vector<1x32xf32>
    %c4_209 = arith.constant 4 : index
    %c0_210 = arith.constant 0 : index
    %522 = vector.load %arg17[%c4_209, %c0_210] : memref<6x32xf32, #tpu.memory_space<vmem>>, vector<1x32xf32>
    %523 = arith.truncf %506 : vector<16x32xf32> to vector<16x32xbf16>
    %cst_211 = arith.constant dense<0.000000e+00> : vector<16x96xf32>
    %524 = tpu.matmul %523, %508, %cst_211 {dimension_numbers = #tpu.dot_dimension_numbers<[1], [0], [0], [1], [0, 0, 1, 1], [], []>} : vector<16x32xbf16>, vector<32x96xbf16>, vector<16x96xf32> -> vector<16x96xf32>
    %525 = vector.broadcast %509 : vector<1x96xf32> to vector<16x96xf32>
    %526 = arith.addf %524, %525 : vector<16x96xf32>
    %527 = vector.extract_strided_slice %526 {offsets = [0, 0], sizes = [16, 32], strides = [1, 1]} : vector<16x96xf32> to vector<16x32xf32>
    %528 = vector.extract_strided_slice %526 {offsets = [0, 32], sizes = [16, 32], strides = [1, 1]} : vector<16x96xf32> to vector<16x32xf32>
    %529 = vector.extract_strided_slice %526 {offsets = [0, 64], sizes = [16, 32], strides = [1, 1]} : vector<16x96xf32> to vector<16x32xf32>
    %530 = vector.extract_strided_slice %527 {offsets = [0, 0], sizes = [8, 32], strides = [1, 1]} : vector<16x32xf32> to vector<8x32xf32>
    %531 = vector.extract_strided_slice %527 {offsets = [8, 0], sizes = [8, 32], strides = [1, 1]} : vector<16x32xf32> to vector<8x32xf32>
    %532 = vector.extract_strided_slice %528 {offsets = [0, 0], sizes = [8, 32], strides = [1, 1]} : vector<16x32xf32> to vector<8x32xf32>
    %533 = vector.extract_strided_slice %528 {offsets = [8, 0], sizes = [8, 32], strides = [1, 1]} : vector<16x32xf32> to vector<8x32xf32>
    %534 = vector.extract_strided_slice %529 {offsets = [0, 0], sizes = [8, 32], strides = [1, 1]} : vector<16x32xf32> to vector<8x32xf32>
    %535 = vector.extract_strided_slice %529 {offsets = [8, 0], sizes = [8, 32], strides = [1, 1]} : vector<16x32xf32> to vector<8x32xf32>
    %536 = tpu.concatenate %530, %530, %531, %531 in 0 : vector<8x32xf32>, vector<8x32xf32>, vector<8x32xf32>, vector<8x32xf32> -> vector<32x32xf32>
    %537 = tpu.concatenate %532, %533, %532, %533 in 0 : vector<8x32xf32>, vector<8x32xf32>, vector<8x32xf32>, vector<8x32xf32> -> vector<32x32xf32>
    %538 = tpu.concatenate %534, %535, %534, %535 in 0 : vector<8x32xf32>, vector<8x32xf32>, vector<8x32xf32>, vector<8x32xf32> -> vector<32x32xf32>
    %539 = arith.mulf %536, %537 : vector<32x32xf32>
    %540 = arith.truncf %539 : vector<32x32xf32> to vector<32x32xbf16>
    %cst_212 = arith.constant dense<0.000000e+00> : vector<32x8xf32>
    %541 = tpu.matmul %540, %9, %cst_212 {dimension_numbers = #tpu.dot_dimension_numbers<[1], [0], [0], [1], [0, 0, 1, 1], [], []>} : vector<32x32xbf16>, vector<32x8xbf16>, vector<32x8xf32> -> vector<32x8xf32>
    %542 = vector.extract_strided_slice %541 {offsets = [0, 0], sizes = [8, 8], strides = [1, 1]} : vector<32x8xf32> to vector<8x8xf32>
    %543 = vector.extract_strided_slice %541 {offsets = [8, 0], sizes = [8, 8], strides = [1, 1]} : vector<32x8xf32> to vector<8x8xf32>
    %544 = arith.maximumf %542, %543 : vector<8x8xf32>
    %545 = arith.subf %542, %544 : vector<8x8xf32>
    %546 = math.exp %545 : vector<8x8xf32>
    %547 = arith.subf %543, %544 : vector<8x8xf32>
    %548 = math.exp %547 : vector<8x8xf32>
    %549 = arith.addf %546, %548 : vector<8x8xf32>
    %550 = tpu.reciprocal %549 {approx = true} : vector<8x8xf32> -> vector<8x8xf32>
    %551 = arith.mulf %546, %550 : vector<8x8xf32>
    %552 = arith.mulf %548, %550 : vector<8x8xf32>
    %553 = vector.extract_strided_slice %541 {offsets = [16, 0], sizes = [8, 8], strides = [1, 1]} : vector<32x8xf32> to vector<8x8xf32>
    %554 = vector.extract_strided_slice %541 {offsets = [24, 0], sizes = [8, 8], strides = [1, 1]} : vector<32x8xf32> to vector<8x8xf32>
    %555 = arith.maximumf %553, %554 : vector<8x8xf32>
    %556 = arith.subf %553, %555 : vector<8x8xf32>
    %557 = math.exp %556 : vector<8x8xf32>
    %558 = arith.subf %554, %555 : vector<8x8xf32>
    %559 = math.exp %558 : vector<8x8xf32>
    %560 = arith.addf %557, %559 : vector<8x8xf32>
    %561 = tpu.reciprocal %560 {approx = true} : vector<8x8xf32> -> vector<8x8xf32>
    %562 = arith.mulf %557, %561 : vector<8x8xf32>
    %563 = arith.mulf %559, %561 : vector<8x8xf32>
    %564 = tpu.concatenate %551, %552, %562, %563 in 0 : vector<8x8xf32>, vector<8x8xf32>, vector<8x8xf32>, vector<8x8xf32> -> vector<32x8xf32>
    %565 = arith.truncf %564 : vector<32x8xf32> to vector<32x8xbf16>
    %cst_213 = arith.constant dense<0.000000e+00> : vector<32x32xf32>
    %566 = tpu.matmul %565, %10, %cst_213 {dimension_numbers = #tpu.dot_dimension_numbers<[1], [0], [0], [1], [0, 0, 1, 1], [], []>} : vector<32x8xbf16>, vector<8x32xbf16>, vector<32x32xf32> -> vector<32x32xf32>
    %567 = arith.mulf %566, %538 : vector<32x32xf32>
    %568 = vector.extract_strided_slice %567 {offsets = [0, 0], sizes = [8, 32], strides = [1, 1]} : vector<32x32xf32> to vector<8x32xf32>
    %569 = vector.extract_strided_slice %567 {offsets = [8, 0], sizes = [8, 32], strides = [1, 1]} : vector<32x32xf32> to vector<8x32xf32>
    %570 = arith.addf %568, %569 : vector<8x32xf32>
    %571 = vector.extract_strided_slice %567 {offsets = [16, 0], sizes = [8, 32], strides = [1, 1]} : vector<32x32xf32> to vector<8x32xf32>
    %572 = vector.extract_strided_slice %567 {offsets = [24, 0], sizes = [8, 32], strides = [1, 1]} : vector<32x32xf32> to vector<8x32xf32>
    %573 = arith.addf %571, %572 : vector<8x32xf32>
    %574 = tpu.concatenate %570, %573 in 0 : vector<8x32xf32>, vector<8x32xf32> -> vector<16x32xf32>
    %575 = arith.truncf %574 : vector<16x32xf32> to vector<16x32xbf16>
    %cst_214 = arith.constant dense<0.000000e+00> : vector<16x32xf32>
    %576 = tpu.matmul %575, %511, %cst_214 {dimension_numbers = #tpu.dot_dimension_numbers<[1], [0], [0], [1], [0, 0, 1, 1], [], []>} : vector<16x32xbf16>, vector<32x32xbf16>, vector<16x32xf32> -> vector<16x32xf32>
    %577 = vector.broadcast %512 : vector<1x32xf32> to vector<16x32xf32>
    %578 = arith.addf %576, %577 : vector<16x32xf32>
    %579 = arith.addf %506, %578 : vector<16x32xf32>
    %cst_215 = arith.constant dense<0.000000e+00> : vector<16xf32>
    %580 = vector.multi_reduction <add>, %579, %cst_215 [1] : vector<16x32xf32> to vector<16xf32>
    %581 = vector.shape_cast %580 : vector<16xf32> to vector<16x1xf32>
    %cst_216 = arith.constant 3.200000e+01 : f32
    %582 = vector.broadcast %cst_216 : f32 to vector<16x1xf32>
    %583 = arith.divf %581, %582 : vector<16x1xf32>
    %584 = vector.broadcast %583 : vector<16x1xf32> to vector<16x32xf32>
    %585 = arith.subf %579, %584 : vector<16x32xf32>
    %586 = arith.mulf %585, %585 : vector<16x32xf32>
    %cst_217 = arith.constant dense<0.000000e+00> : vector<16xf32>
    %587 = vector.multi_reduction <add>, %586, %cst_217 [1] : vector<16x32xf32> to vector<16xf32>
    %588 = vector.shape_cast %587 : vector<16xf32> to vector<16x1xf32>
    %cst_218 = arith.constant 3.200000e+01 : f32
    %589 = vector.broadcast %cst_218 : f32 to vector<16x1xf32>
    %590 = arith.divf %588, %589 : vector<16x1xf32>
    %cst_219 = arith.constant 9.99999974E-6 : f32
    %591 = vector.broadcast %cst_219 : f32 to vector<16x1xf32>
    %592 = arith.addf %590, %591 : vector<16x1xf32>
    %593 = math.rsqrt %592 : vector<16x1xf32>
    %594 = vector.broadcast %593 : vector<16x1xf32> to vector<16x32xf32>
    %595 = arith.mulf %585, %594 : vector<16x32xf32>
    %596 = vector.broadcast %513 : vector<1x32xf32> to vector<16x32xf32>
    %597 = arith.mulf %595, %596 : vector<16x32xf32>
    %598 = vector.broadcast %514 : vector<1x32xf32> to vector<16x32xf32>
    %599 = arith.addf %597, %598 : vector<16x32xf32>
    %600 = arith.truncf %599 : vector<16x32xf32> to vector<16x32xbf16>
    %cst_220 = arith.constant dense<0.000000e+00> : vector<16x2048xf32>
    %601 = tpu.matmul %600, %516, %cst_220 {dimension_numbers = #tpu.dot_dimension_numbers<[1], [0], [0], [1], [0, 0, 1, 1], [], []>} : vector<16x32xbf16>, vector<32x2048xbf16>, vector<16x2048xf32> -> vector<16x2048xf32>
    %602 = vector.broadcast %517 : vector<1x2048xf32> to vector<16x2048xf32>
    %603 = arith.addf %601, %602 : vector<16x2048xf32>
    %cst_221 = arith.constant 0.000000e+00 : f32
    %604 = vector.broadcast %cst_221 : f32 to vector<16x2048xf32>
    %605 = arith.maximumf %603, %604 : vector<16x2048xf32>
    %606 = arith.truncf %605 : vector<16x2048xf32> to vector<16x2048xbf16>
    %cst_222 = arith.constant dense<0.000000e+00> : vector<16x32xf32>
    %607 = tpu.matmul %606, %519, %cst_222 {dimension_numbers = #tpu.dot_dimension_numbers<[1], [1], [0], [0], [0, 0, 1, 0], [], []>} : vector<16x2048xbf16>, vector<32x2048xbf16>, vector<16x32xf32> -> vector<16x32xf32>
    %608 = vector.broadcast %520 : vector<1x32xf32> to vector<16x32xf32>
    %609 = arith.addf %607, %608 : vector<16x32xf32>
    %610 = arith.addf %599, %609 : vector<16x32xf32>
    %cst_223 = arith.constant dense<0.000000e+00> : vector<16xf32>
    %611 = vector.multi_reduction <add>, %610, %cst_223 [1] : vector<16x32xf32> to vector<16xf32>
    %612 = vector.shape_cast %611 : vector<16xf32> to vector<16x1xf32>
    %cst_224 = arith.constant 3.200000e+01 : f32
    %613 = vector.broadcast %cst_224 : f32 to vector<16x1xf32>
    %614 = arith.divf %612, %613 : vector<16x1xf32>
    %615 = vector.broadcast %614 : vector<16x1xf32> to vector<16x32xf32>
    %616 = arith.subf %610, %615 : vector<16x32xf32>
    %617 = arith.mulf %616, %616 : vector<16x32xf32>
    %cst_225 = arith.constant dense<0.000000e+00> : vector<16xf32>
    %618 = vector.multi_reduction <add>, %617, %cst_225 [1] : vector<16x32xf32> to vector<16xf32>
    %619 = vector.shape_cast %618 : vector<16xf32> to vector<16x1xf32>
    %cst_226 = arith.constant 3.200000e+01 : f32
    %620 = vector.broadcast %cst_226 : f32 to vector<16x1xf32>
    %621 = arith.divf %619, %620 : vector<16x1xf32>
    %cst_227 = arith.constant 9.99999974E-6 : f32
    %622 = vector.broadcast %cst_227 : f32 to vector<16x1xf32>
    %623 = arith.addf %621, %622 : vector<16x1xf32>
    %624 = math.rsqrt %623 : vector<16x1xf32>
    %625 = vector.broadcast %624 : vector<16x1xf32> to vector<16x32xf32>
    %626 = arith.mulf %616, %625 : vector<16x32xf32>
    %627 = vector.broadcast %521 : vector<1x32xf32> to vector<16x32xf32>
    %628 = arith.mulf %626, %627 : vector<16x32xf32>
    %629 = vector.broadcast %522 : vector<1x32xf32> to vector<16x32xf32>
    %630 = arith.addf %628, %629 : vector<16x32xf32>
    %c5 = arith.constant 5 : index
    %c0_228 = arith.constant 0 : index
    %c0_229 = arith.constant 0 : index
    %631 = vector.load %arg6[%c5, %c0_228, %c0_229] : memref<6x32x96xbf16, #tpu.memory_space<vmem>>, vector<1x32x96xbf16>
    %632 = vector.shape_cast %631 : vector<1x32x96xbf16> to vector<32x96xbf16>
    %c5_230 = arith.constant 5 : index
    %c0_231 = arith.constant 0 : index
    %633 = vector.load %arg7[%c5_230, %c0_231] : memref<6x96xf32, #tpu.memory_space<vmem>>, vector<1x96xf32>
    %c5_232 = arith.constant 5 : index
    %c0_233 = arith.constant 0 : index
    %c0_234 = arith.constant 0 : index
    %634 = vector.load %arg8[%c5_232, %c0_233, %c0_234] : memref<6x32x32xbf16, #tpu.memory_space<vmem>>, vector<1x32x32xbf16>
    %635 = vector.shape_cast %634 : vector<1x32x32xbf16> to vector<32x32xbf16>
    %c5_235 = arith.constant 5 : index
    %c0_236 = arith.constant 0 : index
    %636 = vector.load %arg9[%c5_235, %c0_236] : memref<6x32xf32, #tpu.memory_space<vmem>>, vector<1x32xf32>
    %c5_237 = arith.constant 5 : index
    %c0_238 = arith.constant 0 : index
    %637 = vector.load %arg10[%c5_237, %c0_238] : memref<6x32xf32, #tpu.memory_space<vmem>>, vector<1x32xf32>
    %c5_239 = arith.constant 5 : index
    %c0_240 = arith.constant 0 : index
    %638 = vector.load %arg11[%c5_239, %c0_240] : memref<6x32xf32, #tpu.memory_space<vmem>>, vector<1x32xf32>
    %c5_241 = arith.constant 5 : index
    %c0_242 = arith.constant 0 : index
    %c0_243 = arith.constant 0 : index
    %639 = vector.load %arg12[%c5_241, %c0_242, %c0_243] : memref<6x32x2048xbf16, #tpu.memory_space<vmem>>, vector<1x32x2048xbf16>
    %640 = vector.shape_cast %639 : vector<1x32x2048xbf16> to vector<32x2048xbf16>
    %c5_244 = arith.constant 5 : index
    %c0_245 = arith.constant 0 : index
    %641 = vector.load %arg13[%c5_244, %c0_245] : memref<6x2048xf32, #tpu.memory_space<vmem>>, vector<1x2048xf32>
    %c5_246 = arith.constant 5 : index
    %c0_247 = arith.constant 0 : index
    %c0_248 = arith.constant 0 : index
    %642 = vector.load %arg14[%c5_246, %c0_247, %c0_248] : memref<6x32x2048xbf16, #tpu.memory_space<vmem>>, vector<1x32x2048xbf16>
    %643 = vector.shape_cast %642 : vector<1x32x2048xbf16> to vector<32x2048xbf16>
    %c5_249 = arith.constant 5 : index
    %c0_250 = arith.constant 0 : index
    %644 = vector.load %arg15[%c5_249, %c0_250] : memref<6x32xf32, #tpu.memory_space<vmem>>, vector<1x32xf32>
    %c5_251 = arith.constant 5 : index
    %c0_252 = arith.constant 0 : index
    %645 = vector.load %arg16[%c5_251, %c0_252] : memref<6x32xf32, #tpu.memory_space<vmem>>, vector<1x32xf32>
    %c5_253 = arith.constant 5 : index
    %c0_254 = arith.constant 0 : index
    %646 = vector.load %arg17[%c5_253, %c0_254] : memref<6x32xf32, #tpu.memory_space<vmem>>, vector<1x32xf32>
    %647 = arith.truncf %630 : vector<16x32xf32> to vector<16x32xbf16>
    %cst_255 = arith.constant dense<0.000000e+00> : vector<16x96xf32>
    %648 = tpu.matmul %647, %632, %cst_255 {dimension_numbers = #tpu.dot_dimension_numbers<[1], [0], [0], [1], [0, 0, 1, 1], [], []>} : vector<16x32xbf16>, vector<32x96xbf16>, vector<16x96xf32> -> vector<16x96xf32>
    %649 = vector.broadcast %633 : vector<1x96xf32> to vector<16x96xf32>
    %650 = arith.addf %648, %649 : vector<16x96xf32>
    %651 = vector.extract_strided_slice %650 {offsets = [0, 0], sizes = [16, 32], strides = [1, 1]} : vector<16x96xf32> to vector<16x32xf32>
    %652 = vector.extract_strided_slice %650 {offsets = [0, 32], sizes = [16, 32], strides = [1, 1]} : vector<16x96xf32> to vector<16x32xf32>
    %653 = vector.extract_strided_slice %650 {offsets = [0, 64], sizes = [16, 32], strides = [1, 1]} : vector<16x96xf32> to vector<16x32xf32>
    %654 = vector.extract_strided_slice %651 {offsets = [0, 0], sizes = [8, 32], strides = [1, 1]} : vector<16x32xf32> to vector<8x32xf32>
    %655 = vector.extract_strided_slice %651 {offsets = [8, 0], sizes = [8, 32], strides = [1, 1]} : vector<16x32xf32> to vector<8x32xf32>
    %656 = vector.extract_strided_slice %652 {offsets = [0, 0], sizes = [8, 32], strides = [1, 1]} : vector<16x32xf32> to vector<8x32xf32>
    %657 = vector.extract_strided_slice %652 {offsets = [8, 0], sizes = [8, 32], strides = [1, 1]} : vector<16x32xf32> to vector<8x32xf32>
    %658 = vector.extract_strided_slice %653 {offsets = [0, 0], sizes = [8, 32], strides = [1, 1]} : vector<16x32xf32> to vector<8x32xf32>
    %659 = vector.extract_strided_slice %653 {offsets = [8, 0], sizes = [8, 32], strides = [1, 1]} : vector<16x32xf32> to vector<8x32xf32>
    %660 = tpu.concatenate %654, %654, %655, %655 in 0 : vector<8x32xf32>, vector<8x32xf32>, vector<8x32xf32>, vector<8x32xf32> -> vector<32x32xf32>
    %661 = tpu.concatenate %656, %657, %656, %657 in 0 : vector<8x32xf32>, vector<8x32xf32>, vector<8x32xf32>, vector<8x32xf32> -> vector<32x32xf32>
    %662 = tpu.concatenate %658, %659, %658, %659 in 0 : vector<8x32xf32>, vector<8x32xf32>, vector<8x32xf32>, vector<8x32xf32> -> vector<32x32xf32>
    %663 = arith.mulf %660, %661 : vector<32x32xf32>
    %664 = arith.truncf %663 : vector<32x32xf32> to vector<32x32xbf16>
    %cst_256 = arith.constant dense<0.000000e+00> : vector<32x8xf32>
    %665 = tpu.matmul %664, %9, %cst_256 {dimension_numbers = #tpu.dot_dimension_numbers<[1], [0], [0], [1], [0, 0, 1, 1], [], []>} : vector<32x32xbf16>, vector<32x8xbf16>, vector<32x8xf32> -> vector<32x8xf32>
    %666 = vector.extract_strided_slice %665 {offsets = [0, 0], sizes = [8, 8], strides = [1, 1]} : vector<32x8xf32> to vector<8x8xf32>
    %667 = vector.extract_strided_slice %665 {offsets = [8, 0], sizes = [8, 8], strides = [1, 1]} : vector<32x8xf32> to vector<8x8xf32>
    %668 = arith.maximumf %666, %667 : vector<8x8xf32>
    %669 = arith.subf %666, %668 : vector<8x8xf32>
    %670 = math.exp %669 : vector<8x8xf32>
    %671 = arith.subf %667, %668 : vector<8x8xf32>
    %672 = math.exp %671 : vector<8x8xf32>
    %673 = arith.addf %670, %672 : vector<8x8xf32>
    %674 = tpu.reciprocal %673 {approx = true} : vector<8x8xf32> -> vector<8x8xf32>
    %675 = arith.mulf %670, %674 : vector<8x8xf32>
    %676 = arith.mulf %672, %674 : vector<8x8xf32>
    %677 = vector.extract_strided_slice %665 {offsets = [16, 0], sizes = [8, 8], strides = [1, 1]} : vector<32x8xf32> to vector<8x8xf32>
    %678 = vector.extract_strided_slice %665 {offsets = [24, 0], sizes = [8, 8], strides = [1, 1]} : vector<32x8xf32> to vector<8x8xf32>
    %679 = arith.maximumf %677, %678 : vector<8x8xf32>
    %680 = arith.subf %677, %679 : vector<8x8xf32>
    %681 = math.exp %680 : vector<8x8xf32>
    %682 = arith.subf %678, %679 : vector<8x8xf32>
    %683 = math.exp %682 : vector<8x8xf32>
    %684 = arith.addf %681, %683 : vector<8x8xf32>
    %685 = tpu.reciprocal %684 {approx = true} : vector<8x8xf32> -> vector<8x8xf32>
    %686 = arith.mulf %681, %685 : vector<8x8xf32>
    %687 = arith.mulf %683, %685 : vector<8x8xf32>
    %688 = tpu.concatenate %675, %676, %686, %687 in 0 : vector<8x8xf32>, vector<8x8xf32>, vector<8x8xf32>, vector<8x8xf32> -> vector<32x8xf32>
    %689 = arith.truncf %688 : vector<32x8xf32> to vector<32x8xbf16>
    %cst_257 = arith.constant dense<0.000000e+00> : vector<32x32xf32>
    %690 = tpu.matmul %689, %10, %cst_257 {dimension_numbers = #tpu.dot_dimension_numbers<[1], [0], [0], [1], [0, 0, 1, 1], [], []>} : vector<32x8xbf16>, vector<8x32xbf16>, vector<32x32xf32> -> vector<32x32xf32>
    %691 = arith.mulf %690, %662 : vector<32x32xf32>
    %692 = vector.extract_strided_slice %691 {offsets = [0, 0], sizes = [8, 32], strides = [1, 1]} : vector<32x32xf32> to vector<8x32xf32>
    %693 = vector.extract_strided_slice %691 {offsets = [8, 0], sizes = [8, 32], strides = [1, 1]} : vector<32x32xf32> to vector<8x32xf32>
    %694 = arith.addf %692, %693 : vector<8x32xf32>
    %695 = vector.extract_strided_slice %691 {offsets = [16, 0], sizes = [8, 32], strides = [1, 1]} : vector<32x32xf32> to vector<8x32xf32>
    %696 = vector.extract_strided_slice %691 {offsets = [24, 0], sizes = [8, 32], strides = [1, 1]} : vector<32x32xf32> to vector<8x32xf32>
    %697 = arith.addf %695, %696 : vector<8x32xf32>
    %698 = tpu.concatenate %694, %697 in 0 : vector<8x32xf32>, vector<8x32xf32> -> vector<16x32xf32>
    %699 = arith.truncf %698 : vector<16x32xf32> to vector<16x32xbf16>
    %cst_258 = arith.constant dense<0.000000e+00> : vector<16x32xf32>
    %700 = tpu.matmul %699, %635, %cst_258 {dimension_numbers = #tpu.dot_dimension_numbers<[1], [0], [0], [1], [0, 0, 1, 1], [], []>} : vector<16x32xbf16>, vector<32x32xbf16>, vector<16x32xf32> -> vector<16x32xf32>
    %701 = vector.broadcast %636 : vector<1x32xf32> to vector<16x32xf32>
    %702 = arith.addf %700, %701 : vector<16x32xf32>
    %703 = arith.addf %630, %702 : vector<16x32xf32>
    %cst_259 = arith.constant dense<0.000000e+00> : vector<16xf32>
    %704 = vector.multi_reduction <add>, %703, %cst_259 [1] : vector<16x32xf32> to vector<16xf32>
    %705 = vector.shape_cast %704 : vector<16xf32> to vector<16x1xf32>
    %cst_260 = arith.constant 3.200000e+01 : f32
    %706 = vector.broadcast %cst_260 : f32 to vector<16x1xf32>
    %707 = arith.divf %705, %706 : vector<16x1xf32>
    %708 = vector.broadcast %707 : vector<16x1xf32> to vector<16x32xf32>
    %709 = arith.subf %703, %708 : vector<16x32xf32>
    %710 = arith.mulf %709, %709 : vector<16x32xf32>
    %cst_261 = arith.constant dense<0.000000e+00> : vector<16xf32>
    %711 = vector.multi_reduction <add>, %710, %cst_261 [1] : vector<16x32xf32> to vector<16xf32>
    %712 = vector.shape_cast %711 : vector<16xf32> to vector<16x1xf32>
    %cst_262 = arith.constant 3.200000e+01 : f32
    %713 = vector.broadcast %cst_262 : f32 to vector<16x1xf32>
    %714 = arith.divf %712, %713 : vector<16x1xf32>
    %cst_263 = arith.constant 9.99999974E-6 : f32
    %715 = vector.broadcast %cst_263 : f32 to vector<16x1xf32>
    %716 = arith.addf %714, %715 : vector<16x1xf32>
    %717 = math.rsqrt %716 : vector<16x1xf32>
    %718 = vector.broadcast %717 : vector<16x1xf32> to vector<16x32xf32>
    %719 = arith.mulf %709, %718 : vector<16x32xf32>
    %720 = vector.broadcast %637 : vector<1x32xf32> to vector<16x32xf32>
    %721 = arith.mulf %719, %720 : vector<16x32xf32>
    %722 = vector.broadcast %638 : vector<1x32xf32> to vector<16x32xf32>
    %723 = arith.addf %721, %722 : vector<16x32xf32>
    %724 = arith.truncf %723 : vector<16x32xf32> to vector<16x32xbf16>
    %cst_264 = arith.constant dense<0.000000e+00> : vector<16x2048xf32>
    %725 = tpu.matmul %724, %640, %cst_264 {dimension_numbers = #tpu.dot_dimension_numbers<[1], [0], [0], [1], [0, 0, 1, 1], [], []>} : vector<16x32xbf16>, vector<32x2048xbf16>, vector<16x2048xf32> -> vector<16x2048xf32>
    %726 = vector.broadcast %641 : vector<1x2048xf32> to vector<16x2048xf32>
    %727 = arith.addf %725, %726 : vector<16x2048xf32>
    %cst_265 = arith.constant 0.000000e+00 : f32
    %728 = vector.broadcast %cst_265 : f32 to vector<16x2048xf32>
    %729 = arith.maximumf %727, %728 : vector<16x2048xf32>
    %730 = arith.truncf %729 : vector<16x2048xf32> to vector<16x2048xbf16>
    %cst_266 = arith.constant dense<0.000000e+00> : vector<16x32xf32>
    %731 = tpu.matmul %730, %643, %cst_266 {dimension_numbers = #tpu.dot_dimension_numbers<[1], [1], [0], [0], [0, 0, 1, 0], [], []>} : vector<16x2048xbf16>, vector<32x2048xbf16>, vector<16x32xf32> -> vector<16x32xf32>
    %732 = vector.broadcast %644 : vector<1x32xf32> to vector<16x32xf32>
    %733 = arith.addf %731, %732 : vector<16x32xf32>
    %734 = arith.addf %723, %733 : vector<16x32xf32>
    %cst_267 = arith.constant dense<0.000000e+00> : vector<16xf32>
    %735 = vector.multi_reduction <add>, %734, %cst_267 [1] : vector<16x32xf32> to vector<16xf32>
    %736 = vector.shape_cast %735 : vector<16xf32> to vector<16x1xf32>
    %cst_268 = arith.constant 3.200000e+01 : f32
    %737 = vector.broadcast %cst_268 : f32 to vector<16x1xf32>
    %738 = arith.divf %736, %737 : vector<16x1xf32>
    %739 = vector.broadcast %738 : vector<16x1xf32> to vector<16x32xf32>
    %740 = arith.subf %734, %739 : vector<16x32xf32>
    %741 = arith.mulf %740, %740 : vector<16x32xf32>
    %cst_269 = arith.constant dense<0.000000e+00> : vector<16xf32>
    %742 = vector.multi_reduction <add>, %741, %cst_269 [1] : vector<16x32xf32> to vector<16xf32>
    %743 = vector.shape_cast %742 : vector<16xf32> to vector<16x1xf32>
    %cst_270 = arith.constant 3.200000e+01 : f32
    %744 = vector.broadcast %cst_270 : f32 to vector<16x1xf32>
    %745 = arith.divf %743, %744 : vector<16x1xf32>
    %cst_271 = arith.constant 9.99999974E-6 : f32
    %746 = vector.broadcast %cst_271 : f32 to vector<16x1xf32>
    %747 = arith.addf %745, %746 : vector<16x1xf32>
    %748 = math.rsqrt %747 : vector<16x1xf32>
    %749 = vector.broadcast %748 : vector<16x1xf32> to vector<16x32xf32>
    %750 = arith.mulf %740, %749 : vector<16x32xf32>
    %751 = vector.broadcast %645 : vector<1x32xf32> to vector<16x32xf32>
    %752 = arith.mulf %750, %751 : vector<16x32xf32>
    %753 = vector.broadcast %646 : vector<1x32xf32> to vector<16x32xf32>
    %754 = arith.addf %752, %753 : vector<16x32xf32>
    %c0_272 = arith.constant 0 : index
    %c0_273 = arith.constant 0 : index
    %755 = vector.load %arg5[%c0_272, %c0_273] : memref<2x16xbf16, #tpu.memory_space<vmem>>, vector<2x16xbf16>
    %756 = arith.truncf %754 : vector<16x32xf32> to vector<16x32xbf16>
    %cst_274 = arith.constant dense<0.000000e+00> : vector<2x32xf32>
    %757 = tpu.matmul %755, %756, %cst_274 {dimension_numbers = #tpu.dot_dimension_numbers<[1], [0], [0], [1], [0, 0, 1, 1], [], []>} : vector<2x16xbf16>, vector<16x32xbf16>, vector<2x32xf32> -> vector<2x32xf32>
    %758 = arith.truncf %757 : vector<2x32xf32> to vector<2x32xbf16>
    %c0_275 = arith.constant 0 : index
    %c0_276 = arith.constant 0 : index
    %759 = vector.load %arg18[%c0_275, %c0_276] : memref<32x3xbf16, #tpu.memory_space<vmem>>, vector<32x3xbf16>
    %cst_277 = arith.constant dense<0.000000e+00> : vector<2x3xf32>
    %760 = tpu.matmul %758, %759, %cst_277 {dimension_numbers = #tpu.dot_dimension_numbers<[1], [0], [0], [1], [0, 0, 1, 1], [], []>} : vector<2x32xbf16>, vector<32x3xbf16>, vector<2x3xf32> -> vector<2x3xf32>
    %c0_278 = arith.constant 0 : index
    %c0_279 = arith.constant 0 : index
    %761 = vector.load %arg19[%c0_278, %c0_279] : memref<1x3xf32, #tpu.memory_space<vmem>>, vector<1x3xf32>
    %762 = vector.broadcast %761 : vector<1x3xf32> to vector<2x3xf32>
    %763 = arith.addf %760, %762 : vector<2x3xf32>
    %c0_280 = arith.constant 0 : index
    %c0_281 = arith.constant 0 : index
    %764 = vector.load %arg20[%c0_280, %c0_281] : memref<2x3xf32, #tpu.memory_space<vmem>>, vector<2x3xf32>
    tpu.vector_store %arg20[%c0_280, %c0_281], %763 {strides = array<i32>} : memref<2x3xf32, #tpu.memory_space<vmem>>, vector<2x3xf32>,
    return
  }
  func.func @transform_0(%arg0: i32) -> (i32, i32) {
    %c0_i32 = arith.constant 0 : i32
    %c0_i32_0 = arith.constant 0 : i32
    %c0_i32_1 = arith.constant 0 : i32
    return %c0_i32, %c0_i32_0 : i32, i32
  }
  func.func @transform_1(%arg0: i32) -> (i32, i32) {
    %c0_i32 = arith.constant 0 : i32
    %c0_i32_0 = arith.constant 0 : i32
    %c0_i32_1 = arith.constant 0 : i32
    return %c0_i32, %c0_i32_0 : i32, i32
  }
  func.func @transform_2(%arg0: i32) -> (i32, i32) {
    %c0_i32 = arith.constant 0 : i32
    %c0_i32_0 = arith.constant 0 : i32
    %c0_i32_1 = arith.constant 0 : i32
    return %c0_i32, %c0_i32_0 : i32, i32
  }
  func.func @transform_3(%arg0: i32) -> (i32, i32) {
    %c0_i32 = arith.constant 0 : i32
    %c0_i32_0 = arith.constant 0 : i32
    %c0_i32_1 = arith.constant 0 : i32
    return %c0_i32, %c0_i32_0 : i32, i32
  }
  func.func @transform_4(%arg0: i32) -> (i32, i32) {
    %c0_i32 = arith.constant 0 : i32
    %c0_i32_0 = arith.constant 0 : i32
    %c0_i32_1 = arith.constant 0 : i32
    return %c0_i32, %c0_i32_0 : i32, i32
  }
  func.func @transform_5(%arg0: i32) -> (i32, i32, i32) {
    %c0_i32 = arith.constant 0 : i32
    %c0_i32_0 = arith.constant 0 : i32
    %c0_i32_1 = arith.constant 0 : i32
    %c0_i32_2 = arith.constant 0 : i32
    return %c0_i32, %c0_i32_0, %c0_i32_1 : i32, i32, i32
  }
  func.func @transform_6(%arg0: i32) -> (i32, i32) {
    %c0_i32 = arith.constant 0 : i32
    %c0_i32_0 = arith.constant 0 : i32
    %c0_i32_1 = arith.constant 0 : i32
    return %c0_i32, %c0_i32_0 : i32, i32
  }
  func.func @transform_7(%arg0: i32) -> (i32, i32, i32) {
    %c0_i32 = arith.constant 0 : i32
    %c0_i32_0 = arith.constant 0 : i32
    %c0_i32_1 = arith.constant 0 : i32
    %c0_i32_2 = arith.constant 0 : i32
    return %c0_i32, %c0_i32_0, %c0_i32_1 : i32, i32, i32
  }
  func.func @transform_8(%arg0: i32) -> (i32, i32) {
    %c0_i32 = arith.constant 0 : i32
    %c0_i32_0 = arith.constant 0 : i32
    %c0_i32_1 = arith.constant 0 : i32
    return %c0_i32, %c0_i32_0 : i32, i32
  }
  func.func @transform_9(%arg0: i32) -> (i32, i32) {
    %c0_i32 = arith.constant 0 : i32
    %c0_i32_0 = arith.constant 0 : i32
    %c0_i32_1 = arith.constant 0 : i32
    return %c0_i32, %c0_i32_0 : i32, i32
  }
  func.func @transform_10(%arg0: i32) -> (i32, i32) {
    %c0_i32 = arith.constant 0 : i32
    %c0_i32_0 = arith.constant 0 : i32
    %c0_i32_1 = arith.constant 0 : i32
    return %c0_i32, %c0_i32_0 : i32, i32
  }
  func.func @transform_11(%arg0: i32) -> (i32, i32, i32) {
    %c0_i32 = arith.constant 0 : i32
    %c0_i32_0 = arith.constant 0 : i32
    %c0_i32_1 = arith.constant 0 : i32
    %c0_i32_2 = arith.constant 0 : i32
    return %c0_i32, %c0_i32_0, %c0_i32_1 : i32, i32, i32
  }
  func.func @transform_12(%arg0: i32) -> (i32, i32) {
    %c0_i32 = arith.constant 0 : i32
    %c0_i32_0 = arith.constant 0 : i32
    %c0_i32_1 = arith.constant 0 : i32
    return %c0_i32, %c0_i32_0 : i32, i32
  }
  func.func @transform_13(%arg0: i32) -> (i32, i32, i32) {
    %c0_i32 = arith.constant 0 : i32
    %c0_i32_0 = arith.constant 0 : i32
    %c0_i32_1 = arith.constant 0 : i32
    %c0_i32_2 = arith.constant 0 : i32
    return %c0_i32, %c0_i32_0, %c0_i32_1 : i32, i32, i32
  }
  func.func @transform_14(%arg0: i32) -> (i32, i32) {
    %c0_i32 = arith.constant 0 : i32
    %c0_i32_0 = arith.constant 0 : i32
    %c0_i32_1 = arith.constant 0 : i32
    return %c0_i32, %c0_i32_0 : i32, i32
  }
  func.func @transform_15(%arg0: i32) -> (i32, i32) {
    %c0_i32 = arith.constant 0 : i32
    %c0_i32_0 = arith.constant 0 : i32
    %c0_i32_1 = arith.constant 0 : i32
    return %c0_i32, %c0_i32_0 : i32, i32
  }
  func.func @transform_16(%arg0: i32) -> (i32, i32) {
    %c0_i32 = arith.constant 0 : i32
    %c0_i32_0 = arith.constant 0 : i32
    %c0_i32_1 = arith.constant 0 : i32
    return %c0_i32, %c0_i32_0 : i32, i32
  }
  func.func @transform_17(%arg0: i32) -> (i32, i32) {
    %c0_i32 = arith.constant 0 : i32
    %c0_i32_0 = arith.constant 0 : i32
    %c0_i32_1 = arith.constant 0 : i32
    return %c0_i32, %c0_i32_0 : i32, i32
  }
  func.func @transform_18(%arg0: i32) -> (i32, i32) {
    %c0_i32 = arith.constant 0 : i32
    %c0_i32_0 = arith.constant 0 : i32
    %c0_i32_1 = arith.constant 0 : i32
    return %c0_i32, %c0_i32_0 : i32, i32
  }
  func.func @transform_19(%arg0: i32) -> (i32, i32) {
    %c0_i32 = arith.constant 0 : i32
    %c0_i32_0 = arith.constant 0 : i32
    %c0_i32_1 = arith.constant 0 : i32
    return %c0_i32, %c0_i32_0 : i32, i32
  }
}

</mosaic_0001>

<bundles_post_ra>
// kernel: tpu_custom_call.1
= control target key start
LH: loop header
LB: loop body
LE: loop exit
PB: predicated region body
PF: predicated region fallthrough
CT: control target
= control target key end

     0   :  { %s12648_s0 = inlined_call_operand.vmem [shape: s32[16,1], index: 0, kind: input, shape index: {}]   ;;  %s12649_s1 = inlined_call_operand.vmem [shape: bf16[128,32], index: 1, kind: input, shape index: {}]   ;;  %s12650_s2 = inlined_call_operand.vmem [shape: bf16[32,8], index: 2, kind: input, shape index: {}]   ;;  %s12651_s3 = inlined_call_operand.hbm [shape: bf16[8,32], index: 3, kind: input, shape index: {}]   ;;  %s12652_s4 = inlined_call_operand.hbm [shape: bf16[2,16], index: 4, kind: input, shape index: {}]   ;;  %s12653_s5 = inlined_call_operand.hbm [shape: bf16[6,32,96], index: 5, kind: input, shape index: {}]   ;;  %s12654_s6 = inlined_call_operand.vmem [shape: f32[6,96], index: 6, kind: input, shape index: {}]   ;;  %s12655_s7 = inlined_call_operand.hbm [shape: bf16[6,32,32], index: 7, kind: input, shape index: {}]   ;;  %s12656_s8 = inlined_call_operand.vmem [shape: f32[6,32], index: 8, kind: input, shape index: {}]   ;;  %s12657_s9 = inlined_call_operand.vmem [shape: f32[6,32], index: 9, kind: input, shape index: {}]   ;;  %s12658_s10 = inlined_call_operand.vmem [shape: f32[6,32], index: 10, kind: input, shape index: {}]   ;;  %s12659_s11 = inlined_call_operand.hbm [shape: bf16[6,32,2048], index: 11, kind: input, shape index: {}]   ;;  %s12660_s12 = inlined_call_operand.vmem [shape: f32[6,2048], index: 12, kind: input, shape index: {}]   ;;  %s12661_s13 = inlined_call_operand.hbm [shape: bf16[6,32,2048], index: 13, kind: input, shape index: {}]   ;;  %s12662_s14 = inlined_call_operand.vmem [shape: f32[6,32], index: 14, kind: input, shape index: {}]   ;;  %s12663_s15 = inlined_call_operand.vmem [shape: f32[6,32], index: 15, kind: input, shape index: {}]   ;;  %s12664_s16 = inlined_call_operand.vmem [shape: f32[6,32], index: 16, kind: input, shape index: {}]   ;;  %s12665_s17 = inlined_call_operand.vmem [shape: bf16[32,3], index: 17, kind: input, shape index: {}]   ;;  %s12666_s18 = inlined_call_operand.vmem [shape: f32[1,3], index: 18, kind: input, shape index: {}]   ;;  %s12667_s19 = inlined_call_operand.hbm [shape: f32[2,3], index: 19, kind: output, shape index: {}]  }
   0x1   :  { %12672 = sst [smem:[#allocation19_spill]] %s12648_s0 }
   0x2   :  { %12673 = sst [smem:[#allocation20_spill]] %s12649_s1 }
   0x3   :  { %12674 = sst [smem:[#allocation21_spill]] %s12650_s2 }
   0x4   :  { %12675 = sst [smem:[#allocation22_spill]] %s12651_s3 }
   0x5   :  { %24 = vsyncpa [#allocation3], 0 }
   0x6   :  { %25 = vsyncpa [#allocation6], 0 }
   0x7   :  { %26 = vsyncpa [#allocation9], 0 }
   0x8   :  { %27 = vsyncpa [#allocation12], 0 }
   0x9   :  { %28 = vsyncpa [#allocation4], 0  ;;  %s11150_s0 = smov [#allocation5]   ;;  %s10986_s1 = scalar_lea.hbm %s12652_s4, 16 }
   0xa   :  { %s51_s30 = sshll.u32 %s11150_s0, 4  ;;  %p10987_p0 = scmp.ne.s32.totalorder %s12652_s4, %s10986_s1  ;;  %s52_s30 = int_to_ptr.vmem [resolvable:$true] %s51_s30 }
   0xb   :  { %p10990_p1 = scmp.lt.u32.totalorder %s10986_s1, %s12652_s4 }
   0xd   :  { %p10992_p2 = pnand %p10990_p1, %p10987_p0 }
   0xf   :  { %10995 = shalt.err (!%p10992_p2)
}
  0x10   :  { %s10996_s25 = scalar_lea.vmem %s52_s30, 16  ;;  %s11000_s3 = scalar_lea.vmem %s52_s30, 32 }
  0x11   :  { %p10997_p3 = scmp.ne.s32.totalorder %s52_s30, %s10996_s25  ;;  %p11001_p4 = scmp.lt.s32.totalorder %s52_s30, %s52_s30 }
  0x12   :  { %p11002_p5 = scmp.lt.s32.totalorder %s11000_s3, %s10996_s25 }
  0x14   :  { %p11003_p6 = por %p11002_p5, %p11001_p4 }
  0x16   :  { %p11004_p7 = pnand %p11003_p6, %p10997_p3 }
  0x18   :  { %11007 = shalt.err (!%p11004_p7)
}
  0x19   :  { %54 = dma.hbm_to_vmem [thread:$0]  %s12652_s4, 16, %s52_s30, [#allocation6]  }
  0x1a   :  { %s11151_s28 = smov [#allocation8]   ;;  %s11152_s0 = smov [#allocation2]  }
  0x1b   :  { %s74_s29 = sshll.u32 %s11151_s28, 4  ;;  %s41_s20 = sshll.u32 %s11152_s0, 4  ;;  %s75_s29 = int_to_ptr.vmem [resolvable:$true] %s74_s29  ;;  %s42_s20 = int_to_ptr.vmem [resolvable:$true] %s41_s20 }
  0x1c   :  { %s11008_s22 = scalar_lea.hbm %s12655_s7, 1536 }
  0x1d   :  { %p11009_p8 = scmp.ne.s32.totalorder %s12655_s7, %s11008_s22  ;;  %p11012_p9 = scmp.lt.u32.totalorder %s11008_s22, %s12655_s7 }
  0x1f   :  { %p11014_p10 = pnand %p11012_p9, %p11009_p8 }
  0x21   :  { %11017 = shalt.err (!%p11014_p10)
}
  0x22   :  { %s11018_s4 = scalar_lea.vmem %s75_s29, 1536  ;;  %p11023_p12 = scmp.lt.s32.totalorder %s75_s29, %s75_s29 }
  0x23   :  { %p11019_p11 = scmp.ne.s32.totalorder %s75_s29, %s11018_s4  ;;  %p11024_p13 = scmp.lt.s32.totalorder %s11018_s4, %s11018_s4 }
  0x25   :  { %p11025_p0 = por %p11024_p13, %p11023_p12 }
  0x27   :  { %p11026_p1 = pnand %p11025_p0, %p11019_p11 }
  0x29   :  { %11029 = shalt.err (!%p11026_p1)
}
  0x2a   :  { %s11153_s30 = smov 64   ;;  %s11154_s3 = smov 4  }
  0x2b   :  { %80 = dma.hbm_to_vmem [thread:$0]  %s12655_s7, 1536, %s75_s29, [#allocation9], %s11153_s30, %s11153_s30, %s11154_s3  }
  0x2c   :  { %s12676_s21 = sld [smem:[#allocation22_spill]] }
  0x32   :  { %s11030_s1 = scalar_lea.hbm %s12676_s21, 64 }
  0x33   :  { %p11031_p2 = scmp.ne.s32.totalorder %s12676_s21, %s11030_s1  ;;  %p11034_p3 = scmp.lt.u32.totalorder %s11030_s1, %s12676_s21 }
  0x35   :  { %p11036_p4 = pnand %p11034_p3, %p11031_p2 }
  0x37   :  { %11039 = shalt.err (!%p11036_p4)
}
  0x38   :  { %s11040_s25 = scalar_lea.vmem %s42_s20, 64  ;;  %p11045_p6 = scmp.lt.s32.totalorder %s42_s20, %s42_s20 }
  0x39   :  { %p11041_p5 = scmp.ne.s32.totalorder %s42_s20, %s11040_s25  ;;  %p11046_p7 = scmp.lt.s32.totalorder %s11040_s25, %s11040_s25 }
  0x3b   :  { %p11047_p8 = por %p11046_p7, %p11045_p6 }
  0x3d   :  { %p11048_p9 = pnand %p11047_p8, %p11041_p5 }
  0x3f   :  { %11051 = shalt.err (!%p11048_p9)
}
  0x40   :  { %44 = dma.hbm_to_vmem [thread:$0]  %s12676_s21, 64, %s42_s20, [#allocation3]  }
  0x41   :  { %s11155_s4 = smov [#allocation7]   ;;  %s11156_s27 = smov [#allocation10]  }
  0x42   :  { %s60_s26 = sshll.u32 %s11155_s4, 4  ;;  %s92_s28 = sshll.u32 %s11156_s27, 4  ;;  %s61_s26 = int_to_ptr.vmem [resolvable:$true] %s60_s26  ;;  %s93_s28 = int_to_ptr.vmem [resolvable:$true] %s92_s28 }
  0x43   :  { %s11052_s22 = scalar_lea.hbm %s12653_s5, 1536 }
  0x44   :  { %p11053_p10 = scmp.ne.s32.totalorder %s12653_s5, %s11052_s22  ;;  %p11056_p11 = scmp.lt.u32.totalorder %s11052_s22, %s12653_s5 }
  0x46   :  { %p11058_p12 = pnand %p11056_p11, %p11053_p10 }
  0x48   :  { %11061 = shalt.err (!%p11058_p12)
}
  0x49   :  { %s11062_s20 = scalar_lea.vmem %s61_s26, 1536  ;;  %p11067_p0 = scmp.lt.s32.totalorder %s61_s26, %s61_s26 }
  0x4a   :  { %p11063_p13 = scmp.ne.s32.totalorder %s61_s26, %s11062_s20  ;;  %p11068_p1 = scmp.lt.s32.totalorder %s11062_s20, %s11062_s20 }
  0x4c   :  { %p11069_p2 = por %p11068_p1, %p11067_p0 }
  0x4e   :  { %p11070_p3 = pnand %p11069_p2, %p11063_p13 }
  0x50   :  { %11073 = shalt.err (!%p11070_p3)
}
  0x51   :  { %66 = dma.hbm_to_vmem [thread:$0]  %s12653_s5, 1536, %s61_s26, [#allocation6], %s11153_s30, %s11153_s30, %s11154_s3  }
  0x52   :  { %s11074_s27 = scalar_lea.hbm %s12659_s11, 24576 }
  0x53   :  { %p11075_p4 = scmp.ne.s32.totalorder %s12659_s11, %s11074_s27  ;;  %p11078_p5 = scmp.lt.u32.totalorder %s11074_s27, %s12659_s11 }
  0x55   :  { %p11080_p6 = pnand %p11078_p5, %p11075_p4 }
  0x57   :  { %11083 = shalt.err (!%p11080_p6)
}
  0x58   :  { %s11084_s23 = scalar_lea.vmem %s93_s28, 24576  ;;  %p11089_p8 = scmp.lt.s32.totalorder %s93_s28, %s93_s28 }
  0x59   :  { %p11085_p7 = scmp.ne.s32.totalorder %s93_s28, %s11084_s23  ;;  %p11090_p9 = scmp.lt.s32.totalorder %s11084_s23, %s11084_s23 }
  0x5b   :  { %p11091_p10 = por %p11090_p9, %p11089_p8 }
  0x5d   :  { %p11092_p11 = pnand %p11091_p10, %p11085_p7 }
  0x5f   :  { %11095 = shalt.err (!%p11092_p11)
}
  0x60   :  { %s11157_s5 = smov 1024   ;;  %s11158_s24 = smov [#allocation11]  }
  0x61   :  { %98 = dma.hbm_to_vmem [thread:$0]  %s12659_s11, 24576, %s93_s28, [#allocation9], %s11157_s5, %s11157_s5, %s11153_s30  }
  0x62   :  { %s106_s25 = sshll.u32 %s11158_s24, 4  ;;  %s11096_s7 = scalar_lea.hbm %s12661_s13, 24576  ;;  %s107_s25 = int_to_ptr.vmem [resolvable:$true] %s106_s25 }
  0x63   :  { %p11097_p12 = scmp.ne.s32.totalorder %s12661_s13, %s11096_s7  ;;  %p11100_p13 = scmp.lt.u32.totalorder %s11096_s7, %s12661_s13 }
  0x65   :  { %p11102_p0 = pnand %p11100_p13, %p11097_p12 }
  0x67   :  { %11105 = shalt.err (!%p11102_p0)
}
  0x68   :  { %s11106_s1 = scalar_lea.vmem %s107_s25, 24576  ;;  %p11111_p2 = scmp.lt.s32.totalorder %s107_s25, %s107_s25 }
  0x69   :  { %p11107_p1 = scmp.ne.s32.totalorder %s107_s25, %s11106_s1  ;;  %p11112_p3 = scmp.lt.s32.totalorder %s11106_s1, %s11106_s1 }
  0x6b   :  { %p11113_p4 = por %p11112_p3, %p11111_p2 }
  0x6d   :  { %p11114_p5 = pnand %p11113_p4, %p11107_p1 }
  0x6f   :  { %11117 = shalt.err (!%p11114_p5)
}
  0x70   :  { %112 = dma.hbm_to_vmem [thread:$0]  %s12661_s13, 24576, %s107_s25, [#allocation12], %s11157_s5, %s11157_s5, %s11153_s30  }
  0x71   :  { %11140 = dma.done.wait [#allocation3], 64  }
  0x72   :  { %11141 = vsyncadd [#allocation3], 4294967232 }
  0x73   :  { %11142 = dma.done.wait [#allocation6], 1552  }
  0x74   :  { %11143 = vsyncadd [#allocation6], 4294965744 }
  0x75   :  { %11144 = dma.done.wait [#allocation9], 26112  }
  0x76   :  { %11145 = vsyncadd [#allocation9], 4294941184 }
  0x77   :  { %11146 = dma.done.wait [#allocation12], 24576  }
  0x78   :  { %11147 = vsyncadd [#allocation12], 4294942720  ;;  %v11159_v0 = vmov 0   ;;  %v11160_v1 = vmov 0.0   ;;  %s12677_s23 = sld [smem:[#allocation19_spill]]  ;;  %s12678_s3 = sld [smem:[#allocation20_spill]]  ;;  %v144_v13 = vlaneseq }
  0x79   :  { %10816 = vset.pattern.permute.xlu0 %v11159_v0  ;;  %10581 = vmatprep.subr.bf16.mxu0 %v11160_v1  ;;  %vm11161_vm0 = vmmov 0   ;;  %v10825_v7 = vld [vmem:[#allocation7] sm:$0xff]   ;;  %v11162_v17 = vmov 1.0|1.0   ;;  %v10826_v18 = vld [vmem:[#allocation7 + $0x8] sm:$0xff]   ;;  %vm372_vm4 = vcmask 261120  }
  0x7a   :  { %10601 = vmatprep.subr.bf16.mxu1 %v11160_v1  ;;  %10597 = vmatprep.mubr.msk.bf16.mxu0 %vm11161_vm0, %v11160_v1  ;;  %v145_v15 = vand.u32 127, %v144_v13  ;;  %v9928_v26 = vld [vmem:[%s12654_s6] ss:$0 sm:$0xff]  ;;  %s11163_s21 = smov 96   ;;  %v268_v41 = vld [vmem:[#allocation2] sm:$0xf] }
  0x7b   :  { %10605 = vmatprep.mubr.msk.bf16.mxu1 %vm11161_vm0, %v11160_v1  ;;  %10602 = vmatpush3.bf16.msra.mxu1 %v10825_v7  ;;  %vm529_vm5 = vcmask 1043456   ;;  %vm522_vm6 = vcmask 64512   ;;  %vm9783_vm7 = vcmask 130048   ;;  %s11164_s0 = smov [#allocation13]   ;;  %vm9894_vm8 = vcmask 17408  }
  0x7c   :  { %10603 = vmatprep.subr.bf16.mxu1 %v11160_v1  ;;  %v11424_v42 = vsel %vm529_vm5, %v268_v41, 0  ;;  %s9902_s1 = sshll.u32 %s11164_s0, 4  ;;  %s9903_s1 = int_to_ptr.vmem [resolvable:$true] %s9902_s1 }
  0x7d   :  { %p11123_p7 = scmp.lt.s32.totalorder %s9903_s1, %s9903_s1 }
  0x7e   :  { %v142_v2 = vld [vmem:[%s12677_s23] sm:$0xff]  ;;  %v143_v4 = vld [vmem:[%s12677_s23 + $0x8] sm:$0xff]  ;;  %v10819_v6 = vld [vmem:[%s12678_s3 + $0x10] sm:$0xff]  }
  0x7f   :  { %147 = vperm.xlu0 %10816, %v142_v2   ;;  %v10817_v3 = vld [vmem:[%s12678_s3] sm:$0xff]   ;;  %v10818_v5 = vld [vmem:[%s12678_s3 + $0x8] sm:$0xff]   ;;  %v10820_v8 = vld [vmem:[%s12678_s3 + $0x18] sm:$0xff]   ;;  %10604 = vmatpush3.bf16.msra.mxu1 %v10826_v18 }
  0x80   :  { %10582 = vmatpush3.bf16.msra.mxu0 %v10817_v3  ;;  %v10821_v9 = vld [vmem:[%s12678_s3 + $0x20] sm:$0xff]   ;;  %v10822_v10 = vld [vmem:[%s12678_s3 + $0x28] sm:$0xff]   ;;  %v10823_v11 = vld [vmem:[%s12678_s3 + $0x30] sm:$0xff]  }
  0x81   :  { %10583 = vmatprep.subr.bf16.mxu0 %v11160_v1  ;;  %v10824_v12 = vld [vmem:[%s12678_s3 + $0x38] sm:$0xff]   ;;  %s12679_s3 = sld [smem:[#allocation21_spill]] }
  0x83   :  { %150 = vperm.xlu0 %10816, %v143_v4  }
  0x84   :  { %10584 = vmatpush3.bf16.msra.mxu0 %v10818_v5 }
  0x85   :  { %10585 = vmatprep.subr.bf16.mxu0 %v11160_v1 }
  0x87   :  { %v11402_v24 = vld [vmem:[%s12679_s3] sm:$0xff]   ;;  %v11409_v25 = vld [vmem:[%s12679_s3 + $0x8] sm:$0xff]  }
  0x88   :  { %10586 = vmatpush3.bf16.msra.mxu0 %v10819_v6  ;;  %10609 = vmatprep.subr.bf16.mxu1 %v11402_v24 }
  0x89   :  { %10587 = vmatprep.subr.bf16.mxu0 %v11160_v1 }
  0x8c   :  { %10588 = vmatpush3.bf16.msra.mxu0 %v10820_v8 }
  0x8d   :  { %10589 = vmatprep.subr.bf16.mxu0 %v11160_v1 }
  0x90   :  { %10590 = vmatpush3.bf16.msra.mxu0 %v10821_v9  ;;  %v10829_v9 = vld [vmem:[#allocation8] sm:$0xff]  }
  0x91   :  { %10591 = vmatprep.subr.bf16.mxu0 %v11160_v1 }
  0x94   :  { %10592 = vmatpush3.bf16.msra.mxu0 %v10822_v10  ;;  %v10830_v10 = vld [vmem:[#allocation8 + $0x8] sm:$0xff]  }
  0x95   :  { %10593 = vmatprep.subr.bf16.mxu0 %v11160_v1 }
  0x98   :  { %10594 = vmatpush3.bf16.msra.mxu0 %v10823_v11 }
  0x99   :  { %10595 = vmatprep.subr.bf16.mxu0 %v11160_v1 }
  0x9c   :  { %10596 = vmatpush3.bf16.msra.mxu0 %v10824_v12 }
  0xfe   :  { %v148_v14 = vpop.permute.xlu0 %147 }
  0xff   :  { %vm152_vm1 = vcmp.eq.s32.totalorder %v145_v15, %v148_v14 }
 0x102   :  { %v151_v16 = vpop.permute.xlu0 %150 }
 0x103   :  { %vm153_vm2 = vcmp.eq.s32.totalorder %v145_v15, %v151_v16 }
 0x104   :  { %vm9924_vm3 = vmpackc.low %vm153_vm2, %vm152_vm1 }
 0x105   :  { %10598 = vmatmul.mubr.msk.bf16.vlgmr.msra.gmra.mrb[0].mxu0 %vm9924_vm3, %v11162_v17 }
 0x106   :  { %974 = vmatprep.mubr.bf16.mxu0 %v11159_v0 }
 0x1d8   :  { %v11392_v19 = vpop.f32.mrb[0].mxu0 }
 0x1d9   :  { %v10599_v20 = vpop.f32.mrb[1].mxu0 }
 0x1da   :  { %v11394_v21 = vpop.f32.mrb[2].mxu0 }
 0x1db   :  { %v355_v22 = vpack.c.bf16 %v11394_v21, %v11392_v19  ;;  %v10600_v23 = vpop.f32.mrb[3].mxu0 }
 0x1dd   :  { %10606 = vmatmul.mubr.msk.bf16.vlgmr.msra.gmra.mrb[0].mxu1 %vm372_vm4, %v355_v22 }
 0x1de   :  { %10610 = vmatpush3.bf16.msra.mxu1 %v11402_v24 }
 0x1df   :  { %10611 = vmatprep.subr.bf16.mxu1 %v11409_v25 }
 0x1e2   :  { %10612 = vmatpush3.bf16.msra.mxu1 %v11409_v25 }
 0x1e3   :  { %10795 = vmatprep.subr.msk.bf16.mxu1 %vm529_vm5, %v268_v41 }
 0x2b0   :  { %v410_v27 = vpop.f32.mrb[0].mxu1 }
 0x2b1   :  { %v411_v28 = vadd.f32 %v9928_v26, %v410_v27  ;;  %v10607_v29 = vpop.f32.mrb[1].mxu1 }
 0x2b2   :  { %v413_v30 = vpop.f32.mrb[2].mxu1  ;;  %v9938_v29 = vld [vmem:[%s12656_s8] ss:$0 sm:$0xff] }
 0x2b3   :  { %582 = vrot.lane.b32.xlu0 %v411_v28, %s11153_s30  ;;  %419 = vrot.lane.b32.xlu1 %v411_v28, %s11163_s21  ;;  %v10608_v31 = vpop.f32.mrb[3].mxu1  ;;  %v414_v32 = vadd.f32 %v9928_v26, %v413_v30 }
 0x2b7   :  { %421 = vrot.lane.b32.xlu1 %v414_v32, %s11163_s21 }
 0x2bb   :  { %584 = vrot.lane.b32.xlu1 %v414_v32, %s11153_s30 }
 0x325   :  { %v420_v33 = vpop.permute.xlu1 %419  ;;  %v583_v12 = vpop.permute.xlu0 %582 }
 0x326   :  { %v425_v35 = vmul.f32 %v420_v33, %v411_v28  ;;  %v427_v36 = vmul.f32 %v420_v33, %v414_v32 }
 0x329   :  { %v422_v34 = vpop.permute.xlu1 %421 }
 0x32a   :  { %v426_v37 = vmul.f32 %v422_v34, %v411_v28  ;;  %v428_v38 = vmul.f32 %v422_v34, %v414_v32 }
 0x32c   :  { %v429_v39 = vpack.c.bf16 %v426_v37, %v425_v35  ;;  %v430_v40 = vpack.c.bf16 %v428_v38, %v427_v36 }
 0x32d   :  { %v585_v15 = vpop.permute.xlu1 %584 }
 0x32e   :  { %10613 = vmatprep.mubr.msk.bf16.mxu1 %vm372_vm4, %v429_v39 }
 0x32f   :  { %10614 = vmatmul.mubr.msk.bf16.vlgmr.msra.gmra.mrb[4].mxu1 %vm372_vm4, %v430_v40 }
 0x330   :  { %10618 = vmatpush3.bf16.msra.mxu1 %v11424_v42 }
 0x331   :  { %10623 = vmatprep.subr.bf16.mxu1 %v11160_v1 }
 0x402   :  { %v10615_v43 = vpop.f32.mrb[4].mxu1 }
 0x403   :  { %v483_v44 = vpop.f32.mrb[5].mxu1 }
 0x404   :  { %v10616_v45 = vpop.f32.mrb[6].mxu1 }
 0x405   :  { %v509_v46 = vmax.f32 %v10615_v43, %v10616_v45  ;;  %v486_v47 = vpop.f32.mrb[7].mxu1 }
 0x406   :  { %v498_v48 = vmax.f32 %v483_v44, %v486_v47 }
 0x407   :  { %v510_v49 = vsub.f32 %v10615_v43, %v509_v46  ;;  %v513_v50 = vsub.f32 %v10616_v45, %v509_v46 }
 0x408   :  { %v499_v51 = vsub.f32 %v483_v44, %v498_v48  ;;  %v502_v52 = vsub.f32 %v486_v47, %v498_v48 }
 0x409   :  { %v511_v53 = vmul.f32 1.442695, %v510_v49  ;;  %v514_v54 = vmul.f32 1.442695, %v513_v50  ;;  %v281_v50 = vld [vmem:[#allocation10] sm:$0xff] }
 0x40a   :  { %v500_v55 = vmul.f32 1.442695, %v499_v51  ;;  %v503_v56 = vmul.f32 1.442695, %v502_v52  ;;  %v282_v51 = vld [vmem:[#allocation10 + $0x8] sm:$0xff] }
 0x40b   :  { %10853 = vpow2.f32 %v511_v53  ;;  %v290_v53 = vld [vmem:[#allocation10 + $0x48] sm:$0xff] }
 0x40c   :  { %10855 = vpow2.f32 %v514_v54 }
 0x40d   :  { %10857 = vpow2.f32 %v500_v55  ;;  %v9946_v55 = vcombine.low %v282_v51, %v290_v53 }
 0x40e   :  { %10859 = vpow2.f32 %v503_v56  ;;  %v9947_v56 = vcombine.high %v282_v51, %v290_v53 }
 0x415   :  { %v10854_v57 = vpop.eup %10853 }
 0x416   :  { %v10856_v58 = vpop.eup %10855 }
 0x417   :  { %v10858_v59 = vpop.eup %10857  ;;  %v516_v60 = vadd.f32 %v10856_v58, %v10854_v57 }
 0x418   :  { %v10860_v61 = vpop.eup %10859 }
 0x419   :  { %10861 = vrcp.f32 %v516_v60  ;;  %v505_v62 = vadd.f32 %v10860_v61, %v10858_v59 }
 0x41b   :  { %10863 = vrcp.f32 %v505_v62 }
 0x423   :  { %v10862_v63 = vpop.eup %10861 }
 0x424   :  { %v519_v2 = vmul.f32 %v10862_v63, %v10856_v58  ;;  %v518_v3 = vmul.f32 %v10862_v63, %v10854_v57  ;;  %v297_v57 = vld [vmem:[#allocation10 + $0x80] sm:$0xff] }
 0x425   :  { %v10864_v4 = vpop.eup %10863  ;;  %v305_v58 = vld [vmem:[#allocation10 + $0xc0] sm:$0xff] }
 0x426   :  { %v507_v5 = vmul.f32 %v10864_v4, %v10858_v59  ;;  %v508_v6 = vmul.f32 %v10864_v4, %v10860_v61  ;;  %v521_v7 = vpack.c.bf16 %v519_v2, %v518_v3  ;;  %v298_v59 = vld [vmem:[#allocation10 + $0x88] sm:$0xff]  ;;  %v9961_v60 = vcombine.high %v297_v57, %v305_v58  ;;  %v283_v3 = vld [vmem:[#allocation10 + $0x10] sm:$0xff] }
 0x427   :  { %v306_v61 = vld [vmem:[#allocation10 + $0xc8] sm:$0xff]  ;;  %v9960_v62 = vcombine.low %v297_v57, %v305_v58  ;;  %v291_v4 = vld [vmem:[#allocation10 + $0x50] sm:$0xff]  ;;  %v296_v57 = vld [vmem:[#allocation10 + $0x78] sm:$0xff] }
 0x428   :  { %v520_v8 = vpack.c.bf16 %v508_v6, %v507_v5  ;;  %v9962_v63 = vcombine.low %v298_v59, %v306_v61  ;;  %v9963_v2 = vcombine.high %v298_v59, %v306_v61  ;;  %v284_v5 = vld [vmem:[#allocation10 + $0x18] sm:$0xff]  ;;  %v9949_v6 = vcombine.high %v283_v3, %v291_v4 }
 0x42a   :  { %10619 = vmatprep.mubr.msk.bf16.mxu1 %vm522_vm6, %v520_v8  ;;  %v9948_v8 = vcombine.low %v283_v3, %v291_v4  ;;  %v312_v3 = vld [vmem:[#allocation10 + $0xf8] sm:$0xff] }
 0x42b   :  { %10620 = vmatmul.mubr.msk.bf16.vlgmr.msra.gmra.mrb[8].mxu1 %vm522_vm6, %v521_v7  ;;  %v292_v7 = vld [vmem:[#allocation10 + $0x58] sm:$0xff] }
 0x42c   :  { %10627 = vmatprep.mubr.msk.bf16.mxu1 %vm11161_vm0, %v11160_v1  ;;  %10624 = vmatpush3.bf16.msra.mxu1 %v10829_v9  ;;  %v9950_v9 = vcombine.low %v284_v5, %v292_v7 }
 0x42d   :  { %10625 = vmatprep.subr.bf16.mxu1 %v11160_v1 }
 0x430   :  { %10626 = vmatpush3.bf16.msra.mxu1 %v10830_v10  ;;  %v9951_v10 = vcombine.high %v284_v5, %v292_v7 }
 0x431   :  { %985 = vmatprep.subr.bf16.mxu1 %v9947_v56  ;;  %v288_v56 = vld [vmem:[#allocation10 + $0x38] sm:$0xff] }
 0x432   :  { %v9959_v61 = vcombine.high %v288_v56, %v296_v57  ;;  %v9958_v5 = vcombine.low %v288_v56, %v296_v57  ;;  %v9926_v57 = vld [vmem:[%s12660_s12 + $0x40] ss:$8 sm:$0xf] }
 0x4fe   :  { %v10621_v11 = vpop.f32.mrb[8].mxu1 }
 0x4ff   :  { %v567_v14 = vpop.f32.mrb[9].mxu1  ;;  %v590_v17 = vmul.f32 %v10621_v11, %v583_v12 }
 0x500   :  { %v10622_v16 = vpop.f32.mrb[10].mxu1  ;;  %v588_v22 = vmul.f32 %v583_v12, %v567_v14 }
 0x501   :  { %v591_v18 = vmul.f32 %v10622_v16, %v585_v15  ;;  %v570_v20 = vpop.f32.mrb[11].mxu1 }
 0x502   :  { %v589_v23 = vmul.f32 %v585_v15, %v570_v20 }
 0x503   :  { %v593_v26 = vadd.f32 %v591_v18, %v590_v17 }
 0x504   :  { %v592_v27 = vadd.f32 %v589_v23, %v588_v22  ;;  %v9942_v22 = vld [vmem:[%s12657_s9] ss:$0 sm:$0xff] }
 0x506   :  { %v594_v28 = vpack.c.bf16 %v593_v26, %v592_v27 }
 0x508   :  { %10628 = vmatmul.mubr.msk.bf16.vlgmr.msra.gmra.mrb[12].mxu1 %vm372_vm4, %v594_v28  ;;  %v9943_v28 = vld [vmem:[%s12658_s10] ss:$0 sm:$0xff] }
 0x509   :  { %1017 = vmatprep.mubr.bf16.mxu1 %v11159_v0  ;;  %986 = vmatpush1.bf16.msra.mxu1 %v9946_v55  ;;  %v295_v55 = vld [vmem:[#allocation10 + $0x70] sm:$0xff] }
 0x50a   :  { %987 = vmatprep.subr.bf16.mxu1 %v9963_v2  ;;  %v304_v2 = vld [vmem:[#allocation10 + $0xb8] sm:$0xff] }
 0x50b   :  { %v9975_v7 = vcombine.high %v304_v2, %v312_v3 }
 0x50d   :  { %988 = vmatpush1.bf16.msra.mxu1 %v9962_v63  ;;  %v311_v63 = vld [vmem:[#allocation10 + $0xf0] sm:$0xff] }
 0x50e   :  { %1071 = vmatprep.subr.bf16.mxu1 %v9951_v10  ;;  %v321_v10 = vld [vmem:[#allocation11 + $0x8] sm:$0xff] }
 0x5db   :  { %v648_v30 = vpop.f32.mrb[12].mxu1 }
 0x5dc   :  { %v649_v31 = vadd.f32 %v9938_v29, %v648_v30  ;;  %v10629_v32 = vpop.f32.mrb[13].mxu1  ;;  %v299_v30 = vld [vmem:[#allocation10 + $0x90] sm:$0xff] }
 0x5dd   :  { %v651_v33 = vpop.f32.mrb[14].mxu1  ;;  %v300_v32 = vld [vmem:[#allocation10 + $0x98] sm:$0xff] }
 0x5de   :  { %v652_v34 = vadd.f32 %v9938_v29, %v651_v33  ;;  %v10630_v35 = vpop.f32.mrb[15].mxu1  ;;  %v655_v36 = vadd.f32 %v649_v31, %v11392_v19  ;;  %v307_v31 = vld [vmem:[#allocation10 + $0xd0] sm:$0xff]  ;;  %v308_v33 = vld [vmem:[#allocation10 + $0xd8] sm:$0xff] }
 0x5e0   :  { %v657_v37 = vsel %vm372_vm4, %v655_v36, 0.0  ;;  %v656_v38 = vadd.f32 %v652_v34, %v11394_v21  ;;  %v289_v21 = vld [vmem:[#allocation10 + $0x40] sm:$0xff] }
 0x5e1   :  { %658 = vadd.xlane.f32.xlu0 %v657_v37  ;;  %v9945_v52 = vcombine.high %v281_v50, %v289_v21  ;;  %v9944_v54 = vcombine.low %v281_v50, %v289_v21  ;;  %v9965_v37 = vcombine.high %v299_v30, %v307_v31  ;;  %v310_v50 = vld [vmem:[#allocation10 + $0xe8] sm:$0xff] }
 0x5e2   :  { %v660_v39 = vsel %vm372_vm4, %v656_v38, 0.0 }
 0x5e3   :  { %661 = vadd.xlane.f32.xlu1 %v660_v39  ;;  %942 = vmatprep.subr.bf16.mxu0 %v9945_v52  ;;  %v285_v39 = vld [vmem:[#allocation10 + $0x20] sm:$0xff] }
 0x5e4   :  { %943 = vmatpush1.bf16.msra.mxu0 %v9944_v54  ;;  %v287_v54 = vld [vmem:[#allocation10 + $0x30] sm:$0xff] }
 0x5e5   :  { %944 = vmatprep.subr.bf16.mxu0 %v9961_v60  ;;  %v9957_v60 = vcombine.high %v287_v54, %v295_v55  ;;  %v9956_v4 = vcombine.low %v287_v54, %v295_v55 }
 0x5e8   :  { %945 = vmatpush1.bf16.msra.mxu0 %v9960_v62  ;;  %v303_v62 = vld [vmem:[#allocation10 + $0xb0] sm:$0xff] }
 0x5e9   :  { %1028 = vmatprep.subr.bf16.mxu0 %v9949_v6  ;;  %v9973_v6 = vcombine.high %v303_v62, %v311_v63 }
 0x66e   :  { %v659_v40 = vpop.xlane.xlu0 %658 }
 0x66f   :  { %v664_v41 = vmul.f32 0.03125, %v659_v40  ;;  %v293_v40 = vld [vmem:[#allocation10 + $0x60] sm:$0xff] }
 0x670   :  { %v662_v43 = vpop.xlane.xlu1 %661  ;;  %v9952_v21 = vcombine.low %v285_v39, %v293_v40 }
 0x671   :  { %v666_v44 = vsub.f32 %v655_v36, %v664_v41  ;;  %v665_v45 = vmul.f32 0.03125, %v662_v43  ;;  %v286_v41 = vld [vmem:[#allocation10 + $0x28] sm:$0xff] }
 0x672   :  { %v294_v43 = vld [vmem:[#allocation10 + $0x68] sm:$0xff] }
 0x673   :  { %v667_v46 = vsub.f32 %v656_v38, %v665_v45  ;;  %v668_v47 = vmul.f32 %v666_v44, %v666_v44  ;;  %v9967_v38 = vcombine.high %v300_v32, %v308_v33  ;;  %v9966_v45 = vcombine.low %v300_v32, %v308_v33  ;;  %v11482_v32 = vld [vmem:[#allocation11 + $0x50] sm:$0xff]  ;;  %v11484_v33 = vld [vmem:[#allocation11 + $0x18] sm:$0xff] }
 0x674   :  { %v9954_v51 = vcombine.low %v286_v41, %v294_v43 }
 0x675   :  { %v670_v48 = vsel %vm372_vm4, %v668_v47, 0.0  ;;  %v669_v49 = vmul.f32 %v667_v46, %v667_v46  ;;  %v9955_v47 = vcombine.high %v286_v41, %v294_v43  ;;  %v700_v41 = vshrl.u32 %v144_v13, 7  ;;  %v313_v43 = vld [vmem:[%s12660_s12] ss:$8 sm:$0xf] }
 0x676   :  { %671 = vadd.xlane.f32.xlu0 %v670_v48  ;;  %v301_v48 = vld [vmem:[#allocation10 + $0xa0] sm:$0xff] }
 0x677   :  { %v673_v19 = vsel %vm372_vm4, %v669_v49, 0.0  ;;  %v309_v49 = vld [vmem:[#allocation10 + $0xe0] sm:$0xff]  ;;  %v11521_v54 = vsub.s32 7, %v700_v41 }
 0x678   :  { %v9969_v52 = vcombine.high %v301_v48, %v309_v49  ;;  %v9968_v58 = vcombine.low %v301_v48, %v309_v49  ;;  %v11507_v48 = vsub.s32 1, %v700_v41  ;;  %v11509_v49 = vsub.s32 3, %v700_v41 }
 0x67a   :  { %674 = vadd.xlane.f32.xlu0 %v673_v19  ;;  %v302_v19 = vld [vmem:[#allocation10 + $0xa8] sm:$0xff] }
 0x67b   :  { %v9971_v53 = vcombine.high %v302_v19, %v310_v50  ;;  %v9970_v59 = vcombine.low %v302_v19, %v310_v50  ;;  %v11513_v50 = vsub.s32 4, %v700_v41 }
 0x703   :  { %v672_v11 = vpop.xlane.xlu0 %671 }
 0x704   :  { %v676_v12 = vmul.f32 0.03125, %v672_v11  ;;  %v329_v11 = vld [vmem:[#allocation11 + $0x48] sm:$0xff] }
 0x706   :  { %v678_v14 = vadd.f32 1e-05, %v676_v12  ;;  %v9972_v12 = vcombine.low %v303_v62, %v311_v63  ;;  %v9927_v62 = vld [vmem:[%s12660_s12 + $0x40] ss:$8 sm:$0xf0] }
 0x707   :  { %v675_v15 = vpop.xlane.xlu0 %674 }
 0x708   :  { %10865 = vrsqrt.f32 %v678_v14  ;;  %v677_v16 = vmul.f32 0.03125, %v675_v15  ;;  %v9974_v14 = vcombine.low %v304_v2, %v312_v3 }
 0x70a   :  { %v679_v17 = vadd.f32 1e-05, %v677_v16  ;;  %v9988_v16 = vcombine.high %v321_v10, %v329_v11 }
 0x70c   :  { %10867 = vrsqrt.f32 %v679_v17 }
 0x712   :  { %v10866_v18 = vpop.eup %10865 }
 0x713   :  { %v682_v20 = vmul.f32 %v10866_v18, %v666_v44  ;;  %v9964_v44 = vcombine.low %v299_v30, %v307_v31  ;;  %v9987_v18 = vcombine.low %v321_v10, %v329_v11  ;;  %v11480_v31 = vld [vmem:[#allocation11 + $0x10] sm:$0xff] }
 0x715   :  { %v688_v26 = vmul.f32 %v9942_v22, %v682_v20  ;;  %v336_v20 = vld [vmem:[#allocation11 + $0x80] sm:$0xff] }
 0x716   :  { %v10868_v23 = vpop.eup %10867 }
 0x717   :  { %v683_v27 = vmul.f32 %v10868_v23, %v667_v46  ;;  %v11450_v34 = vadd.f32 %v9943_v28, %v688_v26  ;;  %v9953_v46 = vcombine.high %v285_v39, %v293_v40  ;;  %v337_v23 = vld [vmem:[#allocation11 + $0x88] sm:$0xff] }
 0x719   :  { %v689_v29 = vmul.f32 %v9942_v22, %v683_v27  ;;  %v344_v22 = vld [vmem:[#allocation11 + $0xc0] sm:$0xff]  ;;  %v345_v27 = vld [vmem:[#allocation11 + $0xc8] sm:$0xff] }
 0x71a   :  { %v10002_v26 = vcombine.high %v336_v20, %v344_v22  ;;  %v10004_v30 = vcombine.high %v337_v23, %v345_v27 }
 0x71b   :  { %v11452_v35 = vadd.f32 %v9943_v28, %v689_v29  ;;  %v10001_v28 = vcombine.low %v336_v20, %v344_v22  ;;  %v10003_v29 = vcombine.low %v337_v23, %v345_v27  ;;  %v11535_v23 = vld [vmem:[#allocation11 + $0x90] sm:$0xff] }
 0x71d   :  { %v11456_v36 = vpack.c.bf16 %v11452_v35, %v11450_v34 }
 0x71f   :  { %9976 = vmatmul.mubr.msk.bf16.vlgmr.msra.gmra.mrb[4].mxu0 %vm372_vm4, %v11456_v36  ;;  %9977 = vmatmul.mubr.msk.bf16.vlgmr.msra.gmra.mrb[16].mxu1 %vm372_vm4, %v11456_v36 }
 0x720   :  { %1029 = vmatpush1.bf16.msra.mxu0 %v9948_v8  ;;  %1072 = vmatpush1.bf16.msra.mxu1 %v9950_v9  ;;  %v320_v8 = vld [vmem:[#allocation11] sm:$0xff] }
 0x721   :  { %1030 = vmatprep.subr.bf16.mxu0 %v9965_v37  ;;  %1073 = vmatprep.subr.bf16.mxu1 %v9967_v38  ;;  %v328_v9 = vld [vmem:[#allocation11 + $0x40] sm:$0xff]  ;;  %v11488_v37 = vld [vmem:[#allocation11 + $0x58] sm:$0xff]  ;;  %v9989_v38 = vcombine.low %v11480_v31, %v11482_v32 }
 0x722   :  { %1060 = vmatprep.mubr.bf16.mxu0 %v11159_v0  ;;  %1103 = vmatprep.mubr.bf16.mxu1 %v11159_v0  ;;  %v9986_v15 = vcombine.high %v320_v8, %v328_v9  ;;  %v9985_v17 = vcombine.low %v320_v8, %v328_v9  ;;  %v9991_v39 = vcombine.low %v11484_v33, %v11488_v37 }
 0x723   :  { %v9992_v40 = vcombine.high %v11484_v33, %v11488_v37  ;;  %v11567_v33 = vld [vmem:[#allocation11 + $0x68] sm:$0xff] }
 0x724   :  { %1031 = vmatpush1.bf16.msra.mxu0 %v9964_v44  ;;  %1074 = vmatpush1.bf16.msra.mxu1 %v9966_v45  ;;  %v314_v44 = vld [vmem:[%s12660_s12] ss:$8 sm:$0xf0]  ;;  %v11503_v45 = vsub.s32 0, %v700_v41 }
 0x725   :  { %1114 = vmatprep.subr.bf16.mxu0 %v9953_v46  ;;  %1157 = vmatprep.subr.bf16.mxu1 %v9955_v47  ;;  %v11505_v46 = vsub.s32 2, %v700_v41  ;;  %v315_v47 = vor.u32 %v314_v44, %v313_v43 }
 0x727   :  { %9978 = vmatmul.mubr.msk.bf16.vlgmr.msra.gmra.mrb[8].mxu0 %vm372_vm4, %v11456_v36  ;;  %9979 = vmatmul.mubr.msk.bf16.vlgmr.msra.gmra.mrb[20].mxu1 %vm372_vm4, %v11456_v36  ;;  %v702_v19 = vrot.slane %v315_v47, %v11503_v45  ;;  %v710_v13 = vrot.slane %v315_v47, %v11505_v46 }
 0x728   :  { %1115 = vmatpush1.bf16.msra.mxu0 %v9952_v21  ;;  %1158 = vmatpush1.bf16.msra.mxu1 %v9954_v51  ;;  %v706_v21 = vrot.slane %v315_v47, %v11507_v48  ;;  %v714_v51 = vrot.slane %v315_v47, %v11509_v49 }
 0x729   :  { %1116 = vmatprep.subr.bf16.mxu0 %v9969_v52  ;;  %1159 = vmatprep.subr.bf16.mxu1 %v9971_v53  ;;  %v11517_v52 = vsub.s32 5, %v700_v41  ;;  %v11519_v53 = vsub.s32 6, %v700_v41 }
 0x72a   :  { %1146 = vmatprep.mubr.bf16.mxu0 %v11159_v0  ;;  %1189 = vmatprep.mubr.bf16.mxu1 %v11159_v0 }
 0x72b   :  { %v726_v10 = vrot.slane %v315_v47, %v11519_v53  ;;  %v722_v11 = vrot.slane %v315_v47, %v11517_v52 }
 0x72c   :  { %1117 = vmatpush1.bf16.msra.mxu0 %v9968_v58  ;;  %1160 = vmatpush1.bf16.msra.mxu1 %v9970_v59 }
 0x72d   :  { %1200 = vmatprep.subr.bf16.mxu0 %v9957_v60  ;;  %1243 = vmatprep.subr.bf16.mxu1 %v9959_v61 }
 0x72f   :  { %9980 = vmatmul.mubr.msk.bf16.vlgmr.msra.gmra.mrb[12].mxu0 %vm372_vm4, %v11456_v36  ;;  %9981 = vmatmul.mubr.msk.bf16.vlgmr.msra.gmra.mrb[24].mxu1 %vm372_vm4, %v11456_v36 }
 0x730   :  { %1201 = vmatpush1.bf16.msra.mxu0 %v9956_v4  ;;  %1244 = vmatpush1.bf16.msra.mxu1 %v9958_v5  ;;  %v718_v5 = vrot.slane %v315_v47, %v11513_v50 }
 0x731   :  { %1202 = vmatprep.subr.bf16.mxu0 %v9973_v6  ;;  %1245 = vmatprep.subr.bf16.mxu1 %v9975_v7 }
 0x732   :  { %1232 = vmatprep.mubr.bf16.mxu0 %v11159_v0  ;;  %1275 = vmatprep.mubr.bf16.mxu1 %v11159_v0 }
 0x734   :  { %1203 = vmatpush1.bf16.msra.mxu0 %v9972_v12  ;;  %1246 = vmatpush1.bf16.msra.mxu1 %v9974_v14 }
 0x735   :  { %1498 = vmatprep.subr.bf16.mxu0 %v9986_v15  ;;  %1539 = vmatprep.subr.bf16.mxu1 %v9988_v16  ;;  %v730_v15 = vrot.slane %v315_v47, %v11521_v54  ;;  %v11533_v16 = vor.u32 %v9927_v62, %v9926_v57 }
 0x737   :  { %9982 = vmatmul.mubr.msk.bf16.vlgmr.msra.gmra.mrb[16].mxu0 %vm372_vm4, %v11456_v36  ;;  %9983 = vmatmul.mubr.msk.bf16.vlgmr.msra.gmra.mrb[28].mxu1 %vm372_vm4, %v11456_v36  ;;  %v9990_v36 = vcombine.high %v11480_v31, %v11482_v32 }
 0x73d   :  { %1499 = vmatpush1.bf16.xpose.msra.mxu0 %v9985_v17  ;;  %1540 = vmatpush1.bf16.xpose.msra.mxu1 %v9987_v18 }
 0x73e   :  { %1500 = vmatprep.subr.bf16.mxu0 %v10002_v26  ;;  %1541 = vmatprep.subr.bf16.mxu1 %v10004_v30  ;;  %v11537_v26 = vld [vmem:[#allocation11 + $0xd0] sm:$0xff] }
 0x745   :  { %1501 = vmatpush1.bf16.xpose.msra.mxu0 %v10001_v28  ;;  %1542 = vmatpush1.bf16.xpose.msra.mxu1 %v10003_v29 }
 0x746   :  { %1580 = vmatprep.subr.bf16.mxu0 %v9990_v36  ;;  %1621 = vmatprep.subr.bf16.mxu1 %v9992_v40  ;;  %v11539_v36 = vld [vmem:[#allocation11 + $0x98] sm:$0xff] }
 0x747   :  { %v11541_v40 = vld [vmem:[#allocation11 + $0xd8] sm:$0xff] }
 0x7f2   :  { %v976_v55 = vpop.f32.mrb[4].mxu0  ;;  %v1019_v56 = vpop.f32.mrb[16].mxu1 }
 0x7f3   :  { %v977_v58 = vadd.f32 %v976_v55, %v702_v19  ;;  %v1020_v59 = vadd.f32 %v1019_v56, %v710_v13  ;;  %v978_v60 = vpop.f32.mrb[5].mxu0  ;;  %v1021_v61 = vpop.f32.mrb[17].mxu1 }
 0x7f4   :  { %v979_v63 = vadd.f32 %v978_v60, %v706_v21  ;;  %v1022_v2 = vadd.f32 %v1021_v61, %v714_v51  ;;  %v980_v3 = vpop.f32.mrb[6].mxu0  ;;  %v1023_v4 = vpop.f32.mrb[18].mxu1 }
 0x7f5   :  { %v981_v6 = vadd.f32 %v980_v3, %v702_v19  ;;  %v1024_v7 = vadd.f32 %v1023_v4, %v710_v13  ;;  %v982_v8 = vpop.f32.mrb[7].mxu0  ;;  %v1025_v9 = vpop.f32.mrb[19].mxu1  ;;  %v1286_v17 = vmax.f32 %v977_v58, 0.0  ;;  %v1288_v18 = vmax.f32 %v1020_v59, 0.0 }
 0x7f6   :  { %v983_v12 = vadd.f32 %v982_v8, %v706_v21  ;;  %v1026_v14 = vadd.f32 %v1025_v9, %v714_v51  ;;  %v1287_v27 = vmax.f32 %v979_v63, 0.0  ;;  %v1289_v28 = vmax.f32 %v1022_v2, 0.0 }
 0x7f7   :  { %v1302_v20 = vmax.f32 %v981_v6, 0.0  ;;  %v1304_v22 = vmax.f32 %v1024_v7, 0.0  ;;  %v734_v21 = vrot.slane %v11533_v16, %v11503_v45  ;;  %v10006_v58 = vcombine.high %v11535_v23, %v11537_v26 }
 0x7f8   :  { %v1303_v29 = vmax.f32 %v983_v12, 0.0  ;;  %v1305_v30 = vmax.f32 %v1026_v14, 0.0  ;;  %v10008_v59 = vcombine.high %v11539_v36, %v11541_v40  ;;  %v742_v2 = vrot.slane %v11533_v16, %v11505_v46 }
 0x7f9   :  { %v1318_v41 = vpack.c.bf16 %v1302_v20, %v1286_v17  ;;  %v1320_v43 = vpack.c.bf16 %v1304_v22, %v1288_v18  ;;  %v738_v8 = vrot.slane %v11533_v16, %v11507_v48  ;;  %v11561_v20 = vld [vmem:[#allocation11 + $0x20] sm:$0xff]  ;;  %v11565_v22 = vld [vmem:[#allocation11 + $0x28] sm:$0xff] }
 0x7fa   :  { %v1319_v44 = vpack.c.bf16 %v1303_v29, %v1287_v27  ;;  %v1321_v47 = vpack.c.bf16 %v1305_v30, %v1289_v28  ;;  %v1062_v19 = vpop.f32.mrb[8].mxu0  ;;  %v1105_v13 = vpop.f32.mrb[20].mxu1 }
 0x7fb   :  { %v1063_v51 = vadd.f32 %v1062_v19, %v718_v5  ;;  %v1106_v55 = vadd.f32 %v1105_v13, %v726_v10  ;;  %v1064_v56 = vpop.f32.mrb[9].mxu0  ;;  %v1107_v57 = vpop.f32.mrb[21].mxu1 }
 0x7fc   :  { %v1065_v60 = vadd.f32 %v1064_v56, %v722_v11  ;;  %v1108_v61 = vadd.f32 %v1107_v57, %v730_v15  ;;  %v1066_v62 = vpop.f32.mrb[10].mxu0  ;;  %v1109_v63 = vpop.f32.mrb[22].mxu1  ;;  %1530 = vmatprep.mubr.bf16.mxu0 %v1319_v44  ;;  %1571 = vmatprep.mubr.bf16.mxu1 %v1321_v47 }
 0x7fd   :  { %v1067_v3 = vadd.f32 %v1066_v62, %v718_v5  ;;  %v1110_v4 = vadd.f32 %v1109_v63, %v726_v10  ;;  %v1068_v6 = vpop.f32.mrb[11].mxu0  ;;  %v1111_v7 = vpop.f32.mrb[23].mxu1  ;;  %1531 = vmatmul.mubr.bf16.vlgmr.msra.gmra.mrb[20].mxu0 %v1318_v41  ;;  %1572 = vmatmul.mubr.bf16.vlgmr.msra.gmra.mrb[32].mxu1 %v1320_v43  ;;  %v746_v5 = vrot.slane %v11533_v16, %v11509_v49  ;;  %v1290_v10 = vmax.f32 %v1063_v51, 0.0 }
 0x7fe   :  { %v1069_v9 = vadd.f32 %v1068_v6, %v722_v11  ;;  %v1112_v12 = vadd.f32 %v1111_v7, %v730_v15  ;;  %1581 = vmatpush1.bf16.xpose.msra.mxu0 %v9989_v38  ;;  %1622 = vmatpush1.bf16.xpose.msra.mxu1 %v9991_v39  ;;  %v1292_v14 = vmax.f32 %v1106_v55, 0.0  ;;  %v11563_v11 = vld [vmem:[#allocation11 + $0x60] sm:$0xff]  ;;  %v1291_v15 = vmax.f32 %v1065_v60, 0.0 }
 0x7ff   :  { %v1306_v17 = vmax.f32 %v1067_v3, 0.0  ;;  %v1308_v18 = vmax.f32 %v1110_v4, 0.0  ;;  %1582 = vmatprep.subr.bf16.mxu0 %v10006_v58  ;;  %1623 = vmatprep.subr.bf16.mxu1 %v10008_v59  ;;  %v1293_v31 = vmax.f32 %v1108_v61, 0.0  ;;  %v10005_v41 = vcombine.low %v11535_v23, %v11537_v26 }
 0x800   :  { %v1307_v32 = vmax.f32 %v1069_v9, 0.0  ;;  %v1309_v38 = vmax.f32 %v1112_v12, 0.0  ;;  %v10007_v43 = vcombine.low %v11539_v36, %v11541_v40  ;;  %v9994_v51 = vcombine.high %v11561_v20, %v11563_v11 }
 0x801   :  { %v11569_v37 = vpack.c.bf16 %v1306_v17, %v1290_v10  ;;  %v11571_v39 = vpack.c.bf16 %v1308_v18, %v1292_v14  ;;  %v9996_v55 = vcombine.high %v11565_v22, %v11567_v33  ;;  %v750_v23 = vrot.slane %v11533_v16, %v11513_v50  ;;  %v340_v17 = vld [vmem:[#allocation11 + $0xa0] sm:$0xff] }
 0x802   :  { %v1323_v27 = vpack.c.bf16 %v1307_v32, %v1291_v15  ;;  %v1325_v28 = vpack.c.bf16 %v1309_v38, %v1293_v31  ;;  %v1148_v29 = vpop.f32.mrb[12].mxu0  ;;  %v1191_v30 = vpop.f32.mrb[24].mxu1  ;;  %v758_v61 = vrot.slane %v11533_v16, %v11519_v53  ;;  %v754_v62 = vrot.slane %v11533_v16, %v11517_v52  ;;  %v341_v15 = vld [vmem:[#allocation11 + $0xa8] sm:$0xff] }
 0x803   :  { %v1149_v44 = vadd.f32 %v1148_v29, %v734_v21  ;;  %v1192_v47 = vadd.f32 %v1191_v30, %v742_v2  ;;  %v1150_v19 = vpop.f32.mrb[13].mxu0  ;;  %v1193_v13 = vpop.f32.mrb[25].mxu1  ;;  %v762_v4 = vrot.slane %v11533_v16, %v11521_v54  ;;  %v349_v31 = vld [vmem:[#allocation11 + $0xe8] sm:$0xff] }
 0x804   :  { %v1151_v56 = vadd.f32 %v1150_v19, %v738_v8  ;;  %v1194_v57 = vadd.f32 %v1193_v13, %v746_v5  ;;  %v1152_v58 = vpop.f32.mrb[14].mxu0  ;;  %v1195_v59 = vpop.f32.mrb[26].mxu1  ;;  %1612 = vmatprep.mubr.bf16.mxu0 %v1323_v27  ;;  %1653 = vmatprep.mubr.bf16.mxu1 %v1325_v28  ;;  %v9993_v28 = vcombine.low %v11561_v20, %v11563_v11 }
 0x805   :  { %v1153_v26 = vadd.f32 %v1152_v58, %v734_v21  ;;  %v1196_v36 = vadd.f32 %v1195_v59, %v742_v2  ;;  %v1154_v40 = vpop.f32.mrb[15].mxu0  ;;  %v1197_v60 = vpop.f32.mrb[27].mxu1  ;;  %v1294_v6 = vmax.f32 %v1149_v44, 0.0  ;;  %v1296_v7 = vmax.f32 %v1192_v47, 0.0 }
 0x806   :  { %v1155_v63 = vadd.f32 %v1154_v40, %v738_v8  ;;  %v1198_v3 = vadd.f32 %v1197_v60, %v746_v5  ;;  %1583 = vmatpush1.bf16.xpose.msra.mxu0 %v10005_v41  ;;  %1624 = vmatpush1.bf16.xpose.msra.mxu1 %v10007_v43  ;;  %v1295_v2 = vmax.f32 %v1151_v56, 0.0  ;;  %v1297_v12 = vmax.f32 %v1194_v57, 0.0  ;;  %v348_v5 = vld [vmem:[#allocation11 + $0xe0] sm:$0xff] }
 0x807   :  { %v1310_v9 = vmax.f32 %v1153_v26, 0.0  ;;  %v1312_v21 = vmax.f32 %v1196_v36, 0.0  ;;  %1662 = vmatprep.subr.bf16.mxu0 %v9994_v51  ;;  %1703 = vmatprep.subr.bf16.mxu1 %v9996_v55  ;;  %v9995_v44 = vcombine.low %v11565_v22, %v11567_v33  ;;  %v10010_v55 = vcombine.high %v340_v17, %v348_v5 }
 0x808   :  { %v1311_v10 = vmax.f32 %v1155_v63, 0.0  ;;  %v1313_v14 = vmax.f32 %v1198_v3, 0.0  ;;  %v10012_v56 = vcombine.high %v341_v15, %v349_v31 }
 0x809   :  { %v11589_v18 = vpack.c.bf16 %v1310_v9, %v1294_v6  ;;  %v11591_v8 = vpack.c.bf16 %v1312_v21, %v1296_v7  ;;  %v10009_v21 = vcombine.low %v340_v17, %v348_v5 }
 0x80a   :  { %v1327_v32 = vpack.c.bf16 %v1311_v10, %v1295_v2  ;;  %v1329_v16 = vpack.c.bf16 %v1313_v14, %v1297_v12  ;;  %v1234_v38 = vpop.f32.mrb[16].mxu0  ;;  %v1277_v27 = vpop.f32.mrb[28].mxu1  ;;  %v10011_v2 = vcombine.low %v341_v15, %v349_v31  ;;  %v342_v14 = vld [vmem:[#allocation11 + $0xb0] sm:$0xff] }
 0x80b   :  { %v1235_v29 = vadd.f32 %v1234_v38, %v750_v23  ;;  %v1278_v30 = vadd.f32 %v1277_v27, %v758_v61  ;;  %v1236_v41 = vpop.f32.mrb[17].mxu0  ;;  %v1279_v43 = vpop.f32.mrb[29].mxu1  ;;  %v343_v38 = vld [vmem:[#allocation11 + $0xb8] sm:$0xff] }
 0x80c   :  { %v1237_v47 = vadd.f32 %v1236_v41, %v754_v62  ;;  %v1280_v19 = vadd.f32 %v1279_v43, %v762_v4  ;;  %v1238_v13 = vpop.f32.mrb[18].mxu0  ;;  %v1281_v51 = vpop.f32.mrb[30].mxu1  ;;  %v351_v27 = vld [vmem:[#allocation11 + $0xf8] sm:$0xff] }
 0x80d   :  { %v1239_v57 = vadd.f32 %v1238_v13, %v750_v23  ;;  %v1282_v58 = vadd.f32 %v1281_v51, %v758_v61  ;;  %1613 = vmatmul.mubr.bf16.vlgmr.msra.gmra.mrb[24].mxu0 %v11569_v37  ;;  %1654 = vmatmul.mubr.bf16.vlgmr.msra.gmra.mrb[36].mxu1 %v11571_v39  ;;  %v1240_v20 = vpop.f32.mrb[19].mxu0  ;;  %v1283_v11 = vpop.f32.mrb[31].mxu1  ;;  %v1298_v36 = vmax.f32 %v1235_v29, 0.0  ;;  %v1300_v22 = vmax.f32 %v1278_v30, 0.0  ;;  %v326_v37 = vld [vmem:[#allocation11 + $0x30] sm:$0xff] }
 0x80e   :  { %v1241_v59 = vadd.f32 %v1240_v20, %v754_v62  ;;  %v1284_v26 = vadd.f32 %v1283_v11, %v762_v4  ;;  %1663 = vmatpush1.bf16.xpose.msra.mxu0 %v9993_v28  ;;  %1694 = vmatprep.mubr.bf16.mxu0 %v1327_v32  ;;  %v1299_v60 = vmax.f32 %v1237_v47, 0.0  ;;  %v1301_v63 = vmax.f32 %v1280_v19, 0.0  ;;  %v334_v39 = vld [vmem:[#allocation11 + $0x70] sm:$0xff]  ;;  %v327_v62 = vld [vmem:[#allocation11 + $0x38] sm:$0xff] }
 0x80f   :  { %v1314_v33 = vmax.f32 %v1239_v57, 0.0  ;;  %v1316_v40 = vmax.f32 %v1282_v58, 0.0  ;;  %1704 = vmatpush1.bf16.xpose.msra.mxu1 %v9995_v44  ;;  %1735 = vmatprep.mubr.bf16.mxu1 %v1329_v16  ;;  %v335_v4 = vld [vmem:[#allocation11 + $0x78] sm:$0xff]  ;;  %v9998_v12 = vcombine.high %v326_v37, %v334_v39  ;;  %v350_v32 = vld [vmem:[#allocation11 + $0xf0] sm:$0xff]  ;;  %v9997_v16 = vcombine.low %v326_v37, %v334_v39 }
 0x810   :  { %v1315_v23 = vmax.f32 %v1241_v59, 0.0  ;;  %v1317_v61 = vmax.f32 %v1284_v26, 0.0  ;;  %1664 = vmatprep.subr.bf16.mxu0 %v10010_v55  ;;  %1705 = vmatprep.subr.bf16.mxu1 %v10012_v56  ;;  %v10000_v10 = vcombine.high %v327_v62, %v335_v4  ;;  %v9999_v28 = vcombine.low %v327_v62, %v335_v4 }
 0x811   :  { %v1330_v3 = vpack.c.bf16 %v1314_v33, %v1298_v36  ;;  %v1332_v6 = vpack.c.bf16 %v1316_v40, %v1300_v22  ;;  %v10014_v29 = vcombine.high %v342_v14, %v350_v32  ;;  %v10016_v30 = vcombine.high %v343_v38, %v351_v27 }
 0x812   :  { %v1331_v7 = vpack.c.bf16 %v1315_v23, %v1299_v60  ;;  %v1333_v9 = vpack.c.bf16 %v1317_v61, %v1301_v63  ;;  %v10013_v17 = vcombine.low %v342_v14, %v350_v32  ;;  %v10015_v5 = vcombine.low %v343_v38, %v351_v27 }
 0x816   :  { %1665 = vmatpush1.bf16.xpose.msra.mxu0 %v10009_v21 }
 0x817   :  { %1706 = vmatpush1.bf16.xpose.msra.mxu1 %v10011_v2  ;;  %1744 = vmatprep.subr.bf16.mxu0 %v9998_v12 }
 0x818   :  { %1785 = vmatprep.subr.bf16.mxu1 %v10000_v10 }
 0x81d   :  { %1695 = vmatmul.mubr.bf16.vlgmr.msra.gmra.mrb[28].mxu0 %v11589_v18  ;;  %v9984_v18 = vld [vmem:[%s12662_s14] ss:$0 sm:$0xff] }
 0x81e   :  { %1736 = vmatmul.mubr.bf16.vlgmr.msra.gmra.mrb[40].mxu1 %v11591_v8  ;;  %1745 = vmatpush1.bf16.xpose.msra.mxu0 %v9997_v16 }
 0x81f   :  { %1776 = vmatprep.mubr.bf16.mxu0 %v1331_v7  ;;  %1786 = vmatpush1.bf16.xpose.msra.mxu1 %v9999_v28 }
 0x820   :  { %1817 = vmatprep.mubr.bf16.mxu1 %v1333_v9  ;;  %1746 = vmatprep.subr.bf16.mxu0 %v10014_v29 }
 0x821   :  { %1787 = vmatprep.subr.bf16.mxu1 %v10016_v30 }
 0x826   :  { %1747 = vmatpush1.bf16.xpose.msra.mxu0 %v10013_v17 }
 0x827   :  { %1788 = vmatpush1.bf16.xpose.msra.mxu1 %v10015_v5  ;;  %10631 = vmatprep.subr.bf16.mxu0 %v11160_v1 }
 0x828   :  { %10639 = vmatprep.subr.bf16.mxu1 %v11402_v24 }
 0x82d   :  { %1777 = vmatmul.mubr.bf16.vlgmr.msra.gmra.mrb[32].mxu0 %v1330_v3 }
 0x82e   :  { %1818 = vmatmul.mubr.bf16.vlgmr.msra.gmra.mrb[44].mxu1 %v1332_v6  ;;  %10635 = vmatprep.mubr.msk.bf16.mxu0 %vm11161_vm0, %v11160_v1 }
 0x82f   :  { %10640 = vmatpush3.bf16.msra.mxu1 %v11402_v24 }
 0x830   :  { %10641 = vmatprep.subr.bf16.mxu1 %v11409_v25 }
 0x833   :  { %10642 = vmatpush3.bf16.msra.mxu1 %v11409_v25 }
 0x834   :  { %10653 = vmatprep.subr.bf16.mxu1 %v11160_v1 }
 0x8d0   :  { %v1532_v8 = vpop.f32.mrb[20].mxu0  ;;  %v1573_v15 = vpop.f32.mrb[32].mxu1 }
 0x8d1   :  { %v1533_v31 = vadd.f32 %v9984_v18, %v1532_v8  ;;  %v1534_v41 = vpop.f32.mrb[21].mxu0  ;;  %v1575_v43 = vpop.f32.mrb[33].mxu1 }
 0x8d2   :  { %v1535_v44 = vpop.f32.mrb[22].mxu0  ;;  %v1576_v47 = vpop.f32.mrb[34].mxu1 }
 0x8d3   :  { %v1574_v19 = vadd.f32 %v1573_v15, %v1533_v31  ;;  %v1536_v13 = vadd.f32 %v9984_v18, %v1535_v44  ;;  %v1537_v24 = vpop.f32.mrb[23].mxu0  ;;  %v1578_v51 = vpop.f32.mrb[35].mxu1 }
 0x8d4   :  { %v10831_v51 = vld [vmem:[#allocation7 + $0x10] sm:$0xff]  }
 0x8d5   :  { %v1577_v55 = vadd.f32 %v1576_v47, %v1536_v13  ;;  %10632 = vmatpush3.bf16.msra.mxu0 %v10831_v51 }
 0x8d6   :  { %10633 = vmatprep.subr.bf16.mxu0 %v11160_v1 }
 0x8e0   :  { %v1614_v56 = vpop.f32.mrb[24].mxu0  ;;  %v1655_v25 = vpop.f32.mrb[36].mxu1 }
 0x8e1   :  { %v1615_v57 = vadd.f32 %v1614_v56, %v1574_v19  ;;  %v1616_v58 = vpop.f32.mrb[25].mxu0  ;;  %v1657_v20 = vpop.f32.mrb[37].mxu1 }
 0x8e2   :  { %v1617_v11 = vpop.f32.mrb[26].mxu0  ;;  %v1658_v59 = vpop.f32.mrb[38].mxu1 }
 0x8e3   :  { %v1656_v26 = vadd.f32 %v1655_v25, %v1615_v57  ;;  %v1618_v36 = vadd.f32 %v1617_v11, %v1577_v55  ;;  %v1619_v22 = vpop.f32.mrb[27].mxu0  ;;  %v1660_v33 = vpop.f32.mrb[39].mxu1  ;;  %v10973_v55 = vld [vmem:[#allocation2] sm:$0xf] }
 0x8e5   :  { %v1659_v40 = vadd.f32 %v1658_v59, %v1618_v36 }
 0x8f0   :  { %v1696_v60 = vpop.f32.mrb[28].mxu0 }
 0x8f1   :  { %v1697_v63 = vadd.f32 %v1696_v60, %v1656_v26  ;;  %v1737_v23 = vpop.f32.mrb[40].mxu1  ;;  %v1698_v61 = vpop.f32.mrb[29].mxu0  ;;  %v10017_v26 = vld [vmem:[%s12663_s15] ss:$0 sm:$0xff] }
 0x8f2   :  { %v1739_v37 = vpop.f32.mrb[41].mxu1  ;;  %v1699_v39 = vpop.f32.mrb[30].mxu0  ;;  %v10018_v60 = vld [vmem:[%s12664_s16] ss:$0 sm:$0xff] }
 0x8f3   :  { %v1738_v3 = vadd.f32 %v1737_v23, %v1697_v63  ;;  %v1700_v6 = vadd.f32 %v1699_v39, %v1659_v40  ;;  %v1740_v62 = vpop.f32.mrb[42].mxu1  ;;  %v1701_v4 = vpop.f32.mrb[31].mxu0  ;;  %v10023_v39 = vld [vmem:[%s12654_s6 + $0x1] ss:$0 sm:$0xff] }
 0x8f4   :  { %v1742_v7 = vpop.f32.mrb[43].mxu1 }
 0x8f5   :  { %v1741_v9 = vadd.f32 %v1740_v62, %v1700_v6 }
 0x900   :  { %v1778_v21 = vpop.f32.mrb[32].mxu0 }
 0x901   :  { %v1779_v2 = vadd.f32 %v1778_v21, %v1738_v3  ;;  %v1819_v12 = vpop.f32.mrb[44].mxu1  ;;  %v1780_v10 = vpop.f32.mrb[33].mxu0 }
 0x902   :  { %v1821_v14 = vpop.f32.mrb[45].mxu1  ;;  %v1781_v32 = vpop.f32.mrb[34].mxu0 }
 0x903   :  { %v1820_v16 = vadd.f32 %v1819_v12, %v1779_v2  ;;  %v1782_v38 = vadd.f32 %v1781_v32, %v1741_v9  ;;  %v1822_v27 = vpop.f32.mrb[46].mxu1  ;;  %v1783_v28 = vpop.f32.mrb[35].mxu0 }
 0x904   :  { %v1824_v29 = vpop.f32.mrb[47].mxu1 }
 0x905   :  { %v1823_v30 = vadd.f32 %v1822_v27, %v1782_v38  ;;  %v1826_v17 = vadd.f32 %v1820_v16, %v11450_v34 }
 0x907   :  { %v1828_v5 = vsel %vm372_vm4, %v1826_v17, 0.0  ;;  %v1827_v18 = vadd.f32 %v1823_v30, %v11452_v35  ;;  %v10832_v35 = vld [vmem:[#allocation7 + $0x18] sm:$0xff]  }
 0x908   :  { %1829 = vadd.xlane.f32.xlu1 %v1828_v5  ;;  %10634 = vmatpush3.bf16.msra.mxu0 %v10832_v35 }
 0x909   :  { %v1831_v8 = vsel %vm372_vm4, %v1827_v18, 0.0  ;;  %10796 = vmatprep.subr.msk.bf16.mxu0 %vm529_vm5, %v10973_v55 }
 0x90a   :  { %1832 = vadd.xlane.f32.xlu0 %v1831_v8 }
 0x995   :  { %v1830_v15 = vpop.xlane.xlu1 %1829 }
 0x996   :  { %v1834_v31 = vmul.f32 0.03125, %v1830_v15 }
 0x997   :  { %v1833_v41 = vpop.xlane.xlu0 %1832 }
 0x998   :  { %v1836_v43 = vsub.f32 %v1826_v17, %v1834_v31  ;;  %v1835_v44 = vmul.f32 0.03125, %v1833_v41 }
 0x99a   :  { %v1837_v47 = vsub.f32 %v1827_v18, %v1835_v44  ;;  %v1838_v19 = vmul.f32 %v1836_v43, %v1836_v43 }
 0x99c   :  { %v1840_v13 = vsel %vm372_vm4, %v1838_v19, 0.0  ;;  %v1839_v24 = vmul.f32 %v1837_v47, %v1837_v47 }
 0x99d   :  { %1841 = vadd.xlane.f32.xlu1 %v1840_v13 }
 0x99e   :  { %v1843_v34 = vsel %vm372_vm4, %v1839_v24, 0.0 }
 0x99f   :  { %1844 = vadd.xlane.f32.xlu0 %v1843_v34 }
 0xa2a   :  { %v1842_v56 = vpop.xlane.xlu1 %1841 }
 0xa2b   :  { %v1846_v25 = vmul.f32 0.03125, %v1842_v56 }
 0xa2c   :  { %v1845_v57 = vpop.xlane.xlu0 %1844 }
 0xa2d   :  { %v1848_v58 = vadd.f32 1e-05, %v1846_v25  ;;  %v1847_v20 = vmul.f32 0.03125, %v1845_v57 }
 0xa2f   :  { %10869 = vrsqrt.f32 %v1848_v58  ;;  %v1849_v11 = vadd.f32 1e-05, %v1847_v20 }
 0xa31   :  { %10871 = vrsqrt.f32 %v1849_v11 }
 0xa39   :  { %v10870_v59 = vpop.eup %10869 }
 0xa3a   :  { %v1852_v36 = vmul.f32 %v10870_v59, %v1836_v43 }
 0xa3b   :  { %v10872_v22 = vpop.eup %10871 }
 0xa3c   :  { %v1858_v33 = vmul.f32 %v10017_v26, %v1852_v36  ;;  %v1853_v40 = vmul.f32 %v10872_v22, %v1837_v47  ;;  %v10834_v36 = vld [vmem:[#allocation8 + $0x18] sm:$0xff]  }
 0xa3e   :  { %v1859_v63 = vmul.f32 %v10017_v26, %v1853_v40  ;;  %v11626_v23 = vadd.f32 %v10018_v60, %v1858_v33  ;;  %v10833_v26 = vld [vmem:[#allocation8 + $0x10] sm:$0xff]  }
 0xa40   :  { %v11628_v61 = vadd.f32 %v10018_v60, %v1859_v63 }
 0xa42   :  { %v1957_v37 = vpack.c.bf16 %v11628_v61, %v11626_v23 }
 0xa44   :  { %10636 = vmatmul.mubr.msk.bf16.vlgmr.msra.gmra.mrb[36].mxu0 %vm372_vm4, %v1957_v37 }
 0xa45   :  { %10648 = vmatpush3.bf16.msra.mxu0 %v11424_v42 }
 0xb17   :  { %v2011_v3 = vpop.f32.mrb[36].mxu0 }
 0xb18   :  { %v2012_v6 = vadd.f32 %v10023_v39, %v2011_v3  ;;  %v10637_v62 = vpop.f32.mrb[37].mxu0 }
 0xb19   :  { %v2014_v4 = vpop.f32.mrb[38].mxu0 }
 0xb1a   :  { %v2015_v7 = vadd.f32 %v10023_v39, %v2014_v4  ;;  %2020 = vrot.lane.b32.xlu1 %v2012_v6, %s11163_s21  ;;  %v10638_v9 = vpop.f32.mrb[39].mxu0 }
 0xb1c   :  { %2022 = vrot.lane.b32.xlu0 %v2015_v7, %s11163_s21 }
 0xb1e   :  { %2166 = vrot.lane.b32.xlu1 %v2012_v6, %s11153_s30 }
 0xb22   :  { %2168 = vrot.lane.b32.xlu1 %v2015_v7, %s11153_s30 }
 0xb8c   :  { %v2021_v21 = vpop.permute.xlu1 %2020 }
 0xb8d   :  { %v2026_v12 = vmul.f32 %v2021_v21, %v2012_v6  ;;  %v2028_v10 = vmul.f32 %v2021_v21, %v2015_v7  ;;  %v10031_v21 = vld [vmem:[%s12656_s8 + $0x1] ss:$0 sm:$0xff] }
 0xb8e   :  { %v2023_v2 = vpop.permute.xlu0 %2022 }
 0xb8f   :  { %v2027_v14 = vmul.f32 %v2023_v2, %v2012_v6  ;;  %v2029_v32 = vmul.f32 %v2023_v2, %v2015_v7 }
 0xb90   :  { %v2167_v22 = vpop.permute.xlu1 %2166 }
 0xb91   :  { %v2030_v16 = vpack.c.bf16 %v2027_v14, %v2026_v12  ;;  %v2031_v38 = vpack.c.bf16 %v2029_v32, %v2028_v10 }
 0xb93   :  { %10643 = vmatprep.mubr.msk.bf16.mxu1 %vm372_vm4, %v2030_v16 }
 0xb94   :  { %10644 = vmatmul.mubr.msk.bf16.vlgmr.msra.gmra.mrb[48].mxu1 %vm372_vm4, %v2031_v38  ;;  %v2169_v60 = vpop.permute.xlu1 %2168 }
 0xb95   :  { %10657 = vmatprep.mubr.msk.bf16.mxu1 %vm11161_vm0, %v11160_v1  ;;  %10654 = vmatpush3.bf16.msra.mxu1 %v10833_v26  ;;  %v1891_v26 = vld [vmem:[#allocation10 + $0x150] sm:$0xff] }
 0xb96   :  { %10655 = vmatprep.subr.bf16.mxu1 %v11160_v1 }
 0xb99   :  { %10656 = vmatpush3.bf16.msra.mxu1 %v10834_v36  ;;  %v1884_v36 = vld [vmem:[#allocation10 + $0x118] sm:$0xff] }
 0xc67   :  { %v10645_v27 = vpop.f32.mrb[48].mxu1 }
 0xc68   :  { %v2072_v28 = vpop.f32.mrb[49].mxu1 }
 0xc69   :  { %v10646_v29 = vpop.f32.mrb[50].mxu1 }
 0xc6a   :  { %v2098_v30 = vmax.f32 %v10645_v27, %v10646_v29  ;;  %v2075_v17 = vpop.f32.mrb[51].mxu1 }
 0xc6b   :  { %v2087_v5 = vmax.f32 %v2072_v28, %v2075_v17 }
 0xc6c   :  { %v2099_v18 = vsub.f32 %v10645_v27, %v2098_v30  ;;  %v2102_v8 = vsub.f32 %v10646_v29, %v2098_v30 }
 0xc6d   :  { %v2088_v15 = vsub.f32 %v2072_v28, %v2087_v5  ;;  %v2091_v31 = vsub.f32 %v2075_v17, %v2087_v5 }
 0xc6e   :  { %v2100_v41 = vmul.f32 1.442695, %v2099_v18  ;;  %v2103_v43 = vmul.f32 1.442695, %v2102_v8 }
 0xc6f   :  { %v2089_v44 = vmul.f32 1.442695, %v2088_v15  ;;  %v2092_v47 = vmul.f32 1.442695, %v2091_v31 }
 0xc70   :  { %10873 = vpow2.f32 %v2100_v41 }
 0xc71   :  { %10875 = vpow2.f32 %v2103_v43 }
 0xc72   :  { %10877 = vpow2.f32 %v2089_v44  ;;  %v1881_v44 = vld [vmem:[#allocation10 + $0x100] sm:$0xff] }
 0xc73   :  { %10879 = vpow2.f32 %v2092_v47  ;;  %v1882_v47 = vld [vmem:[#allocation10 + $0x108] sm:$0xff] }
 0xc7a   :  { %v10874_v19 = vpop.eup %10873 }
 0xc7b   :  { %v10876_v13 = vpop.eup %10875 }
 0xc7c   :  { %v10878_v24 = vpop.eup %10877  ;;  %v2105_v34 = vadd.f32 %v10876_v13, %v10874_v19 }
 0xc7d   :  { %v10880_v51 = vpop.eup %10879 }
 0xc7e   :  { %10881 = vrcp.f32 %v2105_v34  ;;  %v2094_v35 = vadd.f32 %v10880_v51, %v10878_v24 }
 0xc80   :  { %10883 = vrcp.f32 %v2094_v35  ;;  %v1897_v35 = vld [vmem:[#allocation10 + $0x180] sm:$0xff] }
 0xc88   :  { %v10882_v55 = vpop.eup %10881 }
 0xc89   :  { %v2108_v56 = vmul.f32 %v10882_v55, %v10876_v13  ;;  %v2107_v25 = vmul.f32 %v10882_v55, %v10874_v19  ;;  %v1890_v13 = vld [vmem:[#allocation10 + $0x148] sm:$0xff]  ;;  %v1905_v55 = vld [vmem:[#allocation10 + $0x1c0] sm:$0xff] }
 0xc8a   :  { %v10884_v57 = vpop.eup %10883  ;;  %v10039_v34 = vcombine.low %v1882_v47, %v1890_v13 }
 0xc8b   :  { %v2096_v58 = vmul.f32 %v10884_v57, %v10878_v24  ;;  %v2097_v20 = vmul.f32 %v10884_v57, %v10880_v51  ;;  %v2110_v11 = vpack.c.bf16 %v2108_v56, %v2107_v25  ;;  %v10040_v51 = vcombine.high %v1882_v47, %v1890_v13  ;;  %v1898_v56 = vld [vmem:[#allocation10 + $0x188] sm:$0xff]  ;;  %v1901_v47 = vld [vmem:[#allocation10 + $0x1a0] sm:$0xff] }
 0xc8c   :  { %v10054_v25 = vcombine.high %v1897_v35, %v1905_v55  ;;  %v1906_v57 = vld [vmem:[#allocation10 + $0x1c8] sm:$0xff] }
 0xc8d   :  { %v2109_v59 = vpack.c.bf16 %v2097_v20, %v2096_v58  ;;  %2568 = vmatprep.subr.bf16.mxu1 %v10040_v51  ;;  %v10053_v58 = vcombine.low %v1897_v35, %v1905_v55  ;;  %v10055_v20 = vcombine.low %v1898_v56, %v1906_v57  ;;  %v1902_v13 = vld [vmem:[#allocation10 + $0x1a8] sm:$0xff] }
 0xc8f   :  { %10649 = vmatprep.mubr.msk.bf16.mxu0 %vm522_vm6, %v2109_v59  ;;  %v1883_v59 = vld [vmem:[#allocation10 + $0x110] sm:$0xff] }
 0xc90   :  { %10650 = vmatmul.mubr.msk.bf16.vlgmr.msra.gmra.mrb[40].mxu0 %vm522_vm6, %v2110_v11  ;;  %v10056_v11 = vcombine.high %v1898_v56, %v1906_v57  ;;  %v1887_v56 = vld [vmem:[#allocation10 + $0x130] sm:$0xff]  ;;  %v1888_v57 = vld [vmem:[#allocation10 + $0x138] sm:$0xff] }
 0xc91   :  { %2557 = vmatprep.mubr.bf16.mxu0 %v11159_v0 }
 0xd63   :  { %v10651_v33 = vpop.f32.mrb[40].mxu0 }
 0xd64   :  { %v2151_v40 = vpop.f32.mrb[41].mxu0  ;;  %v2174_v37 = vmul.f32 %v10651_v33, %v2167_v22  ;;  %v1892_v33 = vld [vmem:[#allocation10 + $0x158] sm:$0xff] }
 0xd65   :  { %v10652_v63 = vpop.f32.mrb[42].mxu0  ;;  %v2172_v6 = vmul.f32 %v2167_v22, %v2151_v40  ;;  %v10042_v22 = vcombine.high %v1883_v59, %v1891_v26  ;;  %v10041_v40 = vcombine.low %v1883_v59, %v1891_v26 }
 0xd66   :  { %v2175_v39 = vmul.f32 %v10652_v63, %v2169_v60  ;;  %v2154_v3 = vpop.f32.mrb[43].mxu0  ;;  %v10044_v63 = vcombine.high %v1884_v36, %v1892_v33 }
 0xd67   :  { %v2173_v62 = vmul.f32 %v2169_v60, %v2154_v3  ;;  %v10043_v60 = vcombine.low %v1884_v36, %v1892_v33  ;;  %v1903_v36 = vld [vmem:[#allocation10 + $0x1b0] sm:$0xff]  ;;  %v1904_v33 = vld [vmem:[#allocation10 + $0x1b8] sm:$0xff] }
 0xd68   :  { %v2177_v4 = vadd.f32 %v2175_v39, %v2174_v37 }
 0xd69   :  { %v2176_v7 = vadd.f32 %v2173_v62, %v2172_v6 }
 0xd6b   :  { %v2178_v9 = vpack.c.bf16 %v2177_v4, %v2176_v7 }
 0xd6d   :  { %10658 = vmatmul.mubr.msk.bf16.vlgmr.msra.gmra.mrb[52].mxu1 %vm372_vm4, %v2178_v9 }
 0xd6e   :  { %2600 = vmatprep.mubr.bf16.mxu1 %v11159_v0  ;;  %2569 = vmatpush1.bf16.msra.mxu1 %v10039_v34 }
 0xd6f   :  { %2570 = vmatprep.subr.bf16.mxu1 %v10056_v11 }
 0xd72   :  { %2571 = vmatpush1.bf16.msra.mxu1 %v10055_v20 }
 0xd73   :  { %2654 = vmatprep.subr.bf16.mxu1 %v10044_v63 }
 0xe40   :  { %v2232_v2 = vpop.f32.mrb[52].mxu1 }
 0xe41   :  { %v2233_v12 = vadd.f32 %v10031_v21, %v2232_v2  ;;  %v10659_v10 = vpop.f32.mrb[53].mxu1 }
 0xe42   :  { %v2235_v14 = vpop.f32.mrb[54].mxu1 }
 0xe43   :  { %v2236_v32 = vadd.f32 %v10031_v21, %v2235_v14  ;;  %v10660_v16 = vpop.f32.mrb[55].mxu1  ;;  %v2239_v38 = vadd.f32 %v2233_v12, %v11626_v23  ;;  %v10035_v21 = vld [vmem:[%s12657_s9 + $0x1] ss:$0 sm:$0xff] }
 0xe44   :  { %v10036_v14 = vld [vmem:[%s12658_s10 + $0x1] ss:$0 sm:$0xff]  ;;  %v1899_v16 = vld [vmem:[#allocation10 + $0x190] sm:$0xff] }
 0xe45   :  { %v2241_v27 = vsel %vm372_vm4, %v2239_v38, 0.0  ;;  %v2240_v28 = vadd.f32 %v2236_v32, %v11628_v61  ;;  %v1889_v61 = vld [vmem:[#allocation10 + $0x140] sm:$0xff] }
 0xe46   :  { %2242 = vadd.xlane.f32.xlu0 %v2241_v27  ;;  %v10038_v19 = vcombine.high %v1881_v44, %v1889_v61  ;;  %v10037_v24 = vcombine.low %v1881_v44, %v1889_v61  ;;  %v1900_v27 = vld [vmem:[#allocation10 + $0x198] sm:$0xff] }
 0xe47   :  { %v2244_v29 = vsel %vm372_vm4, %v2240_v28, 0.0 }
 0xe48   :  { %2245 = vadd.xlane.f32.xlu1 %v2244_v29  ;;  %2525 = vmatprep.subr.bf16.mxu0 %v10038_v19  ;;  %v1909_v19 = vld [vmem:[#allocation10 + $0x1e0] sm:$0xff] }
 0xe49   :  { %2526 = vmatpush1.bf16.msra.mxu0 %v10037_v24  ;;  %v1910_v24 = vld [vmem:[#allocation10 + $0x1e8] sm:$0xff]  ;;  %v10062_v35 = vcombine.high %v1901_v47, %v1909_v19  ;;  %v10061_v20 = vcombine.low %v1901_v47, %v1909_v19 }
 0xe4a   :  { %2527 = vmatprep.subr.bf16.mxu0 %v10054_v25  ;;  %v10064_v55 = vcombine.high %v1902_v13, %v1910_v24  ;;  %v1895_v25 = vld [vmem:[#allocation10 + $0x170] sm:$0xff]  ;;  %v10063_v11 = vcombine.low %v1902_v13, %v1910_v24 }
 0xe4b   :  { %v10050_v59 = vcombine.high %v1887_v56, %v1895_v25  ;;  %v10020_v47 = vld [vmem:[%s12660_s12 + $0x1] ss:$8 sm:$0xf0] }
 0xe4d   :  { %2528 = vmatpush1.bf16.msra.mxu0 %v10053_v58  ;;  %v1896_v58 = vld [vmem:[#allocation10 + $0x178] sm:$0xff] }
 0xe4e   :  { %2611 = vmatprep.subr.bf16.mxu0 %v10042_v22  ;;  %v10052_v26 = vcombine.high %v1888_v57, %v1896_v58  ;;  %v1911_v22 = vld [vmem:[#allocation10 + $0x1f0] sm:$0xff]  ;;  %v10051_v63 = vcombine.low %v1888_v57, %v1896_v58 }
 0xed3   :  { %v2243_v30 = vpop.xlane.xlu0 %2242 }
 0xed4   :  { %v2247_v17 = vmul.f32 0.03125, %v2243_v30 }
 0xed5   :  { %v2246_v5 = vpop.xlane.xlu1 %2245 }
 0xed6   :  { %v2249_v18 = vsub.f32 %v2239_v38, %v2247_v17  ;;  %v2248_v8 = vmul.f32 0.03125, %v2246_v5  ;;  %v1907_v38 = vld [vmem:[#allocation10 + $0x1d0] sm:$0xff] }
 0xed7   :  { %v10058_v5 = vcombine.high %v1899_v16, %v1907_v38 }
 0xed8   :  { %v2250_v15 = vsub.f32 %v2240_v28, %v2248_v8  ;;  %v2251_v31 = vmul.f32 %v2249_v18, %v2249_v18  ;;  %v1908_v28 = vld [vmem:[#allocation10 + $0x1d8] sm:$0xff]  ;;  %v1885_v8 = vld [vmem:[#allocation10 + $0x120] sm:$0xff] }
 0xeda   :  { %v2253_v41 = vsel %vm372_vm4, %v2251_v31, 0.0  ;;  %v2252_v43 = vmul.f32 %v2250_v15, %v2250_v15  ;;  %v1886_v31 = vld [vmem:[#allocation10 + $0x128] sm:$0xff] }
 0xedb   :  { %2254 = vadd.xlane.f32.xlu0 %v2253_v41  ;;  %v1894_v41 = vld [vmem:[#allocation10 + $0x168] sm:$0xff] }
 0xedc   :  { %v2256_v23 = vsel %vm372_vm4, %v2252_v43, 0.0  ;;  %v10057_v43 = vcombine.low %v1899_v16, %v1907_v38  ;;  %v10048_v61 = vcombine.high %v1886_v31, %v1894_v41  ;;  %v10047_v51 = vcombine.low %v1886_v31, %v1894_v41  ;;  %v1939_v16 = vld [vmem:[#allocation11 + $0x188] sm:$0xff]  ;;  %v11704_v41 = vld [vmem:[#allocation11 + $0x158] sm:$0xff] }
 0xedf   :  { %2257 = vadd.xlane.f32.xlu0 %v2256_v23  ;;  %v10059_v23 = vcombine.low %v1900_v27, %v1908_v28 }
 0xf68   :  { %v2255_v37 = vpop.xlane.xlu0 %2254 }
 0xf69   :  { %v2259_v39 = vmul.f32 0.03125, %v2255_v37  ;;  %v10066_v37 = vcombine.high %v1903_v36, %v1911_v22 }
 0xf6b   :  { %v2261_v3 = vadd.f32 1e-05, %v2259_v39 }
 0xf6c   :  { %v2258_v6 = vpop.xlane.xlu0 %2257 }
 0xf6d   :  { %10885 = vrsqrt.f32 %v2261_v3  ;;  %v2260_v62 = vmul.f32 0.03125, %v2258_v6  ;;  %v1922_v3 = vld [vmem:[#allocation11 + $0x100] sm:$0xff] }
 0xf6e   :  { %v1930_v6 = vld [vmem:[#allocation11 + $0x140] sm:$0xff] }
 0xf6f   :  { %v2262_v4 = vadd.f32 1e-05, %v2260_v62  ;;  %v1923_v62 = vld [vmem:[#allocation11 + $0x108] sm:$0xff] }
 0xf71   :  { %10887 = vrsqrt.f32 %v2262_v4  ;;  %v1931_v4 = vld [vmem:[#allocation11 + $0x148] sm:$0xff] }
 0xf77   :  { %v10886_v7 = vpop.eup %10885 }
 0xf78   :  { %v2265_v9 = vmul.f32 %v10886_v7, %v2249_v18  ;;  %v10060_v18 = vcombine.high %v1900_v27, %v1908_v28  ;;  %v10065_v7 = vcombine.low %v1903_v36, %v1911_v22  ;;  %v1947_v27 = vld [vmem:[#allocation11 + $0x1c8] sm:$0xff] }
 0xf7a   :  { %v2271_v12 = vmul.f32 %v10035_v21, %v2265_v9 }
 0xf7b   :  { %v10888_v2 = vpop.eup %10887 }
 0xf7c   :  { %v2266_v10 = vmul.f32 %v10888_v2, %v2250_v15  ;;  %v11666_v29 = vadd.f32 %v10036_v14, %v2271_v12  ;;  %v1893_v15 = vld [vmem:[#allocation10 + $0x160] sm:$0xff]  ;;  %v10081_v2 = vcombine.high %v1923_v62, %v1931_v4  ;;  %v10078_v12 = vcombine.low %v1922_v3, %v1930_v6 }
 0xf7d   :  { %v10046_v44 = vcombine.high %v1885_v8, %v1893_v15  ;;  %v10045_v34 = vcombine.low %v1885_v8, %v1893_v15  ;;  %v11696_v8 = vld [vmem:[#allocation11 + $0x110] sm:$0xff] }
 0xf7e   :  { %v2272_v32 = vmul.f32 %v10035_v21, %v2266_v10  ;;  %v10079_v21 = vcombine.high %v1922_v3, %v1930_v6  ;;  %v10080_v10 = vcombine.low %v1923_v62, %v1931_v4  ;;  %v11698_v15 = vld [vmem:[#allocation11 + $0x150] sm:$0xff] }
 0xf7f   :  { %v10083_v31 = vcombine.high %v11696_v8, %v11698_v15 }
 0xf80   :  { %v11668_v30 = vadd.f32 %v10036_v14, %v2272_v32  ;;  %v1938_v14 = vld [vmem:[#allocation11 + $0x180] sm:$0xff] }
 0xf81   :  { %v1946_v32 = vld [vmem:[#allocation11 + $0x1c0] sm:$0xff] }
 0xf82   :  { %v11672_v17 = vpack.c.bf16 %v11668_v30, %v11666_v29  ;;  %v10095_v38 = vcombine.high %v1938_v14, %v1946_v32  ;;  %v10094_v28 = vcombine.low %v1938_v14, %v1946_v32  ;;  %v11736_v14 = vld [vmem:[#allocation11 + $0x1d0] sm:$0xff] }
 0xf84   :  { %10069 = vmatmul.mubr.msk.bf16.vlgmr.msra.gmra.mrb[44].mxu0 %vm372_vm4, %v11672_v17  ;;  %10070 = vmatmul.mubr.msk.bf16.vlgmr.msra.gmra.mrb[56].mxu1 %vm372_vm4, %v11672_v17 }
 0xf85   :  { %2612 = vmatpush1.bf16.msra.mxu0 %v10041_v40  ;;  %2655 = vmatpush1.bf16.msra.mxu1 %v10043_v60  ;;  %v1912_v40 = vld [vmem:[#allocation10 + $0x1f8] sm:$0xff]  ;;  %v10049_v60 = vcombine.low %v1887_v56, %v1895_v25 }
 0xf86   :  { %2613 = vmatprep.subr.bf16.mxu0 %v10058_v5  ;;  %2656 = vmatprep.subr.bf16.mxu1 %v10060_v18  ;;  %v10068_v39 = vcombine.high %v1904_v33, %v1912_v40  ;;  %v10067_v9 = vcombine.low %v1904_v33, %v1912_v40  ;;  %v10096_v5 = vcombine.low %v1939_v16, %v1947_v27  ;;  %v10021_v56 = vld [vmem:[%s12660_s12 + $0x41] ss:$8 sm:$0xf] }
 0xf87   :  { %2643 = vmatprep.mubr.bf16.mxu0 %v11159_v0  ;;  %2686 = vmatprep.mubr.bf16.mxu1 %v11159_v0  ;;  %v10097_v18 = vcombine.high %v1939_v16, %v1947_v27 }
 0xf89   :  { %2614 = vmatpush1.bf16.msra.mxu0 %v10057_v43  ;;  %2657 = vmatpush1.bf16.msra.mxu1 %v10059_v23  ;;  %v10082_v43 = vcombine.low %v11696_v8, %v11698_v15 }
 0xf8a   :  { %2697 = vmatprep.subr.bf16.mxu0 %v10046_v44  ;;  %2740 = vmatprep.subr.bf16.mxu1 %v10048_v61  ;;  %v10019_v61 = vld [vmem:[%s12660_s12 + $0x1] ss:$8 sm:$0xf] }
 0xf8b   :  { %v1916_v19 = vor.u32 %v10020_v47, %v10019_v61 }
 0xf8c   :  { %10071 = vmatmul.mubr.msk.bf16.vlgmr.msra.gmra.mrb[48].mxu0 %vm372_vm4, %v11672_v17  ;;  %10072 = vmatmul.mubr.msk.bf16.vlgmr.msra.gmra.mrb[60].mxu1 %vm372_vm4, %v11672_v17 }
 0xf8d   :  { %2698 = vmatpush1.bf16.msra.mxu0 %v10045_v34  ;;  %2741 = vmatpush1.bf16.msra.mxu1 %v10047_v51  ;;  %v2285_v13 = vrot.slane %v1916_v19, %v11503_v45  ;;  %v2293_v24 = vrot.slane %v1916_v19, %v11505_v46  ;;  %v2289_v34 = vrot.slane %v1916_v19, %v11507_v48 }
 0xf8e   :  { %2699 = vmatprep.subr.bf16.mxu0 %v10062_v35  ;;  %2742 = vmatprep.subr.bf16.mxu1 %v10064_v55  ;;  %v2297_v51 = vrot.slane %v1916_v19, %v11509_v49  ;;  %v2301_v33 = vrot.slane %v1916_v19, %v11513_v50  ;;  %v2305_v3 = vrot.slane %v1916_v19, %v11517_v52 }
 0xf8f   :  { %2729 = vmatprep.mubr.bf16.mxu0 %v11159_v0  ;;  %2772 = vmatprep.mubr.bf16.mxu1 %v11159_v0  ;;  %v2313_v4 = vrot.slane %v1916_v19, %v11521_v54 }
 0xf91   :  { %2700 = vmatpush1.bf16.msra.mxu0 %v10061_v20  ;;  %2743 = vmatpush1.bf16.msra.mxu1 %v10063_v11  ;;  %v10022_v11 = vld [vmem:[%s12660_s12 + $0x41] ss:$8 sm:$0xf0] }
 0xf92   :  { %2783 = vmatprep.subr.bf16.mxu0 %v10050_v59  ;;  %2826 = vmatprep.subr.bf16.mxu1 %v10052_v26 }
 0xf94   :  { %10073 = vmatmul.mubr.msk.bf16.vlgmr.msra.gmra.mrb[52].mxu0 %vm372_vm4, %v11672_v17  ;;  %10074 = vmatmul.mubr.msk.bf16.vlgmr.msra.gmra.mrb[64].mxu1 %vm372_vm4, %v11672_v17 }
 0xf95   :  { %2784 = vmatpush1.bf16.msra.mxu0 %v10049_v60  ;;  %2827 = vmatpush1.bf16.msra.mxu1 %v10051_v63 }
 0xf96   :  { %2785 = vmatprep.subr.bf16.mxu0 %v10066_v37  ;;  %2828 = vmatprep.subr.bf16.mxu1 %v10068_v39  ;;  %v2309_v39 = vrot.slane %v1916_v19, %v11519_v53 }
 0xf97   :  { %2815 = vmatprep.mubr.bf16.mxu0 %v11159_v0  ;;  %2858 = vmatprep.mubr.bf16.mxu1 %v11159_v0 }
 0xf99   :  { %2786 = vmatpush1.bf16.msra.mxu0 %v10065_v7  ;;  %2829 = vmatpush1.bf16.msra.mxu1 %v10067_v9  ;;  %v11732_v7 = vor.u32 %v10022_v11, %v10021_v56 }
 0xf9a   :  { %3081 = vmatprep.subr.bf16.mxu0 %v10079_v21  ;;  %3122 = vmatprep.subr.bf16.mxu1 %v10081_v2 }
 0xf9b   :  { %v2325_v11 = vrot.slane %v11732_v7, %v11505_v46 }
 0xf9c   :  { %10075 = vmatmul.mubr.msk.bf16.vlgmr.msra.gmra.mrb[56].mxu0 %vm372_vm4, %v11672_v17  ;;  %10076 = vmatmul.mubr.msk.bf16.vlgmr.msra.gmra.mrb[68].mxu1 %vm372_vm4, %v11672_v17  ;;  %v11700_v17 = vld [vmem:[#allocation11 + $0x118] sm:$0xff] }
 0xf9d   :  { %v10084_v23 = vcombine.low %v11700_v17, %v11704_v41  ;;  %v10085_v44 = vcombine.high %v11700_v17, %v11704_v41  ;;  %v11766_v17 = vld [vmem:[#allocation11 + $0x168] sm:$0xff] }
 0xfa2   :  { %3082 = vmatpush1.bf16.xpose.msra.mxu0 %v10078_v12  ;;  %3123 = vmatpush1.bf16.xpose.msra.mxu1 %v10080_v10  ;;  %v11734_v10 = vld [vmem:[#allocation11 + $0x190] sm:$0xff] }
 0xfa3   :  { %3083 = vmatprep.subr.bf16.mxu0 %v10095_v38  ;;  %3124 = vmatprep.subr.bf16.mxu1 %v10097_v18 }
 0xfaa   :  { %3084 = vmatpush1.bf16.xpose.msra.mxu0 %v10094_v28  ;;  %3125 = vmatpush1.bf16.xpose.msra.mxu1 %v10096_v5  ;;  %v11738_v28 = vld [vmem:[#allocation11 + $0x198] sm:$0xff] }
 0xfab   :  { %3163 = vmatprep.subr.bf16.mxu0 %v10083_v31  ;;  %3204 = vmatprep.subr.bf16.mxu1 %v10085_v44  ;;  %v11740_v5 = vld [vmem:[#allocation11 + $0x1d8] sm:$0xff] }
 0xfac   :  { %v10101_v56 = vcombine.high %v11738_v28, %v11740_v5 }
0x1057   :  { %v2559_v35 = vpop.f32.mrb[44].mxu0  ;;  %v2602_v55 = vpop.f32.mrb[56].mxu1 }
0x1058   :  { %v2560_v25 = vadd.f32 %v2559_v35, %v2285_v13  ;;  %v2603_v57 = vadd.f32 %v2602_v55, %v2293_v24  ;;  %v2561_v58 = vpop.f32.mrb[45].mxu0  ;;  %v2604_v20 = vpop.f32.mrb[57].mxu1  ;;  %v10099_v55 = vcombine.high %v11734_v10, %v11736_v14 }
0x1059   :  { %v2562_v59 = vadd.f32 %v2561_v58, %v2289_v34  ;;  %v2605_v26 = vadd.f32 %v2604_v20, %v2297_v51  ;;  %v2563_v36 = vpop.f32.mrb[46].mxu0  ;;  %v2606_v22 = vpop.f32.mrb[58].mxu1 }
0x105a   :  { %v2564_v40 = vadd.f32 %v2563_v36, %v2285_v13  ;;  %v2607_v60 = vadd.f32 %v2606_v22, %v2293_v24  ;;  %v2565_v63 = vpop.f32.mrb[47].mxu0  ;;  %v2608_v37 = vpop.f32.mrb[59].mxu1  ;;  %v2869_v9 = vmax.f32 %v2560_v25, 0.0  ;;  %v2871_v21 = vmax.f32 %v2603_v57, 0.0 }
0x105b   :  { %v2566_v6 = vadd.f32 %v2565_v63, %v2289_v34  ;;  %v2609_v62 = vadd.f32 %v2608_v37, %v2297_v51  ;;  %v2870_v32 = vmax.f32 %v2562_v59, 0.0  ;;  %v2872_v16 = vmax.f32 %v2605_v26, 0.0 }
0x105c   :  { %v2885_v2 = vmax.f32 %v2564_v40, 0.0  ;;  %v2887_v12 = vmax.f32 %v2607_v60, 0.0  ;;  %v2317_v13 = vrot.slane %v11732_v7, %v11503_v45  ;;  %v2321_v40 = vrot.slane %v11732_v7, %v11507_v48 }
0x105d   :  { %v2886_v38 = vmax.f32 %v2566_v6, 0.0  ;;  %v2888_v27 = vmax.f32 %v2609_v62, 0.0 }
0x105e   :  { %v2901_v18 = vpack.c.bf16 %v2885_v2, %v2869_v9  ;;  %v2903_v31 = vpack.c.bf16 %v2887_v12, %v2871_v21  ;;  %v11760_v9 = vld [vmem:[#allocation11 + $0x120] sm:$0xff]  ;;  %v11764_v21 = vld [vmem:[#allocation11 + $0x128] sm:$0xff] }
0x105f   :  { %v2902_v44 = vpack.c.bf16 %v2886_v38, %v2870_v32  ;;  %v2904_v61 = vpack.c.bf16 %v2888_v27, %v2872_v16  ;;  %v2645_v47 = vpop.f32.mrb[48].mxu0  ;;  %v2688_v19 = vpop.f32.mrb[60].mxu1  ;;  %v10098_v38 = vcombine.low %v11734_v10, %v11736_v14  ;;  %v10100_v27 = vcombine.low %v11738_v28, %v11740_v5 }
0x1060   :  { %v2646_v24 = vadd.f32 %v2645_v47, %v2301_v33  ;;  %v2689_v34 = vadd.f32 %v2688_v19, %v2309_v39  ;;  %v2647_v51 = vpop.f32.mrb[49].mxu0  ;;  %v2690_v35 = vpop.f32.mrb[61].mxu1  ;;  %v10089_v19 = vcombine.high %v11764_v21, %v11766_v17  ;;  %v2333_v10 = vrot.slane %v11732_v7, %v11513_v50 }
0x1061   :  { %v2648_v25 = vadd.f32 %v2647_v51, %v2305_v3  ;;  %v2691_v57 = vadd.f32 %v2690_v35, %v2313_v4  ;;  %v2649_v58 = vpop.f32.mrb[50].mxu0  ;;  %v2692_v20 = vpop.f32.mrb[62].mxu1  ;;  %3113 = vmatprep.mubr.bf16.mxu0 %v2902_v44  ;;  %3154 = vmatprep.mubr.bf16.mxu1 %v2904_v61 }
0x1062   :  { %v2650_v59 = vadd.f32 %v2649_v58, %v2301_v33  ;;  %v2693_v26 = vadd.f32 %v2692_v20, %v2309_v39  ;;  %v2651_v36 = vpop.f32.mrb[51].mxu0  ;;  %v2694_v22 = vpop.f32.mrb[63].mxu1  ;;  %3114 = vmatmul.mubr.bf16.vlgmr.msra.gmra.mrb[60].mxu0 %v2901_v18  ;;  %3155 = vmatmul.mubr.bf16.vlgmr.msra.gmra.mrb[72].mxu1 %v2903_v31  ;;  %v2329_v33 = vrot.slane %v11732_v7, %v11509_v49  ;;  %v2873_v37 = vmax.f32 %v2646_v24, 0.0 }
0x1063   :  { %v2652_v60 = vadd.f32 %v2651_v36, %v2305_v3  ;;  %v2695_v63 = vadd.f32 %v2694_v22, %v2313_v4  ;;  %3164 = vmatpush1.bf16.xpose.msra.mxu0 %v10082_v43  ;;  %3205 = vmatpush1.bf16.xpose.msra.mxu1 %v10084_v23  ;;  %v2875_v39 = vmax.f32 %v2689_v34, 0.0  ;;  %v11762_v3 = vld [vmem:[#allocation11 + $0x160] sm:$0xff]  ;;  %v2874_v4 = vmax.f32 %v2648_v25, 0.0 }
0x1064   :  { %v2889_v6 = vmax.f32 %v2650_v59, 0.0  ;;  %v2891_v62 = vmax.f32 %v2693_v26, 0.0  ;;  %3165 = vmatprep.subr.bf16.mxu0 %v10099_v55  ;;  %3206 = vmatprep.subr.bf16.mxu1 %v10101_v56  ;;  %v2876_v8 = vmax.f32 %v2691_v57, 0.0  ;;  %v10087_v47 = vcombine.high %v11760_v9, %v11762_v3 }
0x1065   :  { %v2890_v15 = vmax.f32 %v2652_v60, 0.0  ;;  %v2892_v43 = vmax.f32 %v2695_v63, 0.0  ;;  %v2341_v56 = vrot.slane %v11732_v7, %v11519_v53  ;;  %v2337_v25 = vrot.slane %v11732_v7, %v11517_v52 }
0x1066   :  { %v11768_v41 = vpack.c.bf16 %v2889_v6, %v2873_v37  ;;  %v11770_v23 = vpack.c.bf16 %v2891_v62, %v2875_v39  ;;  %v2345_v20 = vrot.slane %v11732_v7, %v11521_v54  ;;  %v1942_v37 = vld [vmem:[#allocation11 + $0x1a0] sm:$0xff]  ;;  %v1943_v6 = vld [vmem:[#allocation11 + $0x1a8] sm:$0xff] }
0x1067   :  { %v2906_v2 = vpack.c.bf16 %v2890_v15, %v2874_v4  ;;  %v2908_v12 = vpack.c.bf16 %v2892_v43, %v2876_v8  ;;  %v2731_v32 = vpop.f32.mrb[52].mxu0  ;;  %v2774_v16 = vpop.f32.mrb[64].mxu1  ;;  %v1951_v62 = vld [vmem:[#allocation11 + $0x1e8] sm:$0xff]  ;;  %v10086_v43 = vcombine.low %v11760_v9, %v11762_v3 }
0x1068   :  { %v2732_v18 = vadd.f32 %v2731_v32, %v2317_v13  ;;  %v2775_v31 = vadd.f32 %v2774_v16, %v2325_v11  ;;  %v2733_v44 = vpop.f32.mrb[53].mxu0  ;;  %v2776_v61 = vpop.f32.mrb[65].mxu1 }
0x1069   :  { %v2734_v24 = vadd.f32 %v2733_v44, %v2321_v40  ;;  %v2777_v34 = vadd.f32 %v2776_v61, %v2329_v33  ;;  %v2735_v51 = vpop.f32.mrb[54].mxu0  ;;  %v2778_v35 = vpop.f32.mrb[66].mxu1  ;;  %3195 = vmatprep.mubr.bf16.mxu0 %v2906_v2  ;;  %3236 = vmatprep.mubr.bf16.mxu1 %v2908_v12 }
0x106a   :  { %v2736_v14 = vadd.f32 %v2735_v51, %v2317_v13  ;;  %v2779_v28 = vadd.f32 %v2778_v35, %v2325_v11  ;;  %v2737_v5 = vpop.f32.mrb[55].mxu0  ;;  %v2780_v55 = vpop.f32.mrb[67].mxu1  ;;  %v2877_v59 = vmax.f32 %v2732_v18, 0.0  ;;  %v2879_v26 = vmax.f32 %v2775_v31, 0.0 }
0x106b   :  { %v2738_v57 = vadd.f32 %v2737_v5, %v2321_v40  ;;  %v2781_v58 = vadd.f32 %v2780_v55, %v2329_v33  ;;  %3166 = vmatpush1.bf16.xpose.msra.mxu0 %v10098_v38  ;;  %3207 = vmatpush1.bf16.xpose.msra.mxu1 %v10100_v27  ;;  %v2878_v11 = vmax.f32 %v2734_v24, 0.0  ;;  %v2880_v22 = vmax.f32 %v2777_v34, 0.0  ;;  %v1950_v33 = vld [vmem:[#allocation11 + $0x1e0] sm:$0xff] }
0x106c   :  { %v2893_v36 = vmax.f32 %v2736_v14, 0.0  ;;  %v2895_v13 = vmax.f32 %v2779_v28, 0.0  ;;  %3245 = vmatprep.subr.bf16.mxu0 %v10087_v47  ;;  %3286 = vmatprep.subr.bf16.mxu1 %v10089_v19  ;;  %v10088_v38 = vcombine.low %v11764_v21, %v11766_v17  ;;  %v10103_v61 = vcombine.high %v1942_v37, %v1950_v33 }
0x106d   :  { %v2894_v60 = vmax.f32 %v2738_v57, 0.0  ;;  %v2896_v63 = vmax.f32 %v2781_v58, 0.0  ;;  %v10105_v47 = vcombine.high %v1943_v6, %v1951_v62  ;;  %v1937_v58 = vld [vmem:[#allocation11 + $0x178] sm:$0xff] }
0x106e   :  { %v11788_v39 = vpack.c.bf16 %v2893_v36, %v2877_v59  ;;  %v11790_v40 = vpack.c.bf16 %v2895_v13, %v2879_v26  ;;  %v10102_v26 = vcombine.low %v1942_v37, %v1950_v33  ;;  %v10104_v36 = vcombine.low %v1943_v6, %v1951_v62  ;;  %v10974_v6 = vld [vmem:[%s12679_s3] sm:$0xff]  }
0x106f   :  { %v2910_v4 = vpack.c.bf16 %v2894_v60, %v2878_v11  ;;  %v2912_v7 = vpack.c.bf16 %v2896_v63, %v2880_v22  ;;  %v2817_v8 = vpop.f32.mrb[56].mxu0  ;;  %v2860_v15 = vpop.f32.mrb[68].mxu1  ;;  %v1944_v22 = vld [vmem:[#allocation11 + $0x1b0] sm:$0xff] }
0x1070   :  { %v2818_v2 = vadd.f32 %v2817_v8, %v2333_v10  ;;  %v2861_v12 = vadd.f32 %v2860_v15, %v2341_v56  ;;  %v2819_v32 = vpop.f32.mrb[57].mxu0  ;;  %v2862_v16 = vpop.f32.mrb[69].mxu1  ;;  %v1952_v60 = vld [vmem:[#allocation11 + $0x1f0] sm:$0xff] }
0x1071   :  { %v2820_v27 = vadd.f32 %v2819_v32, %v2337_v25  ;;  %v2863_v18 = vadd.f32 %v2862_v16, %v2345_v20  ;;  %v2821_v31 = vpop.f32.mrb[58].mxu0  ;;  %v2864_v44 = vpop.f32.mrb[70].mxu1  ;;  %v10107_v15 = vcombine.high %v1944_v22, %v1952_v60  ;;  %v10106_v37 = vcombine.low %v1944_v22, %v1952_v60 }
0x1072   :  { %v2822_v19 = vadd.f32 %v2821_v31, %v2333_v10  ;;  %v2865_v24 = vadd.f32 %v2864_v44, %v2341_v56  ;;  %3196 = vmatmul.mubr.bf16.vlgmr.msra.gmra.mrb[64].mxu0 %v11768_v41  ;;  %3237 = vmatmul.mubr.bf16.vlgmr.msra.gmra.mrb[76].mxu1 %v11770_v23  ;;  %v2823_v9 = vpop.f32.mrb[59].mxu0  ;;  %v2866_v3 = vpop.f32.mrb[71].mxu1  ;;  %v2881_v35 = vmax.f32 %v2818_v2, 0.0  ;;  %v2883_v21 = vmax.f32 %v2861_v12, 0.0  ;;  %v1928_v41 = vld [vmem:[#allocation11 + $0x130] sm:$0xff] }
0x1073   :  { %v2824_v34 = vadd.f32 %v2823_v9, %v2337_v25  ;;  %v2867_v51 = vadd.f32 %v2866_v3, %v2345_v20  ;;  %3246 = vmatpush1.bf16.xpose.msra.mxu0 %v10086_v43  ;;  %3277 = vmatprep.mubr.bf16.mxu0 %v2910_v4  ;;  %v2882_v28 = vmax.f32 %v2820_v27, 0.0  ;;  %v2884_v5 = vmax.f32 %v2863_v18, 0.0  ;;  %v1936_v23 = vld [vmem:[#allocation11 + $0x170] sm:$0xff]  ;;  %v1929_v25 = vld [vmem:[#allocation11 + $0x138] sm:$0xff] }
0x1074   :  { %v2897_v17 = vmax.f32 %v2822_v19, 0.0  ;;  %v2899_v14 = vmax.f32 %v2865_v24, 0.0  ;;  %3287 = vmatpush1.bf16.xpose.msra.mxu1 %v10088_v38  ;;  %3318 = vmatprep.mubr.bf16.mxu1 %v2912_v7  ;;  %v10091_v13 = vcombine.high %v1928_v41, %v1936_v23  ;;  %v10093_v11 = vcombine.high %v1929_v25, %v1937_v58  ;;  %v1945_v4 = vld [vmem:[#allocation11 + $0x1b8] sm:$0xff] }
0x1075   :  { %v2898_v10 = vmax.f32 %v2824_v34, 0.0  ;;  %v2900_v55 = vmax.f32 %v2867_v51, 0.0  ;;  %3247 = vmatprep.subr.bf16.mxu0 %v10103_v61  ;;  %3288 = vmatprep.subr.bf16.mxu1 %v10105_v47  ;;  %v10090_v63 = vcombine.low %v1928_v41, %v1936_v23  ;;  %v1953_v7 = vld [vmem:[#allocation11 + $0x1f8] sm:$0xff]  ;;  %v10092_v8 = vcombine.low %v1929_v25, %v1937_v58 }
0x1076   :  { %v2913_v56 = vpack.c.bf16 %v2897_v17, %v2881_v35  ;;  %v2915_v57 = vpack.c.bf16 %v2899_v14, %v2883_v21  ;;  %v10109_v43 = vcombine.high %v1945_v4, %v1953_v7  ;;  %v10108_v33 = vcombine.low %v1945_v4, %v1953_v7 }
0x1077   :  { %v2914_v20 = vpack.c.bf16 %v2898_v10, %v2882_v28  ;;  %v2916_v59 = vpack.c.bf16 %v2900_v55, %v2884_v5 }
0x107b   :  { %3248 = vmatpush1.bf16.xpose.msra.mxu0 %v10102_v26 }
0x107c   :  { %3289 = vmatpush1.bf16.xpose.msra.mxu1 %v10104_v36  ;;  %3327 = vmatprep.subr.bf16.mxu0 %v10091_v13 }
0x107d   :  { %3368 = vmatprep.subr.bf16.mxu1 %v10093_v11 }
0x1082   :  { %3278 = vmatmul.mubr.bf16.vlgmr.msra.gmra.mrb[68].mxu0 %v11788_v39  ;;  %v10975_v39 = vld [vmem:[%s12679_s3 + $0x8] sm:$0xff]  }
0x1083   :  { %3319 = vmatmul.mubr.bf16.vlgmr.msra.gmra.mrb[80].mxu1 %v11790_v40  ;;  %3328 = vmatpush1.bf16.xpose.msra.mxu0 %v10090_v63  ;;  %v10077_v40 = vld [vmem:[%s12662_s14 + $0x1] ss:$0 sm:$0xff] }
0x1084   :  { %3359 = vmatprep.mubr.bf16.mxu0 %v2914_v20  ;;  %3369 = vmatpush1.bf16.xpose.msra.mxu1 %v10092_v8 }
0x1085   :  { %3400 = vmatprep.mubr.bf16.mxu1 %v2916_v59  ;;  %3329 = vmatprep.subr.bf16.mxu0 %v10107_v15 }
0x1086   :  { %3370 = vmatprep.subr.bf16.mxu1 %v10109_v43 }
0x108b   :  { %3330 = vmatpush1.bf16.xpose.msra.mxu0 %v10106_v37 }
0x108c   :  { %3371 = vmatpush1.bf16.xpose.msra.mxu1 %v10108_v33  ;;  %10661 = vmatprep.subr.bf16.mxu0 %v11160_v1 }
0x108d   :  { %10669 = vmatprep.subr.bf16.mxu1 %v10974_v6 }
0x1092   :  { %3360 = vmatmul.mubr.bf16.vlgmr.msra.gmra.mrb[72].mxu0 %v2913_v56 }
0x1093   :  { %3401 = vmatmul.mubr.bf16.vlgmr.msra.gmra.mrb[84].mxu1 %v2915_v57  ;;  %10665 = vmatprep.mubr.msk.bf16.mxu0 %vm11161_vm0, %v11160_v1 }
0x1094   :  { %10670 = vmatpush3.bf16.msra.mxu1 %v10974_v6 }
0x1095   :  { %10671 = vmatprep.subr.bf16.mxu1 %v10975_v39 }
0x1098   :  { %10672 = vmatpush3.bf16.msra.mxu1 %v10975_v39 }
0x1099   :  { %10683 = vmatprep.subr.bf16.mxu1 %v11160_v1 }
0x1135   :  { %v3115_v62 = vpop.f32.mrb[60].mxu0  ;;  %v3156_v2 = vpop.f32.mrb[72].mxu1 }
0x1136   :  { %v3116_v12 = vadd.f32 %v10077_v40, %v3115_v62  ;;  %v3117_v32 = vpop.f32.mrb[61].mxu0  ;;  %v3158_v16 = vpop.f32.mrb[73].mxu1 }
0x1137   :  { %v3118_v38 = vpop.f32.mrb[62].mxu0  ;;  %v3159_v27 = vpop.f32.mrb[74].mxu1 }
0x1138   :  { %v3157_v18 = vadd.f32 %v3156_v2, %v3116_v12  ;;  %v3119_v31 = vadd.f32 %v10077_v40, %v3118_v38  ;;  %v3120_v44 = vpop.f32.mrb[63].mxu0  ;;  %v3161_v61 = vpop.f32.mrb[75].mxu1 }
0x1139   :  { %v10835_v61 = vld [vmem:[#allocation7 + $0x20] sm:$0xff]  }
0x113a   :  { %v3160_v47 = vadd.f32 %v3159_v27, %v3119_v31  ;;  %10662 = vmatpush3.bf16.msra.mxu0 %v10835_v61 }
0x113b   :  { %10663 = vmatprep.subr.bf16.mxu0 %v11160_v1 }
0x1145   :  { %v3197_v19 = vpop.f32.mrb[64].mxu0  ;;  %v3238_v24 = vpop.f32.mrb[76].mxu1 }
0x1146   :  { %v3198_v9 = vadd.f32 %v3197_v19, %v3157_v18  ;;  %v3199_v3 = vpop.f32.mrb[65].mxu0  ;;  %v3240_v34 = vpop.f32.mrb[77].mxu1 }
0x1147   :  { %v3200_v51 = vpop.f32.mrb[66].mxu0  ;;  %v3241_v35 = vpop.f32.mrb[78].mxu1 }
0x1148   :  { %v3239_v21 = vadd.f32 %v3238_v24, %v3198_v9  ;;  %v3201_v17 = vadd.f32 %v3200_v51, %v3160_v47  ;;  %v3202_v14 = vpop.f32.mrb[67].mxu0  ;;  %v3243_v28 = vpop.f32.mrb[79].mxu1  ;;  %v10976_v47 = vld [vmem:[#allocation2] sm:$0xf] }
0x114a   :  { %v3242_v5 = vadd.f32 %v3241_v35, %v3201_v17 }
0x1155   :  { %v3279_v10 = vpop.f32.mrb[68].mxu0 }
0x1156   :  { %v3280_v55 = vadd.f32 %v3279_v10, %v3239_v21  ;;  %v3320_v41 = vpop.f32.mrb[80].mxu1  ;;  %v3281_v23 = vpop.f32.mrb[69].mxu0  ;;  %v10110_v21 = vld [vmem:[%s12663_s15 + $0x1] ss:$0 sm:$0xff] }
0x1157   :  { %v3322_v56 = vpop.f32.mrb[81].mxu1  ;;  %v3282_v57 = vpop.f32.mrb[70].mxu0  ;;  %v10111_v10 = vld [vmem:[%s12664_s16 + $0x1] ss:$0 sm:$0xff] }
0x1158   :  { %v3321_v25 = vadd.f32 %v3320_v41, %v3280_v55  ;;  %v3283_v58 = vadd.f32 %v3282_v57, %v3242_v5  ;;  %v3323_v20 = vpop.f32.mrb[82].mxu1  ;;  %v3284_v59 = vpop.f32.mrb[71].mxu0  ;;  %v10116_v57 = vld [vmem:[%s12654_s6 + $0x2] ss:$0 sm:$0xff] }
0x1159   :  { %v3325_v26 = vpop.f32.mrb[83].mxu1 }
0x115a   :  { %v3324_v36 = vadd.f32 %v3323_v20, %v3283_v58 }
0x1165   :  { %v3361_v13 = vpop.f32.mrb[72].mxu0 }
0x1166   :  { %v3362_v11 = vadd.f32 %v3361_v13, %v3321_v25  ;;  %v3402_v22 = vpop.f32.mrb[84].mxu1  ;;  %v3363_v60 = vpop.f32.mrb[73].mxu0 }
0x1167   :  { %v3404_v63 = vpop.f32.mrb[85].mxu1  ;;  %v3364_v4 = vpop.f32.mrb[74].mxu0 }
0x1168   :  { %v3403_v7 = vadd.f32 %v3402_v22, %v3362_v11  ;;  %v3365_v8 = vadd.f32 %v3364_v4, %v3324_v36  ;;  %v3405_v15 = vpop.f32.mrb[86].mxu1  ;;  %v3366_v43 = vpop.f32.mrb[75].mxu0 }
0x1169   :  { %v3407_v37 = vpop.f32.mrb[87].mxu1 }
0x116a   :  { %v3406_v33 = vadd.f32 %v3405_v15, %v3365_v8  ;;  %v3409_v6 = vadd.f32 %v3403_v7, %v11666_v29 }
0x116c   :  { %v3411_v39 = vsel %vm372_vm4, %v3409_v6, 0.0  ;;  %v3410_v40 = vadd.f32 %v3406_v33, %v11668_v30  ;;  %v10836_v30 = vld [vmem:[#allocation7 + $0x28] sm:$0xff]  }
0x116d   :  { %3412 = vadd.xlane.f32.xlu1 %v3411_v39  ;;  %10664 = vmatpush3.bf16.msra.mxu0 %v10836_v30 }
0x116e   :  { %v3414_v62 = vsel %vm372_vm4, %v3410_v40, 0.0  ;;  %10797 = vmatprep.subr.msk.bf16.mxu0 %vm529_vm5, %v10976_v47 }
0x116f   :  { %3415 = vadd.xlane.f32.xlu0 %v3414_v62 }
0x11fa   :  { %v3413_v2 = vpop.xlane.xlu1 %3412 }
0x11fb   :  { %v3417_v12 = vmul.f32 0.03125, %v3413_v2 }
0x11fc   :  { %v3416_v32 = vpop.xlane.xlu0 %3415 }
0x11fd   :  { %v3419_v16 = vsub.f32 %v3409_v6, %v3417_v12  ;;  %v3418_v38 = vmul.f32 0.03125, %v3416_v32 }
0x11ff   :  { %v3420_v27 = vsub.f32 %v3410_v40, %v3418_v38  ;;  %v3421_v18 = vmul.f32 %v3419_v16, %v3419_v16 }
0x1201   :  { %v3423_v31 = vsel %vm372_vm4, %v3421_v18, 0.0  ;;  %v3422_v44 = vmul.f32 %v3420_v27, %v3420_v27 }
0x1202   :  { %3424 = vadd.xlane.f32.xlu1 %v3423_v31 }
0x1203   :  { %v3426_v29 = vsel %vm372_vm4, %v3422_v44, 0.0 }
0x1204   :  { %3427 = vadd.xlane.f32.xlu0 %v3426_v29 }
0x128f   :  { %v3425_v19 = vpop.xlane.xlu1 %3424 }
0x1290   :  { %v3429_v24 = vmul.f32 0.03125, %v3425_v19 }
0x1291   :  { %v3428_v9 = vpop.xlane.xlu0 %3427 }
0x1292   :  { %v3431_v3 = vadd.f32 1e-05, %v3429_v24  ;;  %v3430_v34 = vmul.f32 0.03125, %v3428_v9 }
0x1294   :  { %10889 = vrsqrt.f32 %v3431_v3  ;;  %v3432_v51 = vadd.f32 1e-05, %v3430_v34 }
0x1296   :  { %10891 = vrsqrt.f32 %v3432_v51 }
0x129e   :  { %v10890_v35 = vpop.eup %10889 }
0x129f   :  { %v3435_v17 = vmul.f32 %v10890_v35, %v3419_v16 }
0x12a0   :  { %v10892_v14 = vpop.eup %10891 }
0x12a1   :  { %v3441_v28 = vmul.f32 %v10110_v21, %v3435_v17  ;;  %v3436_v5 = vmul.f32 %v10892_v14, %v3420_v27  ;;  %v10838_v17 = vld [vmem:[#allocation8 + $0x28] sm:$0xff]  }
0x12a3   :  { %v3442_v55 = vmul.f32 %v10110_v21, %v3436_v5  ;;  %v11827_v41 = vadd.f32 %v10111_v10, %v3441_v28  ;;  %v10837_v21 = vld [vmem:[#allocation8 + $0x20] sm:$0xff]  }
0x12a5   :  { %v11829_v23 = vadd.f32 %v10111_v10, %v3442_v55 }
0x12a7   :  { %v3540_v56 = vpack.c.bf16 %v11829_v23, %v11827_v41 }
0x12a9   :  { %10666 = vmatmul.mubr.msk.bf16.vlgmr.msra.gmra.mrb[76].mxu0 %vm372_vm4, %v3540_v56 }
0x12aa   :  { %10678 = vmatpush3.bf16.msra.mxu0 %v11424_v42 }
0x137c   :  { %v3594_v25 = vpop.f32.mrb[76].mxu0 }
0x137d   :  { %v3595_v58 = vadd.f32 %v10116_v57, %v3594_v25  ;;  %v10667_v20 = vpop.f32.mrb[77].mxu0 }
0x137e   :  { %v3597_v59 = vpop.f32.mrb[78].mxu0 }
0x137f   :  { %v3598_v26 = vadd.f32 %v10116_v57, %v3597_v59  ;;  %3603 = vrot.lane.b32.xlu1 %v3595_v58, %s11163_s21  ;;  %v10668_v36 = vpop.f32.mrb[79].mxu0 }
0x1381   :  { %3605 = vrot.lane.b32.xlu0 %v3598_v26, %s11163_s21 }
0x1383   :  { %3749 = vrot.lane.b32.xlu1 %v3595_v58, %s11153_s30 }
0x1387   :  { %3751 = vrot.lane.b32.xlu1 %v3598_v26, %s11153_s30 }
0x13f1   :  { %v3604_v13 = vpop.permute.xlu1 %3603 }
0x13f2   :  { %v3609_v22 = vmul.f32 %v3604_v13, %v3595_v58  ;;  %v3611_v60 = vmul.f32 %v3604_v13, %v3598_v26  ;;  %v10124_v13 = vld [vmem:[%s12656_s8 + $0x2] ss:$0 sm:$0xff] }
0x13f3   :  { %v3606_v11 = vpop.permute.xlu0 %3605 }
0x13f4   :  { %v3610_v63 = vmul.f32 %v3606_v11, %v3595_v58  ;;  %v3612_v4 = vmul.f32 %v3606_v11, %v3598_v26 }
0x13f5   :  { %v3750_v14 = vpop.permute.xlu1 %3749 }
0x13f6   :  { %v3613_v7 = vpack.c.bf16 %v3610_v63, %v3609_v22  ;;  %v3614_v8 = vpack.c.bf16 %v3612_v4, %v3611_v60 }
0x13f8   :  { %10673 = vmatprep.mubr.msk.bf16.mxu1 %vm372_vm4, %v3613_v7 }
0x13f9   :  { %10674 = vmatmul.mubr.msk.bf16.vlgmr.msra.gmra.mrb[88].mxu1 %vm372_vm4, %v3614_v8  ;;  %v3752_v10 = vpop.permute.xlu1 %3751 }
0x13fa   :  { %10687 = vmatprep.mubr.msk.bf16.mxu1 %vm11161_vm0, %v11160_v1  ;;  %10684 = vmatpush3.bf16.msra.mxu1 %v10837_v21  ;;  %v3474_v21 = vld [vmem:[#allocation10 + $0x250] sm:$0xff] }
0x13fb   :  { %10685 = vmatprep.subr.bf16.mxu1 %v11160_v1 }
0x13fe   :  { %10686 = vmatpush3.bf16.msra.mxu1 %v10838_v17  ;;  %v3467_v17 = vld [vmem:[#allocation10 + $0x218] sm:$0xff] }
0x14cc   :  { %v10675_v15 = vpop.f32.mrb[88].mxu1 }
0x14cd   :  { %v3655_v43 = vpop.f32.mrb[89].mxu1 }
0x14ce   :  { %v10676_v37 = vpop.f32.mrb[90].mxu1 }
0x14cf   :  { %v3681_v33 = vmax.f32 %v10675_v15, %v10676_v37  ;;  %v3658_v6 = vpop.f32.mrb[91].mxu1 }
0x14d0   :  { %v3670_v39 = vmax.f32 %v3655_v43, %v3658_v6 }
0x14d1   :  { %v3682_v40 = vsub.f32 %v10675_v15, %v3681_v33  ;;  %v3685_v62 = vsub.f32 %v10676_v37, %v3681_v33 }
0x14d2   :  { %v3671_v2 = vsub.f32 %v3655_v43, %v3670_v39  ;;  %v3674_v12 = vsub.f32 %v3658_v6, %v3670_v39 }
0x14d3   :  { %v3683_v32 = vmul.f32 1.442695, %v3682_v40  ;;  %v3686_v16 = vmul.f32 1.442695, %v3685_v62 }
0x14d4   :  { %v3672_v38 = vmul.f32 1.442695, %v3671_v2  ;;  %v3675_v27 = vmul.f32 1.442695, %v3674_v12 }
0x14d5   :  { %10893 = vpow2.f32 %v3683_v32 }
0x14d6   :  { %10895 = vpow2.f32 %v3686_v16 }
0x14d7   :  { %10897 = vpow2.f32 %v3672_v38  ;;  %v3464_v38 = vld [vmem:[#allocation10 + $0x200] sm:$0xff] }
0x14d8   :  { %10899 = vpow2.f32 %v3675_v27  ;;  %v3465_v27 = vld [vmem:[#allocation10 + $0x208] sm:$0xff] }
0x14df   :  { %v10894_v18 = vpop.eup %10893 }
0x14e0   :  { %v10896_v31 = vpop.eup %10895 }
0x14e1   :  { %v10898_v44 = vpop.eup %10897  ;;  %v3688_v29 = vadd.f32 %v10896_v31, %v10894_v18 }
0x14e2   :  { %v10900_v61 = vpop.eup %10899 }
0x14e3   :  { %10901 = vrcp.f32 %v3688_v29  ;;  %v3677_v30 = vadd.f32 %v10900_v61, %v10898_v44 }
0x14e5   :  { %10903 = vrcp.f32 %v3677_v30  ;;  %v3480_v30 = vld [vmem:[#allocation10 + $0x280] sm:$0xff] }
0x14ed   :  { %v10902_v47 = vpop.eup %10901 }
0x14ee   :  { %v3691_v19 = vmul.f32 %v10902_v47, %v10896_v31  ;;  %v3690_v24 = vmul.f32 %v10902_v47, %v10894_v18  ;;  %v3473_v31 = vld [vmem:[#allocation10 + $0x248] sm:$0xff]  ;;  %v3488_v47 = vld [vmem:[#allocation10 + $0x2c0] sm:$0xff] }
0x14ef   :  { %v10904_v9 = vpop.eup %10903  ;;  %v10132_v29 = vcombine.low %v3465_v27, %v3473_v31 }
0x14f0   :  { %v3679_v3 = vmul.f32 %v10904_v9, %v10898_v44  ;;  %v3680_v34 = vmul.f32 %v10904_v9, %v10900_v61  ;;  %v3693_v51 = vpack.c.bf16 %v3691_v19, %v3690_v24  ;;  %v10133_v61 = vcombine.high %v3465_v27, %v3473_v31  ;;  %v3481_v19 = vld [vmem:[#allocation10 + $0x288] sm:$0xff]  ;;  %v3484_v27 = vld [vmem:[#allocation10 + $0x2a0] sm:$0xff] }
0x14f1   :  { %v10147_v24 = vcombine.high %v3480_v30, %v3488_v47  ;;  %v3489_v9 = vld [vmem:[#allocation10 + $0x2c8] sm:$0xff] }
0x14f2   :  { %v3692_v35 = vpack.c.bf16 %v3680_v34, %v3679_v3  ;;  %4151 = vmatprep.subr.bf16.mxu1 %v10133_v61  ;;  %v10146_v3 = vcombine.low %v3480_v30, %v3488_v47  ;;  %v10148_v34 = vcombine.low %v3481_v19, %v3489_v9  ;;  %v3485_v31 = vld [vmem:[#allocation10 + $0x2a8] sm:$0xff] }
0x14f4   :  { %10679 = vmatprep.mubr.msk.bf16.mxu0 %vm522_vm6, %v3692_v35  ;;  %v3466_v35 = vld [vmem:[#allocation10 + $0x210] sm:$0xff] }
0x14f5   :  { %10680 = vmatmul.mubr.msk.bf16.vlgmr.msra.gmra.mrb[80].mxu0 %vm522_vm6, %v3693_v51  ;;  %v10149_v51 = vcombine.high %v3481_v19, %v3489_v9  ;;  %v3470_v19 = vld [vmem:[#allocation10 + $0x230] sm:$0xff]  ;;  %v3471_v9 = vld [vmem:[#allocation10 + $0x238] sm:$0xff] }
0x14f6   :  { %4140 = vmatprep.mubr.bf16.mxu0 %v11159_v0 }
0x15c8   :  { %v10681_v28 = vpop.f32.mrb[80].mxu0 }
0x15c9   :  { %v3734_v5 = vpop.f32.mrb[81].mxu0  ;;  %v3757_v56 = vmul.f32 %v10681_v28, %v3750_v14  ;;  %v3475_v28 = vld [vmem:[#allocation10 + $0x258] sm:$0xff] }
0x15ca   :  { %v10682_v55 = vpop.f32.mrb[82].mxu0  ;;  %v3755_v58 = vmul.f32 %v3750_v14, %v3734_v5  ;;  %v10135_v14 = vcombine.high %v3466_v35, %v3474_v21  ;;  %v10134_v5 = vcombine.low %v3466_v35, %v3474_v21 }
0x15cb   :  { %v3758_v57 = vmul.f32 %v10682_v55, %v3752_v10  ;;  %v3737_v25 = vpop.f32.mrb[83].mxu0  ;;  %v10137_v55 = vcombine.high %v3467_v17, %v3475_v28 }
0x15cc   :  { %v3756_v20 = vmul.f32 %v3752_v10, %v3737_v25  ;;  %v10136_v10 = vcombine.low %v3467_v17, %v3475_v28  ;;  %v3486_v17 = vld [vmem:[#allocation10 + $0x2b0] sm:$0xff]  ;;  %v3487_v28 = vld [vmem:[#allocation10 + $0x2b8] sm:$0xff] }
0x15cd   :  { %v3760_v59 = vadd.f32 %v3758_v57, %v3757_v56 }
0x15ce   :  { %v3759_v26 = vadd.f32 %v3756_v20, %v3755_v58 }
0x15d0   :  { %v3761_v36 = vpack.c.bf16 %v3760_v59, %v3759_v26 }
0x15d2   :  { %10688 = vmatmul.mubr.msk.bf16.vlgmr.msra.gmra.mrb[92].mxu1 %vm372_vm4, %v3761_v36 }
0x15d3   :  { %4183 = vmatprep.mubr.bf16.mxu1 %v11159_v0  ;;  %4152 = vmatpush1.bf16.msra.mxu1 %v10132_v29 }
0x15d4   :  { %4153 = vmatprep.subr.bf16.mxu1 %v10149_v51 }
0x15d7   :  { %4154 = vmatpush1.bf16.msra.mxu1 %v10148_v34 }
0x15d8   :  { %4237 = vmatprep.subr.bf16.mxu1 %v10137_v55 }
0x16a5   :  { %v3815_v11 = vpop.f32.mrb[92].mxu1 }
0x16a6   :  { %v3816_v22 = vadd.f32 %v10124_v13, %v3815_v11  ;;  %v10689_v60 = vpop.f32.mrb[93].mxu1 }
0x16a7   :  { %v3818_v63 = vpop.f32.mrb[94].mxu1 }
0x16a8   :  { %v3819_v4 = vadd.f32 %v10124_v13, %v3818_v63  ;;  %v10690_v7 = vpop.f32.mrb[95].mxu1  ;;  %v3822_v8 = vadd.f32 %v3816_v22, %v11827_v41  ;;  %v10128_v13 = vld [vmem:[%s12657_s9 + $0x2] ss:$0 sm:$0xff] }
0x16a9   :  { %v10129_v63 = vld [vmem:[%s12658_s10 + $0x2] ss:$0 sm:$0xff]  ;;  %v3482_v7 = vld [vmem:[#allocation10 + $0x290] sm:$0xff] }
0x16aa   :  { %v3824_v15 = vsel %vm372_vm4, %v3822_v8, 0.0  ;;  %v3823_v43 = vadd.f32 %v3819_v4, %v11829_v23  ;;  %v3472_v23 = vld [vmem:[#allocation10 + $0x240] sm:$0xff] }
0x16ab   :  { %3825 = vadd.xlane.f32.xlu0 %v3824_v15  ;;  %v10131_v18 = vcombine.high %v3464_v38, %v3472_v23  ;;  %v10130_v44 = vcombine.low %v3464_v38, %v3472_v23  ;;  %v3483_v15 = vld [vmem:[#allocation10 + $0x298] sm:$0xff] }
0x16ac   :  { %v3827_v37 = vsel %vm372_vm4, %v3823_v43, 0.0 }
0x16ad   :  { %3828 = vadd.xlane.f32.xlu1 %v3827_v37  ;;  %4108 = vmatprep.subr.bf16.mxu0 %v10131_v18  ;;  %v3492_v18 = vld [vmem:[#allocation10 + $0x2e0] sm:$0xff] }
0x16ae   :  { %4109 = vmatpush1.bf16.msra.mxu0 %v10130_v44  ;;  %v3493_v44 = vld [vmem:[#allocation10 + $0x2e8] sm:$0xff]  ;;  %v10155_v30 = vcombine.high %v3484_v27, %v3492_v18  ;;  %v10154_v34 = vcombine.low %v3484_v27, %v3492_v18 }
0x16af   :  { %4110 = vmatprep.subr.bf16.mxu0 %v10147_v24  ;;  %v10157_v47 = vcombine.high %v3485_v31, %v3493_v44  ;;  %v3478_v24 = vld [vmem:[#allocation10 + $0x270] sm:$0xff]  ;;  %v10156_v51 = vcombine.low %v3485_v31, %v3493_v44 }
0x16b0   :  { %v10143_v35 = vcombine.high %v3470_v19, %v3478_v24  ;;  %v10113_v27 = vld [vmem:[%s12660_s12 + $0x2] ss:$8 sm:$0xf0] }
0x16b2   :  { %4111 = vmatpush1.bf16.msra.mxu0 %v10146_v3  ;;  %v3479_v3 = vld [vmem:[#allocation10 + $0x278] sm:$0xff] }
0x16b3   :  { %4194 = vmatprep.subr.bf16.mxu0 %v10135_v14  ;;  %v10145_v21 = vcombine.high %v3471_v9, %v3479_v3  ;;  %v3494_v14 = vld [vmem:[#allocation10 + $0x2f0] sm:$0xff]  ;;  %v10144_v55 = vcombine.low %v3471_v9, %v3479_v3 }
0x1738   :  { %v3826_v33 = vpop.xlane.xlu0 %3825 }
0x1739   :  { %v3830_v6 = vmul.f32 0.03125, %v3826_v33 }
0x173a   :  { %v3829_v39 = vpop.xlane.xlu1 %3828 }
0x173b   :  { %v3832_v40 = vsub.f32 %v3822_v8, %v3830_v6  ;;  %v3831_v62 = vmul.f32 0.03125, %v3829_v39  ;;  %v3490_v8 = vld [vmem:[#allocation10 + $0x2d0] sm:$0xff] }
0x173c   :  { %v10151_v39 = vcombine.high %v3482_v7, %v3490_v8 }
0x173d   :  { %v3833_v2 = vsub.f32 %v3823_v43, %v3831_v62  ;;  %v3834_v12 = vmul.f32 %v3832_v40, %v3832_v40  ;;  %v3491_v43 = vld [vmem:[#allocation10 + $0x2d8] sm:$0xff]  ;;  %v3468_v62 = vld [vmem:[#allocation10 + $0x220] sm:$0xff] }
0x173f   :  { %v3836_v32 = vsel %vm372_vm4, %v3834_v12, 0.0  ;;  %v3835_v16 = vmul.f32 %v3833_v2, %v3833_v2  ;;  %v3469_v12 = vld [vmem:[#allocation10 + $0x228] sm:$0xff] }
0x1740   :  { %3837 = vadd.xlane.f32.xlu0 %v3836_v32  ;;  %v3477_v32 = vld [vmem:[#allocation10 + $0x268] sm:$0xff] }
0x1741   :  { %v3839_v41 = vsel %vm372_vm4, %v3835_v16, 0.0  ;;  %v10150_v16 = vcombine.low %v3482_v7, %v3490_v8  ;;  %v10141_v23 = vcombine.high %v3469_v12, %v3477_v32  ;;  %v10140_v61 = vcombine.low %v3469_v12, %v3477_v32  ;;  %v3522_v7 = vld [vmem:[#allocation11 + $0x288] sm:$0xff]  ;;  %v11905_v32 = vld [vmem:[#allocation11 + $0x258] sm:$0xff] }
0x1744   :  { %3840 = vadd.xlane.f32.xlu0 %v3839_v41  ;;  %v10152_v41 = vcombine.low %v3483_v15, %v3491_v43 }
0x17cd   :  { %v3838_v56 = vpop.xlane.xlu0 %3837 }
0x17ce   :  { %v3842_v57 = vmul.f32 0.03125, %v3838_v56  ;;  %v10159_v56 = vcombine.high %v3486_v17, %v3494_v14 }
0x17d0   :  { %v3844_v25 = vadd.f32 1e-05, %v3842_v57 }
0x17d1   :  { %v3841_v58 = vpop.xlane.xlu0 %3840 }
0x17d2   :  { %10905 = vrsqrt.f32 %v3844_v25  ;;  %v3843_v20 = vmul.f32 0.03125, %v3841_v58  ;;  %v3505_v25 = vld [vmem:[#allocation11 + $0x200] sm:$0xff] }
0x17d3   :  { %v3513_v58 = vld [vmem:[#allocation11 + $0x240] sm:$0xff] }
0x17d4   :  { %v3845_v59 = vadd.f32 1e-05, %v3843_v20  ;;  %v3506_v20 = vld [vmem:[#allocation11 + $0x208] sm:$0xff] }
0x17d6   :  { %10907 = vrsqrt.f32 %v3845_v59  ;;  %v3514_v59 = vld [vmem:[#allocation11 + $0x248] sm:$0xff] }
0x17dc   :  { %v10906_v26 = vpop.eup %10905 }
0x17dd   :  { %v3848_v36 = vmul.f32 %v10906_v26, %v3832_v40  ;;  %v10153_v40 = vcombine.high %v3483_v15, %v3491_v43  ;;  %v10158_v26 = vcombine.low %v3486_v17, %v3494_v14  ;;  %v3530_v15 = vld [vmem:[#allocation11 + $0x2c8] sm:$0xff] }
0x17df   :  { %v3854_v22 = vmul.f32 %v10128_v13, %v3848_v36 }
0x17e0   :  { %v10908_v11 = vpop.eup %10907 }
0x17e1   :  { %v3849_v60 = vmul.f32 %v10908_v11, %v3833_v2  ;;  %v11867_v37 = vadd.f32 %v10129_v63, %v3854_v22  ;;  %v3476_v2 = vld [vmem:[#allocation10 + $0x260] sm:$0xff]  ;;  %v10174_v11 = vcombine.high %v3506_v20, %v3514_v59  ;;  %v10171_v22 = vcombine.low %v3505_v25, %v3513_v58 }
0x17e2   :  { %v10139_v38 = vcombine.high %v3468_v62, %v3476_v2  ;;  %v10138_v29 = vcombine.low %v3468_v62, %v3476_v2  ;;  %v11897_v62 = vld [vmem:[#allocation11 + $0x210] sm:$0xff] }
0x17e3   :  { %v3855_v4 = vmul.f32 %v10128_v13, %v3849_v60  ;;  %v10172_v13 = vcombine.high %v3505_v25, %v3513_v58  ;;  %v10173_v60 = vcombine.low %v3506_v20, %v3514_v59  ;;  %v11899_v2 = vld [vmem:[#allocation11 + $0x250] sm:$0xff] }
0x17e4   :  { %v10176_v12 = vcombine.high %v11897_v62, %v11899_v2 }
0x17e5   :  { %v11869_v33 = vadd.f32 %v10129_v63, %v3855_v4  ;;  %v3521_v63 = vld [vmem:[#allocation11 + $0x280] sm:$0xff] }
0x17e6   :  { %v3529_v4 = vld [vmem:[#allocation11 + $0x2c0] sm:$0xff] }
0x17e7   :  { %v11873_v6 = vpack.c.bf16 %v11869_v33, %v11867_v37  ;;  %v10188_v8 = vcombine.high %v3521_v63, %v3529_v4  ;;  %v10187_v43 = vcombine.low %v3521_v63, %v3529_v4  ;;  %v11937_v63 = vld [vmem:[#allocation11 + $0x2d0] sm:$0xff] }
0x17e9   :  { %10162 = vmatmul.mubr.msk.bf16.vlgmr.msra.gmra.mrb[84].mxu0 %vm372_vm4, %v11873_v6  ;;  %10163 = vmatmul.mubr.msk.bf16.vlgmr.msra.gmra.mrb[96].mxu1 %vm372_vm4, %v11873_v6 }
0x17ea   :  { %4195 = vmatpush1.bf16.msra.mxu0 %v10134_v5  ;;  %4238 = vmatpush1.bf16.msra.mxu1 %v10136_v10  ;;  %v3495_v5 = vld [vmem:[#allocation10 + $0x2f8] sm:$0xff]  ;;  %v10142_v10 = vcombine.low %v3470_v19, %v3478_v24 }
0x17eb   :  { %4196 = vmatprep.subr.bf16.mxu0 %v10151_v39  ;;  %4239 = vmatprep.subr.bf16.mxu1 %v10153_v40  ;;  %v10161_v57 = vcombine.high %v3487_v28, %v3495_v5  ;;  %v10160_v36 = vcombine.low %v3487_v28, %v3495_v5  ;;  %v10189_v39 = vcombine.low %v3522_v7, %v3530_v15  ;;  %v10114_v19 = vld [vmem:[%s12660_s12 + $0x42] ss:$8 sm:$0xf] }
0x17ec   :  { %4226 = vmatprep.mubr.bf16.mxu0 %v11159_v0  ;;  %4269 = vmatprep.mubr.bf16.mxu1 %v11159_v0  ;;  %v10190_v40 = vcombine.high %v3522_v7, %v3530_v15 }
0x17ee   :  { %4197 = vmatpush1.bf16.msra.mxu0 %v10150_v16  ;;  %4240 = vmatpush1.bf16.msra.mxu1 %v10152_v41  ;;  %v10175_v16 = vcombine.low %v11897_v62, %v11899_v2 }
0x17ef   :  { %4280 = vmatprep.subr.bf16.mxu0 %v10139_v38  ;;  %4323 = vmatprep.subr.bf16.mxu1 %v10141_v23  ;;  %v10112_v23 = vld [vmem:[%s12660_s12 + $0x2] ss:$8 sm:$0xf] }
0x17f0   :  { %v3499_v18 = vor.u32 %v10113_v27, %v10112_v23 }
0x17f1   :  { %10164 = vmatmul.mubr.msk.bf16.vlgmr.msra.gmra.mrb[88].mxu0 %vm372_vm4, %v11873_v6  ;;  %10165 = vmatmul.mubr.msk.bf16.vlgmr.msra.gmra.mrb[100].mxu1 %vm372_vm4, %v11873_v6 }
0x17f2   :  { %4281 = vmatpush1.bf16.msra.mxu0 %v10138_v29  ;;  %4324 = vmatpush1.bf16.msra.mxu1 %v10140_v61  ;;  %v3868_v31 = vrot.slane %v3499_v18, %v11503_v45  ;;  %v3876_v44 = vrot.slane %v3499_v18, %v11505_v46  ;;  %v3872_v29 = vrot.slane %v3499_v18, %v11507_v48 }
0x17f3   :  { %4282 = vmatprep.subr.bf16.mxu0 %v10155_v30  ;;  %4325 = vmatprep.subr.bf16.mxu1 %v10157_v47  ;;  %v3880_v61 = vrot.slane %v3499_v18, %v11509_v49  ;;  %v3884_v28 = vrot.slane %v3499_v18, %v11513_v50  ;;  %v3888_v25 = vrot.slane %v3499_v18, %v11517_v52 }
0x17f4   :  { %4312 = vmatprep.mubr.bf16.mxu0 %v11159_v0  ;;  %4355 = vmatprep.mubr.bf16.mxu1 %v11159_v0  ;;  %v3896_v59 = vrot.slane %v3499_v18, %v11521_v54 }
0x17f6   :  { %4283 = vmatpush1.bf16.msra.mxu0 %v10154_v34  ;;  %4326 = vmatpush1.bf16.msra.mxu1 %v10156_v51  ;;  %v10115_v51 = vld [vmem:[%s12660_s12 + $0x42] ss:$8 sm:$0xf0] }
0x17f7   :  { %4366 = vmatprep.subr.bf16.mxu0 %v10143_v35  ;;  %4409 = vmatprep.subr.bf16.mxu1 %v10145_v21 }
0x17f9   :  { %10166 = vmatmul.mubr.msk.bf16.vlgmr.msra.gmra.mrb[92].mxu0 %vm372_vm4, %v11873_v6  ;;  %10167 = vmatmul.mubr.msk.bf16.vlgmr.msra.gmra.mrb[104].mxu1 %vm372_vm4, %v11873_v6 }
0x17fa   :  { %4367 = vmatpush1.bf16.msra.mxu0 %v10142_v10  ;;  %4410 = vmatpush1.bf16.msra.mxu1 %v10144_v55 }
0x17fb   :  { %4368 = vmatprep.subr.bf16.mxu0 %v10159_v56  ;;  %4411 = vmatprep.subr.bf16.mxu1 %v10161_v57  ;;  %v3892_v57 = vrot.slane %v3499_v18, %v11519_v53 }
0x17fc   :  { %4398 = vmatprep.mubr.bf16.mxu0 %v11159_v0  ;;  %4441 = vmatprep.mubr.bf16.mxu1 %v11159_v0 }
0x17fe   :  { %4369 = vmatpush1.bf16.msra.mxu0 %v10158_v26  ;;  %4412 = vmatpush1.bf16.msra.mxu1 %v10160_v36  ;;  %v11933_v26 = vor.u32 %v10115_v51, %v10114_v19 }
0x17ff   :  { %4664 = vmatprep.subr.bf16.mxu0 %v10172_v13  ;;  %4705 = vmatprep.subr.bf16.mxu1 %v10174_v11 }
0x1800   :  { %v3908_v51 = vrot.slane %v11933_v26, %v11505_v46 }
0x1801   :  { %10168 = vmatmul.mubr.msk.bf16.vlgmr.msra.gmra.mrb[96].mxu0 %vm372_vm4, %v11873_v6  ;;  %10169 = vmatmul.mubr.msk.bf16.vlgmr.msra.gmra.mrb[108].mxu1 %vm372_vm4, %v11873_v6  ;;  %v11901_v6 = vld [vmem:[#allocation11 + $0x218] sm:$0xff] }
0x1802   :  { %v10177_v41 = vcombine.low %v11901_v6, %v11905_v32  ;;  %v10178_v38 = vcombine.high %v11901_v6, %v11905_v32  ;;  %v11967_v6 = vld [vmem:[#allocation11 + $0x268] sm:$0xff] }
0x1807   :  { %4665 = vmatpush1.bf16.xpose.msra.mxu0 %v10171_v22  ;;  %4706 = vmatpush1.bf16.xpose.msra.mxu1 %v10173_v60  ;;  %v11935_v60 = vld [vmem:[#allocation11 + $0x290] sm:$0xff] }
0x1808   :  { %4666 = vmatprep.subr.bf16.mxu0 %v10188_v8  ;;  %4707 = vmatprep.subr.bf16.mxu1 %v10190_v40 }
0x180f   :  { %4667 = vmatpush1.bf16.xpose.msra.mxu0 %v10187_v43  ;;  %4708 = vmatpush1.bf16.xpose.msra.mxu1 %v10189_v39  ;;  %v11939_v43 = vld [vmem:[#allocation11 + $0x298] sm:$0xff] }
0x1810   :  { %4746 = vmatprep.subr.bf16.mxu0 %v10176_v12  ;;  %4787 = vmatprep.subr.bf16.mxu1 %v10178_v38  ;;  %v11941_v39 = vld [vmem:[#allocation11 + $0x2d8] sm:$0xff] }
0x1811   :  { %v10194_v19 = vcombine.high %v11939_v43, %v11941_v39 }
0x18bc   :  { %v4142_v30 = vpop.f32.mrb[84].mxu0  ;;  %v4185_v47 = vpop.f32.mrb[96].mxu1 }
0x18bd   :  { %v4143_v24 = vadd.f32 %v4142_v30, %v3868_v31  ;;  %v4186_v9 = vadd.f32 %v4185_v47, %v3876_v44  ;;  %v4144_v3 = vpop.f32.mrb[85].mxu0  ;;  %v4187_v34 = vpop.f32.mrb[97].mxu1  ;;  %v10192_v47 = vcombine.high %v11935_v60, %v11937_v63 }
0x18be   :  { %v4145_v35 = vadd.f32 %v4144_v3, %v3872_v29  ;;  %v4188_v21 = vadd.f32 %v4187_v34, %v3880_v61  ;;  %v4146_v17 = vpop.f32.mrb[86].mxu0  ;;  %v4189_v14 = vpop.f32.mrb[98].mxu1 }
0x18bf   :  { %v4147_v5 = vadd.f32 %v4146_v17, %v3868_v31  ;;  %v4190_v10 = vadd.f32 %v4189_v14, %v3876_v44  ;;  %v4148_v55 = vpop.f32.mrb[87].mxu0  ;;  %v4191_v56 = vpop.f32.mrb[99].mxu1  ;;  %v4452_v36 = vmax.f32 %v4143_v24, 0.0  ;;  %v4454_v13 = vmax.f32 %v4186_v9, 0.0 }
0x18c0   :  { %v4149_v58 = vadd.f32 %v4148_v55, %v3872_v29  ;;  %v4192_v20 = vadd.f32 %v4191_v56, %v3880_v61  ;;  %v4453_v4 = vmax.f32 %v4145_v35, 0.0  ;;  %v4455_v7 = vmax.f32 %v4188_v21, 0.0 }
0x18c1   :  { %v4468_v11 = vmax.f32 %v4147_v5, 0.0  ;;  %v4470_v22 = vmax.f32 %v4190_v10, 0.0  ;;  %v3900_v31 = vrot.slane %v11933_v26, %v11503_v45  ;;  %v3904_v5 = vrot.slane %v11933_v26, %v11507_v48 }
0x18c2   :  { %v4469_v8 = vmax.f32 %v4149_v58, 0.0  ;;  %v4471_v15 = vmax.f32 %v4192_v20, 0.0 }
0x18c3   :  { %v4484_v40 = vpack.c.bf16 %v4468_v11, %v4452_v36  ;;  %v4486_v12 = vpack.c.bf16 %v4470_v22, %v4454_v13  ;;  %v11961_v36 = vld [vmem:[#allocation11 + $0x220] sm:$0xff]  ;;  %v11965_v13 = vld [vmem:[#allocation11 + $0x228] sm:$0xff] }
0x18c4   :  { %v4485_v38 = vpack.c.bf16 %v4469_v8, %v4453_v4  ;;  %v4487_v23 = vpack.c.bf16 %v4471_v15, %v4455_v7  ;;  %v4228_v27 = vpop.f32.mrb[88].mxu0  ;;  %v4271_v18 = vpop.f32.mrb[100].mxu1  ;;  %v10191_v8 = vcombine.low %v11935_v60, %v11937_v63  ;;  %v10193_v15 = vcombine.low %v11939_v43, %v11941_v39 }
0x18c5   :  { %v4229_v44 = vadd.f32 %v4228_v27, %v3884_v28  ;;  %v4272_v29 = vadd.f32 %v4271_v18, %v3892_v57  ;;  %v4230_v61 = vpop.f32.mrb[89].mxu0  ;;  %v4273_v30 = vpop.f32.mrb[101].mxu1  ;;  %v10182_v18 = vcombine.high %v11965_v13, %v11967_v6  ;;  %v3916_v60 = vrot.slane %v11933_v26, %v11513_v50 }
0x18c6   :  { %v4231_v24 = vadd.f32 %v4230_v61, %v3888_v25  ;;  %v4274_v9 = vadd.f32 %v4273_v30, %v3896_v59  ;;  %v4232_v3 = vpop.f32.mrb[90].mxu0  ;;  %v4275_v34 = vpop.f32.mrb[102].mxu1  ;;  %4696 = vmatprep.mubr.bf16.mxu0 %v4485_v38  ;;  %4737 = vmatprep.mubr.bf16.mxu1 %v4487_v23 }
0x18c7   :  { %v4233_v35 = vadd.f32 %v4232_v3, %v3884_v28  ;;  %v4276_v21 = vadd.f32 %v4275_v34, %v3892_v57  ;;  %v4234_v17 = vpop.f32.mrb[91].mxu0  ;;  %v4277_v14 = vpop.f32.mrb[103].mxu1  ;;  %4697 = vmatmul.mubr.bf16.vlgmr.msra.gmra.mrb[100].mxu0 %v4484_v40  ;;  %4738 = vmatmul.mubr.bf16.vlgmr.msra.gmra.mrb[112].mxu1 %v4486_v12  ;;  %v3912_v28 = vrot.slane %v11933_v26, %v11509_v49  ;;  %v4456_v56 = vmax.f32 %v4229_v44, 0.0 }
0x18c8   :  { %v4235_v10 = vadd.f32 %v4234_v17, %v3888_v25  ;;  %v4278_v55 = vadd.f32 %v4277_v14, %v3896_v59  ;;  %4747 = vmatpush1.bf16.xpose.msra.mxu0 %v10175_v16  ;;  %4788 = vmatpush1.bf16.xpose.msra.mxu1 %v10177_v41  ;;  %v4458_v57 = vmax.f32 %v4272_v29, 0.0  ;;  %v11963_v25 = vld [vmem:[#allocation11 + $0x260] sm:$0xff]  ;;  %v4457_v59 = vmax.f32 %v4231_v24, 0.0 }
0x18c9   :  { %v4472_v58 = vmax.f32 %v4233_v35, 0.0  ;;  %v4474_v20 = vmax.f32 %v4276_v21, 0.0  ;;  %4748 = vmatprep.subr.bf16.mxu0 %v10192_v47  ;;  %4789 = vmatprep.subr.bf16.mxu1 %v10194_v19  ;;  %v4459_v62 = vmax.f32 %v4274_v9, 0.0  ;;  %v10180_v27 = vcombine.high %v11961_v36, %v11963_v25 }
0x18ca   :  { %v4473_v2 = vmax.f32 %v4235_v10, 0.0  ;;  %v4475_v16 = vmax.f32 %v4278_v55, 0.0  ;;  %v3924_v19 = vrot.slane %v11933_v26, %v11519_v53  ;;  %v3920_v24 = vrot.slane %v11933_v26, %v11517_v52 }
0x18cb   :  { %v11969_v32 = vpack.c.bf16 %v4472_v58, %v4456_v56  ;;  %v11971_v41 = vpack.c.bf16 %v4474_v20, %v4458_v57  ;;  %v3928_v34 = vrot.slane %v11933_v26, %v11521_v54  ;;  %v3525_v56 = vld [vmem:[#allocation11 + $0x2a0] sm:$0xff]  ;;  %v3526_v58 = vld [vmem:[#allocation11 + $0x2a8] sm:$0xff] }
0x18cc   :  { %v4489_v11 = vpack.c.bf16 %v4473_v2, %v4457_v59  ;;  %v4491_v22 = vpack.c.bf16 %v4475_v16, %v4459_v62  ;;  %v4314_v4 = vpop.f32.mrb[92].mxu0  ;;  %v4357_v7 = vpop.f32.mrb[104].mxu1  ;;  %v3534_v20 = vld [vmem:[#allocation11 + $0x2e8] sm:$0xff]  ;;  %v10179_v16 = vcombine.low %v11961_v36, %v11963_v25 }
0x18cd   :  { %v4315_v40 = vadd.f32 %v4314_v4, %v3900_v31  ;;  %v4358_v12 = vadd.f32 %v4357_v7, %v3908_v51  ;;  %v4316_v38 = vpop.f32.mrb[93].mxu0  ;;  %v4359_v23 = vpop.f32.mrb[105].mxu1 }
0x18ce   :  { %v4317_v44 = vadd.f32 %v4316_v38, %v3904_v5  ;;  %v4360_v29 = vadd.f32 %v4359_v23, %v3912_v28  ;;  %v4318_v61 = vpop.f32.mrb[94].mxu0  ;;  %v4361_v30 = vpop.f32.mrb[106].mxu1  ;;  %4778 = vmatprep.mubr.bf16.mxu0 %v4489_v11  ;;  %4819 = vmatprep.mubr.bf16.mxu1 %v4491_v22 }
0x18cf   :  { %v4319_v63 = vadd.f32 %v4318_v61, %v3900_v31  ;;  %v4362_v43 = vadd.f32 %v4361_v30, %v3908_v51  ;;  %v4320_v39 = vpop.f32.mrb[95].mxu0  ;;  %v4363_v47 = vpop.f32.mrb[107].mxu1  ;;  %v4460_v35 = vmax.f32 %v4315_v40, 0.0  ;;  %v4462_v21 = vmax.f32 %v4358_v12, 0.0 }
0x18d0   :  { %v4321_v9 = vadd.f32 %v4320_v39, %v3904_v5  ;;  %v4364_v3 = vadd.f32 %v4363_v47, %v3912_v28  ;;  %4749 = vmatpush1.bf16.xpose.msra.mxu0 %v10191_v8  ;;  %4790 = vmatpush1.bf16.xpose.msra.mxu1 %v10193_v15  ;;  %v4461_v51 = vmax.f32 %v4317_v44, 0.0  ;;  %v4463_v14 = vmax.f32 %v4360_v29, 0.0  ;;  %v3533_v28 = vld [vmem:[#allocation11 + $0x2e0] sm:$0xff] }
0x18d1   :  { %v4476_v17 = vmax.f32 %v4319_v63, 0.0  ;;  %v4478_v31 = vmax.f32 %v4362_v43, 0.0  ;;  %4828 = vmatprep.subr.bf16.mxu0 %v10180_v27  ;;  %4869 = vmatprep.subr.bf16.mxu1 %v10182_v18  ;;  %v10181_v8 = vcombine.low %v11965_v13, %v11967_v6  ;;  %v10196_v23 = vcombine.high %v3525_v56, %v3533_v28 }
0x18d2   :  { %v4477_v10 = vmax.f32 %v4321_v9, 0.0  ;;  %v4479_v55 = vmax.f32 %v4364_v3, 0.0  ;;  %v10198_v27 = vcombine.high %v3526_v58, %v3534_v20  ;;  %v3520_v3 = vld [vmem:[#allocation11 + $0x278] sm:$0xff] }
0x18d3   :  { %v11989_v57 = vpack.c.bf16 %v4476_v17, %v4460_v35  ;;  %v11991_v5 = vpack.c.bf16 %v4478_v31, %v4462_v21  ;;  %v10195_v21 = vcombine.low %v3525_v56, %v3533_v28  ;;  %v10197_v17 = vcombine.low %v3526_v58, %v3534_v20  ;;  %v10977_v58 = vld [vmem:[%s12679_s3] sm:$0xff]  }
0x18d4   :  { %v4493_v59 = vpack.c.bf16 %v4477_v10, %v4461_v51  ;;  %v4495_v26 = vpack.c.bf16 %v4479_v55, %v4463_v14  ;;  %v4400_v62 = vpop.f32.mrb[96].mxu0  ;;  %v4443_v2 = vpop.f32.mrb[108].mxu1  ;;  %v3527_v14 = vld [vmem:[#allocation11 + $0x2b0] sm:$0xff] }
0x18d5   :  { %v4401_v11 = vadd.f32 %v4400_v62, %v3916_v60  ;;  %v4444_v22 = vadd.f32 %v4443_v2, %v3924_v19  ;;  %v4402_v4 = vpop.f32.mrb[97].mxu0  ;;  %v4445_v7 = vpop.f32.mrb[109].mxu1  ;;  %v3535_v10 = vld [vmem:[#allocation11 + $0x2f0] sm:$0xff] }
0x18d6   :  { %v4403_v15 = vadd.f32 %v4402_v4, %v3920_v24  ;;  %v4446_v40 = vadd.f32 %v4445_v7, %v3928_v34  ;;  %v4404_v12 = vpop.f32.mrb[98].mxu0  ;;  %v4447_v38 = vpop.f32.mrb[110].mxu1  ;;  %v10200_v2 = vcombine.high %v3527_v14, %v3535_v10  ;;  %v10199_v56 = vcombine.low %v3527_v14, %v3535_v10 }
0x18d7   :  { %v4405_v18 = vadd.f32 %v4404_v12, %v3916_v60  ;;  %v4448_v44 = vadd.f32 %v4447_v38, %v3924_v19  ;;  %4779 = vmatmul.mubr.bf16.vlgmr.msra.gmra.mrb[104].mxu0 %v11969_v32  ;;  %4820 = vmatmul.mubr.bf16.vlgmr.msra.gmra.mrb[116].mxu1 %v11971_v41  ;;  %v4406_v36 = vpop.f32.mrb[99].mxu0  ;;  %v4449_v25 = vpop.f32.mrb[111].mxu1  ;;  %v4464_v30 = vmax.f32 %v4401_v11, 0.0  ;;  %v4466_v13 = vmax.f32 %v4444_v22, 0.0  ;;  %v3511_v32 = vld [vmem:[#allocation11 + $0x230] sm:$0xff] }
0x18d8   :  { %v4407_v29 = vadd.f32 %v4406_v36, %v3920_v24  ;;  %v4450_v61 = vadd.f32 %v4449_v25, %v3928_v34  ;;  %4829 = vmatpush1.bf16.xpose.msra.mxu0 %v10179_v16  ;;  %4860 = vmatprep.mubr.bf16.mxu0 %v4493_v59  ;;  %v4465_v43 = vmax.f32 %v4403_v15, 0.0  ;;  %v4467_v39 = vmax.f32 %v4446_v40, 0.0  ;;  %v3519_v41 = vld [vmem:[#allocation11 + $0x270] sm:$0xff]  ;;  %v3512_v24 = vld [vmem:[#allocation11 + $0x238] sm:$0xff] }
0x18d9   :  { %v4480_v6 = vmax.f32 %v4405_v18, 0.0  ;;  %v4482_v63 = vmax.f32 %v4448_v44, 0.0  ;;  %4870 = vmatpush1.bf16.xpose.msra.mxu1 %v10181_v8  ;;  %4901 = vmatprep.mubr.bf16.mxu1 %v4495_v26  ;;  %v10184_v31 = vcombine.high %v3511_v32, %v3519_v41  ;;  %v10186_v51 = vcombine.high %v3512_v24, %v3520_v3  ;;  %v3528_v59 = vld [vmem:[#allocation11 + $0x2b8] sm:$0xff] }
0x18da   :  { %v4481_v60 = vmax.f32 %v4407_v29, 0.0  ;;  %v4483_v47 = vmax.f32 %v4450_v61, 0.0  ;;  %4830 = vmatprep.subr.bf16.mxu0 %v10196_v23  ;;  %4871 = vmatprep.subr.bf16.mxu1 %v10198_v27  ;;  %v10183_v55 = vcombine.low %v3511_v32, %v3519_v41  ;;  %v3536_v26 = vld [vmem:[#allocation11 + $0x2f8] sm:$0xff]  ;;  %v10185_v62 = vcombine.low %v3512_v24, %v3520_v3 }
0x18db   :  { %v4496_v19 = vpack.c.bf16 %v4480_v6, %v4464_v30  ;;  %v4498_v9 = vpack.c.bf16 %v4482_v63, %v4466_v13  ;;  %v10202_v16 = vcombine.high %v3528_v59, %v3536_v26  ;;  %v10201_v28 = vcombine.low %v3528_v59, %v3536_v26 }
0x18dc   :  { %v4497_v34 = vpack.c.bf16 %v4481_v60, %v4465_v43  ;;  %v4499_v35 = vpack.c.bf16 %v4483_v47, %v4467_v39 }
0x18e0   :  { %4831 = vmatpush1.bf16.xpose.msra.mxu0 %v10195_v21 }
0x18e1   :  { %4872 = vmatpush1.bf16.xpose.msra.mxu1 %v10197_v17  ;;  %4910 = vmatprep.subr.bf16.mxu0 %v10184_v31 }
0x18e2   :  { %4951 = vmatprep.subr.bf16.mxu1 %v10186_v51 }
0x18e7   :  { %4861 = vmatmul.mubr.bf16.vlgmr.msra.gmra.mrb[108].mxu0 %v11989_v57  ;;  %v10978_v57 = vld [vmem:[%s12679_s3 + $0x8] sm:$0xff]  }
0x18e8   :  { %4902 = vmatmul.mubr.bf16.vlgmr.msra.gmra.mrb[120].mxu1 %v11991_v5  ;;  %4911 = vmatpush1.bf16.xpose.msra.mxu0 %v10183_v55  ;;  %v10170_v5 = vld [vmem:[%s12662_s14 + $0x2] ss:$0 sm:$0xff] }
0x18e9   :  { %4942 = vmatprep.mubr.bf16.mxu0 %v4497_v34  ;;  %4952 = vmatpush1.bf16.xpose.msra.mxu1 %v10185_v62 }
0x18ea   :  { %4983 = vmatprep.mubr.bf16.mxu1 %v4499_v35  ;;  %4912 = vmatprep.subr.bf16.mxu0 %v10200_v2 }
0x18eb   :  { %4953 = vmatprep.subr.bf16.mxu1 %v10202_v16 }
0x18f0   :  { %4913 = vmatpush1.bf16.xpose.msra.mxu0 %v10199_v56 }
0x18f1   :  { %4954 = vmatpush1.bf16.xpose.msra.mxu1 %v10201_v28  ;;  %10691 = vmatprep.subr.bf16.mxu0 %v11160_v1 }
0x18f2   :  { %10699 = vmatprep.subr.bf16.mxu1 %v10977_v58 }
0x18f7   :  { %4943 = vmatmul.mubr.bf16.vlgmr.msra.gmra.mrb[112].mxu0 %v4496_v19 }
0x18f8   :  { %4984 = vmatmul.mubr.bf16.vlgmr.msra.gmra.mrb[124].mxu1 %v4498_v9  ;;  %10695 = vmatprep.mubr.msk.bf16.mxu0 %vm11161_vm0, %v11160_v1 }
0x18f9   :  { %10700 = vmatpush3.bf16.msra.mxu1 %v10977_v58 }
0x18fa   :  { %10701 = vmatprep.subr.bf16.mxu1 %v10978_v57 }
0x18fd   :  { %10702 = vmatpush3.bf16.msra.mxu1 %v10978_v57 }
0x18fe   :  { %10713 = vmatprep.subr.bf16.mxu1 %v11160_v1 }
0x199a   :  { %v4698_v20 = vpop.f32.mrb[100].mxu0  ;;  %v4739_v11 = vpop.f32.mrb[112].mxu1 }
0x199b   :  { %v4699_v22 = vadd.f32 %v10170_v5, %v4698_v20  ;;  %v4700_v4 = vpop.f32.mrb[101].mxu0  ;;  %v4741_v7 = vpop.f32.mrb[113].mxu1 }
0x199c   :  { %v4701_v8 = vpop.f32.mrb[102].mxu0  ;;  %v4742_v15 = vpop.f32.mrb[114].mxu1 }
0x199d   :  { %v4740_v40 = vadd.f32 %v4739_v11, %v4699_v22  ;;  %v4702_v12 = vadd.f32 %v10170_v5, %v4701_v8  ;;  %v4703_v38 = vpop.f32.mrb[103].mxu0  ;;  %v4744_v23 = vpop.f32.mrb[115].mxu1 }
0x199e   :  { %v10839_v23 = vld [vmem:[#allocation7 + $0x30] sm:$0xff]  }
0x199f   :  { %v4743_v27 = vadd.f32 %v4742_v15, %v4702_v12  ;;  %10692 = vmatpush3.bf16.msra.mxu0 %v10839_v23 }
0x19a0   :  { %10693 = vmatprep.subr.bf16.mxu0 %v11160_v1 }
0x19aa   :  { %v4780_v18 = vpop.f32.mrb[104].mxu0  ;;  %v4821_v44 = vpop.f32.mrb[116].mxu1 }
0x19ab   :  { %v4781_v36 = vadd.f32 %v4780_v18, %v4740_v40  ;;  %v4782_v25 = vpop.f32.mrb[105].mxu0  ;;  %v4823_v29 = vpop.f32.mrb[117].mxu1 }
0x19ac   :  { %v4783_v61 = vpop.f32.mrb[106].mxu0  ;;  %v4824_v30 = vpop.f32.mrb[118].mxu1 }
0x19ad   :  { %v4822_v13 = vadd.f32 %v4821_v44, %v4781_v36  ;;  %v4784_v6 = vadd.f32 %v4783_v61, %v4743_v27  ;;  %v4785_v63 = vpop.f32.mrb[107].mxu0  ;;  %v4826_v43 = vpop.f32.mrb[119].mxu1  ;;  %v10979_v27 = vld [vmem:[#allocation2] sm:$0xf] }
0x19af   :  { %v4825_v39 = vadd.f32 %v4824_v30, %v4784_v6 }
0x19ba   :  { %v4862_v60 = vpop.f32.mrb[108].mxu0 }
0x19bb   :  { %v4863_v47 = vadd.f32 %v4862_v60, %v4822_v13  ;;  %v4903_v32 = vpop.f32.mrb[120].mxu1  ;;  %v4864_v41 = vpop.f32.mrb[109].mxu0  ;;  %v10203_v13 = vld [vmem:[%s12663_s15 + $0x2] ss:$0 sm:$0xff] }
0x19bc   :  { %v4905_v19 = vpop.f32.mrb[121].mxu1  ;;  %v4865_v9 = vpop.f32.mrb[110].mxu0  ;;  %v10204_v60 = vld [vmem:[%s12664_s16 + $0x2] ss:$0 sm:$0xff] }
0x19bd   :  { %v4904_v24 = vadd.f32 %v4903_v32, %v4863_v47  ;;  %v4866_v3 = vadd.f32 %v4865_v9, %v4825_v39  ;;  %v4906_v34 = vpop.f32.mrb[122].mxu1  ;;  %v4867_v35 = vpop.f32.mrb[111].mxu0  ;;  %v10209_v9 = vld [vmem:[%s12654_s6 + $0x3] ss:$0 sm:$0xff] }
0x19be   :  { %v4908_v21 = vpop.f32.mrb[123].mxu1 }
0x19bf   :  { %v4907_v17 = vadd.f32 %v4906_v34, %v4866_v3 }
0x19ca   :  { %v4944_v31 = vpop.f32.mrb[112].mxu0 }
0x19cb   :  { %v4945_v51 = vadd.f32 %v4944_v31, %v4904_v24  ;;  %v4985_v14 = vpop.f32.mrb[124].mxu1  ;;  %v4946_v10 = vpop.f32.mrb[113].mxu0 }
0x19cc   :  { %v4987_v55 = vpop.f32.mrb[125].mxu1  ;;  %v4947_v59 = vpop.f32.mrb[114].mxu0 }
0x19cd   :  { %v4986_v26 = vadd.f32 %v4985_v14, %v4945_v51  ;;  %v4948_v62 = vadd.f32 %v4947_v59, %v4907_v17  ;;  %v4988_v2 = vpop.f32.mrb[126].mxu1  ;;  %v4949_v16 = vpop.f32.mrb[115].mxu0 }
0x19ce   :  { %v4990_v56 = vpop.f32.mrb[127].mxu1 }
0x19cf   :  { %v4989_v28 = vadd.f32 %v4988_v2, %v4948_v62  ;;  %v4992_v58 = vadd.f32 %v4986_v26, %v11867_v37 }
0x19d1   :  { %v4994_v57 = vsel %vm372_vm4, %v4992_v58, 0.0  ;;  %v4993_v5 = vadd.f32 %v4989_v28, %v11869_v33  ;;  %v10840_v33 = vld [vmem:[#allocation7 + $0x38] sm:$0xff]  }
0x19d2   :  { %4995 = vadd.xlane.f32.xlu1 %v4994_v57  ;;  %10694 = vmatpush3.bf16.msra.mxu0 %v10840_v33 }
0x19d3   :  { %v4997_v20 = vsel %vm372_vm4, %v4993_v5, 0.0  ;;  %10798 = vmatprep.subr.msk.bf16.mxu0 %vm529_vm5, %v10979_v27 }
0x19d4   :  { %4998 = vadd.xlane.f32.xlu0 %v4997_v20 }
0x1a5f   :  { %v4996_v11 = vpop.xlane.xlu1 %4995 }
0x1a60   :  { %v5000_v22 = vmul.f32 0.03125, %v4996_v11 }
0x1a61   :  { %v4999_v4 = vpop.xlane.xlu0 %4998 }
0x1a62   :  { %v5002_v7 = vsub.f32 %v4992_v58, %v5000_v22  ;;  %v5001_v8 = vmul.f32 0.03125, %v4999_v4 }
0x1a64   :  { %v5003_v15 = vsub.f32 %v4993_v5, %v5001_v8  ;;  %v5004_v40 = vmul.f32 %v5002_v7, %v5002_v7 }
0x1a66   :  { %v5006_v12 = vsel %vm372_vm4, %v5004_v40, 0.0  ;;  %v5005_v38 = vmul.f32 %v5003_v15, %v5003_v15 }
0x1a67   :  { %5007 = vadd.xlane.f32.xlu1 %v5006_v12 }
0x1a68   :  { %v5009_v37 = vsel %vm372_vm4, %v5005_v38, 0.0 }
0x1a69   :  { %5010 = vadd.xlane.f32.xlu0 %v5009_v37 }
0x1af4   :  { %v5008_v18 = vpop.xlane.xlu1 %5007 }
0x1af5   :  { %v5012_v44 = vmul.f32 0.03125, %v5008_v18 }
0x1af6   :  { %v5011_v36 = vpop.xlane.xlu0 %5010 }
0x1af7   :  { %v5014_v25 = vadd.f32 1e-05, %v5012_v44  ;;  %v5013_v29 = vmul.f32 0.03125, %v5011_v36 }
0x1af9   :  { %10909 = vrsqrt.f32 %v5014_v25  ;;  %v5015_v61 = vadd.f32 1e-05, %v5013_v29 }
0x1afb   :  { %10911 = vrsqrt.f32 %v5015_v61 }
0x1b03   :  { %v10910_v30 = vpop.eup %10909 }
0x1b04   :  { %v5018_v6 = vmul.f32 %v10910_v30, %v5002_v7 }
0x1b05   :  { %v10912_v63 = vpop.eup %10911 }
0x1b06   :  { %v5024_v43 = vmul.f32 %v10203_v13, %v5018_v6  ;;  %v5019_v39 = vmul.f32 %v10912_v63, %v5003_v15  ;;  %v10842_v6 = vld [vmem:[#allocation8 + $0x38] sm:$0xff]  }
0x1b08   :  { %v5025_v47 = vmul.f32 %v10203_v13, %v5019_v39  ;;  %v12028_v32 = vadd.f32 %v10204_v60, %v5024_v43  ;;  %v10841_v13 = vld [vmem:[#allocation8 + $0x30] sm:$0xff]  }
0x1b0a   :  { %v12030_v41 = vadd.f32 %v10204_v60, %v5025_v47 }
0x1b0c   :  { %v5123_v19 = vpack.c.bf16 %v12030_v41, %v12028_v32 }
0x1b0e   :  { %10696 = vmatmul.mubr.msk.bf16.vlgmr.msra.gmra.mrb[116].mxu0 %vm372_vm4, %v5123_v19 }
0x1b0f   :  { %10708 = vmatpush3.bf16.msra.mxu0 %v11424_v42 }
0x1be1   :  { %v5177_v24 = vpop.f32.mrb[116].mxu0 }
0x1be2   :  { %v5178_v3 = vadd.f32 %v10209_v9, %v5177_v24  ;;  %v10697_v34 = vpop.f32.mrb[117].mxu0 }
0x1be3   :  { %v5180_v35 = vpop.f32.mrb[118].mxu0 }
0x1be4   :  { %v5181_v21 = vadd.f32 %v10209_v9, %v5180_v35  ;;  %5186 = vrot.lane.b32.xlu1 %v5178_v3, %s11163_s21  ;;  %v10698_v17 = vpop.f32.mrb[119].mxu0 }
0x1be6   :  { %5188 = vrot.lane.b32.xlu0 %v5181_v21, %s11163_s21 }
0x1be8   :  { %5332 = vrot.lane.b32.xlu1 %v5178_v3, %s11153_s30 }
0x1bec   :  { %5334 = vrot.lane.b32.xlu1 %v5181_v21, %s11153_s30 }
0x1c56   :  { %v5187_v31 = vpop.permute.xlu1 %5186 }
0x1c57   :  { %v5192_v14 = vmul.f32 %v5187_v31, %v5178_v3  ;;  %v5194_v10 = vmul.f32 %v5187_v31, %v5181_v21  ;;  %v10217_v31 = vld [vmem:[%s12656_s8 + $0x3] ss:$0 sm:$0xff] }
0x1c58   :  { %v5189_v51 = vpop.permute.xlu0 %5188 }
0x1c59   :  { %v5193_v55 = vmul.f32 %v5189_v51, %v5178_v3  ;;  %v5195_v59 = vmul.f32 %v5189_v51, %v5181_v21 }
0x1c5a   :  { %v5333_v63 = vpop.permute.xlu1 %5332 }
0x1c5b   :  { %v5196_v26 = vpack.c.bf16 %v5193_v55, %v5192_v14  ;;  %v5197_v62 = vpack.c.bf16 %v5195_v59, %v5194_v10 }
0x1c5d   :  { %10703 = vmatprep.mubr.msk.bf16.mxu1 %vm372_vm4, %v5196_v26 }
0x1c5e   :  { %10704 = vmatmul.mubr.msk.bf16.vlgmr.msra.gmra.mrb[128].mxu1 %vm372_vm4, %v5197_v62  ;;  %v5335_v60 = vpop.permute.xlu1 %5334 }
0x1c5f   :  { %10717 = vmatprep.mubr.msk.bf16.mxu1 %vm11161_vm0, %v11160_v1  ;;  %10714 = vmatpush3.bf16.msra.mxu1 %v10841_v13  ;;  %v5057_v13 = vld [vmem:[#allocation10 + $0x350] sm:$0xff] }
0x1c60   :  { %10715 = vmatprep.subr.bf16.mxu1 %v11160_v1 }
0x1c63   :  { %10716 = vmatpush3.bf16.msra.mxu1 %v10842_v6  ;;  %v5050_v6 = vld [vmem:[#allocation10 + $0x318] sm:$0xff] }
0x1d31   :  { %v10705_v2 = vpop.f32.mrb[128].mxu1 }
0x1d32   :  { %v5238_v16 = vpop.f32.mrb[129].mxu1 }
0x1d33   :  { %v10706_v56 = vpop.f32.mrb[130].mxu1 }
0x1d34   :  { %v5264_v28 = vmax.f32 %v10705_v2, %v10706_v56  ;;  %v5241_v58 = vpop.f32.mrb[131].mxu1 }
0x1d35   :  { %v5253_v57 = vmax.f32 %v5238_v16, %v5241_v58 }
0x1d36   :  { %v5265_v5 = vsub.f32 %v10705_v2, %v5264_v28  ;;  %v5268_v20 = vsub.f32 %v10706_v56, %v5264_v28 }
0x1d37   :  { %v5254_v11 = vsub.f32 %v5238_v16, %v5253_v57  ;;  %v5257_v22 = vsub.f32 %v5241_v58, %v5253_v57 }
0x1d38   :  { %v5266_v4 = vmul.f32 1.442695, %v5265_v5  ;;  %v5269_v7 = vmul.f32 1.442695, %v5268_v20 }
0x1d39   :  { %v5255_v8 = vmul.f32 1.442695, %v5254_v11  ;;  %v5258_v15 = vmul.f32 1.442695, %v5257_v22 }
0x1d3a   :  { %10913 = vpow2.f32 %v5266_v4 }
0x1d3b   :  { %10915 = vpow2.f32 %v5269_v7 }
0x1d3c   :  { %10917 = vpow2.f32 %v5255_v8  ;;  %v5047_v8 = vld [vmem:[#allocation10 + $0x300] sm:$0xff] }
0x1d3d   :  { %10919 = vpow2.f32 %v5258_v15  ;;  %v5048_v15 = vld [vmem:[#allocation10 + $0x308] sm:$0xff] }
0x1d44   :  { %v10914_v40 = vpop.eup %10913 }
0x1d45   :  { %v10916_v12 = vpop.eup %10915 }
0x1d46   :  { %v10918_v38 = vpop.eup %10917  ;;  %v5271_v37 = vadd.f32 %v10916_v12, %v10914_v40 }
0x1d47   :  { %v10920_v23 = vpop.eup %10919 }
0x1d48   :  { %10921 = vrcp.f32 %v5271_v37  ;;  %v5260_v33 = vadd.f32 %v10920_v23, %v10918_v38 }
0x1d4a   :  { %10923 = vrcp.f32 %v5260_v33  ;;  %v5063_v33 = vld [vmem:[#allocation10 + $0x380] sm:$0xff] }
0x1d52   :  { %v10922_v27 = vpop.eup %10921 }
0x1d53   :  { %v5274_v18 = vmul.f32 %v10922_v27, %v10916_v12  ;;  %v5273_v44 = vmul.f32 %v10922_v27, %v10914_v40  ;;  %v5056_v12 = vld [vmem:[#allocation10 + $0x348] sm:$0xff]  ;;  %v5071_v27 = vld [vmem:[#allocation10 + $0x3c0] sm:$0xff] }
0x1d54   :  { %v10924_v36 = vpop.eup %10923  ;;  %v10225_v37 = vcombine.low %v5048_v15, %v5056_v12 }
0x1d55   :  { %v5262_v25 = vmul.f32 %v10924_v36, %v10918_v38  ;;  %v5263_v29 = vmul.f32 %v10924_v36, %v10920_v23  ;;  %v5276_v61 = vpack.c.bf16 %v5274_v18, %v5273_v44  ;;  %v10226_v23 = vcombine.high %v5048_v15, %v5056_v12  ;;  %v5064_v18 = vld [vmem:[#allocation10 + $0x388] sm:$0xff]  ;;  %v5067_v15 = vld [vmem:[#allocation10 + $0x3a0] sm:$0xff] }
0x1d56   :  { %v10240_v44 = vcombine.high %v5063_v33, %v5071_v27  ;;  %v5072_v36 = vld [vmem:[#allocation10 + $0x3c8] sm:$0xff] }
0x1d57   :  { %v5275_v30 = vpack.c.bf16 %v5263_v29, %v5262_v25  ;;  %5734 = vmatprep.subr.bf16.mxu1 %v10226_v23  ;;  %v10239_v25 = vcombine.low %v5063_v33, %v5071_v27  ;;  %v10241_v29 = vcombine.low %v5064_v18, %v5072_v36  ;;  %v5068_v12 = vld [vmem:[#allocation10 + $0x3a8] sm:$0xff] }
0x1d59   :  { %10709 = vmatprep.mubr.msk.bf16.mxu0 %vm522_vm6, %v5275_v30  ;;  %v5049_v30 = vld [vmem:[#allocation10 + $0x310] sm:$0xff] }
0x1d5a   :  { %10710 = vmatmul.mubr.msk.bf16.vlgmr.msra.gmra.mrb[120].mxu0 %vm522_vm6, %v5276_v61  ;;  %v10242_v61 = vcombine.high %v5064_v18, %v5072_v36  ;;  %v5053_v18 = vld [vmem:[#allocation10 + $0x330] sm:$0xff]  ;;  %v5054_v36 = vld [vmem:[#allocation10 + $0x338] sm:$0xff] }
0x1d5b   :  { %5723 = vmatprep.mubr.bf16.mxu0 %v11159_v0 }
0x1e2d   :  { %v10711_v43 = vpop.f32.mrb[120].mxu0 }
0x1e2e   :  { %v5317_v39 = vpop.f32.mrb[121].mxu0  ;;  %v5340_v19 = vmul.f32 %v10711_v43, %v5333_v63  ;;  %v5058_v43 = vld [vmem:[#allocation10 + $0x358] sm:$0xff] }
0x1e2f   :  { %v10712_v47 = vpop.f32.mrb[122].mxu0  ;;  %v5338_v3 = vmul.f32 %v5333_v63, %v5317_v39  ;;  %v10228_v63 = vcombine.high %v5049_v30, %v5057_v13  ;;  %v10227_v39 = vcombine.low %v5049_v30, %v5057_v13 }
0x1e30   :  { %v5341_v9 = vmul.f32 %v10712_v47, %v5335_v60  ;;  %v5320_v24 = vpop.f32.mrb[123].mxu0  ;;  %v10230_v47 = vcombine.high %v5050_v6, %v5058_v43 }
0x1e31   :  { %v5339_v34 = vmul.f32 %v5335_v60, %v5320_v24  ;;  %v10229_v60 = vcombine.low %v5050_v6, %v5058_v43  ;;  %v5069_v6 = vld [vmem:[#allocation10 + $0x3b0] sm:$0xff]  ;;  %v5070_v43 = vld [vmem:[#allocation10 + $0x3b8] sm:$0xff] }
0x1e32   :  { %v5343_v35 = vadd.f32 %v5341_v9, %v5340_v19 }
0x1e33   :  { %v5342_v21 = vadd.f32 %v5339_v34, %v5338_v3 }
0x1e35   :  { %v5344_v17 = vpack.c.bf16 %v5343_v35, %v5342_v21 }
0x1e37   :  { %10718 = vmatmul.mubr.msk.bf16.vlgmr.msra.gmra.mrb[132].mxu1 %vm372_vm4, %v5344_v17 }
0x1e38   :  { %5766 = vmatprep.mubr.bf16.mxu1 %v11159_v0  ;;  %5735 = vmatpush1.bf16.msra.mxu1 %v10225_v37 }
0x1e39   :  { %5736 = vmatprep.subr.bf16.mxu1 %v10242_v61 }
0x1e3c   :  { %5737 = vmatpush1.bf16.msra.mxu1 %v10241_v29 }
0x1e3d   :  { %5820 = vmatprep.subr.bf16.mxu1 %v10230_v47 }
0x1f0a   :  { %v5398_v51 = vpop.f32.mrb[132].mxu1 }
0x1f0b   :  { %v5399_v14 = vadd.f32 %v10217_v31, %v5398_v51  ;;  %v10719_v10 = vpop.f32.mrb[133].mxu1 }
0x1f0c   :  { %v5401_v55 = vpop.f32.mrb[134].mxu1 }
0x1f0d   :  { %v5402_v59 = vadd.f32 %v10217_v31, %v5401_v55  ;;  %v10720_v26 = vpop.f32.mrb[135].mxu1  ;;  %v5405_v62 = vadd.f32 %v5399_v14, %v12028_v32  ;;  %v10221_v31 = vld [vmem:[%s12657_s9 + $0x3] ss:$0 sm:$0xff] }
0x1f0e   :  { %v10222_v55 = vld [vmem:[%s12658_s10 + $0x3] ss:$0 sm:$0xff]  ;;  %v5065_v26 = vld [vmem:[#allocation10 + $0x390] sm:$0xff] }
0x1f0f   :  { %v5407_v2 = vsel %vm372_vm4, %v5405_v62, 0.0  ;;  %v5406_v16 = vadd.f32 %v5402_v59, %v12030_v41  ;;  %v5055_v41 = vld [vmem:[#allocation10 + $0x340] sm:$0xff] }
0x1f10   :  { %5408 = vadd.xlane.f32.xlu0 %v5407_v2  ;;  %v10224_v40 = vcombine.high %v5047_v8, %v5055_v41  ;;  %v10223_v38 = vcombine.low %v5047_v8, %v5055_v41  ;;  %v5066_v2 = vld [vmem:[#allocation10 + $0x398] sm:$0xff] }
0x1f11   :  { %v5410_v56 = vsel %vm372_vm4, %v5406_v16, 0.0 }
0x1f12   :  { %5411 = vadd.xlane.f32.xlu1 %v5410_v56  ;;  %5691 = vmatprep.subr.bf16.mxu0 %v10224_v40  ;;  %v5075_v40 = vld [vmem:[#allocation10 + $0x3e0] sm:$0xff] }
0x1f13   :  { %5692 = vmatpush1.bf16.msra.mxu0 %v10223_v38  ;;  %v5076_v38 = vld [vmem:[#allocation10 + $0x3e8] sm:$0xff]  ;;  %v10248_v33 = vcombine.high %v5067_v15, %v5075_v40  ;;  %v10247_v29 = vcombine.low %v5067_v15, %v5075_v40 }
0x1f14   :  { %5693 = vmatprep.subr.bf16.mxu0 %v10240_v44  ;;  %v10250_v27 = vcombine.high %v5068_v12, %v5076_v38  ;;  %v5061_v44 = vld [vmem:[#allocation10 + $0x370] sm:$0xff]  ;;  %v10249_v61 = vcombine.low %v5068_v12, %v5076_v38 }
0x1f15   :  { %v10236_v30 = vcombine.high %v5053_v18, %v5061_v44  ;;  %v10206_v15 = vld [vmem:[%s12660_s12 + $0x3] ss:$8 sm:$0xf0] }
0x1f17   :  { %5694 = vmatpush1.bf16.msra.mxu0 %v10239_v25  ;;  %v5062_v25 = vld [vmem:[#allocation10 + $0x378] sm:$0xff] }
0x1f18   :  { %5777 = vmatprep.subr.bf16.mxu0 %v10228_v63  ;;  %v10238_v13 = vcombine.high %v5054_v36, %v5062_v25  ;;  %v5077_v63 = vld [vmem:[#allocation10 + $0x3f0] sm:$0xff]  ;;  %v10237_v47 = vcombine.low %v5054_v36, %v5062_v25 }
0x1f9d   :  { %v5409_v28 = vpop.xlane.xlu0 %5408 }
0x1f9e   :  { %v5413_v58 = vmul.f32 0.03125, %v5409_v28 }
0x1f9f   :  { %v5412_v57 = vpop.xlane.xlu1 %5411 }
0x1fa0   :  { %v5415_v5 = vsub.f32 %v5405_v62, %v5413_v58  ;;  %v5414_v20 = vmul.f32 0.03125, %v5412_v57  ;;  %v5073_v62 = vld [vmem:[#allocation10 + $0x3d0] sm:$0xff] }
0x1fa1   :  { %v10244_v57 = vcombine.high %v5065_v26, %v5073_v62 }
0x1fa2   :  { %v5416_v11 = vsub.f32 %v5406_v16, %v5414_v20  ;;  %v5417_v22 = vmul.f32 %v5415_v5, %v5415_v5  ;;  %v5074_v16 = vld [vmem:[#allocation10 + $0x3d8] sm:$0xff]  ;;  %v5051_v20 = vld [vmem:[#allocation10 + $0x320] sm:$0xff] }
0x1fa4   :  { %v5419_v4 = vsel %vm372_vm4, %v5417_v22, 0.0  ;;  %v5418_v7 = vmul.f32 %v5416_v11, %v5416_v11  ;;  %v5052_v22 = vld [vmem:[#allocation10 + $0x328] sm:$0xff] }
0x1fa5   :  { %5420 = vadd.xlane.f32.xlu0 %v5419_v4  ;;  %v5060_v4 = vld [vmem:[#allocation10 + $0x368] sm:$0xff] }
0x1fa6   :  { %v5422_v32 = vsel %vm372_vm4, %v5418_v7, 0.0  ;;  %v10243_v7 = vcombine.low %v5065_v26, %v5073_v62  ;;  %v10234_v41 = vcombine.high %v5052_v22, %v5060_v4  ;;  %v10233_v23 = vcombine.low %v5052_v22, %v5060_v4  ;;  %v5105_v26 = vld [vmem:[#allocation11 + $0x388] sm:$0xff]  ;;  %v12106_v4 = vld [vmem:[#allocation11 + $0x358] sm:$0xff] }
0x1fa9   :  { %5423 = vadd.xlane.f32.xlu0 %v5422_v32  ;;  %v10245_v32 = vcombine.low %v5066_v2, %v5074_v16 }
0x2032   :  { %v5421_v19 = vpop.xlane.xlu0 %5420 }
0x2033   :  { %v5425_v9 = vmul.f32 0.03125, %v5421_v19  ;;  %v10252_v19 = vcombine.high %v5069_v6, %v5077_v63 }
0x2035   :  { %v5427_v24 = vadd.f32 1e-05, %v5425_v9 }
0x2036   :  { %v5424_v3 = vpop.xlane.xlu0 %5423 }
0x2037   :  { %10925 = vrsqrt.f32 %v5427_v24  ;;  %v5426_v34 = vmul.f32 0.03125, %v5424_v3  ;;  %v5088_v24 = vld [vmem:[#allocation11 + $0x300] sm:$0xff] }
0x2038   :  { %v5096_v3 = vld [vmem:[#allocation11 + $0x340] sm:$0xff] }
0x2039   :  { %v5428_v35 = vadd.f32 1e-05, %v5426_v34  ;;  %v5089_v34 = vld [vmem:[#allocation11 + $0x308] sm:$0xff] }
0x203b   :  { %10927 = vrsqrt.f32 %v5428_v35  ;;  %v5097_v35 = vld [vmem:[#allocation11 + $0x348] sm:$0xff] }
0x2041   :  { %v10926_v21 = vpop.eup %10925 }
0x2042   :  { %v5431_v17 = vmul.f32 %v10926_v21, %v5415_v5  ;;  %v10246_v5 = vcombine.high %v5066_v2, %v5074_v16  ;;  %v10251_v21 = vcombine.low %v5069_v6, %v5077_v63  ;;  %v5113_v2 = vld [vmem:[#allocation11 + $0x3c8] sm:$0xff] }
0x2044   :  { %v5437_v14 = vmul.f32 %v10221_v31, %v5431_v17 }
0x2045   :  { %v10928_v51 = vpop.eup %10927 }
0x2046   :  { %v5432_v10 = vmul.f32 %v10928_v51, %v5416_v11  ;;  %v12068_v56 = vadd.f32 %v10222_v55, %v5437_v14  ;;  %v5059_v11 = vld [vmem:[#allocation10 + $0x360] sm:$0xff]  ;;  %v10267_v51 = vcombine.high %v5089_v34, %v5097_v35  ;;  %v10264_v14 = vcombine.low %v5088_v24, %v5096_v3 }
0x2047   :  { %v10232_v8 = vcombine.high %v5051_v20, %v5059_v11  ;;  %v10231_v37 = vcombine.low %v5051_v20, %v5059_v11  ;;  %v12098_v20 = vld [vmem:[#allocation11 + $0x310] sm:$0xff] }
0x2048   :  { %v5438_v59 = vmul.f32 %v10221_v31, %v5432_v10  ;;  %v10265_v31 = vcombine.high %v5088_v24, %v5096_v3  ;;  %v10266_v10 = vcombine.low %v5089_v34, %v5097_v35  ;;  %v12100_v11 = vld [vmem:[#allocation11 + $0x350] sm:$0xff] }
0x2049   :  { %v10269_v22 = vcombine.high %v12098_v20, %v12100_v11 }
0x204a   :  { %v12070_v28 = vadd.f32 %v10222_v55, %v5438_v59  ;;  %v5104_v55 = vld [vmem:[#allocation11 + $0x380] sm:$0xff] }
0x204b   :  { %v5112_v59 = vld [vmem:[#allocation11 + $0x3c0] sm:$0xff] }
0x204c   :  { %v12074_v58 = vpack.c.bf16 %v12070_v28, %v12068_v56  ;;  %v10281_v62 = vcombine.high %v5104_v55, %v5112_v59  ;;  %v10280_v16 = vcombine.low %v5104_v55, %v5112_v59  ;;  %v12138_v55 = vld [vmem:[#allocation11 + $0x3d0] sm:$0xff] }
0x204e   :  { %10255 = vmatmul.mubr.msk.bf16.vlgmr.msra.gmra.mrb[124].mxu0 %vm372_vm4, %v12074_v58  ;;  %10256 = vmatmul.mubr.msk.bf16.vlgmr.msra.gmra.mrb[136].mxu1 %vm372_vm4, %v12074_v58 }
0x204f   :  { %5778 = vmatpush1.bf16.msra.mxu0 %v10227_v39  ;;  %5821 = vmatpush1.bf16.msra.mxu1 %v10229_v60  ;;  %v5078_v39 = vld [vmem:[#allocation10 + $0x3f8] sm:$0xff]  ;;  %v10235_v60 = vcombine.low %v5053_v18, %v5061_v44 }
0x2050   :  { %5779 = vmatprep.subr.bf16.mxu0 %v10244_v57  ;;  %5822 = vmatprep.subr.bf16.mxu1 %v10246_v5  ;;  %v10254_v9 = vcombine.high %v5070_v43, %v5078_v39  ;;  %v10253_v17 = vcombine.low %v5070_v43, %v5078_v39  ;;  %v10282_v57 = vcombine.low %v5105_v26, %v5113_v2  ;;  %v10207_v18 = vld [vmem:[%s12660_s12 + $0x43] ss:$8 sm:$0xf] }
0x2051   :  { %5809 = vmatprep.mubr.bf16.mxu0 %v11159_v0  ;;  %5852 = vmatprep.mubr.bf16.mxu1 %v11159_v0  ;;  %v10283_v5 = vcombine.high %v5105_v26, %v5113_v2 }
0x2053   :  { %5780 = vmatpush1.bf16.msra.mxu0 %v10243_v7  ;;  %5823 = vmatpush1.bf16.msra.mxu1 %v10245_v32  ;;  %v10268_v7 = vcombine.low %v12098_v20, %v12100_v11 }
0x2054   :  { %5863 = vmatprep.subr.bf16.mxu0 %v10232_v8  ;;  %5906 = vmatprep.subr.bf16.mxu1 %v10234_v41  ;;  %v10205_v41 = vld [vmem:[%s12660_s12 + $0x3] ss:$8 sm:$0xf] }
0x2055   :  { %v5082_v40 = vor.u32 %v10206_v15, %v10205_v41 }
0x2056   :  { %10257 = vmatmul.mubr.msk.bf16.vlgmr.msra.gmra.mrb[128].mxu0 %vm372_vm4, %v12074_v58  ;;  %10258 = vmatmul.mubr.msk.bf16.vlgmr.msra.gmra.mrb[140].mxu1 %vm372_vm4, %v12074_v58 }
0x2057   :  { %5864 = vmatpush1.bf16.msra.mxu0 %v10231_v37  ;;  %5907 = vmatpush1.bf16.msra.mxu1 %v10233_v23  ;;  %v5451_v12 = vrot.slane %v5082_v40, %v11503_v45  ;;  %v5459_v38 = vrot.slane %v5082_v40, %v11505_v46  ;;  %v5455_v37 = vrot.slane %v5082_v40, %v11507_v48 }
0x2058   :  { %5865 = vmatprep.subr.bf16.mxu0 %v10248_v33  ;;  %5908 = vmatprep.subr.bf16.mxu1 %v10250_v27  ;;  %v5463_v23 = vrot.slane %v5082_v40, %v11509_v49  ;;  %v5467_v43 = vrot.slane %v5082_v40, %v11513_v50  ;;  %v5471_v24 = vrot.slane %v5082_v40, %v11517_v52 }
0x2059   :  { %5895 = vmatprep.mubr.bf16.mxu0 %v11159_v0  ;;  %5938 = vmatprep.mubr.bf16.mxu1 %v11159_v0  ;;  %v5479_v35 = vrot.slane %v5082_v40, %v11521_v54 }
0x205b   :  { %5866 = vmatpush1.bf16.msra.mxu0 %v10247_v29  ;;  %5909 = vmatpush1.bf16.msra.mxu1 %v10249_v61  ;;  %v10208_v61 = vld [vmem:[%s12660_s12 + $0x43] ss:$8 sm:$0xf0] }
0x205c   :  { %5949 = vmatprep.subr.bf16.mxu0 %v10236_v30  ;;  %5992 = vmatprep.subr.bf16.mxu1 %v10238_v13 }
0x205e   :  { %10259 = vmatmul.mubr.msk.bf16.vlgmr.msra.gmra.mrb[132].mxu0 %vm372_vm4, %v12074_v58  ;;  %10260 = vmatmul.mubr.msk.bf16.vlgmr.msra.gmra.mrb[144].mxu1 %vm372_vm4, %v12074_v58 }
0x205f   :  { %5950 = vmatpush1.bf16.msra.mxu0 %v10235_v60  ;;  %5993 = vmatpush1.bf16.msra.mxu1 %v10237_v47 }
0x2060   :  { %5951 = vmatprep.subr.bf16.mxu0 %v10252_v19  ;;  %5994 = vmatprep.subr.bf16.mxu1 %v10254_v9  ;;  %v5475_v9 = vrot.slane %v5082_v40, %v11519_v53 }
0x2061   :  { %5981 = vmatprep.mubr.bf16.mxu0 %v11159_v0  ;;  %6024 = vmatprep.mubr.bf16.mxu1 %v11159_v0 }
0x2063   :  { %5952 = vmatpush1.bf16.msra.mxu0 %v10251_v21  ;;  %5995 = vmatpush1.bf16.msra.mxu1 %v10253_v17  ;;  %v12134_v21 = vor.u32 %v10208_v61, %v10207_v18 }
0x2064   :  { %6247 = vmatprep.subr.bf16.mxu0 %v10265_v31  ;;  %6288 = vmatprep.subr.bf16.mxu1 %v10267_v51 }
0x2065   :  { %v5491_v61 = vrot.slane %v12134_v21, %v11505_v46 }
0x2066   :  { %10261 = vmatmul.mubr.msk.bf16.vlgmr.msra.gmra.mrb[136].mxu0 %vm372_vm4, %v12074_v58  ;;  %10262 = vmatmul.mubr.msk.bf16.vlgmr.msra.gmra.mrb[148].mxu1 %vm372_vm4, %v12074_v58  ;;  %v12102_v58 = vld [vmem:[#allocation11 + $0x318] sm:$0xff] }
0x2067   :  { %v10270_v32 = vcombine.low %v12102_v58, %v12106_v4  ;;  %v10271_v8 = vcombine.high %v12102_v58, %v12106_v4  ;;  %v12168_v58 = vld [vmem:[#allocation11 + $0x368] sm:$0xff] }
0x206c   :  { %6248 = vmatpush1.bf16.xpose.msra.mxu0 %v10264_v14  ;;  %6289 = vmatpush1.bf16.xpose.msra.mxu1 %v10266_v10  ;;  %v12136_v10 = vld [vmem:[#allocation11 + $0x390] sm:$0xff] }
0x206d   :  { %6249 = vmatprep.subr.bf16.mxu0 %v10281_v62  ;;  %6290 = vmatprep.subr.bf16.mxu1 %v10283_v5 }
0x2074   :  { %6250 = vmatpush1.bf16.xpose.msra.mxu0 %v10280_v16  ;;  %6291 = vmatpush1.bf16.xpose.msra.mxu1 %v10282_v57  ;;  %v12140_v16 = vld [vmem:[#allocation11 + $0x398] sm:$0xff] }
0x2075   :  { %6329 = vmatprep.subr.bf16.mxu0 %v10269_v22  ;;  %6370 = vmatprep.subr.bf16.mxu1 %v10271_v8  ;;  %v12142_v57 = vld [vmem:[#allocation11 + $0x3d8] sm:$0xff] }
0x2076   :  { %v10287_v18 = vcombine.high %v12140_v16, %v12142_v57 }
0x2121   :  { %v5725_v33 = vpop.f32.mrb[124].mxu0  ;;  %v5768_v27 = vpop.f32.mrb[136].mxu1 }
0x2122   :  { %v5726_v44 = vadd.f32 %v5725_v33, %v5451_v12  ;;  %v5769_v36 = vadd.f32 %v5768_v27, %v5459_v38  ;;  %v5727_v25 = vpop.f32.mrb[125].mxu0  ;;  %v5770_v29 = vpop.f32.mrb[137].mxu1  ;;  %v10285_v27 = vcombine.high %v12136_v10, %v12138_v55 }
0x2123   :  { %v5728_v30 = vadd.f32 %v5727_v25, %v5455_v37  ;;  %v5771_v13 = vadd.f32 %v5770_v29, %v5463_v23  ;;  %v5729_v6 = vpop.f32.mrb[126].mxu0  ;;  %v5772_v63 = vpop.f32.mrb[138].mxu1 }
0x2124   :  { %v5730_v39 = vadd.f32 %v5729_v6, %v5451_v12  ;;  %v5773_v60 = vadd.f32 %v5772_v63, %v5459_v38  ;;  %v5731_v47 = vpop.f32.mrb[127].mxu0  ;;  %v5774_v19 = vpop.f32.mrb[139].mxu1  ;;  %v6035_v17 = vmax.f32 %v5726_v44, 0.0  ;;  %v6037_v31 = vmax.f32 %v5769_v36, 0.0 }
0x2125   :  { %v5732_v3 = vadd.f32 %v5731_v47, %v5455_v37  ;;  %v5775_v34 = vadd.f32 %v5774_v19, %v5463_v23  ;;  %v6036_v59 = vmax.f32 %v5728_v30, 0.0  ;;  %v6038_v26 = vmax.f32 %v5771_v13, 0.0 }
0x2126   :  { %v6051_v51 = vmax.f32 %v5730_v39, 0.0  ;;  %v6053_v14 = vmax.f32 %v5773_v60, 0.0  ;;  %v5483_v12 = vrot.slane %v12134_v21, %v11503_v45  ;;  %v5487_v39 = vrot.slane %v12134_v21, %v11507_v48 }
0x2127   :  { %v6052_v62 = vmax.f32 %v5732_v3, 0.0  ;;  %v6054_v2 = vmax.f32 %v5775_v34, 0.0 }
0x2128   :  { %v6067_v5 = vpack.c.bf16 %v6051_v51, %v6035_v17  ;;  %v6069_v22 = vpack.c.bf16 %v6053_v14, %v6037_v31  ;;  %v12162_v17 = vld [vmem:[#allocation11 + $0x320] sm:$0xff]  ;;  %v12166_v31 = vld [vmem:[#allocation11 + $0x328] sm:$0xff] }
0x2129   :  { %v6068_v8 = vpack.c.bf16 %v6052_v62, %v6036_v59  ;;  %v6070_v41 = vpack.c.bf16 %v6054_v2, %v6038_v26  ;;  %v5811_v15 = vpop.f32.mrb[128].mxu0  ;;  %v5854_v40 = vpop.f32.mrb[140].mxu1  ;;  %v10284_v62 = vcombine.low %v12136_v10, %v12138_v55  ;;  %v10286_v2 = vcombine.low %v12140_v16, %v12142_v57 }
0x212a   :  { %v5812_v38 = vadd.f32 %v5811_v15, %v5467_v43  ;;  %v5855_v37 = vadd.f32 %v5854_v40, %v5475_v9  ;;  %v5813_v23 = vpop.f32.mrb[129].mxu0  ;;  %v5856_v33 = vpop.f32.mrb[141].mxu1  ;;  %v10275_v40 = vcombine.high %v12166_v31, %v12168_v58  ;;  %v5499_v10 = vrot.slane %v12134_v21, %v11513_v50 }
0x212b   :  { %v5814_v44 = vadd.f32 %v5813_v23, %v5471_v24  ;;  %v5857_v36 = vadd.f32 %v5856_v33, %v5479_v35  ;;  %v5815_v25 = vpop.f32.mrb[130].mxu0  ;;  %v5858_v29 = vpop.f32.mrb[142].mxu1  ;;  %6279 = vmatprep.mubr.bf16.mxu0 %v6068_v8  ;;  %6320 = vmatprep.mubr.bf16.mxu1 %v6070_v41 }
0x212c   :  { %v5816_v30 = vadd.f32 %v5815_v25, %v5467_v43  ;;  %v5859_v13 = vadd.f32 %v5858_v29, %v5475_v9  ;;  %v5817_v6 = vpop.f32.mrb[131].mxu0  ;;  %v5860_v63 = vpop.f32.mrb[143].mxu1  ;;  %6280 = vmatmul.mubr.bf16.vlgmr.msra.gmra.mrb[140].mxu0 %v6067_v5  ;;  %6321 = vmatmul.mubr.bf16.vlgmr.msra.gmra.mrb[152].mxu1 %v6069_v22  ;;  %v5495_v43 = vrot.slane %v12134_v21, %v11509_v49  ;;  %v6039_v19 = vmax.f32 %v5812_v38, 0.0 }
0x212d   :  { %v5818_v60 = vadd.f32 %v5817_v6, %v5471_v24  ;;  %v5861_v47 = vadd.f32 %v5860_v63, %v5479_v35  ;;  %6330 = vmatpush1.bf16.xpose.msra.mxu0 %v10268_v7  ;;  %6371 = vmatpush1.bf16.xpose.msra.mxu1 %v10270_v32  ;;  %v6041_v9 = vmax.f32 %v5855_v37, 0.0  ;;  %v12164_v24 = vld [vmem:[#allocation11 + $0x360] sm:$0xff]  ;;  %v6040_v35 = vmax.f32 %v5814_v44, 0.0 }
0x212e   :  { %v6055_v3 = vmax.f32 %v5816_v30, 0.0  ;;  %v6057_v34 = vmax.f32 %v5859_v13, 0.0  ;;  %6331 = vmatprep.subr.bf16.mxu0 %v10285_v27  ;;  %6372 = vmatprep.subr.bf16.mxu1 %v10287_v18  ;;  %v6042_v20 = vmax.f32 %v5857_v36, 0.0  ;;  %v10273_v15 = vcombine.high %v12162_v17, %v12164_v24 }
0x212f   :  { %v6056_v11 = vmax.f32 %v5818_v60, 0.0  ;;  %v6058_v7 = vmax.f32 %v5861_v47, 0.0  ;;  %v5507_v18 = vrot.slane %v12134_v21, %v11519_v53  ;;  %v5503_v44 = vrot.slane %v12134_v21, %v11517_v52 }
0x2130   :  { %v12170_v4 = vpack.c.bf16 %v6055_v3, %v6039_v19  ;;  %v12172_v32 = vpack.c.bf16 %v6057_v34, %v6041_v9  ;;  %v5511_v29 = vrot.slane %v12134_v21, %v11521_v54  ;;  %v5108_v19 = vld [vmem:[#allocation11 + $0x3a0] sm:$0xff]  ;;  %v5109_v3 = vld [vmem:[#allocation11 + $0x3a8] sm:$0xff] }
0x2131   :  { %v6072_v51 = vpack.c.bf16 %v6056_v11, %v6040_v35  ;;  %v6074_v14 = vpack.c.bf16 %v6058_v7, %v6042_v20  ;;  %v5897_v59 = vpop.f32.mrb[132].mxu0  ;;  %v5940_v26 = vpop.f32.mrb[144].mxu1  ;;  %v5117_v34 = vld [vmem:[#allocation11 + $0x3e8] sm:$0xff]  ;;  %v10272_v7 = vcombine.low %v12162_v17, %v12164_v24 }
0x2132   :  { %v5898_v5 = vadd.f32 %v5897_v59, %v5483_v12  ;;  %v5941_v22 = vadd.f32 %v5940_v26, %v5491_v61  ;;  %v5899_v8 = vpop.f32.mrb[133].mxu0  ;;  %v5942_v41 = vpop.f32.mrb[145].mxu1 }
0x2133   :  { %v5900_v38 = vadd.f32 %v5899_v8, %v5487_v39  ;;  %v5943_v37 = vadd.f32 %v5942_v41, %v5495_v43  ;;  %v5901_v23 = vpop.f32.mrb[134].mxu0  ;;  %v5944_v33 = vpop.f32.mrb[146].mxu1  ;;  %6361 = vmatprep.mubr.bf16.mxu0 %v6072_v51  ;;  %6402 = vmatprep.mubr.bf16.mxu1 %v6074_v14 }
0x2134   :  { %v5902_v55 = vadd.f32 %v5901_v23, %v5483_v12  ;;  %v5945_v16 = vadd.f32 %v5944_v33, %v5491_v61  ;;  %v5903_v57 = vpop.f32.mrb[135].mxu0  ;;  %v5946_v27 = vpop.f32.mrb[147].mxu1  ;;  %v6043_v30 = vmax.f32 %v5898_v5, 0.0  ;;  %v6045_v13 = vmax.f32 %v5941_v22, 0.0 }
0x2135   :  { %v5904_v36 = vadd.f32 %v5903_v57, %v5487_v39  ;;  %v5947_v25 = vadd.f32 %v5946_v27, %v5495_v43  ;;  %6332 = vmatpush1.bf16.xpose.msra.mxu0 %v10284_v62  ;;  %6373 = vmatpush1.bf16.xpose.msra.mxu1 %v10286_v2  ;;  %v6044_v61 = vmax.f32 %v5900_v38, 0.0  ;;  %v6046_v63 = vmax.f32 %v5943_v37, 0.0  ;;  %v5116_v43 = vld [vmem:[#allocation11 + $0x3e0] sm:$0xff] }
0x2136   :  { %v6059_v6 = vmax.f32 %v5902_v55, 0.0  ;;  %v6061_v12 = vmax.f32 %v5945_v16, 0.0  ;;  %6411 = vmatprep.subr.bf16.mxu0 %v10273_v15  ;;  %6452 = vmatprep.subr.bf16.mxu1 %v10275_v40  ;;  %v10274_v62 = vcombine.low %v12166_v31, %v12168_v58  ;;  %v10289_v41 = vcombine.high %v5108_v19, %v5116_v43 }
0x2137   :  { %v6060_v60 = vmax.f32 %v5904_v36, 0.0  ;;  %v6062_v47 = vmax.f32 %v5947_v25, 0.0  ;;  %v10291_v15 = vcombine.high %v5109_v3, %v5117_v34  ;;  %v5103_v25 = vld [vmem:[#allocation11 + $0x378] sm:$0xff] }
0x2138   :  { %v12190_v9 = vpack.c.bf16 %v6059_v6, %v6043_v30  ;;  %v12192_v39 = vpack.c.bf16 %v6061_v12, %v6045_v13  ;;  %v10288_v13 = vcombine.low %v5108_v19, %v5116_v43  ;;  %v10290_v6 = vcombine.low %v5109_v3, %v5117_v34  ;;  %v10980_v3 = vld [vmem:[%s12679_s3] sm:$0xff]  }
0x2139   :  { %v6076_v35 = vpack.c.bf16 %v6060_v60, %v6044_v61  ;;  %v6078_v21 = vpack.c.bf16 %v6062_v47, %v6046_v63  ;;  %v5983_v20 = vpop.f32.mrb[136].mxu0  ;;  %v6026_v11 = vpop.f32.mrb[148].mxu1  ;;  %v5110_v63 = vld [vmem:[#allocation11 + $0x3b0] sm:$0xff] }
0x213a   :  { %v5984_v51 = vadd.f32 %v5983_v20, %v5499_v10  ;;  %v6027_v14 = vadd.f32 %v6026_v11, %v5507_v18  ;;  %v5985_v59 = vpop.f32.mrb[137].mxu0  ;;  %v6028_v26 = vpop.f32.mrb[149].mxu1  ;;  %v5118_v60 = vld [vmem:[#allocation11 + $0x3f0] sm:$0xff] }
0x213b   :  { %v5986_v2 = vadd.f32 %v5985_v59, %v5503_v44  ;;  %v6029_v5 = vadd.f32 %v6028_v26, %v5511_v29  ;;  %v5987_v22 = vpop.f32.mrb[138].mxu0  ;;  %v6030_v8 = vpop.f32.mrb[150].mxu1  ;;  %v10293_v11 = vcombine.high %v5110_v63, %v5118_v60  ;;  %v10292_v19 = vcombine.low %v5110_v63, %v5118_v60 }
0x213c   :  { %v5988_v40 = vadd.f32 %v5987_v22, %v5499_v10  ;;  %v6031_v38 = vadd.f32 %v6030_v8, %v5507_v18  ;;  %6362 = vmatmul.mubr.bf16.vlgmr.msra.gmra.mrb[144].mxu0 %v12170_v4  ;;  %6403 = vmatmul.mubr.bf16.vlgmr.msra.gmra.mrb[156].mxu1 %v12172_v32  ;;  %v5989_v17 = vpop.f32.mrb[139].mxu0  ;;  %v6032_v24 = vpop.f32.mrb[151].mxu1  ;;  %v6047_v33 = vmax.f32 %v5984_v51, 0.0  ;;  %v6049_v31 = vmax.f32 %v6027_v14, 0.0  ;;  %v5094_v4 = vld [vmem:[#allocation11 + $0x330] sm:$0xff] }
0x213d   :  { %v5990_v37 = vadd.f32 %v5989_v17, %v5503_v44  ;;  %v6033_v23 = vadd.f32 %v6032_v24, %v5511_v29  ;;  %6412 = vmatpush1.bf16.xpose.msra.mxu0 %v10272_v7  ;;  %6443 = vmatprep.mubr.bf16.mxu0 %v6076_v35  ;;  %v6048_v16 = vmax.f32 %v5986_v2, 0.0  ;;  %v6050_v57 = vmax.f32 %v6029_v5, 0.0  ;;  %v5102_v32 = vld [vmem:[#allocation11 + $0x370] sm:$0xff]  ;;  %v5095_v44 = vld [vmem:[#allocation11 + $0x338] sm:$0xff] }
0x213e   :  { %v6063_v58 = vmax.f32 %v5988_v40, 0.0  ;;  %v6065_v55 = vmax.f32 %v6031_v38, 0.0  ;;  %6453 = vmatpush1.bf16.xpose.msra.mxu1 %v10274_v62  ;;  %6484 = vmatprep.mubr.bf16.mxu1 %v6078_v21  ;;  %v10277_v12 = vcombine.high %v5094_v4, %v5102_v32  ;;  %v10279_v61 = vcombine.high %v5095_v44, %v5103_v25  ;;  %v5111_v35 = vld [vmem:[#allocation11 + $0x3b8] sm:$0xff] }
0x213f   :  { %v6064_v10 = vmax.f32 %v5990_v37, 0.0  ;;  %v6066_v27 = vmax.f32 %v6033_v23, 0.0  ;;  %6413 = vmatprep.subr.bf16.mxu0 %v10289_v41  ;;  %6454 = vmatprep.subr.bf16.mxu1 %v10291_v15  ;;  %v10276_v47 = vcombine.low %v5094_v4, %v5102_v32  ;;  %v5119_v21 = vld [vmem:[#allocation11 + $0x3f8] sm:$0xff]  ;;  %v10278_v20 = vcombine.low %v5095_v44, %v5103_v25 }
0x2140   :  { %v6079_v18 = vpack.c.bf16 %v6063_v58, %v6047_v33  ;;  %v6081_v36 = vpack.c.bf16 %v6065_v55, %v6049_v31  ;;  %v10295_v7 = vcombine.high %v5111_v35, %v5119_v21  ;;  %v10294_v43 = vcombine.low %v5111_v35, %v5119_v21 }
0x2141   :  { %v6080_v29 = vpack.c.bf16 %v6064_v10, %v6048_v16  ;;  %v6082_v30 = vpack.c.bf16 %v6066_v27, %v6050_v57 }
0x2145   :  { %6414 = vmatpush1.bf16.xpose.msra.mxu0 %v10288_v13 }
0x2146   :  { %6455 = vmatpush1.bf16.xpose.msra.mxu1 %v10290_v6  ;;  %6493 = vmatprep.subr.bf16.mxu0 %v10277_v12 }
0x2147   :  { %6534 = vmatprep.subr.bf16.mxu1 %v10279_v61 }
0x214c   :  { %6444 = vmatmul.mubr.bf16.vlgmr.msra.gmra.mrb[148].mxu0 %v12190_v9  ;;  %v10981_v9 = vld [vmem:[%s12679_s3 + $0x8] sm:$0xff]  }
0x214d   :  { %6485 = vmatmul.mubr.bf16.vlgmr.msra.gmra.mrb[160].mxu1 %v12192_v39  ;;  %6494 = vmatpush1.bf16.xpose.msra.mxu0 %v10276_v47  ;;  %v10263_v39 = vld [vmem:[%s12662_s14 + $0x3] ss:$0 sm:$0xff] }
0x214e   :  { %6525 = vmatprep.mubr.bf16.mxu0 %v6080_v29  ;;  %6535 = vmatpush1.bf16.xpose.msra.mxu1 %v10278_v20 }
0x214f   :  { %6566 = vmatprep.mubr.bf16.mxu1 %v6082_v30  ;;  %6495 = vmatprep.subr.bf16.mxu0 %v10293_v11 }
0x2150   :  { %6536 = vmatprep.subr.bf16.mxu1 %v10295_v7 }
0x2155   :  { %6496 = vmatpush1.bf16.xpose.msra.mxu0 %v10292_v19 }
0x2156   :  { %6537 = vmatpush1.bf16.xpose.msra.mxu1 %v10294_v43  ;;  %10721 = vmatprep.subr.bf16.mxu0 %v11160_v1 }
0x2157   :  { %10729 = vmatprep.subr.bf16.mxu1 %v10980_v3 }
0x215c   :  { %6526 = vmatmul.mubr.bf16.vlgmr.msra.gmra.mrb[152].mxu0 %v6079_v18 }
0x215d   :  { %6567 = vmatmul.mubr.bf16.vlgmr.msra.gmra.mrb[164].mxu1 %v6081_v36  ;;  %10725 = vmatprep.mubr.msk.bf16.mxu0 %vm11161_vm0, %v11160_v1 }
0x215e   :  { %10730 = vmatpush3.bf16.msra.mxu1 %v10980_v3 }
0x215f   :  { %10731 = vmatprep.subr.bf16.mxu1 %v10981_v9 }
0x2162   :  { %10732 = vmatpush3.bf16.msra.mxu1 %v10981_v9 }
0x2163   :  { %10743 = vmatprep.subr.bf16.mxu1 %v11160_v1 }
0x21ff   :  { %v6281_v34 = vpop.f32.mrb[140].mxu0  ;;  %v6322_v51 = vpop.f32.mrb[152].mxu1 }
0x2200   :  { %v6282_v14 = vadd.f32 %v10263_v39, %v6281_v34  ;;  %v6283_v59 = vpop.f32.mrb[141].mxu0  ;;  %v6324_v26 = vpop.f32.mrb[153].mxu1 }
0x2201   :  { %v6284_v62 = vpop.f32.mrb[142].mxu0  ;;  %v6325_v2 = vpop.f32.mrb[154].mxu1 }
0x2202   :  { %v6323_v5 = vadd.f32 %v6322_v51, %v6282_v14  ;;  %v6285_v22 = vadd.f32 %v10263_v39, %v6284_v62  ;;  %v6286_v8 = vpop.f32.mrb[143].mxu0  ;;  %v6327_v41 = vpop.f32.mrb[155].mxu1 }
0x2203   :  { %v10843_v41 = vld [vmem:[#allocation7 + $0x40] sm:$0xff]  }
0x2204   :  { %v6326_v15 = vadd.f32 %v6325_v2, %v6285_v22  ;;  %10722 = vmatpush3.bf16.msra.mxu0 %v10843_v41 }
0x2205   :  { %10723 = vmatprep.subr.bf16.mxu0 %v11160_v1 }
0x220f   :  { %v6363_v40 = vpop.f32.mrb[144].mxu0  ;;  %v6404_v38 = vpop.f32.mrb[156].mxu1 }
0x2210   :  { %v6364_v17 = vadd.f32 %v6363_v40, %v6323_v5  ;;  %v6365_v24 = vpop.f32.mrb[145].mxu0  ;;  %v6406_v37 = vpop.f32.mrb[157].mxu1 }
0x2211   :  { %v6366_v23 = vpop.f32.mrb[146].mxu0  ;;  %v6407_v33 = vpop.f32.mrb[158].mxu1 }
0x2212   :  { %v6405_v31 = vadd.f32 %v6404_v38, %v6364_v17  ;;  %v6367_v58 = vadd.f32 %v6366_v23, %v6326_v15  ;;  %v6368_v55 = vpop.f32.mrb[147].mxu0  ;;  %v6409_v16 = vpop.f32.mrb[159].mxu1  ;;  %v10982_v15 = vld [vmem:[#allocation2] sm:$0xf] }
0x2214   :  { %v6408_v57 = vadd.f32 %v6407_v33, %v6367_v58 }
0x221f   :  { %v6445_v10 = vpop.f32.mrb[148].mxu0 }
0x2220   :  { %v6446_v27 = vadd.f32 %v6445_v10, %v6405_v31  ;;  %v6486_v4 = vpop.f32.mrb[160].mxu1  ;;  %v6447_v32 = vpop.f32.mrb[149].mxu0  ;;  %v10296_v31 = vld [vmem:[%s12663_s15 + $0x3] ss:$0 sm:$0xff] }
0x2221   :  { %v6488_v18 = vpop.f32.mrb[161].mxu1  ;;  %v6448_v36 = vpop.f32.mrb[150].mxu0  ;;  %v10297_v10 = vld [vmem:[%s12664_s16 + $0x3] ss:$0 sm:$0xff] }
0x2222   :  { %v6487_v44 = vadd.f32 %v6486_v4, %v6446_v27  ;;  %v6449_v25 = vadd.f32 %v6448_v36, %v6408_v57  ;;  %v6489_v29 = vpop.f32.mrb[162].mxu1  ;;  %v6450_v30 = vpop.f32.mrb[151].mxu0  ;;  %v10302_v36 = vld [vmem:[%s12654_s6 + $0x4] ss:$0 sm:$0xff] }
0x2223   :  { %v6491_v13 = vpop.f32.mrb[163].mxu1 }
0x2224   :  { %v6490_v6 = vadd.f32 %v6489_v29, %v6449_v25 }
0x222f   :  { %v6527_v12 = vpop.f32.mrb[152].mxu0 }
0x2230   :  { %v6528_v61 = vadd.f32 %v6527_v12, %v6487_v44  ;;  %v6568_v63 = vpop.f32.mrb[164].mxu1  ;;  %v6529_v60 = vpop.f32.mrb[153].mxu0 }
0x2231   :  { %v6570_v47 = vpop.f32.mrb[165].mxu1  ;;  %v6530_v35 = vpop.f32.mrb[154].mxu0 }
0x2232   :  { %v6569_v21 = vadd.f32 %v6568_v63, %v6528_v61  ;;  %v6531_v20 = vadd.f32 %v6530_v35, %v6490_v6  ;;  %v6571_v11 = vpop.f32.mrb[166].mxu1  ;;  %v6532_v7 = vpop.f32.mrb[155].mxu0 }
0x2233   :  { %v6573_v19 = vpop.f32.mrb[167].mxu1 }
0x2234   :  { %v6572_v43 = vadd.f32 %v6571_v11, %v6531_v20  ;;  %v6575_v3 = vadd.f32 %v6569_v21, %v12068_v56 }
0x2236   :  { %v6577_v9 = vsel %vm372_vm4, %v6575_v3, 0.0  ;;  %v6576_v39 = vadd.f32 %v6572_v43, %v12070_v28  ;;  %v10844_v28 = vld [vmem:[#allocation7 + $0x48] sm:$0xff]  }
0x2237   :  { %6578 = vadd.xlane.f32.xlu1 %v6577_v9  ;;  %10724 = vmatpush3.bf16.msra.mxu0 %v10844_v28 }
0x2238   :  { %v6580_v34 = vsel %vm372_vm4, %v6576_v39, 0.0  ;;  %10799 = vmatprep.subr.msk.bf16.mxu0 %vm529_vm5, %v10982_v15 }
0x2239   :  { %6581 = vadd.xlane.f32.xlu0 %v6580_v34 }
0x22c4   :  { %v6579_v51 = vpop.xlane.xlu1 %6578 }
0x22c5   :  { %v6583_v14 = vmul.f32 0.03125, %v6579_v51 }
0x22c6   :  { %v6582_v59 = vpop.xlane.xlu0 %6581 }
0x22c7   :  { %v6585_v26 = vsub.f32 %v6575_v3, %v6583_v14  ;;  %v6584_v62 = vmul.f32 0.03125, %v6582_v59 }
0x22c9   :  { %v6586_v2 = vsub.f32 %v6576_v39, %v6584_v62  ;;  %v6587_v5 = vmul.f32 %v6585_v26, %v6585_v26 }
0x22cb   :  { %v6589_v22 = vsel %vm372_vm4, %v6587_v5, 0.0  ;;  %v6588_v8 = vmul.f32 %v6586_v2, %v6586_v2 }
0x22cc   :  { %6590 = vadd.xlane.f32.xlu1 %v6589_v22 }
0x22cd   :  { %v6592_v56 = vsel %vm372_vm4, %v6588_v8, 0.0 }
0x22ce   :  { %6593 = vadd.xlane.f32.xlu0 %v6592_v56 }
0x2359   :  { %v6591_v40 = vpop.xlane.xlu1 %6590 }
0x235a   :  { %v6595_v38 = vmul.f32 0.03125, %v6591_v40 }
0x235b   :  { %v6594_v17 = vpop.xlane.xlu0 %6593 }
0x235c   :  { %v6597_v24 = vadd.f32 1e-05, %v6595_v38  ;;  %v6596_v37 = vmul.f32 0.03125, %v6594_v17 }
0x235e   :  { %10929 = vrsqrt.f32 %v6597_v24  ;;  %v6598_v23 = vadd.f32 1e-05, %v6596_v37 }
0x2360   :  { %10931 = vrsqrt.f32 %v6598_v23 }
0x2368   :  { %v10930_v33 = vpop.eup %10929 }
0x2369   :  { %v6601_v58 = vmul.f32 %v10930_v33, %v6585_v26 }
0x236a   :  { %v10932_v55 = vpop.eup %10931 }
0x236b   :  { %v6607_v16 = vmul.f32 %v10296_v31, %v6601_v58  ;;  %v6602_v57 = vmul.f32 %v10932_v55, %v6586_v2  ;;  %v10846_v58 = vld [vmem:[#allocation8 + $0x48] sm:$0xff]  }
0x236d   :  { %v6608_v27 = vmul.f32 %v10296_v31, %v6602_v57  ;;  %v12229_v4 = vadd.f32 %v10297_v10, %v6607_v16  ;;  %v10845_v31 = vld [vmem:[#allocation8 + $0x40] sm:$0xff]  }
0x236f   :  { %v12231_v32 = vadd.f32 %v10297_v10, %v6608_v27 }
0x2371   :  { %v6706_v18 = vpack.c.bf16 %v12231_v32, %v12229_v4 }
0x2373   :  { %10726 = vmatmul.mubr.msk.bf16.vlgmr.msra.gmra.mrb[156].mxu0 %vm372_vm4, %v6706_v18 }
0x2374   :  { %10738 = vmatpush3.bf16.msra.mxu0 %v11424_v42 }
0x2446   :  { %v6760_v44 = vpop.f32.mrb[156].mxu0 }
0x2447   :  { %v6761_v25 = vadd.f32 %v10302_v36, %v6760_v44  ;;  %v10727_v29 = vpop.f32.mrb[157].mxu0 }
0x2448   :  { %v6763_v30 = vpop.f32.mrb[158].mxu0 }
0x2449   :  { %v6764_v13 = vadd.f32 %v10302_v36, %v6763_v30  ;;  %6769 = vrot.lane.b32.xlu1 %v6761_v25, %s11163_s21  ;;  %v10728_v6 = vpop.f32.mrb[159].mxu0 }
0x244b   :  { %6771 = vrot.lane.b32.xlu0 %v6764_v13, %s11163_s21 }
0x244d   :  { %6915 = vrot.lane.b32.xlu1 %v6761_v25, %s11153_s30 }
0x2451   :  { %6917 = vrot.lane.b32.xlu1 %v6764_v13, %s11153_s30 }
0x24bb   :  { %v6770_v12 = vpop.permute.xlu1 %6769 }
0x24bc   :  { %v6775_v63 = vmul.f32 %v6770_v12, %v6761_v25  ;;  %v6777_v60 = vmul.f32 %v6770_v12, %v6764_v13  ;;  %v10310_v12 = vld [vmem:[%s12656_s8 + $0x4] ss:$0 sm:$0xff] }
0x24bd   :  { %v6772_v61 = vpop.permute.xlu0 %6771 }
0x24be   :  { %v6776_v47 = vmul.f32 %v6772_v61, %v6761_v25  ;;  %v6778_v35 = vmul.f32 %v6772_v61, %v6764_v13 }
0x24bf   :  { %v6916_v55 = vpop.permute.xlu1 %6915 }
0x24c0   :  { %v6779_v21 = vpack.c.bf16 %v6776_v47, %v6775_v63  ;;  %v6780_v20 = vpack.c.bf16 %v6778_v35, %v6777_v60 }
0x24c2   :  { %10733 = vmatprep.mubr.msk.bf16.mxu1 %vm372_vm4, %v6779_v21 }
0x24c3   :  { %10734 = vmatmul.mubr.msk.bf16.vlgmr.msra.gmra.mrb[168].mxu1 %vm372_vm4, %v6780_v20  ;;  %v6918_v10 = vpop.permute.xlu1 %6917 }
0x24c4   :  { %10747 = vmatprep.mubr.msk.bf16.mxu1 %vm11161_vm0, %v11160_v1  ;;  %10744 = vmatpush3.bf16.msra.mxu1 %v10845_v31  ;;  %v6640_v31 = vld [vmem:[#allocation10 + $0x450] sm:$0xff] }
0x24c5   :  { %10745 = vmatprep.subr.bf16.mxu1 %v11160_v1 }
0x24c8   :  { %10746 = vmatpush3.bf16.msra.mxu1 %v10846_v58  ;;  %v6633_v58 = vld [vmem:[#allocation10 + $0x418] sm:$0xff] }
0x2596   :  { %v10735_v11 = vpop.f32.mrb[168].mxu1 }
0x2597   :  { %v6821_v7 = vpop.f32.mrb[169].mxu1 }
0x2598   :  { %v10736_v19 = vpop.f32.mrb[170].mxu1 }
0x2599   :  { %v6847_v43 = vmax.f32 %v10735_v11, %v10736_v19  ;;  %v6824_v3 = vpop.f32.mrb[171].mxu1 }
0x259a   :  { %v6836_v9 = vmax.f32 %v6821_v7, %v6824_v3 }
0x259b   :  { %v6848_v39 = vsub.f32 %v10735_v11, %v6847_v43  ;;  %v6851_v34 = vsub.f32 %v10736_v19, %v6847_v43 }
0x259c   :  { %v6837_v51 = vsub.f32 %v6821_v7, %v6836_v9  ;;  %v6840_v14 = vsub.f32 %v6824_v3, %v6836_v9 }
0x259d   :  { %v6849_v59 = vmul.f32 1.442695, %v6848_v39  ;;  %v6852_v26 = vmul.f32 1.442695, %v6851_v34 }
0x259e   :  { %v6838_v62 = vmul.f32 1.442695, %v6837_v51  ;;  %v6841_v2 = vmul.f32 1.442695, %v6840_v14 }
0x259f   :  { %10933 = vpow2.f32 %v6849_v59 }
0x25a0   :  { %10935 = vpow2.f32 %v6852_v26 }
0x25a1   :  { %10937 = vpow2.f32 %v6838_v62  ;;  %v6630_v62 = vld [vmem:[#allocation10 + $0x400] sm:$0xff] }
0x25a2   :  { %10939 = vpow2.f32 %v6841_v2  ;;  %v6631_v2 = vld [vmem:[#allocation10 + $0x408] sm:$0xff] }
0x25a9   :  { %v10934_v5 = vpop.eup %10933 }
0x25aa   :  { %v10936_v22 = vpop.eup %10935 }
0x25ab   :  { %v10938_v8 = vpop.eup %10937  ;;  %v6854_v56 = vadd.f32 %v10936_v22, %v10934_v5 }
0x25ac   :  { %v10940_v41 = vpop.eup %10939 }
0x25ad   :  { %10941 = vrcp.f32 %v6854_v56  ;;  %v6843_v28 = vadd.f32 %v10940_v41, %v10938_v8 }
0x25af   :  { %10943 = vrcp.f32 %v6843_v28  ;;  %v6646_v28 = vld [vmem:[#allocation10 + $0x480] sm:$0xff] }
0x25b7   :  { %v10942_v15 = vpop.eup %10941 }
0x25b8   :  { %v6857_v40 = vmul.f32 %v10942_v15, %v10936_v22  ;;  %v6856_v38 = vmul.f32 %v10942_v15, %v10934_v5  ;;  %v6639_v22 = vld [vmem:[#allocation10 + $0x448] sm:$0xff]  ;;  %v6654_v15 = vld [vmem:[#allocation10 + $0x4c0] sm:$0xff] }
0x25b9   :  { %v10944_v17 = vpop.eup %10943  ;;  %v10318_v56 = vcombine.low %v6631_v2, %v6639_v22 }
0x25ba   :  { %v6845_v24 = vmul.f32 %v10944_v17, %v10938_v8  ;;  %v6846_v37 = vmul.f32 %v10944_v17, %v10940_v41  ;;  %v6859_v23 = vpack.c.bf16 %v6857_v40, %v6856_v38  ;;  %v10319_v41 = vcombine.high %v6631_v2, %v6639_v22  ;;  %v6647_v40 = vld [vmem:[#allocation10 + $0x488] sm:$0xff]  ;;  %v6650_v2 = vld [vmem:[#allocation10 + $0x4a0] sm:$0xff] }
0x25bb   :  { %v10333_v38 = vcombine.high %v6646_v28, %v6654_v15  ;;  %v6655_v17 = vld [vmem:[#allocation10 + $0x4c8] sm:$0xff] }
0x25bc   :  { %v6858_v33 = vpack.c.bf16 %v6846_v37, %v6845_v24  ;;  %7317 = vmatprep.subr.bf16.mxu1 %v10319_v41  ;;  %v10332_v24 = vcombine.low %v6646_v28, %v6654_v15  ;;  %v10334_v37 = vcombine.low %v6647_v40, %v6655_v17  ;;  %v6651_v22 = vld [vmem:[#allocation10 + $0x4a8] sm:$0xff] }
0x25be   :  { %10739 = vmatprep.mubr.msk.bf16.mxu0 %vm522_vm6, %v6858_v33  ;;  %v6632_v33 = vld [vmem:[#allocation10 + $0x410] sm:$0xff] }
0x25bf   :  { %10740 = vmatmul.mubr.msk.bf16.vlgmr.msra.gmra.mrb[160].mxu0 %vm522_vm6, %v6859_v23  ;;  %v10335_v23 = vcombine.high %v6647_v40, %v6655_v17  ;;  %v6636_v40 = vld [vmem:[#allocation10 + $0x430] sm:$0xff]  ;;  %v6637_v17 = vld [vmem:[#allocation10 + $0x438] sm:$0xff] }
0x25c0   :  { %7306 = vmatprep.mubr.bf16.mxu0 %v11159_v0 }
0x2692   :  { %v10741_v16 = vpop.f32.mrb[160].mxu0 }
0x2693   :  { %v6900_v57 = vpop.f32.mrb[161].mxu0  ;;  %v6923_v18 = vmul.f32 %v10741_v16, %v6916_v55  ;;  %v6641_v16 = vld [vmem:[#allocation10 + $0x458] sm:$0xff] }
0x2694   :  { %v10742_v27 = vpop.f32.mrb[162].mxu0  ;;  %v6921_v25 = vmul.f32 %v6916_v55, %v6900_v57  ;;  %v10321_v55 = vcombine.high %v6632_v33, %v6640_v31  ;;  %v10320_v57 = vcombine.low %v6632_v33, %v6640_v31 }
0x2695   :  { %v6924_v36 = vmul.f32 %v10742_v27, %v6918_v10  ;;  %v6903_v44 = vpop.f32.mrb[163].mxu0  ;;  %v10323_v27 = vcombine.high %v6633_v58, %v6641_v16 }
0x2696   :  { %v6922_v29 = vmul.f32 %v6918_v10, %v6903_v44  ;;  %v10322_v10 = vcombine.low %v6633_v58, %v6641_v16  ;;  %v6652_v58 = vld [vmem:[#allocation10 + $0x4b0] sm:$0xff]  ;;  %v6653_v16 = vld [vmem:[#allocation10 + $0x4b8] sm:$0xff] }
0x2697   :  { %v6926_v30 = vadd.f32 %v6924_v36, %v6923_v18 }
0x2698   :  { %v6925_v13 = vadd.f32 %v6922_v29, %v6921_v25 }
0x269a   :  { %v6927_v6 = vpack.c.bf16 %v6926_v30, %v6925_v13 }
0x269c   :  { %10748 = vmatmul.mubr.msk.bf16.vlgmr.msra.gmra.mrb[172].mxu1 %vm372_vm4, %v6927_v6 }
0x269d   :  { %7349 = vmatprep.mubr.bf16.mxu1 %v11159_v0  ;;  %7318 = vmatpush1.bf16.msra.mxu1 %v10318_v56 }
0x269e   :  { %7319 = vmatprep.subr.bf16.mxu1 %v10335_v23 }
0x26a1   :  { %7320 = vmatpush1.bf16.msra.mxu1 %v10334_v37 }
0x26a2   :  { %7403 = vmatprep.subr.bf16.mxu1 %v10323_v27 }
0x276f   :  { %v6981_v61 = vpop.f32.mrb[172].mxu1 }
0x2770   :  { %v6982_v63 = vadd.f32 %v10310_v12, %v6981_v61  ;;  %v10749_v60 = vpop.f32.mrb[173].mxu1 }
0x2771   :  { %v6984_v47 = vpop.f32.mrb[174].mxu1 }
0x2772   :  { %v6985_v35 = vadd.f32 %v10310_v12, %v6984_v47  ;;  %v10750_v21 = vpop.f32.mrb[175].mxu1  ;;  %v6988_v20 = vadd.f32 %v6982_v63, %v12229_v4  ;;  %v10314_v12 = vld [vmem:[%s12657_s9 + $0x4] ss:$0 sm:$0xff] }
0x2773   :  { %v10315_v47 = vld [vmem:[%s12658_s10 + $0x4] ss:$0 sm:$0xff]  ;;  %v6648_v21 = vld [vmem:[#allocation10 + $0x490] sm:$0xff] }
0x2774   :  { %v6990_v11 = vsel %vm372_vm4, %v6988_v20, 0.0  ;;  %v6989_v7 = vadd.f32 %v6985_v35, %v12231_v32  ;;  %v6638_v32 = vld [vmem:[#allocation10 + $0x440] sm:$0xff] }
0x2775   :  { %6991 = vadd.xlane.f32.xlu0 %v6990_v11  ;;  %v10317_v5 = vcombine.high %v6630_v62, %v6638_v32  ;;  %v10316_v8 = vcombine.low %v6630_v62, %v6638_v32  ;;  %v6649_v11 = vld [vmem:[#allocation10 + $0x498] sm:$0xff] }
0x2776   :  { %v6993_v19 = vsel %vm372_vm4, %v6989_v7, 0.0 }
0x2777   :  { %6994 = vadd.xlane.f32.xlu1 %v6993_v19  ;;  %7274 = vmatprep.subr.bf16.mxu0 %v10317_v5  ;;  %v6658_v5 = vld [vmem:[#allocation10 + $0x4e0] sm:$0xff] }
0x2778   :  { %7275 = vmatpush1.bf16.msra.mxu0 %v10316_v8  ;;  %v6659_v8 = vld [vmem:[#allocation10 + $0x4e8] sm:$0xff]  ;;  %v10341_v28 = vcombine.high %v6650_v2, %v6658_v5  ;;  %v10340_v37 = vcombine.low %v6650_v2, %v6658_v5 }
0x2779   :  { %7276 = vmatprep.subr.bf16.mxu0 %v10333_v38  ;;  %v10343_v15 = vcombine.high %v6651_v22, %v6659_v8  ;;  %v6644_v38 = vld [vmem:[#allocation10 + $0x470] sm:$0xff]  ;;  %v10342_v23 = vcombine.low %v6651_v22, %v6659_v8 }
0x277a   :  { %v10329_v33 = vcombine.high %v6636_v40, %v6644_v38  ;;  %v10299_v2 = vld [vmem:[%s12660_s12 + $0x4] ss:$8 sm:$0xf0] }
0x277c   :  { %7277 = vmatpush1.bf16.msra.mxu0 %v10332_v24  ;;  %v6645_v24 = vld [vmem:[#allocation10 + $0x478] sm:$0xff] }
0x277d   :  { %7360 = vmatprep.subr.bf16.mxu0 %v10321_v55  ;;  %v10331_v31 = vcombine.high %v6637_v17, %v6645_v24  ;;  %v6660_v55 = vld [vmem:[#allocation10 + $0x4f0] sm:$0xff]  ;;  %v10330_v27 = vcombine.low %v6637_v17, %v6645_v24 }
0x2802   :  { %v6992_v43 = vpop.xlane.xlu0 %6991 }
0x2803   :  { %v6996_v3 = vmul.f32 0.03125, %v6992_v43 }
0x2804   :  { %v6995_v9 = vpop.xlane.xlu1 %6994 }
0x2805   :  { %v6998_v39 = vsub.f32 %v6988_v20, %v6996_v3  ;;  %v6997_v34 = vmul.f32 0.03125, %v6995_v9  ;;  %v6656_v20 = vld [vmem:[#allocation10 + $0x4d0] sm:$0xff] }
0x2806   :  { %v10337_v9 = vcombine.high %v6648_v21, %v6656_v20 }
0x2807   :  { %v6999_v51 = vsub.f32 %v6989_v7, %v6997_v34  ;;  %v7000_v14 = vmul.f32 %v6998_v39, %v6998_v39  ;;  %v6657_v7 = vld [vmem:[#allocation10 + $0x4d8] sm:$0xff]  ;;  %v6634_v34 = vld [vmem:[#allocation10 + $0x420] sm:$0xff] }
0x2809   :  { %v7002_v59 = vsel %vm372_vm4, %v7000_v14, 0.0  ;;  %v7001_v26 = vmul.f32 %v6999_v51, %v6999_v51  ;;  %v6635_v14 = vld [vmem:[#allocation10 + $0x428] sm:$0xff] }
0x280a   :  { %7003 = vadd.xlane.f32.xlu0 %v7002_v59  ;;  %v6643_v59 = vld [vmem:[#allocation10 + $0x468] sm:$0xff] }
0x280b   :  { %v7005_v4 = vsel %vm372_vm4, %v7001_v26, 0.0  ;;  %v10336_v26 = vcombine.low %v6648_v21, %v6656_v20  ;;  %v10327_v32 = vcombine.high %v6635_v14, %v6643_v59  ;;  %v10326_v41 = vcombine.low %v6635_v14, %v6643_v59  ;;  %v6688_v21 = vld [vmem:[#allocation11 + $0x488] sm:$0xff]  ;;  %v12307_v59 = vld [vmem:[#allocation11 + $0x458] sm:$0xff] }
0x280e   :  { %7006 = vadd.xlane.f32.xlu0 %v7005_v4  ;;  %v10338_v4 = vcombine.low %v6649_v11, %v6657_v7 }
0x2897   :  { %v7004_v18 = vpop.xlane.xlu0 %7003 }
0x2898   :  { %v7008_v36 = vmul.f32 0.03125, %v7004_v18  ;;  %v10345_v18 = vcombine.high %v6652_v58, %v6660_v55 }
0x289a   :  { %v7010_v44 = vadd.f32 1e-05, %v7008_v36 }
0x289b   :  { %v7007_v25 = vpop.xlane.xlu0 %7006 }
0x289c   :  { %10945 = vrsqrt.f32 %v7010_v44  ;;  %v7009_v29 = vmul.f32 0.03125, %v7007_v25  ;;  %v6671_v44 = vld [vmem:[#allocation11 + $0x400] sm:$0xff] }
0x289d   :  { %v6679_v25 = vld [vmem:[#allocation11 + $0x440] sm:$0xff] }
0x289e   :  { %v7011_v30 = vadd.f32 1e-05, %v7009_v29  ;;  %v6672_v29 = vld [vmem:[#allocation11 + $0x408] sm:$0xff] }
0x28a0   :  { %10947 = vrsqrt.f32 %v7011_v30  ;;  %v6680_v30 = vld [vmem:[#allocation11 + $0x448] sm:$0xff] }
0x28a6   :  { %v10946_v13 = vpop.eup %10945 }
0x28a7   :  { %v7014_v6 = vmul.f32 %v10946_v13, %v6998_v39  ;;  %v10339_v39 = vcombine.high %v6649_v11, %v6657_v7  ;;  %v10344_v13 = vcombine.low %v6652_v58, %v6660_v55  ;;  %v6696_v11 = vld [vmem:[#allocation11 + $0x4c8] sm:$0xff] }
0x28a9   :  { %v7020_v63 = vmul.f32 %v10314_v12, %v7014_v6 }
0x28aa   :  { %v10948_v61 = vpop.eup %10947 }
0x28ab   :  { %v7015_v60 = vmul.f32 %v10948_v61, %v6999_v51  ;;  %v12269_v19 = vadd.f32 %v10315_v47, %v7020_v63  ;;  %v6642_v51 = vld [vmem:[#allocation10 + $0x460] sm:$0xff]  ;;  %v10360_v61 = vcombine.high %v6672_v29, %v6680_v30  ;;  %v10357_v63 = vcombine.low %v6671_v44, %v6679_v25 }
0x28ac   :  { %v10325_v62 = vcombine.high %v6634_v34, %v6642_v51  ;;  %v10324_v56 = vcombine.low %v6634_v34, %v6642_v51  ;;  %v12299_v34 = vld [vmem:[#allocation11 + $0x410] sm:$0xff] }
0x28ad   :  { %v7021_v35 = vmul.f32 %v10314_v12, %v7015_v60  ;;  %v10358_v12 = vcombine.high %v6671_v44, %v6679_v25  ;;  %v10359_v60 = vcombine.low %v6672_v29, %v6680_v30  ;;  %v12301_v51 = vld [vmem:[#allocation11 + $0x450] sm:$0xff] }
0x28ae   :  { %v10362_v14 = vcombine.high %v12299_v34, %v12301_v51 }
0x28af   :  { %v12271_v43 = vadd.f32 %v10315_v47, %v7021_v35  ;;  %v6687_v47 = vld [vmem:[#allocation11 + $0x480] sm:$0xff] }
0x28b0   :  { %v6695_v35 = vld [vmem:[#allocation11 + $0x4c0] sm:$0xff] }
0x28b1   :  { %v12275_v3 = vpack.c.bf16 %v12271_v43, %v12269_v19  ;;  %v10374_v20 = vcombine.high %v6687_v47, %v6695_v35  ;;  %v10373_v7 = vcombine.low %v6687_v47, %v6695_v35  ;;  %v12339_v47 = vld [vmem:[#allocation11 + $0x4d0] sm:$0xff] }
0x28b3   :  { %10348 = vmatmul.mubr.msk.bf16.vlgmr.msra.gmra.mrb[164].mxu0 %vm372_vm4, %v12275_v3  ;;  %10349 = vmatmul.mubr.msk.bf16.vlgmr.msra.gmra.mrb[176].mxu1 %vm372_vm4, %v12275_v3 }
0x28b4   :  { %7361 = vmatpush1.bf16.msra.mxu0 %v10320_v57  ;;  %7404 = vmatpush1.bf16.msra.mxu1 %v10322_v10  ;;  %v6661_v57 = vld [vmem:[#allocation10 + $0x4f8] sm:$0xff]  ;;  %v10328_v10 = vcombine.low %v6636_v40, %v6644_v38 }
0x28b5   :  { %7362 = vmatprep.subr.bf16.mxu0 %v10337_v9  ;;  %7405 = vmatprep.subr.bf16.mxu1 %v10339_v39  ;;  %v10347_v36 = vcombine.high %v6653_v16, %v6661_v57  ;;  %v10346_v6 = vcombine.low %v6653_v16, %v6661_v57  ;;  %v10375_v9 = vcombine.low %v6688_v21, %v6696_v11  ;;  %v10300_v40 = vld [vmem:[%s12660_s12 + $0x44] ss:$8 sm:$0xf] }
0x28b6   :  { %7392 = vmatprep.mubr.bf16.mxu0 %v11159_v0  ;;  %7435 = vmatprep.mubr.bf16.mxu1 %v11159_v0  ;;  %v10376_v39 = vcombine.high %v6688_v21, %v6696_v11 }
0x28b8   :  { %7363 = vmatpush1.bf16.msra.mxu0 %v10336_v26  ;;  %7406 = vmatpush1.bf16.msra.mxu1 %v10338_v4  ;;  %v10361_v26 = vcombine.low %v12299_v34, %v12301_v51 }
0x28b9   :  { %7446 = vmatprep.subr.bf16.mxu0 %v10325_v62  ;;  %7489 = vmatprep.subr.bf16.mxu1 %v10327_v32  ;;  %v10298_v32 = vld [vmem:[%s12660_s12 + $0x4] ss:$8 sm:$0xf] }
0x28ba   :  { %v6665_v5 = vor.u32 %v10299_v2, %v10298_v32 }
0x28bb   :  { %10350 = vmatmul.mubr.msk.bf16.vlgmr.msra.gmra.mrb[168].mxu0 %vm372_vm4, %v12275_v3  ;;  %10351 = vmatmul.mubr.msk.bf16.vlgmr.msra.gmra.mrb[180].mxu1 %vm372_vm4, %v12275_v3 }
0x28bc   :  { %7447 = vmatpush1.bf16.msra.mxu0 %v10324_v56  ;;  %7490 = vmatpush1.bf16.msra.mxu1 %v10326_v41  ;;  %v7034_v22 = vrot.slane %v6665_v5, %v11503_v45  ;;  %v7042_v8 = vrot.slane %v6665_v5, %v11505_v46  ;;  %v7038_v56 = vrot.slane %v6665_v5, %v11507_v48 }
0x28bd   :  { %7448 = vmatprep.subr.bf16.mxu0 %v10341_v28  ;;  %7491 = vmatprep.subr.bf16.mxu1 %v10343_v15  ;;  %v7046_v41 = vrot.slane %v6665_v5, %v11509_v49  ;;  %v7050_v16 = vrot.slane %v6665_v5, %v11513_v50  ;;  %v7054_v44 = vrot.slane %v6665_v5, %v11517_v52 }
0x28be   :  { %7478 = vmatprep.mubr.bf16.mxu0 %v11159_v0  ;;  %7521 = vmatprep.mubr.bf16.mxu1 %v11159_v0  ;;  %v7062_v30 = vrot.slane %v6665_v5, %v11521_v54 }
0x28c0   :  { %7449 = vmatpush1.bf16.msra.mxu0 %v10340_v37  ;;  %7492 = vmatpush1.bf16.msra.mxu1 %v10342_v23  ;;  %v10301_v23 = vld [vmem:[%s12660_s12 + $0x44] ss:$8 sm:$0xf0] }
0x28c1   :  { %7532 = vmatprep.subr.bf16.mxu0 %v10329_v33  ;;  %7575 = vmatprep.subr.bf16.mxu1 %v10331_v31 }
0x28c3   :  { %10352 = vmatmul.mubr.msk.bf16.vlgmr.msra.gmra.mrb[172].mxu0 %vm372_vm4, %v12275_v3  ;;  %10353 = vmatmul.mubr.msk.bf16.vlgmr.msra.gmra.mrb[184].mxu1 %vm372_vm4, %v12275_v3 }
0x28c4   :  { %7533 = vmatpush1.bf16.msra.mxu0 %v10328_v10  ;;  %7576 = vmatpush1.bf16.msra.mxu1 %v10330_v27 }
0x28c5   :  { %7534 = vmatprep.subr.bf16.mxu0 %v10345_v18  ;;  %7577 = vmatprep.subr.bf16.mxu1 %v10347_v36  ;;  %v7058_v36 = vrot.slane %v6665_v5, %v11519_v53 }
0x28c6   :  { %7564 = vmatprep.mubr.bf16.mxu0 %v11159_v0  ;;  %7607 = vmatprep.mubr.bf16.mxu1 %v11159_v0 }
0x28c8   :  { %7535 = vmatpush1.bf16.msra.mxu0 %v10344_v13  ;;  %7578 = vmatpush1.bf16.msra.mxu1 %v10346_v6  ;;  %v12335_v13 = vor.u32 %v10301_v23, %v10300_v40 }
0x28c9   :  { %7830 = vmatprep.subr.bf16.mxu0 %v10358_v12  ;;  %7871 = vmatprep.subr.bf16.mxu1 %v10360_v61 }
0x28ca   :  { %v7074_v23 = vrot.slane %v12335_v13, %v11505_v46 }
0x28cb   :  { %10354 = vmatmul.mubr.msk.bf16.vlgmr.msra.gmra.mrb[176].mxu0 %vm372_vm4, %v12275_v3  ;;  %10355 = vmatmul.mubr.msk.bf16.vlgmr.msra.gmra.mrb[188].mxu1 %vm372_vm4, %v12275_v3  ;;  %v12303_v3 = vld [vmem:[#allocation11 + $0x418] sm:$0xff] }
0x28cc   :  { %v10363_v4 = vcombine.low %v12303_v3, %v12307_v59  ;;  %v10364_v62 = vcombine.high %v12303_v3, %v12307_v59  ;;  %v12369_v3 = vld [vmem:[#allocation11 + $0x468] sm:$0xff] }
0x28d1   :  { %7831 = vmatpush1.bf16.xpose.msra.mxu0 %v10357_v63  ;;  %7872 = vmatpush1.bf16.xpose.msra.mxu1 %v10359_v60  ;;  %v12337_v60 = vld [vmem:[#allocation11 + $0x490] sm:$0xff] }
0x28d2   :  { %7832 = vmatprep.subr.bf16.mxu0 %v10374_v20  ;;  %7873 = vmatprep.subr.bf16.mxu1 %v10376_v39 }
0x28d9   :  { %7833 = vmatpush1.bf16.xpose.msra.mxu0 %v10373_v7  ;;  %7874 = vmatpush1.bf16.xpose.msra.mxu1 %v10375_v9  ;;  %v12341_v7 = vld [vmem:[#allocation11 + $0x498] sm:$0xff] }
0x28da   :  { %7912 = vmatprep.subr.bf16.mxu0 %v10362_v14  ;;  %7953 = vmatprep.subr.bf16.mxu1 %v10364_v62  ;;  %v12343_v9 = vld [vmem:[#allocation11 + $0x4d8] sm:$0xff] }
0x28db   :  { %v10380_v40 = vcombine.high %v12341_v7, %v12343_v9 }
0x2986   :  { %v7308_v28 = vpop.f32.mrb[164].mxu0  ;;  %v7351_v15 = vpop.f32.mrb[176].mxu1 }
0x2987   :  { %v7309_v38 = vadd.f32 %v7308_v28, %v7034_v22  ;;  %v7352_v17 = vadd.f32 %v7351_v15, %v7042_v8  ;;  %v7310_v24 = vpop.f32.mrb[165].mxu0  ;;  %v7353_v37 = vpop.f32.mrb[177].mxu1  ;;  %v10378_v15 = vcombine.high %v12337_v60, %v12339_v47 }
0x2988   :  { %v7311_v33 = vadd.f32 %v7310_v24, %v7038_v56  ;;  %v7354_v31 = vadd.f32 %v7353_v37, %v7046_v41  ;;  %v7312_v58 = vpop.f32.mrb[166].mxu0  ;;  %v7355_v55 = vpop.f32.mrb[178].mxu1 }
0x2989   :  { %v7313_v57 = vadd.f32 %v7312_v58, %v7034_v22  ;;  %v7356_v10 = vadd.f32 %v7355_v55, %v7042_v8  ;;  %v7314_v27 = vpop.f32.mrb[167].mxu0  ;;  %v7357_v18 = vpop.f32.mrb[179].mxu1  ;;  %v7618_v6 = vmax.f32 %v7309_v38, 0.0  ;;  %v7620_v12 = vmax.f32 %v7352_v17, 0.0 }
0x298a   :  { %v7315_v25 = vadd.f32 %v7314_v27, %v7038_v56  ;;  %v7358_v29 = vadd.f32 %v7357_v18, %v7046_v41  ;;  %v7619_v35 = vmax.f32 %v7311_v33, 0.0  ;;  %v7621_v21 = vmax.f32 %v7354_v31, 0.0 }
0x298b   :  { %v7634_v61 = vmax.f32 %v7313_v57, 0.0  ;;  %v7636_v63 = vmax.f32 %v7356_v10, 0.0  ;;  %v7066_v22 = vrot.slane %v12335_v13, %v11503_v45  ;;  %v7070_v57 = vrot.slane %v12335_v13, %v11507_v48 }
0x298c   :  { %v7635_v20 = vmax.f32 %v7315_v25, 0.0  ;;  %v7637_v11 = vmax.f32 %v7358_v29, 0.0 }
0x298d   :  { %v7650_v39 = vpack.c.bf16 %v7634_v61, %v7618_v6  ;;  %v7652_v14 = vpack.c.bf16 %v7636_v63, %v7620_v12  ;;  %v12363_v6 = vld [vmem:[#allocation11 + $0x420] sm:$0xff]  ;;  %v12367_v12 = vld [vmem:[#allocation11 + $0x428] sm:$0xff] }
0x298e   :  { %v7651_v62 = vpack.c.bf16 %v7635_v20, %v7619_v35  ;;  %v7653_v32 = vpack.c.bf16 %v7637_v11, %v7621_v21  ;;  %v7394_v2 = vpop.f32.mrb[168].mxu0  ;;  %v7437_v5 = vpop.f32.mrb[180].mxu1  ;;  %v10377_v20 = vcombine.low %v12337_v60, %v12339_v47  ;;  %v10379_v11 = vcombine.low %v12341_v7, %v12343_v9 }
0x298f   :  { %v7395_v8 = vadd.f32 %v7394_v2, %v7050_v16  ;;  %v7438_v56 = vadd.f32 %v7437_v5, %v7058_v36  ;;  %v7396_v41 = vpop.f32.mrb[169].mxu0  ;;  %v7439_v28 = vpop.f32.mrb[181].mxu1  ;;  %v10368_v5 = vcombine.high %v12367_v12, %v12369_v3  ;;  %v7082_v60 = vrot.slane %v12335_v13, %v11513_v50 }
0x2990   :  { %v7397_v38 = vadd.f32 %v7396_v41, %v7054_v44  ;;  %v7440_v17 = vadd.f32 %v7439_v28, %v7062_v30  ;;  %v7398_v24 = vpop.f32.mrb[170].mxu0  ;;  %v7441_v37 = vpop.f32.mrb[182].mxu1  ;;  %7862 = vmatprep.mubr.bf16.mxu0 %v7651_v62  ;;  %7903 = vmatprep.mubr.bf16.mxu1 %v7653_v32 }
0x2991   :  { %v7399_v33 = vadd.f32 %v7398_v24, %v7050_v16  ;;  %v7442_v31 = vadd.f32 %v7441_v37, %v7058_v36  ;;  %v7400_v58 = vpop.f32.mrb[171].mxu0  ;;  %v7443_v55 = vpop.f32.mrb[183].mxu1  ;;  %7863 = vmatmul.mubr.bf16.vlgmr.msra.gmra.mrb[180].mxu0 %v7650_v39  ;;  %7904 = vmatmul.mubr.bf16.vlgmr.msra.gmra.mrb[192].mxu1 %v7652_v14  ;;  %v7078_v16 = vrot.slane %v12335_v13, %v11509_v49  ;;  %v7622_v18 = vmax.f32 %v7395_v8, 0.0 }
0x2992   :  { %v7401_v10 = vadd.f32 %v7400_v58, %v7054_v44  ;;  %v7444_v27 = vadd.f32 %v7443_v55, %v7062_v30  ;;  %7913 = vmatpush1.bf16.xpose.msra.mxu0 %v10361_v26  ;;  %7954 = vmatpush1.bf16.xpose.msra.mxu1 %v10363_v4  ;;  %v7624_v36 = vmax.f32 %v7438_v56, 0.0  ;;  %v12365_v44 = vld [vmem:[#allocation11 + $0x460] sm:$0xff]  ;;  %v7623_v30 = vmax.f32 %v7397_v38, 0.0 }
0x2993   :  { %v7638_v25 = vmax.f32 %v7399_v33, 0.0  ;;  %v7640_v29 = vmax.f32 %v7442_v31, 0.0  ;;  %7914 = vmatprep.subr.bf16.mxu0 %v10378_v15  ;;  %7955 = vmatprep.subr.bf16.mxu1 %v10380_v40  ;;  %v7625_v34 = vmax.f32 %v7440_v17, 0.0  ;;  %v10366_v2 = vcombine.high %v12363_v6, %v12365_v44 }
0x2994   :  { %v7639_v51 = vmax.f32 %v7401_v10, 0.0  ;;  %v7641_v26 = vmax.f32 %v7444_v27, 0.0  ;;  %v7090_v40 = vrot.slane %v12335_v13, %v11519_v53  ;;  %v7086_v38 = vrot.slane %v12335_v13, %v11517_v52 }
0x2995   :  { %v12371_v59 = vpack.c.bf16 %v7638_v25, %v7622_v18  ;;  %v12373_v4 = vpack.c.bf16 %v7640_v29, %v7624_v36  ;;  %v7094_v37 = vrot.slane %v12335_v13, %v11521_v54  ;;  %v6691_v18 = vld [vmem:[#allocation11 + $0x4a0] sm:$0xff]  ;;  %v6692_v25 = vld [vmem:[#allocation11 + $0x4a8] sm:$0xff] }
0x2996   :  { %v7655_v61 = vpack.c.bf16 %v7639_v51, %v7623_v30  ;;  %v7657_v63 = vpack.c.bf16 %v7641_v26, %v7625_v34  ;;  %v7480_v35 = vpop.f32.mrb[172].mxu0  ;;  %v7523_v21 = vpop.f32.mrb[184].mxu1  ;;  %v6700_v29 = vld [vmem:[#allocation11 + $0x4e8] sm:$0xff]  ;;  %v10365_v26 = vcombine.low %v12363_v6, %v12365_v44 }
0x2997   :  { %v7481_v39 = vadd.f32 %v7480_v35, %v7066_v22  ;;  %v7524_v14 = vadd.f32 %v7523_v21, %v7074_v23  ;;  %v7482_v62 = vpop.f32.mrb[173].mxu0  ;;  %v7525_v32 = vpop.f32.mrb[185].mxu1 }
0x2998   :  { %v7483_v8 = vadd.f32 %v7482_v62, %v7070_v57  ;;  %v7526_v56 = vadd.f32 %v7525_v32, %v7078_v16  ;;  %v7484_v41 = vpop.f32.mrb[174].mxu0  ;;  %v7527_v28 = vpop.f32.mrb[186].mxu1  ;;  %7944 = vmatprep.mubr.bf16.mxu0 %v7655_v61  ;;  %7985 = vmatprep.mubr.bf16.mxu1 %v7657_v63 }
0x2999   :  { %v7485_v47 = vadd.f32 %v7484_v41, %v7066_v22  ;;  %v7528_v7 = vadd.f32 %v7527_v28, %v7074_v23  ;;  %v7486_v9 = vpop.f32.mrb[175].mxu0  ;;  %v7529_v15 = vpop.f32.mrb[187].mxu1  ;;  %v7626_v33 = vmax.f32 %v7481_v39, 0.0  ;;  %v7628_v31 = vmax.f32 %v7524_v14, 0.0 }
0x299a   :  { %v7487_v17 = vadd.f32 %v7486_v9, %v7070_v57  ;;  %v7530_v24 = vadd.f32 %v7529_v15, %v7078_v16  ;;  %7915 = vmatpush1.bf16.xpose.msra.mxu0 %v10377_v20  ;;  %7956 = vmatpush1.bf16.xpose.msra.mxu1 %v10379_v11  ;;  %v7627_v23 = vmax.f32 %v7483_v8, 0.0  ;;  %v7629_v55 = vmax.f32 %v7526_v56, 0.0  ;;  %v6699_v16 = vld [vmem:[#allocation11 + $0x4e0] sm:$0xff] }
0x299b   :  { %v7642_v58 = vmax.f32 %v7485_v47, 0.0  ;;  %v7644_v22 = vmax.f32 %v7528_v7, 0.0  ;;  %7994 = vmatprep.subr.bf16.mxu0 %v10366_v2  ;;  %8035 = vmatprep.subr.bf16.mxu1 %v10368_v5  ;;  %v10367_v20 = vcombine.low %v12367_v12, %v12369_v3  ;;  %v10382_v32 = vcombine.high %v6691_v18, %v6699_v16 }
0x299c   :  { %v7643_v10 = vmax.f32 %v7487_v17, 0.0  ;;  %v7645_v27 = vmax.f32 %v7530_v24, 0.0  ;;  %v10384_v2 = vcombine.high %v6692_v25, %v6700_v29  ;;  %v6686_v24 = vld [vmem:[#allocation11 + $0x478] sm:$0xff] }
0x299d   :  { %v12391_v36 = vpack.c.bf16 %v7642_v58, %v7626_v33  ;;  %v12393_v57 = vpack.c.bf16 %v7644_v22, %v7628_v31  ;;  %v10381_v31 = vcombine.low %v6691_v18, %v6699_v16  ;;  %v10383_v58 = vcombine.low %v6692_v25, %v6700_v29  ;;  %v10983_v25 = vld [vmem:[%s12679_s3] sm:$0xff]  }
0x299e   :  { %v7659_v30 = vpack.c.bf16 %v7643_v10, %v7627_v23  ;;  %v7661_v13 = vpack.c.bf16 %v7645_v27, %v7629_v55  ;;  %v7566_v34 = vpop.f32.mrb[176].mxu0  ;;  %v7609_v51 = vpop.f32.mrb[188].mxu1  ;;  %v6693_v55 = vld [vmem:[#allocation11 + $0x4b0] sm:$0xff] }
0x299f   :  { %v7567_v61 = vadd.f32 %v7566_v34, %v7082_v60  ;;  %v7610_v63 = vadd.f32 %v7609_v51, %v7090_v40  ;;  %v7568_v35 = vpop.f32.mrb[177].mxu0  ;;  %v7611_v21 = vpop.f32.mrb[189].mxu1  ;;  %v6701_v10 = vld [vmem:[#allocation11 + $0x4f0] sm:$0xff] }
0x29a0   :  { %v7569_v11 = vadd.f32 %v7568_v35, %v7086_v38  ;;  %v7612_v39 = vadd.f32 %v7611_v21, %v7094_v37  ;;  %v7570_v14 = vpop.f32.mrb[178].mxu0  ;;  %v7613_v62 = vpop.f32.mrb[190].mxu1  ;;  %v10386_v51 = vcombine.high %v6693_v55, %v6701_v10  ;;  %v10385_v18 = vcombine.low %v6693_v55, %v6701_v10 }
0x29a1   :  { %v7571_v5 = vadd.f32 %v7570_v14, %v7082_v60  ;;  %v7614_v8 = vadd.f32 %v7613_v62, %v7090_v40  ;;  %7945 = vmatmul.mubr.bf16.vlgmr.msra.gmra.mrb[184].mxu0 %v12371_v59  ;;  %7986 = vmatmul.mubr.bf16.vlgmr.msra.gmra.mrb[196].mxu1 %v12373_v4  ;;  %v7572_v6 = vpop.f32.mrb[179].mxu0  ;;  %v7615_v44 = vpop.f32.mrb[191].mxu1  ;;  %v7630_v28 = vmax.f32 %v7567_v61, 0.0  ;;  %v7632_v12 = vmax.f32 %v7610_v63, 0.0  ;;  %v6677_v59 = vld [vmem:[#allocation11 + $0x430] sm:$0xff] }
0x29a2   :  { %v7573_v56 = vadd.f32 %v7572_v6, %v7086_v38  ;;  %v7616_v41 = vadd.f32 %v7615_v44, %v7094_v37  ;;  %7995 = vmatpush1.bf16.xpose.msra.mxu0 %v10365_v26  ;;  %8026 = vmatprep.mubr.bf16.mxu0 %v7659_v30  ;;  %v7631_v7 = vmax.f32 %v7569_v11, 0.0  ;;  %v7633_v9 = vmax.f32 %v7612_v39, 0.0  ;;  %v6685_v4 = vld [vmem:[#allocation11 + $0x470] sm:$0xff]  ;;  %v6678_v38 = vld [vmem:[#allocation11 + $0x438] sm:$0xff] }
0x29a3   :  { %v7646_v3 = vmax.f32 %v7571_v5, 0.0  ;;  %v7648_v47 = vmax.f32 %v7614_v8, 0.0  ;;  %8036 = vmatpush1.bf16.xpose.msra.mxu1 %v10367_v20  ;;  %8067 = vmatprep.mubr.bf16.mxu1 %v7661_v13  ;;  %v10370_v22 = vcombine.high %v6677_v59, %v6685_v4  ;;  %v10372_v23 = vcombine.high %v6678_v38, %v6686_v24  ;;  %v6694_v30 = vld [vmem:[#allocation11 + $0x4b8] sm:$0xff] }
0x29a4   :  { %v7647_v60 = vmax.f32 %v7573_v56, 0.0  ;;  %v7649_v15 = vmax.f32 %v7616_v41, 0.0  ;;  %7996 = vmatprep.subr.bf16.mxu0 %v10382_v32  ;;  %8037 = vmatprep.subr.bf16.mxu1 %v10384_v2  ;;  %v10369_v27 = vcombine.low %v6677_v59, %v6685_v4  ;;  %v6702_v13 = vld [vmem:[#allocation11 + $0x4f8] sm:$0xff]  ;;  %v10371_v34 = vcombine.low %v6678_v38, %v6686_v24 }
0x29a5   :  { %v7662_v40 = vpack.c.bf16 %v7646_v3, %v7630_v28  ;;  %v7664_v17 = vpack.c.bf16 %v7648_v47, %v7632_v12  ;;  %v10388_v26 = vcombine.high %v6694_v30, %v6702_v13  ;;  %v10387_v16 = vcombine.low %v6694_v30, %v6702_v13 }
0x29a6   :  { %v7663_v37 = vpack.c.bf16 %v7647_v60, %v7631_v7  ;;  %v7665_v33 = vpack.c.bf16 %v7649_v15, %v7633_v9 }
0x29aa   :  { %7997 = vmatpush1.bf16.xpose.msra.mxu0 %v10381_v31 }
0x29ab   :  { %8038 = vmatpush1.bf16.xpose.msra.mxu1 %v10383_v58  ;;  %8076 = vmatprep.subr.bf16.mxu0 %v10370_v22 }
0x29ac   :  { %8117 = vmatprep.subr.bf16.mxu1 %v10372_v23 }
0x29b1   :  { %8027 = vmatmul.mubr.bf16.vlgmr.msra.gmra.mrb[188].mxu0 %v12391_v36  ;;  %v10984_v36 = vld [vmem:[%s12679_s3 + $0x8] sm:$0xff]  }
0x29b2   :  { %8068 = vmatmul.mubr.bf16.vlgmr.msra.gmra.mrb[200].mxu1 %v12393_v57  ;;  %8077 = vmatpush1.bf16.xpose.msra.mxu0 %v10369_v27  ;;  %v10356_v57 = vld [vmem:[%s12662_s14 + $0x4] ss:$0 sm:$0xff] }
0x29b3   :  { %8108 = vmatprep.mubr.bf16.mxu0 %v7663_v37  ;;  %8118 = vmatpush1.bf16.xpose.msra.mxu1 %v10371_v34 }
0x29b4   :  { %8149 = vmatprep.mubr.bf16.mxu1 %v7665_v33  ;;  %8078 = vmatprep.subr.bf16.mxu0 %v10386_v51 }
0x29b5   :  { %8119 = vmatprep.subr.bf16.mxu1 %v10388_v26 }
0x29ba   :  { %8079 = vmatpush1.bf16.xpose.msra.mxu0 %v10385_v18 }
0x29bb   :  { %8120 = vmatpush1.bf16.xpose.msra.mxu1 %v10387_v16  ;;  %10751 = vmatprep.subr.bf16.mxu0 %v11160_v1 }
0x29bc   :  { %10759 = vmatprep.subr.bf16.mxu1 %v10983_v25 }
0x29c1   :  { %8109 = vmatmul.mubr.bf16.vlgmr.msra.gmra.mrb[192].mxu0 %v7662_v40 }
0x29c2   :  { %8150 = vmatmul.mubr.bf16.vlgmr.msra.gmra.mrb[204].mxu1 %v7664_v17  ;;  %10755 = vmatprep.mubr.msk.bf16.mxu0 %vm11161_vm0, %v11160_v1 }
0x29c3   :  { %10760 = vmatpush3.bf16.msra.mxu1 %v10983_v25 }
0x29c4   :  { %10761 = vmatprep.subr.bf16.mxu1 %v10984_v36 }
0x29c7   :  { %10762 = vmatpush3.bf16.msra.mxu1 %v10984_v36 }
0x29c8   :  { %10773 = vmatprep.subr.bf16.mxu1 %v11160_v1 }
0x2a64   :  { %v7864_v29 = vpop.f32.mrb[180].mxu0  ;;  %v7905_v61 = vpop.f32.mrb[192].mxu1 }
0x2a65   :  { %v7865_v63 = vadd.f32 %v10356_v57, %v7864_v29  ;;  %v7866_v35 = vpop.f32.mrb[181].mxu0  ;;  %v7907_v21 = vpop.f32.mrb[193].mxu1 }
0x2a66   :  { %v7867_v20 = vpop.f32.mrb[182].mxu0  ;;  %v7908_v11 = vpop.f32.mrb[194].mxu1 }
0x2a67   :  { %v7906_v39 = vadd.f32 %v7905_v61, %v7865_v63  ;;  %v7868_v14 = vadd.f32 %v10356_v57, %v7867_v20  ;;  %v7869_v62 = vpop.f32.mrb[183].mxu0  ;;  %v7910_v32 = vpop.f32.mrb[195].mxu1 }
0x2a68   :  { %v10847_v32 = vld [vmem:[#allocation7 + $0x50] sm:$0xff]  }
0x2a69   :  { %v7909_v2 = vadd.f32 %v7908_v11, %v7868_v14  ;;  %10752 = vmatpush3.bf16.msra.mxu0 %v10847_v32 }
0x2a6a   :  { %10753 = vmatprep.subr.bf16.mxu0 %v11160_v1 }
0x2a74   :  { %v7946_v5 = vpop.f32.mrb[184].mxu0  ;;  %v7987_v8 = vpop.f32.mrb[196].mxu1 }
0x2a75   :  { %v7947_v6 = vadd.f32 %v7946_v5, %v7906_v39  ;;  %v7948_v44 = vpop.f32.mrb[185].mxu0  ;;  %v7989_v56 = vpop.f32.mrb[197].mxu1 }
0x2a76   :  { %v7949_v41 = vpop.f32.mrb[186].mxu0  ;;  %v7990_v28 = vpop.f32.mrb[198].mxu1 }
0x2a77   :  { %v7988_v12 = vadd.f32 %v7987_v8, %v7947_v6  ;;  %v7950_v3 = vadd.f32 %v7949_v41, %v7909_v2  ;;  %v7951_v47 = vpop.f32.mrb[187].mxu0  ;;  %v7992_v7 = vpop.f32.mrb[199].mxu1  ;;  %v10985_v2 = vld [vmem:[#allocation2] sm:$0xf] }
0x2a79   :  { %v7991_v9 = vadd.f32 %v7990_v28, %v7950_v3 }
0x2a84   :  { %v8028_v60 = vpop.f32.mrb[188].mxu0 }
0x2a85   :  { %v8029_v15 = vadd.f32 %v8028_v60, %v7988_v12  ;;  %v8069_v59 = vpop.f32.mrb[200].mxu1  ;;  %v8030_v4 = vpop.f32.mrb[189].mxu0  ;;  %v10389_v12 = vld [vmem:[%s12663_s15 + $0x4] ss:$0 sm:$0xff] }
0x2a86   :  { %v8071_v40 = vpop.f32.mrb[201].mxu1  ;;  %v8031_v17 = vpop.f32.mrb[190].mxu0  ;;  %v10390_v60 = vld [vmem:[%s12664_s16 + $0x4] ss:$0 sm:$0xff] }
0x2a87   :  { %v8070_v38 = vadd.f32 %v8069_v59, %v8029_v15  ;;  %v8032_v24 = vadd.f32 %v8031_v17, %v7991_v9  ;;  %v8072_v37 = vpop.f32.mrb[202].mxu1  ;;  %v8033_v33 = vpop.f32.mrb[191].mxu0  ;;  %v10395_v17 = vld [vmem:[%s12654_s6 + $0x5] ss:$0 sm:$0xff] }
0x2a88   :  { %v8074_v31 = vpop.f32.mrb[203].mxu1 }
0x2a89   :  { %v8073_v58 = vadd.f32 %v8072_v37, %v8032_v24 }
0x2a94   :  { %v8110_v22 = vpop.f32.mrb[192].mxu0 }
0x2a95   :  { %v8111_v23 = vadd.f32 %v8110_v22, %v8070_v38  ;;  %v8151_v55 = vpop.f32.mrb[204].mxu1  ;;  %v8112_v10 = vpop.f32.mrb[193].mxu0 }
0x2a96   :  { %v8153_v27 = vpop.f32.mrb[205].mxu1  ;;  %v8113_v30 = vpop.f32.mrb[194].mxu0 }
0x2a97   :  { %v8152_v13 = vadd.f32 %v8151_v55, %v8111_v23  ;;  %v8114_v34 = vadd.f32 %v8113_v30, %v8073_v58  ;;  %v8154_v51 = vpop.f32.mrb[206].mxu1  ;;  %v8115_v26 = vpop.f32.mrb[195].mxu0 }
0x2a98   :  { %v8156_v18 = vpop.f32.mrb[207].mxu1 }
0x2a99   :  { %v8155_v16 = vadd.f32 %v8154_v51, %v8114_v34  ;;  %v8158_v25 = vadd.f32 %v8152_v13, %v12269_v19 }
0x2a9b   :  { %v8160_v36 = vsel %vm372_vm4, %v8158_v25, 0.0  ;;  %v8159_v57 = vadd.f32 %v8155_v16, %v12271_v43  ;;  %v10848_v43 = vld [vmem:[#allocation7 + $0x58] sm:$0xff]  }
0x2a9c   :  { %8161 = vadd.xlane.f32.xlu1 %v8160_v36  ;;  %10754 = vmatpush3.bf16.msra.mxu0 %v10848_v43 }
0x2a9d   :  { %v8163_v29 = vsel %vm372_vm4, %v8159_v57, 0.0  ;;  %10800 = vmatprep.subr.msk.bf16.mxu0 %vm529_vm5, %v10985_v2 }
0x2a9e   :  { %8164 = vadd.xlane.f32.xlu0 %v8163_v29 }
0x2b29   :  { %v8162_v61 = vpop.xlane.xlu1 %8161 }
0x2b2a   :  { %v8166_v63 = vmul.f32 0.03125, %v8162_v61 }
0x2b2b   :  { %v8165_v35 = vpop.xlane.xlu0 %8164 }
0x2b2c   :  { %v8168_v21 = vsub.f32 %v8158_v25, %v8166_v63  ;;  %v8167_v20 = vmul.f32 0.03125, %v8165_v35 }
0x2b2e   :  { %v8169_v11 = vsub.f32 %v8159_v57, %v8167_v20  ;;  %v8170_v39 = vmul.f32 %v8168_v21, %v8168_v21 }
0x2b30   :  { %v8172_v14 = vsel %vm372_vm4, %v8170_v39, 0.0  ;;  %v8171_v62 = vmul.f32 %v8169_v11, %v8169_v11 }
0x2b31   :  { %8173 = vadd.xlane.f32.xlu1 %v8172_v14 }
0x2b32   :  { %v8175_v19 = vsel %vm372_vm4, %v8171_v62, 0.0 }
0x2b33   :  { %8176 = vadd.xlane.f32.xlu0 %v8175_v19 }
0x2bbe   :  { %v8174_v5 = vpop.xlane.xlu1 %8173 }
0x2bbf   :  { %v8178_v8 = vmul.f32 0.03125, %v8174_v5 }
0x2bc0   :  { %v8177_v6 = vpop.xlane.xlu0 %8176 }
0x2bc1   :  { %v8180_v44 = vadd.f32 1e-05, %v8178_v8  ;;  %v8179_v56 = vmul.f32 0.03125, %v8177_v6 }
0x2bc3   :  { %10949 = vrsqrt.f32 %v8180_v44  ;;  %v8181_v41 = vadd.f32 1e-05, %v8179_v56 }
0x2bc5   :  { %10951 = vrsqrt.f32 %v8181_v41 }
0x2bcd   :  { %v10950_v28 = vpop.eup %10949 }
0x2bce   :  { %v8184_v3 = vmul.f32 %v10950_v28, %v8168_v21  ;;  %v10849_v28 = vld [vmem:[#allocation8 + $0x50] sm:$0xff]  }
0x2bcf   :  { %v10952_v47 = vpop.eup %10951 }
0x2bd0   :  { %v8190_v7 = vmul.f32 %v10389_v12, %v8184_v3  ;;  %v8185_v9 = vmul.f32 %v10952_v47, %v8169_v11 }
0x2bd2   :  { %v8191_v15 = vmul.f32 %v10389_v12, %v8185_v9  ;;  %v12430_v59 = vadd.f32 %v10390_v60, %v8190_v7  ;;  %v10850_v12 = vld [vmem:[#allocation8 + $0x58] sm:$0xff]  }
0x2bd4   :  { %v12432_v4 = vadd.f32 %v10390_v60, %v8191_v15 }
0x2bd6   :  { %v8289_v40 = vpack.c.bf16 %v12432_v4, %v12430_v59 }
0x2bd8   :  { %10756 = vmatmul.mubr.msk.bf16.vlgmr.msra.gmra.mrb[196].mxu0 %vm372_vm4, %v8289_v40 }
0x2bd9   :  { %10768 = vmatpush3.bf16.msra.mxu0 %v11424_v42 }
0x2cab   :  { %v8343_v38 = vpop.f32.mrb[196].mxu0 }
0x2cac   :  { %v8344_v24 = vadd.f32 %v10395_v17, %v8343_v38  ;;  %v10757_v37 = vpop.f32.mrb[197].mxu0 }
0x2cad   :  { %v8346_v33 = vpop.f32.mrb[198].mxu0 }
0x2cae   :  { %v8347_v31 = vadd.f32 %v10395_v17, %v8346_v33  ;;  %8352 = vrot.lane.b32.xlu1 %v8344_v24, %s11163_s21  ;;  %v10758_v58 = vpop.f32.mrb[199].mxu0 }
0x2caf   :  { %v10403_v58 = vld [vmem:[%s12656_s8 + $0x5] ss:$0 sm:$0xff] }
0x2cb0   :  { %8354 = vrot.lane.b32.xlu0 %v8347_v31, %s11163_s21 }
0x2cb2   :  { %8498 = vrot.lane.b32.xlu1 %v8344_v24, %s11153_s30 }
0x2cb6   :  { %8500 = vrot.lane.b32.xlu1 %v8347_v31, %s11153_s30 }
0x2d20   :  { %v8353_v22 = vpop.permute.xlu1 %8352 }
0x2d21   :  { %v8358_v23 = vmul.f32 %v8353_v22, %v8344_v24  ;;  %v8360_v55 = vmul.f32 %v8353_v22, %v8347_v31 }
0x2d22   :  { %v8355_v42 = vpop.permute.xlu0 %8354 }
0x2d23   :  { %v8359_v10 = vmul.f32 %v8355_v42, %v8344_v24  ;;  %v8361_v27 = vmul.f32 %v8355_v42, %v8347_v31 }
0x2d24   :  { %v8499_v3 = vpop.permute.xlu1 %8498 }
0x2d25   :  { %v8362_v30 = vpack.c.bf16 %v8359_v10, %v8358_v23  ;;  %v8363_v13 = vpack.c.bf16 %v8361_v27, %v8360_v55 }
0x2d27   :  { %10763 = vmatprep.mubr.msk.bf16.mxu1 %vm372_vm4, %v8362_v30 }
0x2d28   :  { %10764 = vmatmul.mubr.msk.bf16.vlgmr.msra.gmra.mrb[208].mxu1 %vm372_vm4, %v8363_v13  ;;  %v8501_v9 = vpop.permute.xlu1 %8500 }
0x2d29   :  { %10777 = vmatprep.mubr.msk.bf16.mxu1 %vm11161_vm0, %v11160_v1  ;;  %10774 = vmatpush3.bf16.msra.mxu1 %v10849_v28  ;;  %v8216_v28 = vld [vmem:[#allocation10 + $0x518] sm:$0xff] }
0x2d2a   :  { %10775 = vmatprep.subr.bf16.mxu1 %v11160_v1 }
0x2d2d   :  { %10776 = vmatpush3.bf16.msra.mxu1 %v10850_v12 }
0x2dfb   :  { %v10765_v34 = vpop.f32.mrb[208].mxu1 }
0x2dfc   :  { %v8404_v51 = vpop.f32.mrb[209].mxu1 }
0x2dfd   :  { %v10766_v26 = vpop.f32.mrb[210].mxu1 }
0x2dfe   :  { %v8430_v18 = vmax.f32 %v10765_v34, %v10766_v26  ;;  %v8407_v16 = vpop.f32.mrb[211].mxu1 }
0x2dff   :  { %v8419_v25 = vmax.f32 %v8404_v51, %v8407_v16 }
0x2e00   :  { %v8431_v36 = vsub.f32 %v10765_v34, %v8430_v18  ;;  %v8434_v57 = vsub.f32 %v10766_v26, %v8430_v18 }
0x2e01   :  { %v8420_v29 = vsub.f32 %v8404_v51, %v8419_v25  ;;  %v8423_v61 = vsub.f32 %v8407_v16, %v8419_v25 }
0x2e02   :  { %v8432_v63 = vmul.f32 1.442695, %v8431_v36  ;;  %v8435_v35 = vmul.f32 1.442695, %v8434_v57 }
0x2e03   :  { %v8421_v21 = vmul.f32 1.442695, %v8420_v29  ;;  %v8424_v20 = vmul.f32 1.442695, %v8423_v61 }
0x2e04   :  { %10953 = vpow2.f32 %v8432_v63 }
0x2e05   :  { %10955 = vpow2.f32 %v8435_v35  ;;  %v8213_v35 = vld [vmem:[#allocation10 + $0x500] sm:$0xff] }
0x2e06   :  { %10957 = vpow2.f32 %v8421_v21  ;;  %v8214_v21 = vld [vmem:[#allocation10 + $0x508] sm:$0xff] }
0x2e07   :  { %10959 = vpow2.f32 %v8424_v20 }
0x2e0e   :  { %v10954_v11 = vpop.eup %10953 }
0x2e0f   :  { %v10956_v39 = vpop.eup %10955 }
0x2e10   :  { %v10958_v14 = vpop.eup %10957  ;;  %v8437_v62 = vadd.f32 %v10956_v39, %v10954_v11 }
0x2e11   :  { %v10960_v19 = vpop.eup %10959 }
0x2e12   :  { %10961 = vrcp.f32 %v8437_v62  ;;  %v8426_v32 = vadd.f32 %v10960_v19, %v10958_v14 }
0x2e14   :  { %10963 = vrcp.f32 %v8426_v32  ;;  %v8237_v32 = vld [vmem:[#allocation10 + $0x5c0] sm:$0xff] }
0x2e1c   :  { %v10962_v43 = vpop.eup %10961 }
0x2e1d   :  { %v8440_v2 = vmul.f32 %v10962_v43, %v10956_v39  ;;  %v8439_v5 = vmul.f32 %v10962_v43, %v10954_v11  ;;  %v8222_v11 = vld [vmem:[#allocation10 + $0x548] sm:$0xff] }
0x2e1e   :  { %v10964_v8 = vpop.eup %10963  ;;  %v10412_v62 = vcombine.high %v8214_v21, %v8222_v11  ;;  %v8230_v43 = vld [vmem:[#allocation10 + $0x588] sm:$0xff] }
0x2e1f   :  { %v8428_v6 = vmul.f32 %v10964_v8, %v10958_v14  ;;  %v8429_v44 = vmul.f32 %v10964_v8, %v10960_v19  ;;  %v8442_v56 = vpack.c.bf16 %v8440_v2, %v8439_v5  ;;  %v10411_v14 = vcombine.low %v8214_v21, %v8222_v11  ;;  %v8229_v19 = vld [vmem:[#allocation10 + $0x580] sm:$0xff]  ;;  %v8238_v5 = vld [vmem:[#allocation10 + $0x5c8] sm:$0xff] }
0x2e20   :  { %8900 = vmatprep.subr.bf16.mxu1 %v10412_v62  ;;  %v10426_v2 = vcombine.high %v8229_v19, %v8237_v32  ;;  %v10425_v8 = vcombine.low %v8229_v19, %v8237_v32  ;;  %v8241_v21 = vld [vmem:[#allocation10 + $0x5e0] sm:$0xff]  ;;  %v8242_v11 = vld [vmem:[#allocation10 + $0x5e8] sm:$0xff]  ;;  %v8219_v32 = vld [vmem:[#allocation10 + $0x530] sm:$0xff] }
0x2e21   :  { %v8441_v41 = vpack.c.bf16 %v8429_v44, %v8428_v6  ;;  %v10427_v6 = vcombine.low %v8230_v43, %v8238_v5  ;;  %v10428_v44 = vcombine.high %v8230_v43, %v8238_v5  ;;  %v8227_v43 = vld [vmem:[#allocation10 + $0x570] sm:$0xff]  ;;  %v8228_v5 = vld [vmem:[#allocation10 + $0x578] sm:$0xff] }
0x2e23   :  { %10769 = vmatprep.mubr.msk.bf16.mxu0 %vm522_vm6, %v8441_v41  ;;  %v8223_v41 = vld [vmem:[#allocation10 + $0x550] sm:$0xff] }
0x2e24   :  { %10770 = vmatmul.mubr.msk.bf16.vlgmr.msra.gmra.mrb[200].mxu0 %vm522_vm6, %v8442_v56  ;;  %v8215_v56 = vld [vmem:[#allocation10 + $0x510] sm:$0xff] }
0x2e25   :  { %8889 = vmatprep.mubr.bf16.mxu0 %v11159_v0  ;;  %v10414_v12 = vcombine.high %v8215_v56, %v8223_v41 }
0x2ef7   :  { %v10771_v47 = vpop.f32.mrb[200].mxu0 }
0x2ef8   :  { %v8483_v7 = vpop.f32.mrb[201].mxu0  ;;  %v8506_v15 = vmul.f32 %v10771_v47, %v8499_v3  ;;  %v10413_v47 = vcombine.low %v8215_v56, %v8223_v41  ;;  %v8235_v41 = vld [vmem:[#allocation10 + $0x5b0] sm:$0xff] }
0x2ef9   :  { %v10772_v60 = vpop.f32.mrb[202].mxu0  ;;  %v8504_v38 = vmul.f32 %v8499_v3, %v8483_v7  ;;  %v8224_v3 = vld [vmem:[#allocation10 + $0x558] sm:$0xff] }
0x2efa   :  { %v8507_v40 = vmul.f32 %v10772_v60, %v8501_v9  ;;  %v8486_v17 = vpop.f32.mrb[203].mxu0  ;;  %v10415_v7 = vcombine.low %v8216_v28, %v8224_v3 }
0x2efb   :  { %v8505_v24 = vmul.f32 %v8501_v9, %v8486_v17  ;;  %v10416_v9 = vcombine.high %v8216_v28, %v8224_v3  ;;  %v8243_v28 = vld [vmem:[#allocation10 + $0x5f0] sm:$0xff]  ;;  %v8244_v3 = vld [vmem:[#allocation10 + $0x5f8] sm:$0xff] }
0x2efc   :  { %v8509_v37 = vadd.f32 %v8507_v40, %v8506_v15 }
0x2efd   :  { %v8508_v33 = vadd.f32 %v8505_v24, %v8504_v38 }
0x2eff   :  { %v8510_v31 = vpack.c.bf16 %v8509_v37, %v8508_v33 }
0x2f01   :  { %10778 = vmatmul.mubr.msk.bf16.vlgmr.msra.gmra.mrb[212].mxu1 %vm372_vm4, %v8510_v31  ;;  %v10407_v31 = vld [vmem:[%s12657_s9 + $0x5] ss:$0 sm:$0xff] }
0x2f02   :  { %8932 = vmatprep.mubr.bf16.mxu1 %v11159_v0  ;;  %8901 = vmatpush1.bf16.msra.mxu1 %v10411_v14 }
0x2f03   :  { %8902 = vmatprep.subr.bf16.mxu1 %v10428_v44  ;;  %v10422_v44 = vcombine.high %v8219_v32, %v8227_v43 }
0x2f06   :  { %8903 = vmatpush1.bf16.msra.mxu1 %v10427_v6 }
0x2f07   :  { %8986 = vmatprep.subr.bf16.mxu1 %v10416_v9  ;;  %v10438_v9 = vcombine.high %v8235_v41, %v8243_v28 }
0x2fd4   :  { %v8564_v22 = vpop.f32.mrb[212].mxu1 }
0x2fd5   :  { %v8565_v42 = vadd.f32 %v10403_v58, %v8564_v22  ;;  %v10779_v23 = vpop.f32.mrb[213].mxu1 }
0x2fd6   :  { %v8567_v55 = vpop.f32.mrb[214].mxu1  ;;  %v10408_v23 = vld [vmem:[%s12658_s10 + $0x5] ss:$0 sm:$0xff] }
0x2fd7   :  { %v8568_v10 = vadd.f32 %v10403_v58, %v8567_v55  ;;  %v10780_v27 = vpop.f32.mrb[215].mxu1  ;;  %v8571_v30 = vadd.f32 %v8565_v42, %v12430_v59 }
0x2fd8   :  { %v8239_v27 = vld [vmem:[#allocation10 + $0x5d0] sm:$0xff] }
0x2fd9   :  { %v8573_v13 = vsel %vm372_vm4, %v8571_v30, 0.0  ;;  %v8572_v34 = vadd.f32 %v8568_v10, %v12432_v4  ;;  %v8221_v4 = vld [vmem:[#allocation10 + $0x540] sm:$0xff]  ;;  %v8231_v10 = vld [vmem:[#allocation10 + $0x590] sm:$0xff] }
0x2fda   :  { %8574 = vadd.xlane.f32.xlu0 %v8573_v13  ;;  %v10410_v20 = vcombine.high %v8213_v35, %v8221_v4  ;;  %v10409_v39 = vcombine.low %v8213_v35, %v8221_v4  ;;  %v8240_v13 = vld [vmem:[#allocation10 + $0x5d8] sm:$0xff]  ;;  %v8233_v4 = vld [vmem:[#allocation10 + $0x5a0] sm:$0xff] }
0x2fdb   :  { %v8576_v51 = vsel %vm372_vm4, %v8572_v34, 0.0  ;;  %v10434_v62 = vcombine.high %v8233_v4, %v8241_v21 }
0x2fdc   :  { %8577 = vadd.xlane.f32.xlu1 %v8576_v51  ;;  %8857 = vmatprep.subr.bf16.mxu0 %v10410_v20  ;;  %v8234_v20 = vld [vmem:[#allocation10 + $0x5a8] sm:$0xff] }
0x2fdd   :  { %8858 = vmatpush1.bf16.msra.mxu0 %v10409_v39  ;;  %v10436_v19 = vcombine.high %v8234_v20, %v8242_v11  ;;  %v10435_v6 = vcombine.low %v8234_v20, %v8242_v11 }
0x2fde   :  { %8859 = vmatprep.subr.bf16.mxu0 %v10426_v2  ;;  %v8220_v2 = vld [vmem:[#allocation10 + $0x538] sm:$0xff] }
0x2fdf   :  { %v10424_v56 = vcombine.high %v8220_v2, %v8228_v5 }
0x2fe1   :  { %8860 = vmatpush1.bf16.msra.mxu0 %v10425_v8  ;;  %v10433_v8 = vcombine.low %v8233_v4, %v8241_v21 }
0x2fe2   :  { %8943 = vmatprep.subr.bf16.mxu0 %v10414_v12  ;;  %v8236_v12 = vld [vmem:[#allocation10 + $0x5b8] sm:$0xff] }
0x3067   :  { %v8575_v26 = vpop.xlane.xlu0 %8574 }
0x3068   :  { %v8579_v18 = vmul.f32 0.03125, %v8575_v26 }
0x3069   :  { %v8578_v16 = vpop.xlane.xlu1 %8577 }
0x306a   :  { %v8581_v25 = vsub.f32 %v8571_v30, %v8579_v18  ;;  %v8580_v36 = vmul.f32 0.03125, %v8578_v16  ;;  %v8232_v30 = vld [vmem:[#allocation10 + $0x598] sm:$0xff]  ;;  %v10430_v18 = vcombine.high %v8231_v10, %v8239_v27 }
0x306b   :  { %v10432_v16 = vcombine.high %v8232_v30, %v8240_v13 }
0x306c   :  { %v8582_v57 = vsub.f32 %v8572_v34, %v8580_v36  ;;  %v8583_v29 = vmul.f32 %v8581_v25, %v8581_v25  ;;  %v8225_v36 = vld [vmem:[#allocation10 + $0x560] sm:$0xff] }
0x306e   :  { %v8585_v61 = vsel %vm372_vm4, %v8583_v29, 0.0  ;;  %v8584_v63 = vmul.f32 %v8582_v57, %v8582_v57  ;;  %v8226_v29 = vld [vmem:[#allocation10 + $0x568] sm:$0xff] }
0x306f   :  { %8586 = vadd.xlane.f32.xlu0 %v8585_v61  ;;  %v10429_v61 = vcombine.low %v8231_v10, %v8239_v27  ;;  %v8279_v27 = vld [vmem:[#allocation11 + $0x5c8] sm:$0xff] }
0x3070   :  { %v8588_v59 = vsel %vm372_vm4, %v8584_v63, 0.0  ;;  %v10431_v63 = vcombine.low %v8232_v30, %v8240_v13 }
0x3073   :  { %8589 = vadd.xlane.f32.xlu0 %v8588_v59 }
0x30fc   :  { %v8587_v60 = vpop.xlane.xlu0 %8586 }
0x30fd   :  { %v8591_v15 = vmul.f32 0.03125, %v8587_v60  ;;  %v10440_v60 = vcombine.high %v8236_v12, %v8244_v3 }
0x30ff   :  { %v8593_v40 = vadd.f32 1e-05, %v8591_v15  ;;  %v8254_v15 = vld [vmem:[#allocation11 + $0x500] sm:$0xff] }
0x3100   :  { %v8590_v17 = vpop.xlane.xlu0 %8589 }
0x3101   :  { %10965 = vrsqrt.f32 %v8593_v40  ;;  %v8592_v38 = vmul.f32 0.03125, %v8590_v17  ;;  %v8262_v40 = vld [vmem:[#allocation11 + $0x540] sm:$0xff]  ;;  %v8255_v17 = vld [vmem:[#allocation11 + $0x508] sm:$0xff] }
0x3103   :  { %v8594_v24 = vadd.f32 1e-05, %v8592_v38  ;;  %v8263_v38 = vld [vmem:[#allocation11 + $0x548] sm:$0xff] }
0x3105   :  { %10967 = vrsqrt.f32 %v8594_v24  ;;  %v10437_v24 = vcombine.low %v8235_v41, %v8243_v28 }
0x310b   :  { %v10966_v37 = vpop.eup %10965 }
0x310c   :  { %v8597_v33 = vmul.f32 %v10966_v37, %v8581_v25  ;;  %v8217_v25 = vld [vmem:[#allocation10 + $0x520] sm:$0xff]  ;;  %v10439_v37 = vcombine.low %v8236_v12, %v8244_v3 }
0x310d   :  { %v10418_v59 = vcombine.high %v8217_v25, %v8225_v36  ;;  %v10417_v39 = vcombine.low %v8217_v25, %v8225_v36  ;;  %v12508_v36 = vld [vmem:[#allocation11 + $0x558] sm:$0xff] }
0x310e   :  { %v8603_v22 = vmul.f32 %v10407_v31, %v8597_v33  ;;  %v10451_v33 = vcombine.high %v8254_v15, %v8262_v40 }
0x310f   :  { %v10968_v58 = vpop.eup %10967 }
0x3110   :  { %v8598_v42 = vmul.f32 %v10968_v58, %v8582_v57  ;;  %v12470_v34 = vadd.f32 %v10408_v23, %v8603_v22  ;;  %v8218_v57 = vld [vmem:[#allocation10 + $0x528] sm:$0xff]  ;;  %v10450_v58 = vcombine.low %v8254_v15, %v8262_v40  ;;  %v10452_v22 = vcombine.low %v8255_v17, %v8263_v38 }
0x3111   :  { %v10420_v35 = vcombine.high %v8218_v57, %v8226_v29  ;;  %v10419_v14 = vcombine.low %v8218_v57, %v8226_v29 }
0x3112   :  { %v8604_v55 = vmul.f32 %v10407_v31, %v8598_v42  ;;  %v10453_v31 = vcombine.high %v8255_v17, %v8263_v38  ;;  %v8270_v42 = vld [vmem:[#allocation11 + $0x580] sm:$0xff] }
0x3114   :  { %v12472_v51 = vadd.f32 %v10408_v23, %v8604_v55  ;;  %v8278_v23 = vld [vmem:[#allocation11 + $0x5c0] sm:$0xff]  ;;  %v8271_v55 = vld [vmem:[#allocation11 + $0x588] sm:$0xff] }
0x3115   :  { %v10467_v10 = vcombine.high %v8270_v42, %v8278_v23  ;;  %v10468_v30 = vcombine.low %v8271_v55, %v8279_v27  ;;  %v10469_v13 = vcombine.high %v8271_v55, %v8279_v27  ;;  %v12544_v27 = vld [vmem:[#allocation11 + $0x5d8] sm:$0xff] }
0x3116   :  { %v12476_v26 = vpack.c.bf16 %v12472_v51, %v12470_v34 }
0x3118   :  { %10441 = vmatmul.mubr.msk.bf16.vlgmr.msra.gmra.mrb[204].mxu0 %vm372_vm4, %v12476_v26  ;;  %10442 = vmatmul.mubr.msk.bf16.vlgmr.msra.gmra.mrb[216].mxu1 %vm372_vm4, %v12476_v26 }
0x3119   :  { %8944 = vmatpush1.bf16.msra.mxu0 %v10413_v47  ;;  %8987 = vmatpush1.bf16.msra.mxu1 %v10415_v7  ;;  %v10421_v47 = vcombine.low %v8219_v32, %v8227_v43  ;;  %v10423_v7 = vcombine.low %v8220_v2, %v8228_v5  ;;  %v10394_v5 = vld [vmem:[%s12660_s12 + $0x45] ss:$8 sm:$0xf0] }
0x311a   :  { %8945 = vmatprep.subr.bf16.mxu0 %v10430_v18  ;;  %8988 = vmatprep.subr.bf16.mxu1 %v10432_v16  ;;  %v12500_v18 = vld [vmem:[#allocation11 + $0x510] sm:$0xff] }
0x311b   :  { %8975 = vmatprep.mubr.bf16.mxu0 %v11159_v0  ;;  %9018 = vmatprep.mubr.bf16.mxu1 %v11159_v0  ;;  %v12502_v16 = vld [vmem:[#allocation11 + $0x550] sm:$0xff] }
0x311c   :  { %v10455_v25 = vcombine.high %v12500_v18, %v12502_v16  ;;  %v10454_v57 = vcombine.low %v12500_v18, %v12502_v16 }
0x311d   :  { %8946 = vmatpush1.bf16.msra.mxu0 %v10429_v61  ;;  %8989 = vmatpush1.bf16.msra.mxu1 %v10431_v63  ;;  %v10391_v63 = vld [vmem:[%s12660_s12 + $0x5] ss:$8 sm:$0xf] }
0x311e   :  { %9029 = vmatprep.subr.bf16.mxu0 %v10418_v59  ;;  %9072 = vmatprep.subr.bf16.mxu1 %v10420_v35  ;;  %v10392_v59 = vld [vmem:[%s12660_s12 + $0x5] ss:$8 sm:$0xf0] }
0x311f   :  { %v8248_v35 = vor.u32 %v10392_v59, %v10391_v63 }
0x3120   :  { %10443 = vmatmul.mubr.msk.bf16.vlgmr.msra.gmra.mrb[208].mxu0 %vm372_vm4, %v12476_v26  ;;  %10444 = vmatmul.mubr.msk.bf16.vlgmr.msra.gmra.mrb[220].mxu1 %vm372_vm4, %v12476_v26 }
0x3121   :  { %9030 = vmatpush1.bf16.msra.mxu0 %v10417_v39  ;;  %9073 = vmatpush1.bf16.msra.mxu1 %v10419_v14  ;;  %v8617_v4 = vrot.slane %v8248_v35, %v11503_v45  ;;  %v8625_v21 = vrot.slane %v8248_v35, %v11505_v46  ;;  %v8621_v20 = vrot.slane %v8248_v35, %v11507_v48 }
0x3122   :  { %9031 = vmatprep.subr.bf16.mxu0 %v10434_v62  ;;  %9074 = vmatprep.subr.bf16.mxu1 %v10436_v19  ;;  %v8629_v11 = vrot.slane %v8248_v35, %v11509_v49  ;;  %v10393_v62 = vld [vmem:[%s12660_s12 + $0x45] ss:$8 sm:$0xf]  ;;  %v8633_v41 = vrot.slane %v8248_v35, %v11513_v50  ;;  %v8645_v40 = vrot.slane %v8248_v35, %v11521_v54 }
0x3123   :  { %9061 = vmatprep.mubr.bf16.mxu0 %v11159_v0  ;;  %9104 = vmatprep.mubr.bf16.mxu1 %v11159_v0  ;;  %v12536_v17 = vor.u32 %v10394_v5, %v10393_v62 }
0x3125   :  { %9032 = vmatpush1.bf16.msra.mxu0 %v10433_v8  ;;  %9075 = vmatpush1.bf16.msra.mxu1 %v10435_v6  ;;  %v8649_v59 = vrot.slane %v12536_v17, %v11503_v45 }
0x3126   :  { %9115 = vmatprep.subr.bf16.mxu0 %v10422_v44  ;;  %9158 = vmatprep.subr.bf16.mxu1 %v10424_v56 }
0x3128   :  { %10445 = vmatmul.mubr.msk.bf16.vlgmr.msra.gmra.mrb[212].mxu0 %vm372_vm4, %v12476_v26  ;;  %10446 = vmatmul.mubr.msk.bf16.vlgmr.msra.gmra.mrb[224].mxu1 %vm372_vm4, %v12476_v26 }
0x3129   :  { %9116 = vmatpush1.bf16.msra.mxu0 %v10421_v47  ;;  %9159 = vmatpush1.bf16.msra.mxu1 %v10423_v7  ;;  %v8641_v7 = vrot.slane %v8248_v35, %v11519_v53 }
0x312a   :  { %9117 = vmatprep.subr.bf16.mxu0 %v10438_v9  ;;  %9160 = vmatprep.subr.bf16.mxu1 %v10440_v60  ;;  %v8637_v9 = vrot.slane %v8248_v35, %v11517_v52 }
0x312b   :  { %9147 = vmatprep.mubr.bf16.mxu0 %v11159_v0  ;;  %9190 = vmatprep.mubr.bf16.mxu1 %v11159_v0  ;;  %v10466_v0 = vcombine.low %v8270_v42, %v8278_v23 }
0x312d   :  { %9118 = vmatpush1.bf16.msra.mxu0 %v10437_v24  ;;  %9161 = vmatpush1.bf16.msra.mxu1 %v10439_v37 }
0x312e   :  { %9413 = vmatprep.subr.bf16.mxu0 %v10451_v33  ;;  %9454 = vmatprep.subr.bf16.mxu1 %v10453_v31  ;;  %v12538_v31 = vld [vmem:[#allocation11 + $0x590] sm:$0xff] }
0x3130   :  { %10447 = vmatmul.mubr.msk.bf16.vlgmr.msra.gmra.mrb[216].mxu0 %vm372_vm4, %v12476_v26  ;;  %10448 = vmatmul.mubr.msk.bf16.vlgmr.msra.gmra.mrb[228].mxu1 %vm372_vm4, %v12476_v26  ;;  %v12504_v26 = vld [vmem:[#allocation11 + $0x518] sm:$0xff] }
0x3131   :  { %v10456_v29 = vcombine.low %v12504_v26, %v12508_v36  ;;  %v10457_v61 = vcombine.high %v12504_v26, %v12508_v36  ;;  %v12570_v26 = vld [vmem:[#allocation11 + $0x568] sm:$0xff] }
0x3136   :  { %9414 = vmatpush1.bf16.xpose.msra.mxu0 %v10450_v58  ;;  %9455 = vmatpush1.bf16.xpose.msra.mxu1 %v10452_v22  ;;  %v12540_v58 = vld [vmem:[#allocation11 + $0x5d0] sm:$0xff] }
0x3137   :  { %9415 = vmatprep.subr.bf16.mxu0 %v10467_v10  ;;  %9456 = vmatprep.subr.bf16.mxu1 %v10469_v13  ;;  %v12542_v10 = vld [vmem:[#allocation11 + $0x598] sm:$0xff] }
0x313e   :  { %9416 = vmatpush1.bf16.xpose.msra.mxu0 %v10466_v0  ;;  %9457 = vmatpush1.bf16.xpose.msra.mxu1 %v10468_v30 }
0x313f   :  { %9495 = vmatprep.subr.bf16.mxu0 %v10455_v25  ;;  %9536 = vmatprep.subr.bf16.mxu1 %v10457_v61 }
0x31eb   :  { %v8891_v39 = vpop.f32.mrb[204].mxu0  ;;  %v8934_v14 = vpop.f32.mrb[216].mxu1 }
0x31ec   :  { %v8892_v19 = vadd.f32 %v8891_v39, %v8617_v4  ;;  %v8935_v32 = vadd.f32 %v8934_v14, %v8625_v21  ;;  %v8893_v43 = vpop.f32.mrb[205].mxu0  ;;  %v8936_v2 = vpop.f32.mrb[217].mxu1  ;;  %v10473_v39 = vcombine.high %v12542_v10, %v12544_v27 }
0x31ed   :  { %v8894_v8 = vadd.f32 %v8893_v43, %v8621_v20  ;;  %v8937_v6 = vadd.f32 %v8936_v2, %v8629_v11  ;;  %v8895_v44 = vpop.f32.mrb[206].mxu0  ;;  %v8938_v56 = vpop.f32.mrb[218].mxu1  ;;  %v8657_v43 = vrot.slane %v12536_v17, %v11505_v46  ;;  %v8661_v46 = vrot.slane %v12536_v17, %v11509_v49 }
0x31ee   :  { %v8896_v28 = vadd.f32 %v8895_v44, %v8617_v4  ;;  %v8939_v12 = vadd.f32 %v8938_v56, %v8625_v21  ;;  %v8897_v3 = vpop.f32.mrb[207].mxu0  ;;  %v8940_v47 = vpop.f32.mrb[219].mxu1  ;;  %v9201_v38 = vmax.f32 %v8892_v19, 0.0  ;;  %v9203_v24 = vmax.f32 %v8935_v32, 0.0 }
0x31ef   :  { %v8898_v60 = vadd.f32 %v8897_v3, %v8621_v20  ;;  %v8941_v15 = vadd.f32 %v8940_v47, %v8629_v11  ;;  %v9202_v22 = vmax.f32 %v8894_v8, 0.0  ;;  %v9204_v42 = vmax.f32 %v8937_v6, 0.0  ;;  %v12566_v47 = vld [vmem:[#allocation11 + $0x560] sm:$0xff] }
0x31f0   :  { %v9217_v37 = vmax.f32 %v8896_v28, 0.0  ;;  %v9219_v33 = vmax.f32 %v8939_v12, 0.0  ;;  %v10471_v11 = vcombine.high %v12538_v31, %v12540_v58  ;;  %v8653_v6 = vrot.slane %v12536_v17, %v11507_v48  ;;  %v12564_v48 = vld [vmem:[#allocation11 + $0x520] sm:$0xff] }
0x31f1   :  { %v9218_v23 = vmax.f32 %v8898_v60, 0.0  ;;  %v9220_v55 = vmax.f32 %v8941_v15, 0.0 }
0x31f2   :  { %v9233_v0 = vpack.c.bf16 %v9217_v37, %v9201_v38  ;;  %v9235_v30 = vpack.c.bf16 %v9219_v33, %v9203_v24  ;;  %v10470_v38 = vcombine.low %v12538_v31, %v12540_v58  ;;  %v10472_v24 = vcombine.low %v12542_v10, %v12544_v27 }
0x31f3   :  { %v9234_v13 = vpack.c.bf16 %v9218_v23, %v9202_v22  ;;  %v9236_v25 = vpack.c.bf16 %v9220_v55, %v9204_v42  ;;  %v8977_v61 = vpop.f32.mrb[208].mxu0  ;;  %v9020_v63 = vpop.f32.mrb[220].mxu1  ;;  %v10459_v23 = vcombine.high %v12564_v48, %v12566_v47  ;;  %v8665_v31 = vrot.slane %v12536_v17, %v11513_v50 }
0x31f4   :  { %v8978_v35 = vadd.f32 %v8977_v61, %v8633_v41  ;;  %v9021_v4 = vadd.f32 %v9020_v63, %v8641_v7  ;;  %v8979_v21 = vpop.f32.mrb[209].mxu0  ;;  %v9022_v20 = vpop.f32.mrb[221].mxu1  ;;  %v8673_v63 = vrot.slane %v12536_v17, %v11519_v53 }
0x31f5   :  { %v8980_v14 = vadd.f32 %v8979_v21, %v8637_v9  ;;  %v9023_v62 = vadd.f32 %v9022_v20, %v8645_v40  ;;  %v8981_v19 = vpop.f32.mrb[210].mxu0  ;;  %v9024_v32 = vpop.f32.mrb[222].mxu1  ;;  %9445 = vmatprep.mubr.bf16.mxu0 %v9234_v13  ;;  %9486 = vmatprep.mubr.bf16.mxu1 %v9236_v25  ;;  %v8677_v20 = vrot.slane %v12536_v17, %v11521_v54 }
0x31f6   :  { %v8982_v45 = vadd.f32 %v8981_v19, %v8633_v41  ;;  %v9025_v2 = vadd.f32 %v9024_v32, %v8641_v7  ;;  %v8983_v5 = vpop.f32.mrb[211].mxu0  ;;  %v9026_v8 = vpop.f32.mrb[223].mxu1  ;;  %9446 = vmatmul.mubr.bf16.vlgmr.msra.gmra.mrb[220].mxu0 %v9233_v0  ;;  %9487 = vmatmul.mubr.bf16.vlgmr.msra.gmra.mrb[232].mxu1 %v9235_v30  ;;  %v9205_v41 = vmax.f32 %v8978_v35, 0.0  ;;  %v9207_v28 = vmax.f32 %v9021_v4, 0.0  ;;  %v8274_v32 = vld [vmem:[#allocation11 + $0x5a0] sm:$0xff] }
0x31f7   :  { %v8984_v44 = vadd.f32 %v8983_v5, %v8637_v9  ;;  %v9027_v56 = vadd.f32 %v9026_v8, %v8645_v40  ;;  %9496 = vmatpush1.bf16.xpose.msra.mxu0 %v10454_v57  ;;  %9537 = vmatpush1.bf16.xpose.msra.mxu1 %v10456_v29  ;;  %v9206_v7 = vmax.f32 %v8980_v14, 0.0  ;;  %v9208_v18 = vmax.f32 %v9023_v62, 0.0  ;;  %v12568_v9 = vld [vmem:[#allocation11 + $0x528] sm:$0xff] }
0x31f8   :  { %v9221_v12 = vmax.f32 %v8982_v45, 0.0  ;;  %v9223_v3 = vmax.f32 %v9025_v2, 0.0  ;;  %9497 = vmatprep.subr.bf16.mxu0 %v10471_v11  ;;  %9538 = vmatprep.subr.bf16.mxu1 %v10473_v39  ;;  %v10461_v55 = vcombine.high %v12568_v9, %v12570_v26  ;;  %v8669_v35 = vrot.slane %v12536_v17, %v11517_v52  ;;  %v8282_v45 = vld [vmem:[#allocation11 + $0x5e0] sm:$0xff]  ;;  %v8275_v2 = vld [vmem:[#allocation11 + $0x5a8] sm:$0xff] }
0x31f9   :  { %v9222_v16 = vmax.f32 %v8984_v44, 0.0  ;;  %v9224_v57 = vmax.f32 %v9027_v56, 0.0  ;;  %v8283_v5 = vld [vmem:[#allocation11 + $0x5e8] sm:$0xff]  ;;  %v10458_v44 = vcombine.low %v12564_v48, %v12566_v47 }
0x31fa   :  { %v12572_v36 = vpack.c.bf16 %v9221_v12, %v9205_v41  ;;  %v12574_v49 = vpack.c.bf16 %v9223_v3, %v9207_v28  ;;  %v10460_v12 = vcombine.low %v12568_v9, %v12570_v26 }
0x31fb   :  { %v9238_v29 = vpack.c.bf16 %v9222_v16, %v9206_v7  ;;  %v9240_v60 = vpack.c.bf16 %v9224_v57, %v9208_v18  ;;  %v9063_v15 = vpop.f32.mrb[212].mxu0  ;;  %v9106_v40 = vpop.f32.mrb[224].mxu1  ;;  %v10475_v57 = vcombine.high %v8274_v32, %v8282_v45 }
0x31fc   :  { %v9064_v37 = vadd.f32 %v9063_v15, %v8649_v59  ;;  %v9107_v33 = vadd.f32 %v9106_v40, %v8657_v43  ;;  %v9065_v22 = vpop.f32.mrb[213].mxu0  ;;  %v9108_v42 = vpop.f32.mrb[225].mxu1 }
0x31fd   :  { %v9066_v0 = vadd.f32 %v9065_v22, %v8653_v6  ;;  %v9109_v30 = vadd.f32 %v9108_v42, %v8661_v46  ;;  %v9067_v13 = vpop.f32.mrb[214].mxu0  ;;  %v9110_v25 = vpop.f32.mrb[226].mxu1  ;;  %9527 = vmatprep.mubr.bf16.mxu0 %v9238_v29  ;;  %9568 = vmatprep.mubr.bf16.mxu1 %v9240_v60  ;;  %v10477_v29 = vcombine.high %v8275_v2, %v8283_v5 }
0x31fe   :  { %v9068_v58 = vadd.f32 %v9067_v13, %v8649_v59  ;;  %v9111_v10 = vadd.f32 %v9110_v25, %v8657_v43  ;;  %v9069_v27 = vpop.f32.mrb[215].mxu0  ;;  %v9112_v61 = vpop.f32.mrb[227].mxu1  ;;  %v9209_v11 = vmax.f32 %v9064_v37, 0.0  ;;  %v9211_v39 = vmax.f32 %v9107_v33, 0.0  ;;  %v8269_v13 = vld [vmem:[#allocation11 + $0x578] sm:$0xff] }
0x31ff   :  { %v9070_v4 = vadd.f32 %v9069_v27, %v8653_v6  ;;  %v9113_v21 = vadd.f32 %v9112_v61, %v8661_v46  ;;  %9498 = vmatpush1.bf16.xpose.msra.mxu0 %v10470_v38  ;;  %9539 = vmatpush1.bf16.xpose.msra.mxu1 %v10472_v24  ;;  %v9210_v14 = vmax.f32 %v9066_v0, 0.0  ;;  %v9212_v62 = vmax.f32 %v9109_v30, 0.0  ;;  %v8261_v30 = vld [vmem:[#allocation11 + $0x538] sm:$0xff] }
0x3200   :  { %v9225_v50 = vmax.f32 %v9068_v58, 0.0  ;;  %v9227_v59 = vmax.f32 %v9111_v10, 0.0  ;;  %9577 = vmatprep.subr.bf16.mxu0 %v10459_v23  ;;  %9618 = vmatprep.subr.bf16.mxu1 %v10461_v55  ;;  %v10474_v58 = vcombine.low %v8274_v32, %v8282_v45  ;;  %v10476_v10 = vcombine.low %v8275_v2, %v8283_v5 }
0x3201   :  { %v9226_v19 = vmax.f32 %v9070_v4, 0.0  ;;  %v9228_v53 = vmax.f32 %v9113_v21, 0.0  ;;  %v10465_v61 = vcombine.high %v8261_v30, %v8269_v13  ;;  %v8277_v21 = vld [vmem:[#allocation11 + $0x5b8] sm:$0xff] }
0x3202   :  { %v12592_v43 = vpack.c.bf16 %v9225_v50, %v9209_v11  ;;  %v12594_v52 = vpack.c.bf16 %v9227_v59, %v9211_v39  ;;  %v10464_v11 = vcombine.low %v8261_v30, %v8269_v13 }
0x3203   :  { %v9242_v8 = vpack.c.bf16 %v9226_v19, %v9210_v14  ;;  %v9244_v54 = vpack.c.bf16 %v9228_v53, %v9212_v62  ;;  %v9149_v17 = vpop.f32.mrb[216].mxu0  ;;  %v9192_v6 = vpop.f32.mrb[228].mxu1  ;;  %v10449_v62 = vld [vmem:[%s12662_s14 + $0x5] ss:$0 sm:$0xff] }
0x3204   :  { %v9150_v56 = vadd.f32 %v9149_v17, %v8665_v31  ;;  %v9193_v46 = vadd.f32 %v9192_v6, %v8673_v63  ;;  %v9151_v41 = vpop.f32.mrb[217].mxu0  ;;  %v9194_v28 = vpop.f32.mrb[229].mxu1 }
0x3205   :  { %v9152_v3 = vadd.f32 %v9151_v41, %v8669_v35  ;;  %v9195_v7 = vadd.f32 %v9194_v28, %v8677_v20  ;;  %v9153_v18 = vpop.f32.mrb[218].mxu0  ;;  %v9196_v16 = vpop.f32.mrb[230].mxu1 }
0x3206   :  { %v9154_v60 = vadd.f32 %v9153_v18, %v8665_v31  ;;  %v9197_v15 = vadd.f32 %v9196_v16, %v8673_v63  ;;  %9528 = vmatmul.mubr.bf16.vlgmr.msra.gmra.mrb[224].mxu0 %v12572_v36  ;;  %9569 = vmatmul.mubr.bf16.vlgmr.msra.gmra.mrb[236].mxu1 %v12574_v49  ;;  %v9155_v48 = vpop.f32.mrb[219].mxu0  ;;  %v9198_v47 = vpop.f32.mrb[231].mxu1  ;;  %v9213_v24 = vmax.f32 %v9150_v56, 0.0  ;;  %v9215_v9 = vmax.f32 %v9193_v46, 0.0  ;;  %v8260_v36 = vld [vmem:[#allocation11 + $0x530] sm:$0xff] }
0x3207   :  { %v9156_v40 = vadd.f32 %v9155_v48, %v8669_v35  ;;  %v9199_v38 = vadd.f32 %v9198_v47, %v8677_v20  ;;  %9578 = vmatpush1.bf16.xpose.msra.mxu0 %v10458_v44  ;;  %9609 = vmatprep.mubr.bf16.mxu0 %v9242_v8  ;;  %v9214_v33 = vmax.f32 %v9152_v3, 0.0  ;;  %v9216_v22 = vmax.f32 %v9195_v7, 0.0  ;;  %v8268_v49 = vld [vmem:[#allocation11 + $0x570] sm:$0xff]  ;;  %v8285_v20 = vld [vmem:[#allocation11 + $0x5f8] sm:$0xff] }
0x3208   :  { %v9229_v26 = vmax.f32 %v9154_v60, 0.0  ;;  %v9231_v37 = vmax.f32 %v9197_v15, 0.0  ;;  %9619 = vmatpush1.bf16.xpose.msra.mxu1 %v10460_v12  ;;  %9650 = vmatprep.mubr.bf16.mxu1 %v9244_v54  ;;  %v10463_v27 = vcombine.high %v8260_v36, %v8268_v49  ;;  %v8276_v63 = vld [vmem:[#allocation11 + $0x5b0] sm:$0xff]  ;;  %v10462_v4 = vcombine.low %v8260_v36, %v8268_v49 }
0x3209   :  { %v9230_v42 = vmax.f32 %v9156_v40, 0.0  ;;  %v9232_v23 = vmax.f32 %v9199_v38, 0.0  ;;  %9579 = vmatprep.subr.bf16.mxu0 %v10475_v57  ;;  %9620 = vmatprep.subr.bf16.mxu1 %v10477_v29  ;;  %v8284_v35 = vld [vmem:[#allocation11 + $0x5f0] sm:$0xff]  ;;  %v10481_v50 = vcombine.high %v8277_v21, %v8285_v20  ;;  %v10480_v14 = vcombine.low %v8277_v21, %v8285_v20 }
0x320a   :  { %v9245_v55 = vpack.c.bf16 %v9229_v26, %v9213_v24  ;;  %v9247_v0 = vpack.c.bf16 %v9231_v37, %v9215_v9  ;;  %v10479_v39 = vcombine.high %v8276_v63, %v8284_v35  ;;  %v10478_v59 = vcombine.low %v8276_v63, %v8284_v35 }
0x320b   :  { %v9246_v25 = vpack.c.bf16 %v9230_v42, %v9214_v33  ;;  %v9248_v31 = vpack.c.bf16 %v9232_v23, %v9216_v22 }
0x320f   :  { %9580 = vmatpush1.bf16.xpose.msra.mxu0 %v10474_v58 }
0x3210   :  { %9621 = vmatpush1.bf16.xpose.msra.mxu1 %v10476_v10  ;;  %9659 = vmatprep.subr.bf16.mxu0 %v10463_v27 }
0x3211   :  { %9700 = vmatprep.subr.bf16.mxu1 %v10465_v61 }
0x3216   :  { %9610 = vmatmul.mubr.bf16.vlgmr.msra.gmra.mrb[228].mxu0 %v12592_v43 }
0x3217   :  { %9651 = vmatmul.mubr.bf16.vlgmr.msra.gmra.mrb[240].mxu1 %v12594_v52  ;;  %9660 = vmatpush1.bf16.xpose.msra.mxu0 %v10462_v4 }
0x3218   :  { %9691 = vmatprep.mubr.bf16.mxu0 %v9246_v25  ;;  %9701 = vmatpush1.bf16.xpose.msra.mxu1 %v10464_v11 }
0x3219   :  { %9732 = vmatprep.mubr.bf16.mxu1 %v9248_v31  ;;  %9661 = vmatprep.subr.bf16.mxu0 %v10479_v39 }
0x321a   :  { %9702 = vmatprep.subr.bf16.mxu1 %v10481_v50 }
0x321f   :  { %9662 = vmatpush1.bf16.xpose.msra.mxu0 %v10478_v59 }
0x3220   :  { %9703 = vmatpush1.bf16.xpose.msra.mxu1 %v10480_v14  ;;  %10781 = vmatprep.subr.bf16.mxu0 %v11160_v1 }
0x3221   :  { %10787 = vmatprep.subr.bf16.mxu1 %v11160_v1 }
0x3226   :  { %9692 = vmatmul.mubr.bf16.vlgmr.msra.gmra.mrb[232].mxu0 %v9245_v55 }
0x3227   :  { %9733 = vmatmul.mubr.bf16.vlgmr.msra.gmra.mrb[244].mxu1 %v9247_v0  ;;  %10783 = vmatprep.mubr.msk.bf16.mxu0 %vm11161_vm0, %v11160_v1 }
0x3228   :  { %10791 = vmatprep.mubr.msk.bf16.mxu1 %vm11161_vm0, %v11160_v1 }
0x32c9   :  { %v9447_v19 = vpop.f32.mrb[220].mxu0  ;;  %v9488_v53 = vpop.f32.mrb[232].mxu1 }
0x32ca   :  { %v9448_v32 = vadd.f32 %v10449_v62, %v9447_v19  ;;  %v9449_v43 = vpop.f32.mrb[221].mxu0  ;;  %v9490_v52 = vpop.f32.mrb[233].mxu1 }
0x32cb   :  { %v9450_v45 = vpop.f32.mrb[222].mxu0  ;;  %v9491_v2 = vpop.f32.mrb[234].mxu1 }
0x32cc   :  { %v9489_v5 = vadd.f32 %v9488_v53, %v9448_v32  ;;  %v9451_v8 = vadd.f32 %v10449_v62, %v9450_v45  ;;  %v9452_v54 = vpop.f32.mrb[223].mxu0  ;;  %v9493_v17 = vpop.f32.mrb[235].mxu1 }
0x32ce   :  { %v9492_v6 = vadd.f32 %v9491_v2, %v9451_v8 }
0x32d9   :  { %v9529_v44 = vpop.f32.mrb[224].mxu0  ;;  %v9570_v56 = vpop.f32.mrb[236].mxu1 }
0x32da   :  { %v9530_v46 = vadd.f32 %v9529_v44, %v9489_v5  ;;  %v9531_v41 = vpop.f32.mrb[225].mxu0  ;;  %v9572_v28 = vpop.f32.mrb[237].mxu1  ;;  %v10482_v5 = vld [vmem:[%s12663_s15 + $0x5] ss:$0 sm:$0xff] }
0x32db   :  { %v9532_v12 = vpop.f32.mrb[226].mxu0  ;;  %v9573_v3 = vpop.f32.mrb[238].mxu1  ;;  %v9781_v28 = vld [vmem:[#allocation5] sm:$0x1] }
0x32dc   :  { %v9571_v7 = vadd.f32 %v9570_v56, %v9530_v46  ;;  %v9533_v18 = vadd.f32 %v9532_v12, %v9492_v6  ;;  %v9534_v16 = vpop.f32.mrb[227].mxu0  ;;  %v9575_v57 = vpop.f32.mrb[239].mxu1  ;;  %v10852_v12 = vld [vmem:[%s12665_s17 + $0x8] sm:$0xff]  }
0x32de   :  { %v9574_v29 = vadd.f32 %v9573_v3, %v9533_v18 }
0x32e9   :  { %v9611_v60 = vpop.f32.mrb[228].mxu0 }
0x32ea   :  { %v9612_v15 = vadd.f32 %v9611_v60, %v9571_v7  ;;  %v9652_v48 = vpop.f32.mrb[240].mxu1  ;;  %v9613_v47 = vpop.f32.mrb[229].mxu0 }
0x32eb   :  { %v9654_v40 = vpop.f32.mrb[241].mxu1  ;;  %v9614_v38 = vpop.f32.mrb[230].mxu0 }
0x32ec   :  { %v9653_v24 = vadd.f32 %v9652_v48, %v9612_v15  ;;  %v9615_v9 = vadd.f32 %v9614_v38, %v9574_v29  ;;  %v9655_v26 = vpop.f32.mrb[242].mxu1  ;;  %v9616_v37 = vpop.f32.mrb[231].mxu0  ;;  %v10485_v29 = vld [vmem:[%s12666_s18] ss:$0 sm:$0xff] }
0x32ed   :  { %v9657_v33 = vpop.f32.mrb[243].mxu1 }
0x32ee   :  { %v9656_v22 = vadd.f32 %v9655_v26, %v9615_v9 }
0x32f9   :  { %v9693_v42 = vpop.f32.mrb[232].mxu0 }
0x32fa   :  { %v9694_v23 = vadd.f32 %v9693_v42, %v9653_v24  ;;  %v9734_v36 = vpop.f32.mrb[244].mxu1  ;;  %v9695_v49 = vpop.f32.mrb[233].mxu0 }
0x32fb   :  { %v9736_v55 = vpop.f32.mrb[245].mxu1  ;;  %v9696_v0 = vpop.f32.mrb[234].mxu0 }
0x32fc   :  { %v9735_v30 = vadd.f32 %v9734_v36, %v9694_v23  ;;  %v9697_v13 = vadd.f32 %v9696_v0, %v9656_v22  ;;  %v9737_v25 = vpop.f32.mrb[246].mxu1  ;;  %v9698_v31 = vpop.f32.mrb[235].mxu0 }
0x32fd   :  { %v9739_v58 = vpop.f32.mrb[247].mxu1 }
0x32fe   :  { %v9738_v10 = vadd.f32 %v9737_v25, %v9697_v13  ;;  %v9741_v27 = vadd.f32 %v9735_v30, %v12470_v34 }
0x3300   :  { %v9743_v61 = vsel %vm372_vm4, %v9741_v27, 0.0  ;;  %v9742_v63 = vadd.f32 %v9738_v10, %v12472_v51  ;;  %v10851_v51 = vld [vmem:[%s12665_s17] sm:$0xff]   ;;  %s11118_s17 = scalar_lea.vmem %s9903_s1, 32 }
0x3301   :  { %9744 = vadd.xlane.f32.xlu1 %v9743_v61  ;;  %10788 = vmatpush3.bf16.msra.mxu1 %v10851_v51  ;;  %p11119_p6 = scmp.ne.s32.totalorder %s9903_s1, %s11118_s17  ;;  %p11124_p8 = scmp.lt.s32.totalorder %s11118_s17, %s11118_s17 }
0x3302   :  { %v9746_v35 = vsel %vm372_vm4, %v9742_v63, 0.0  ;;  %10789 = vmatprep.subr.bf16.mxu1 %v11160_v1  ;;  %v10483_v1 = vld [vmem:[%s12664_s16 + $0x5] ss:$0 sm:$0xff] }
0x3303   :  { %9747 = vadd.xlane.f32.xlu0 %v9746_v35  ;;  %p11125_p9 = por %p11124_p8, %p11123_p7 }
0x3305   :  { %10790 = vmatpush3.bf16.msra.mxu1 %v10852_v12  ;;  %p11126_p10 = pnand %p11125_p9, %p11119_p6 }
0x338e   :  { %v9745_v4 = vpop.xlane.xlu1 %9744 }
0x338f   :  { %v9749_v21 = vmul.f32 0.03125, %v9745_v4 }
0x3390   :  { %v9748_v20 = vpop.xlane.xlu0 %9747 }
0x3391   :  { %v9751_v11 = vsub.f32 %v9741_v27, %v9749_v21  ;;  %v9750_v39 = vmul.f32 0.03125, %v9748_v20 }
0x3393   :  { %v9752_v50 = vsub.f32 %v9742_v63, %v9750_v39  ;;  %v9753_v59 = vmul.f32 %v9751_v11, %v9751_v11 }
0x3395   :  { %v9755_v14 = vsel %vm372_vm4, %v9753_v59, 0.0  ;;  %v9754_v62 = vmul.f32 %v9752_v50, %v9752_v50 }
0x3396   :  { %9756 = vadd.xlane.f32.xlu1 %v9755_v14 }
0x3397   :  { %v9758_v34 = vsel %vm372_vm4, %v9754_v62, 0.0 }
0x3398   :  { %9759 = vadd.xlane.f32.xlu0 %v9758_v34 }
0x3423   :  { %v9757_v19 = vpop.xlane.xlu1 %9756 }
0x3424   :  { %v9761_v53 = vmul.f32 0.03125, %v9757_v19 }
0x3425   :  { %v9760_v32 = vpop.xlane.xlu0 %9759 }
0x3426   :  { %v9763_v43 = vadd.f32 1e-05, %v9761_v53  ;;  %v9762_v52 = vmul.f32 0.03125, %v9760_v32 }
0x3428   :  { %10969 = vrsqrt.f32 %v9763_v43  ;;  %v9764_v45 = vadd.f32 1e-05, %v9762_v52 }
0x342a   :  { %10971 = vrsqrt.f32 %v9764_v45 }
0x3432   :  { %v10970_v2 = vpop.eup %10969 }
0x3433   :  { %v9767_v8 = vmul.f32 %v10970_v2, %v9751_v11 }
0x3434   :  { %v10972_v54 = vpop.eup %10971 }
0x3435   :  { %v9768_v17 = vmul.f32 %v10972_v54, %v9752_v50  ;;  %v9773_v6 = vmul.f32 %v10482_v5, %v9767_v8 }
0x3437   :  { %v9774_v44 = vmul.f32 %v10482_v5, %v9768_v17  ;;  %v9779_v56 = vadd.f32 %v10483_v1, %v9773_v6 }
0x3439   :  { %v9780_v46 = vadd.f32 %v10483_v1, %v9774_v44 }
0x343b   :  { %v9782_v41 = vpack.c.bf16 %v9780_v46, %v9779_v56 }
0x343d   :  { %10782 = vmatpush3.bf16.msra.mxu0 %v9782_v41 }
0x3440   :  { %10784 = vmatmul.mubr.msk.bf16.vlgmr.msra.gmra.mrb[236].mxu0 %vm9783_vm7, %v9781_v28 }
0x3513   :  { %v9821_v3 = vpop.f32.mrb[236].mxu0 }
0x3514   :  { %v9827_v7 = vpack.c.bf16 %v9821_v3, %v9821_v3  ;;  %v10785_v18 = vpop.f32.mrb[237].mxu0 }
0x3515   :  { %v9824_v16 = vpop.f32.mrb[238].mxu0 }
0x3516   :  { %v10786_v57 = vpop.f32.mrb[239].mxu0  ;;  %10792 = vmatmul.mubr.msk.bf16.vlgmr.msra.gmra.mrb[248].mxu1 %vm372_vm4, %v9827_v7 }
0x35e9   :  { %v9888_v60 = vpop.f32.mrb[248].mxu1 }
0x35ea   :  { %v9889_v15 = vadd.f32 %v10485_v29, %v9888_v60  ;;  %v10793_v48 = vpop.f32.mrb[249].mxu1 }
0x35eb   :  { %v9891_v47 = vpop.f32.mrb[250].mxu1 }
0x35ec   :  { %v10794_v40 = vpop.f32.mrb[251].mxu1  ;;  %9895 = vst.msk [vmem:[#allocation13] sm:$0x3] %vm9894_vm8, %v9889_v15 }
0x35ed   :  { %11129 = shalt.err (!%p11126_p10)
}
0x35ee   :  { %s11130_s18 = scalar_lea.hbm %s12667_s19, 32 }
0x35ef   :  { %p11131_p11 = scmp.ne.s32.totalorder %s12667_s19, %s11130_s18  ;;  %p11134_p12 = scmp.lt.u32.totalorder %s11130_s18, %s12667_s19 }
0x35f1   :  { %p11136_p13 = pnand %p11134_p12, %p11131_p11 }
0x35f3   :  { %11139 = shalt.err (!%p11136_p13)
}
0x35f4   :  { %9905 = dma.vmem_to_hbm [thread:$0]  %s9903_s1, 32, %s12667_s19, [#allocation4]  }
0x35f5   :  { %11148 = dma.done.wait [#allocation4], 32  }
0x35f6   :  { %11149 = vsyncadd [#allocation4], 4294967264 }
0x35f7   :  { %9909 = vsyncpa [#allocation3], 1 }
0x35f8   :  { %9910 = vsyncpa [#allocation6], 1 }
0x35f9   :  { %9911 = vsyncpa [#allocation9], 1 }
0x35fa   :  { %9912 = vsyncpa [#allocation12], 1 }
0x35fb   :  { %9913 = vsyncpa [#allocation4], 1 }

</bundles_post_ra>
